<compile_context>
chip_gen: v7x
topology: tpu7x:2x2x1
jax: 0.10.0
libtpu: 0.0.40
codegen_flags: <defaults>
</compile_context>

<pallas_src>
import functools

import jax
import jax.numpy as jnp
from jax.experimental import pallas as pl
from jax.experimental.pallas import tpu as pltpu

_LANE = 128                     # vreg lane width
_SUB = 8                        # vreg sublane width
_TILE_M = 256                   # row tile for linear / LN kernels
_VMEM_LIMIT = 32 * 1024 * 1024  # sized against v7x scoped VMEM


def _ceil_to(x, m):
    return (x + m - 1) // m * m


def _cparams():
    return pltpu.CompilerParams(dimension_semantics=("parallel",),
                                vmem_limit_bytes=_VMEM_LIMIT)


# ----------------------------- Pallas kernels ------------------------------
def _matmul_kernel(x_ref, w_ref, b_ref, o_ref, *, act):
    y = jnp.dot(x_ref[...], w_ref[...], preferred_element_type=jnp.float32)
    y = y + b_ref[...]
    if act == "relu":
        y = jnp.maximum(y, 0.0)
    o_ref[...] = y


def _matmul_res_kernel(x_ref, w_ref, b_ref, r_ref, o_ref, *, act):
    y = jnp.dot(x_ref[...], w_ref[...], preferred_element_type=jnp.float32)
    y = y + b_ref[...]
    if act == "relu":
        y = jnp.maximum(y, 0.0)
    o_ref[...] = y + r_ref[...]


def _ln_matmul_kernel(x_ref, g_ref, be_ref, w_ref, b_ref, o_ref, *,
                      c_real, eps, act):
    # LayerNorm over the (zero-padded) last axis using E[x^2] - E[x]^2 so the
    # padded lanes do not perturb the statistics; padded gamma/beta are zero.
    x = x_ref[...]
    mu = jnp.sum(x, axis=-1, keepdims=True) / c_real
    var = jnp.sum(x * x, axis=-1, keepdims=True) / c_real - mu * mu
    xn = (x - mu) * jax.lax.rsqrt(var + eps)
    xn = xn * g_ref[...] + be_ref[...]
    y = jnp.dot(xn.astype(jnp.bfloat16), w_ref[...],
                preferred_element_type=jnp.float32)
    y = y + b_ref[...]
    if act == "relu":
        y = jnp.maximum(y, 0.0)
    o_ref[...] = y


def _layernorm_kernel(x_ref, g_ref, b_ref, o_ref, *, c_real, eps):
    x = x_ref[...]
    mu = jnp.sum(x, axis=-1, keepdims=True) / c_real
    var = jnp.sum(x * x, axis=-1, keepdims=True) / c_real - mu * mu
    y = (x - mu) * jax.lax.rsqrt(var + eps)
    o_ref[...] = y * g_ref[...] + b_ref[...]


def _attention_kernel(q_ref, k_ref, v_ref, o_ref, *, scale):
    s = jnp.einsum("gqd,gkd->gqk", q_ref[...], k_ref[...],
                   preferred_element_type=jnp.float32) * scale
    s = s - jnp.max(s, axis=-1, keepdims=True)
    p = jnp.exp(s)
    inv = pl.reciprocal(jnp.sum(p, axis=-1, keepdims=True), approx=True)
    p = p * inv
    o_ref[...] = jnp.einsum("gqk,gkd->gqd", p.astype(jnp.bfloat16), v_ref[...],
                            preferred_element_type=jnp.float32)


def _softmax_bmm_kernel(a_ref, v_ref, o_ref, *, scale):
    a = a_ref[...].astype(jnp.float32) * scale
    a = a - jnp.max(a, axis=-1, keepdims=True)
    p = jnp.exp(a)
    inv = pl.reciprocal(jnp.sum(p, axis=-1, keepdims=True), approx=True)
    p = p * inv
    o_ref[...] = jnp.einsum("gij,gjd->gid", p.astype(jnp.bfloat16), v_ref[...],
                            preferred_element_type=jnp.float32)


# --------------------------- Pallas call wrappers ---------------------------
def pallas_linear(x2d, w, b=None, act=None, residual=None):
    """x2d: (M, K), w: (K, N) -> (M, N) f32.  bf16 MXU matmul, M-tiled grid."""
    M, K = x2d.shape
    N = w.shape[1]
    Kp = _ceil_to(K, _LANE)
    Np = _ceil_to(N, _LANE)
    TM = min(_TILE_M, _ceil_to(M, _SUB))
    Mp = _ceil_to(M, TM)
    xp = jnp.pad(x2d.astype(jnp.bfloat16), ((0, Mp - M), (0, Kp - K)))
    wp = jnp.pad(w.astype(jnp.bfloat16), ((0, Kp - K), (0, Np - N)))
    if b is None:
        b = jnp.zeros((N,), jnp.float32)
    bp = jnp.pad(b.astype(jnp.float32).reshape(1, N), ((0, 0), (0, Np - N)))
    grid = (Mp // TM,)
    if residual is None:
        out = pl.pallas_call(
            functools.partial(_matmul_kernel, act=act),
            out_shape=jax.ShapeDtypeStruct((Mp, Np), jnp.float32),
            grid=grid,
            in_specs=[pl.BlockSpec((TM, Kp), lambda i: (i, 0)),
                      pl.BlockSpec((Kp, Np), lambda i: (0, 0)),
                      pl.BlockSpec((1, Np), lambda i: (0, 0))],
            out_specs=pl.BlockSpec((TM, Np), lambda i: (i, 0)),
            compiler_params=_cparams(),
        )(xp, wp, bp)
    else:
        rp = jnp.pad(residual.astype(jnp.float32), ((0, Mp - M), (0, Np - N)))
        out = pl.pallas_call(
            functools.partial(_matmul_res_kernel, act=act),
            out_shape=jax.ShapeDtypeStruct((Mp, Np), jnp.float32),
            grid=grid,
            in_specs=[pl.BlockSpec((TM, Kp), lambda i: (i, 0)),
                      pl.BlockSpec((Kp, Np), lambda i: (0, 0)),
                      pl.BlockSpec((1, Np), lambda i: (0, 0)),
                      pl.BlockSpec((TM, Np), lambda i: (i, 0))],
            out_specs=pl.BlockSpec((TM, Np), lambda i: (i, 0)),
            compiler_params=_cparams(),
        )(xp, wp, bp, rp)
    return out[:M, :N]


def pallas_ln_linear(x2d, gamma, beta, w, b=None, act=None, eps=1e-5):
    """Fused LayerNorm(last axis) + linear.  x2d: (M, K) f32, w: (K, N)."""
    M, K = x2d.shape
    N = w.shape[1]
    Kp = _ceil_to(K, _LANE)
    Np = _ceil_to(N, _LANE)
    TM = min(_TILE_M, _ceil_to(M, _SUB))
    Mp = _ceil_to(M, TM)
    xp = jnp.pad(x2d.astype(jnp.float32), ((0, Mp - M), (0, Kp - K)))
    gp = jnp.pad(gamma.astype(jnp.float32).reshape(1, K), ((0, 0), (0, Kp - K)))
    bep = jnp.pad(beta.astype(jnp.float32).reshape(1, K), ((0, 0), (0, Kp - K)))
    wp = jnp.pad(w.astype(jnp.bfloat16), ((0, Kp - K), (0, Np - N)))
    if b is None:
        b = jnp.zeros((N,), jnp.float32)
    bp = jnp.pad(b.astype(jnp.float32).reshape(1, N), ((0, 0), (0, Np - N)))
    out = pl.pallas_call(
        functools.partial(_ln_matmul_kernel, c_real=float(K), eps=eps, act=act),
        out_shape=jax.ShapeDtypeStruct((Mp, Np), jnp.float32),
        grid=(Mp // TM,),
        in_specs=[pl.BlockSpec((TM, Kp), lambda i: (i, 0)),
                  pl.BlockSpec((1, Kp), lambda i: (0, 0)),
                  pl.BlockSpec((1, Kp), lambda i: (0, 0)),
                  pl.BlockSpec((Kp, Np), lambda i: (0, 0)),
                  pl.BlockSpec((1, Np), lambda i: (0, 0))],
        out_specs=pl.BlockSpec((TM, Np), lambda i: (i, 0)),
        compiler_params=_cparams(),
    )(xp, gp, bep, wp, bp)
    return out[:M, :N]


def pallas_layernorm(x2d, g, b, eps=1e-5):
    M, C = x2d.shape
    Cp = _ceil_to(C, _LANE)
    TM = min(_TILE_M, _ceil_to(M, _SUB))
    Mp = _ceil_to(M, TM)
    xp = jnp.pad(x2d.astype(jnp.float32), ((0, Mp - M), (0, Cp - C)))
    gp = jnp.pad(g.astype(jnp.float32).reshape(1, C), ((0, 0), (0, Cp - C)))
    bp = jnp.pad(b.astype(jnp.float32).reshape(1, C), ((0, 0), (0, Cp - C)))
    out = pl.pallas_call(
        functools.partial(_layernorm_kernel, c_real=float(C), eps=eps),
        out_shape=jax.ShapeDtypeStruct((Mp, Cp), jnp.float32),
        grid=(Mp // TM,),
        in_specs=[pl.BlockSpec((TM, Cp), lambda i: (i, 0)),
                  pl.BlockSpec((1, Cp), lambda i: (0, 0)),
                  pl.BlockSpec((1, Cp), lambda i: (0, 0))],
        out_specs=pl.BlockSpec((TM, Cp), lambda i: (i, 0)),
        compiler_params=_cparams(),
    )(xp, gp, bp)
    return out[:M, :C]


def pallas_attention(q, k, v, scale, tile_g=8):
    """q: (G, Nq, D), k/v: (G, Nk, D) -> softmax(scale*q@k^T) @ v (f32)."""
    G, Nq, D = q.shape
    Nk = k.shape[1]
    TG = min(tile_g, G)
    Gp = _ceil_to(G, TG)
    pad3 = lambda t: jnp.pad(t.astype(jnp.bfloat16),
                             ((0, Gp - G), (0, 0), (0, 0)))
    out = pl.pallas_call(
        functools.partial(_attention_kernel, scale=scale),
        out_shape=jax.ShapeDtypeStruct((Gp, Nq, D), jnp.float32),
        grid=(Gp // TG,),
        in_specs=[pl.BlockSpec((TG, Nq, D), lambda i: (i, 0, 0)),
                  pl.BlockSpec((TG, Nk, D), lambda i: (i, 0, 0)),
                  pl.BlockSpec((TG, Nk, D), lambda i: (i, 0, 0))],
        out_specs=pl.BlockSpec((TG, Nq, D), lambda i: (i, 0, 0)),
        compiler_params=_cparams(),
    )(pad3(q), pad3(k), pad3(v))
    return out[:G]


def pallas_softmax_bmm(a, v, scale, tile_g=32):
    """a: (G, K2, K2) outlook logits,  v: (G, K2, D) -> softmax(scale*a) @ v."""
    G, K2, _ = a.shape
    D = v.shape[2]
    TG = min(tile_g, G)
    Gp = _ceil_to(G, TG)
    pad3 = lambda t: jnp.pad(t.astype(jnp.bfloat16),
                             ((0, Gp - G), (0, 0), (0, 0)))
    out = pl.pallas_call(
        functools.partial(_softmax_bmm_kernel, scale=scale),
        out_shape=jax.ShapeDtypeStruct((Gp, K2, D), jnp.float32),
        grid=(Gp // TG,),
        in_specs=[pl.BlockSpec((TG, K2, K2), lambda i: (i, 0, 0)),
                  pl.BlockSpec((TG, K2, D), lambda i: (i, 0, 0))],
        out_specs=pl.BlockSpec((TG, K2, D), lambda i: (i, 0, 0)),
        compiler_params=_cparams(),
    )(pad3(a), pad3(v))
    return out[:G]


# ------------------------------ JAX glue ops --------------------------------
def linear(x, w, b=None, act=None, residual=None):
    """Linear over last axis of an arbitrarily shaped tensor."""
    shp = x.shape
    x2 = x.reshape(-1, shp[-1])
    r2 = None if residual is None else residual.reshape(-1, w.shape[1])
    y = pallas_linear(x2, w, b, act=act, residual=r2)
    return y.reshape(*shp[:-1], w.shape[1])


def layer_norm(x, p, eps=1e-5):
    shp = x.shape
    y = pallas_layernorm(x.reshape(-1, shp[-1]), p["g"], p["b"], eps)
    return y.reshape(shp)


def gelu_exact(x):
    # matches torch.nn.GELU (erf form)
    return 0.5 * x * (1.0 + jax.lax.erf(x / jnp.sqrt(2.0).astype(x.dtype)))


def fold_bn(w, b, bn, eps=1e-5):
    """Fold eval-mode BatchNorm into the preceding conv weights/bias."""
    scale = bn["gamma"] / jnp.sqrt(bn["var"] + eps)
    w2 = w * scale[:, None, None, None]
    if b is None:
        b = jnp.zeros((w.shape[0],), jnp.float32)
    b2 = (b - bn["mean"]) * scale + bn["beta"]
    return w2, b2


def conv2d(x, w, b=None, stride=1, padding=0, act=None):
    """NCHW conv via im2col + tiled Pallas matmul. w: (Cout, Cin, KH, KW)."""
    B, C, H, W = x.shape
    Cout, Cin, KH, KW = w.shape
    xp = jnp.pad(x, ((0, 0), (0, 0), (padding, padding), (padding, padding)))
    Ho = (H + 2 * padding - KH) // stride + 1
    Wo = (W + 2 * padding - KW) // stride + 1
    cols = []
    for i in range(KH):
        for j in range(KW):
            cols.append(xp[:, :, i:i + stride * Ho:stride, j:j + stride * Wo:stride])
    patches = jnp.stack(cols, axis=2)                        # B, C, KH*KW, Ho, Wo
    patches = patches.reshape(B, C * KH * KW, Ho * Wo)
    patches = patches.transpose(0, 2, 1).reshape(B * Ho * Wo, C * KH * KW)
    wmat = w.reshape(Cout, Cin * KH * KW).T                  # (Cin*KH*KW, Cout)
    y = pallas_linear(patches, wmat, b, act=act)
    return y.reshape(B, Ho, Wo, Cout).transpose(0, 3, 1, 2)  # NCHW


def unfold_nchw(x, K, padding, stride):
    """PyTorch nn.Unfold: -> (B, C*K*K, L), channel-major / kernel-minor."""
    B, C, H, W = x.shape
    xp = jnp.pad(x, ((0, 0), (0, 0), (padding, padding), (padding, padding)))
    Ho = (H + 2 * padding - K) // stride + 1
    Wo = (W + 2 * padding - K) // stride + 1
    cols = []
    for i in range(K):
        for j in range(K):
            cols.append(xp[:, :, i:i + stride * Ho:stride, j:j + stride * Wo:stride])
    patches = jnp.stack(cols, axis=2)                        # B, C, K*K, Ho, Wo
    return patches.reshape(B, C * K * K, Ho * Wo), Ho, Wo


def fold_nchw(patches, H, W, K, padding, stride):
    """Adjoint of unfold_nchw (PyTorch F.fold): sums overlapping patches."""
    B = patches.shape[0]
    C = patches.shape[1] // (K * K)
    Ho = (H + 2 * padding - K) // stride + 1
    Wo = (W + 2 * padding - K) // stride + 1
    p = patches.reshape(B, C, K * K, Ho, Wo)
    out = jnp.zeros((B, C, H + 2 * padding, W + 2 * padding), jnp.float32)
    idx = 0
    for i in range(K):
        for j in range(K):
            out = out.at[:, :, i:i + stride * Ho:stride,
                         j:j + stride * Wo:stride].add(p[:, :, idx])
            idx += 1
    return out[:, :, padding:padding + H, padding:padding + W]


def avg_pool_bhwc(x, s):
    B, H, W, C = x.shape
    return x.reshape(B, H // s, s, W // s, s, C).mean(axis=(2, 4))


# ------------------------------ VOLO modules --------------------------------
def mlp_block(x, pnorm, pmlp):
    """x + fc2(gelu(fc1(LN(x)))), with LN+fc1 and fc2+residual fused."""
    shp = x.shape
    x2 = x.reshape(-1, shp[-1])
    h = pallas_ln_linear(x2, pnorm["g"], pnorm["b"],
                         pmlp["fc1_w"], pmlp["fc1_b"])
    h = gelu_exact(h)
    y = pallas_linear(h, pmlp["fc2_w"], pmlp["fc2_b"], residual=x2)
    return y.reshape(shp)


def outlook_attention(x, p, num_heads, K, padding, stride, residual):
    # x: (B, H, W, C) already LayerNorm-ed; residual is the pre-norm tensor.
    B, H, W, C = x.shape
    hd = C // num_heads
    scale = hd ** -0.5
    v = linear(x, p["v_w"])                                   # B,H,W,C (no bias)
    v = v.transpose(0, 3, 1, 2)                               # B,C,H,W
    vu, h, w = unfold_nchw(v, K, padding, stride)             # B, C*K*K, h*w
    vu = vu.reshape(B, num_heads, hd, K * K, h * w).transpose(0, 1, 4, 3, 2)
    # attention weights from average-pooled feature map
    xpool = avg_pool_bhwc(x, stride)                          # B, h, w, C
    a = linear(xpool, p["attn_w"], p["attn_b"])               # B,h,w, K^4*nh
    a = a.reshape(B, h * w, num_heads, K * K, K * K).transpose(0, 2, 1, 3, 4)
    G = B * num_heads * h * w
    out = pallas_softmax_bmm(a.reshape(G, K * K, K * K),
                             vu.reshape(G, K * K, hd), scale)  # G, K2, hd
    out = out.reshape(B, num_heads, h * w, K * K, hd)
    out = out.transpose(0, 1, 4, 3, 2).reshape(B, C * K * K, h * w)
    out = fold_nchw(out, H, W, K, padding, stride)            # B,C,H,W
    out = out.transpose(0, 2, 3, 1)
    return linear(out, p["proj_w"], p["proj_b"], residual=residual)


def outlooker_block(x, p, num_heads, K, padding, stride):
    xn = layer_norm(x, p["norm1"])
    x = outlook_attention(xn, p["attn"], num_heads, K, padding, stride,
                          residual=x)
    x = mlp_block(x, p["norm2"], p["mlp"])
    return x


def transformer_block(x, p, num_heads):
    # x: (B, H, W, C)
    B, H, W, C = x.shape
    hd = C // num_heads
    scale = hd ** -0.5
    N = H * W
    x2 = x.reshape(B * N, C)
    qkv = pallas_ln_linear(x2, p["norm1"]["g"], p["norm1"]["b"],
                           p["attn"]["qkv_w"])                 # fused LN+qkv
    qkv = qkv.reshape(B, N, 3, num_heads, hd).transpose(2, 0, 3, 1, 4)
    q, k, v = qkv[0], qkv[1], qkv[2]
    G = B * num_heads
    o = pallas_attention(q.reshape(G, N, hd), k.reshape(G, N, hd),
                         v.reshape(G, N, hd), scale)
    o = o.reshape(B, num_heads, N, hd).transpose(0, 2, 1, 3).reshape(B * N, C)
    x2 = pallas_linear(o, p["attn"]["proj_w"], p["attn"]["proj_b"],
                       residual=x2)
    x2 = mlp_block(x2, p["norm2"], p["mlp"])
    return x2.reshape(B, H, W, C)


def class_block(x, p, num_heads):
    # x: (B, N, C) with cls token at position 0
    B, N, C = x.shape
    hd = C // num_heads
    scale = hd ** -0.5
    xn = layer_norm(x, p["norm1"])
    kv = linear(xn, p["attn"]["kv_w"]).reshape(B, N, 2, num_heads, hd)
    kv = kv.transpose(2, 0, 3, 1, 4)
    k, v = kv[0], kv[1]                                       # B, nh, N, hd
    q = linear(xn[:, :1], p["attn"]["q_w"]).reshape(B, 1, num_heads, hd)
    q = q.transpose(0, 2, 1, 3)
    G = B * num_heads
    o = pallas_attention(q.reshape(G, 1, hd), k.reshape(G, N, hd),
                         v.reshape(G, N, hd), scale)
    cls_attn = o.reshape(B, num_heads, 1, hd).transpose(0, 2, 1, 3)
    cls_attn = cls_attn.reshape(B, 1, C)
    cls = linear(cls_attn, p["attn"]["proj_w"], p["attn"]["proj_b"],
                 residual=x[:, :1])
    cls = mlp_block(cls, p["norm2"], p["mlp"])
    return jnp.concatenate([cls, x[:, 1:]], axis=1)


def patch_embed(x, p):
    # BatchNorm (eval) folded into conv weights, ReLU fused into the matmul.
    w1, b1 = fold_bn(p["conv1"]["w"], None, p["bn1"])
    x = conv2d(x, w1, b1, stride=2, padding=3, act="relu")
    w2, b2 = fold_bn(p["conv2"]["w"], None, p["bn2"])
    x = conv2d(x, w2, b2, stride=1, padding=1, act="relu")
    w3, b3 = fold_bn(p["conv3"]["w"], None, p["bn3"])
    x = conv2d(x, w3, b3, stride=1, padding=1, act="relu")
    x = conv2d(x, p["proj"]["w"], p["proj"]["b"], stride=2, padding=0)
    return x                                                  # B, C1, g1, g1


def downsample(x, p):
    # x: (B, H, W, C1) -> (B, H/2, W/2, C2)
    y = conv2d(x.transpose(0, 3, 1, 2), p["w"], p["b"], stride=2, padding=0)
    return y.transpose(0, 2, 3, 1)


def volo_forward(x, params, cfg):
    """Eval-mode VOLO forward. x: NCHW float32."""
    nh1, nh2 = cfg["num_heads"]
    K, pad, st = cfg["ok_kernel"], cfg["ok_padding"], cfg["ok_stride"]
    # step 1: patch embedding
    x = patch_embed(x, params["patch_embed"]).transpose(0, 2, 3, 1)   # B,H,W,C1
    # step 2: token learning
    for blk in params["stage1"]:
        x = outlooker_block(x, blk, nh1, K, pad, st)
    x = downsample(x, params["downsample"])
    x = x + params["pos_embed"]
    for blk in params["stage2"]:
        x = transformer_block(x, blk, nh2)
    B, H, W, C = x.shape
    x = x.reshape(B, H * W, C)
    # step 3: class-attention post network
    cls = jnp.broadcast_to(params["cls_token"], (B, 1, C))
    x = jnp.concatenate([cls, x], axis=1)
    for blk in params["post"]:
        x = class_block(x, blk, nh2)
    x = layer_norm(x, params["norm"])
    x_cls = linear(x[:, 0], params["head_w"], params["head_b"])       # (B, nc)
    x_aux = linear(x[:, 1:], params["aux_w"], params["aux_b"])        # (B, N, nc)
    return x_cls + 0.5 * jnp.max(x_aux, axis=1)


# ------------------------------ parameter init ------------------------------
class PRNG:
    def __init__(self, key):
        self._key = key

    def next(self):
        self._key, sub = jax.random.split(self._key)
        return sub


def _nrm(rng, shape, std=0.02):
    return jax.random.normal(rng.next(), shape, jnp.float32) * std


def _zeros(*shape):
    return jnp.zeros(shape, jnp.float32)


def _ones(*shape):
    return jnp.ones(shape, jnp.float32)


def _ln_p(c):
    return {"g": _ones(c), "b": _zeros(c)}


def _bn_p(c):
    return {"gamma": _ones(c), "beta": _zeros(c), "mean": _zeros(c), "var": _ones(c)}


def _mlp_p(rng, c, hidden):
    return {"fc1_w": _nrm(rng, (c, hidden)), "fc1_b": _zeros(hidden),
            "fc2_w": _nrm(rng, (hidden, c)), "fc2_b": _zeros(c)}


def init_params(rng, cfg):
    d1, d2 = cfg["embed_dims"]
    nh1, nh2 = cfg["num_heads"]
    hid = cfg["stem_hidden"]
    K = cfg["ok_kernel"]
    nc = cfg["num_classes"]
    mh1 = int(d1 * cfg["mlp_ratio"])
    mh2 = int(d2 * cfg["mlp_ratio"])
    proj_k = cfg["patch_size"] // cfg["stem_stride"]
    g1 = cfg["img"] // cfg["patch_size"]
    g2 = g1 // 2

    P = {}
    P["patch_embed"] = {
        "conv1": {"w": _nrm(rng, (hid, cfg["in_chans"], 7, 7))}, "bn1": _bn_p(hid),
        "conv2": {"w": _nrm(rng, (hid, hid, 3, 3))}, "bn2": _bn_p(hid),
        "conv3": {"w": _nrm(rng, (hid, hid, 3, 3))}, "bn3": _bn_p(hid),
        "proj": {"w": _nrm(rng, (d1, hid, proj_k, proj_k)), "b": _zeros(d1)},
    }
    P["stage1"] = []
    for _ in range(cfg["outlooker_layers"]):
        P["stage1"].append({
            "norm1": _ln_p(d1),
            "attn": {"v_w": _nrm(rng, (d1, d1)),
                     "attn_w": _nrm(rng, (d1, K ** 4 * nh1)),
                     "attn_b": _zeros(K ** 4 * nh1),
                     "proj_w": _nrm(rng, (d1, d1)), "proj_b": _zeros(d1)},
            "norm2": _ln_p(d1),
            "mlp": _mlp_p(rng, d1, mh1)})
    P["downsample"] = {"w": _nrm(rng, (d2, d1, 2, 2)), "b": _zeros(d2)}
    P["pos_embed"] = _nrm(rng, (1, g2, g2, d2))
    P["stage2"] = []
    for _ in range(cfg["transformer_layers"]):
        P["stage2"].append({
            "norm1": _ln_p(d2),
            "attn": {"qkv_w": _nrm(rng, (d2, 3 * d2)),
                     "proj_w": _nrm(rng, (d2, d2)), "proj_b": _zeros(d2)},
            "norm2": _ln_p(d2),
            "mlp": _mlp_p(rng, d2, mh2)})
    P["cls_token"] = _nrm(rng, (1, 1, d2))
    P["post"] = []
    for _ in range(cfg["post_layers"]):
        P["post"].append({
            "norm1": _ln_p(d2),
            "attn": {"kv_w": _nrm(rng, (d2, 2 * d2)), "q_w": _nrm(rng, (d2, d2)),
                     "proj_w": _nrm(rng, (d2, d2)), "proj_b": _zeros(d2)},
            "norm2": _ln_p(d2),
            "mlp": _mlp_p(rng, d2, mh2)})
    P["norm"] = _ln_p(d2)
    P["head_w"] = _nrm(rng, (d2, nc))
    P["head_b"] = _zeros(nc)
    P["aux_w"] = _nrm(rng, (d2, nc))
    P["aux_b"] = _zeros(nc)
    return P


# ----------------------------------- main ------------------------------------
CFG = dict(
    img=32, in_chans=3, stem_hidden=16,
    patch_size=4, stem_stride=2,
    embed_dims=(32, 64), num_heads=(2, 4),
    outlooker_layers=2, transformer_layers=2, post_layers=2,
    mlp_ratio=2.0, num_classes=10,
    ok_kernel=3, ok_padding=1, ok_stride=2,
)

if __name__ == "__main__":
    key = jax.random.PRNGKey(0)
    pkey, xkey = jax.random.split(key)
    params = init_params(PRNG(pkey), CFG)
    x = jax.random.normal(xkey, (2, CFG["in_chans"], CFG["img"], CFG["img"]),
                          jnp.float32)
    fwd = jax.jit(functools.partial(volo_forward, cfg=CFG))
    out = fwd(x, params)
    jax.block_until_ready(out)
    assert out.shape == (2, CFG["num_classes"])
    assert bool(jnp.all(jnp.isfinite(out)))
    print("KERNEL_OK")
</pallas_src>

<mosaic_0001>
module attributes {stable_mosaic.version = 11 : i64} {
  func.func @_matmul_kernel(%arg0: i32, %arg1: memref<256x256xbf16, #tpu.memory_space<vmem>>, %arg2: memref<256x128xbf16, #tpu.memory_space<vmem>>, %arg3: memref<1x128xf32, #tpu.memory_space<vmem>>, %arg4: memref<256x128xf32, #tpu.memory_space<vmem>>) attributes {dimension_semantics = [#tpu.dimension_semantics<parallel>], iteration_bounds = array<i64: 2>, scalar_prefetch = 0 : i64, scratch_operands = 0 : i64, tpu.core_type = #tpu.core_type<tc>, window_params = [{transform_indices = @transform_0, window_bounds = array<i64: 256, 256>}, {pipeline_mode = #tpu.pipeline_mode<synchronous>, transform_indices = @transform_1, window_bounds = array<i64: 256, 128>}, {pipeline_mode = #tpu.pipeline_mode<synchronous>, transform_indices = @transform_2, window_bounds = array<i64: 1, 128>}, {transform_indices = @transform_3, window_bounds = array<i64: 256, 128>}]} {
    %c0 = arith.constant 0 : index
    %c0_0 = arith.constant 0 : index
    %0 = vector.load %arg1[%c0, %c0_0] : memref<256x256xbf16, #tpu.memory_space<vmem>>, vector<256x256xbf16>
    %c0_1 = arith.constant 0 : index
    %c0_2 = arith.constant 0 : index
    %1 = vector.load %arg2[%c0_1, %c0_2] : memref<256x128xbf16, #tpu.memory_space<vmem>>, vector<256x128xbf16>
    %cst = arith.constant dense<0.000000e+00> : vector<256x128xf32>
    %2 = tpu.matmul %0, %1, %cst {dimension_numbers = #tpu.dot_dimension_numbers<[1], [0], [0], [1], [0, 0, 1, 1], [], []>} : vector<256x256xbf16>, vector<256x128xbf16>, vector<256x128xf32> -> vector<256x128xf32>
    %c0_3 = arith.constant 0 : index
    %c0_4 = arith.constant 0 : index
    %3 = vector.load %arg3[%c0_3, %c0_4] : memref<1x128xf32, #tpu.memory_space<vmem>>, vector<1x128xf32>
    %4 = vector.broadcast %3 : vector<1x128xf32> to vector<256x128xf32>
    %5 = arith.addf %2, %4 : vector<256x128xf32>
    %cst_5 = arith.constant 0.000000e+00 : f32
    %6 = vector.broadcast %cst_5 : f32 to vector<256x128xf32>
    %7 = arith.maximumf %5, %6 : vector<256x128xf32>
    %c0_6 = arith.constant 0 : index
    %c0_7 = arith.constant 0 : index
    %8 = vector.load %arg4[%c0_6, %c0_7] : memref<256x128xf32, #tpu.memory_space<vmem>>, vector<256x128xf32>
    tpu.vector_store %arg4[%c0_6, %c0_7], %7 {strides = array<i32>} : memref<256x128xf32, #tpu.memory_space<vmem>>, vector<256x128xf32>,
    return
  }
  func.func @transform_0(%arg0: i32) -> (i32, i32) {
    %c0_i32 = arith.constant 0 : i32
    %c0_i32_0 = arith.constant 0 : i32
    return %arg0, %c0_i32 : i32, i32
  }
  func.func @transform_1(%arg0: i32) -> (i32, i32) {
    %c0_i32 = arith.constant 0 : i32
    %c0_i32_0 = arith.constant 0 : i32
    %c0_i32_1 = arith.constant 0 : i32
    return %c0_i32, %c0_i32_0 : i32, i32
  }
  func.func @transform_2(%arg0: i32) -> (i32, i32) {
    %c0_i32 = arith.constant 0 : i32
    %c0_i32_0 = arith.constant 0 : i32
    %c0_i32_1 = arith.constant 0 : i32
    return %c0_i32, %c0_i32_0 : i32, i32
  }
  func.func @transform_3(%arg0: i32) -> (i32, i32) {
    %c0_i32 = arith.constant 0 : i32
    %c0_i32_0 = arith.constant 0 : i32
    return %arg0, %c0_i32 : i32, i32
  }
}

module attributes {stable_mosaic.version = 11 : i64} {
  func.func @_matmul_kernel(%arg0: i32, %arg1: memref<128x128xbf16, #tpu.memory_space<vmem>>, %arg2: memref<128x128xbf16, #tpu.memory_space<vmem>>, %arg3: memref<1x128xf32, #tpu.memory_space<vmem>>, %arg4: memref<128x128xf32, #tpu.memory_space<vmem>>) attributes {dimension_semantics = [#tpu.dimension_semantics<parallel>], iteration_bounds = array<i64: 1>, scalar_prefetch = 0 : i64, scratch_operands = 0 : i64, tpu.core_type = #tpu.core_type<tc>, window_params = [{transform_indices = @transform_0, window_bounds = array<i64: 128, 128>}, {pipeline_mode = #tpu.pipeline_mode<synchronous>, transform_indices = @transform_1, window_bounds = array<i64: 128, 128>}, {pipeline_mode = #tpu.pipeline_mode<synchronous>, transform_indices = @transform_2, window_bounds = array<i64: 1, 128>}, {transform_indices = @transform_3, window_bounds = array<i64: 128, 128>}]} {
    %c0 = arith.constant 0 : index
    %c0_0 = arith.constant 0 : index
    %0 = vector.load %arg1[%c0, %c0_0] : memref<128x128xbf16, #tpu.memory_space<vmem>>, vector<128x128xbf16>
    %c0_1 = arith.constant 0 : index
    %c0_2 = arith.constant 0 : index
    %1 = vector.load %arg2[%c0_1, %c0_2] : memref<128x128xbf16, #tpu.memory_space<vmem>>, vector<128x128xbf16>
    %cst = arith.constant dense<0.000000e+00> : vector<128x128xf32>
    %2 = tpu.matmul %0, %1, %cst {dimension_numbers = #tpu.dot_dimension_numbers<[1], [0], [0], [1], [0, 0, 1, 1], [], []>} : vector<128x128xbf16>, vector<128x128xbf16>, vector<128x128xf32> -> vector<128x128xf32>
    %c0_3 = arith.constant 0 : index
    %c0_4 = arith.constant 0 : index
    %3 = vector.load %arg3[%c0_3, %c0_4] : memref<1x128xf32, #tpu.memory_space<vmem>>, vector<1x128xf32>
    %4 = vector.broadcast %3 : vector<1x128xf32> to vector<128x128xf32>
    %5 = arith.addf %2, %4 : vector<128x128xf32>
    %c0_5 = arith.constant 0 : index
    %c0_6 = arith.constant 0 : index
    %6 = vector.load %arg4[%c0_5, %c0_6] : memref<128x128xf32, #tpu.memory_space<vmem>>, vector<128x128xf32>
    tpu.vector_store %arg4[%c0_5, %c0_6], %5 {strides = array<i32>} : memref<128x128xf32, #tpu.memory_space<vmem>>, vector<128x128xf32>,
    return
  }
  func.func @transform_0(%arg0: i32) -> (i32, i32) {
    %c0_i32 = arith.constant 0 : i32
    %c0_i32_0 = arith.constant 0 : i32
    return %arg0, %c0_i32 : i32, i32
  }
  func.func @transform_1(%arg0: i32) -> (i32, i32) {
    %c0_i32 = arith.constant 0 : i32
    %c0_i32_0 = arith.constant 0 : i32
    %c0_i32_1 = arith.constant 0 : i32
    return %c0_i32, %c0_i32_0 : i32, i32
  }
  func.func @transform_2(%arg0: i32) -> (i32, i32) {
    %c0_i32 = arith.constant 0 : i32
    %c0_i32_0 = arith.constant 0 : i32
    %c0_i32_1 = arith.constant 0 : i32
    return %c0_i32, %c0_i32_0 : i32, i32
  }
  func.func @transform_3(%arg0: i32) -> (i32, i32) {
    %c0_i32 = arith.constant 0 : i32
    %c0_i32_0 = arith.constant 0 : i32
    return %arg0, %c0_i32 : i32, i32
  }
}

module attributes {stable_mosaic.version = 11 : i64} {
  func.func @_layernorm_kernel(%arg0: i32, %arg1: memref<128x128xf32, #tpu.memory_space<vmem>>, %arg2: memref<1x128xf32, #tpu.memory_space<vmem>>, %arg3: memref<1x128xf32, #tpu.memory_space<vmem>>, %arg4: memref<128x128xf32, #tpu.memory_space<vmem>>) attributes {dimension_semantics = [#tpu.dimension_semantics<parallel>], iteration_bounds = array<i64: 1>, scalar_prefetch = 0 : i64, scratch_operands = 0 : i64, tpu.core_type = #tpu.core_type<tc>, window_params = [{transform_indices = @transform_0, window_bounds = array<i64: 128, 128>}, {pipeline_mode = #tpu.pipeline_mode<synchronous>, transform_indices = @transform_1, window_bounds = array<i64: 1, 128>}, {pipeline_mode = #tpu.pipeline_mode<synchronous>, transform_indices = @transform_2, window_bounds = array<i64: 1, 128>}, {transform_indices = @transform_3, window_bounds = array<i64: 128, 128>}]} {
    %c0 = arith.constant 0 : index
    %c0_0 = arith.constant 0 : index
    %0 = vector.load %arg1[%c0, %c0_0] : memref<128x128xf32, #tpu.memory_space<vmem>>, vector<128x128xf32>
    %cst = arith.constant dense<0.000000e+00> : vector<128xf32>
    %1 = vector.multi_reduction <add>, %0, %cst [1] : vector<128x128xf32> to vector<128xf32>
    %2 = vector.shape_cast %1 : vector<128xf32> to vector<128x1xf32>
    %cst_1 = arith.constant 3.200000e+01 : f32
    %3 = vector.broadcast %cst_1 : f32 to vector<128x1xf32>
    %4 = arith.divf %2, %3 : vector<128x1xf32>
    %5 = arith.mulf %0, %0 : vector<128x128xf32>
    %cst_2 = arith.constant dense<0.000000e+00> : vector<128xf32>
    %6 = vector.multi_reduction <add>, %5, %cst_2 [1] : vector<128x128xf32> to vector<128xf32>
    %7 = vector.shape_cast %6 : vector<128xf32> to vector<128x1xf32>
    %cst_3 = arith.constant 3.200000e+01 : f32
    %8 = vector.broadcast %cst_3 : f32 to vector<128x1xf32>
    %9 = arith.divf %7, %8 : vector<128x1xf32>
    %10 = arith.mulf %4, %4 : vector<128x1xf32>
    %11 = arith.subf %9, %10 : vector<128x1xf32>
    %12 = vector.broadcast %4 : vector<128x1xf32> to vector<128x128xf32>
    %13 = arith.subf %0, %12 : vector<128x128xf32>
    %cst_4 = arith.constant 9.99999974E-6 : f32
    %14 = vector.broadcast %cst_4 : f32 to vector<128x1xf32>
    %15 = arith.addf %11, %14 : vector<128x1xf32>
    %16 = math.rsqrt %15 : vector<128x1xf32>
    %17 = vector.broadcast %16 : vector<128x1xf32> to vector<128x128xf32>
    %18 = arith.mulf %13, %17 : vector<128x128xf32>
    %c0_5 = arith.constant 0 : index
    %c0_6 = arith.constant 0 : index
    %19 = vector.load %arg2[%c0_5, %c0_6] : memref<1x128xf32, #tpu.memory_space<vmem>>, vector<1x128xf32>
    %20 = vector.broadcast %19 : vector<1x128xf32> to vector<128x128xf32>
    %21 = arith.mulf %18, %20 : vector<128x128xf32>
    %c0_7 = arith.constant 0 : index
    %c0_8 = arith.constant 0 : index
    %22 = vector.load %arg3[%c0_7, %c0_8] : memref<1x128xf32, #tpu.memory_space<vmem>>, vector<1x128xf32>
    %23 = vector.broadcast %22 : vector<1x128xf32> to vector<128x128xf32>
    %24 = arith.addf %21, %23 : vector<128x128xf32>
    %c0_9 = arith.constant 0 : index
    %c0_10 = arith.constant 0 : index
    %25 = vector.load %arg4[%c0_9, %c0_10] : memref<128x128xf32, #tpu.memory_space<vmem>>, vector<128x128xf32>
    tpu.vector_store %arg4[%c0_9, %c0_10], %24 {strides = array<i32>} : memref<128x128xf32, #tpu.memory_space<vmem>>, vector<128x128xf32>,
    return
  }
  func.func @transform_0(%arg0: i32) -> (i32, i32) {
    %c0_i32 = arith.constant 0 : i32
    %c0_i32_0 = arith.constant 0 : i32
    return %arg0, %c0_i32 : i32, i32
  }
  func.func @transform_1(%arg0: i32) -> (i32, i32) {
    %c0_i32 = arith.constant 0 : i32
    %c0_i32_0 = arith.constant 0 : i32
    %c0_i32_1 = arith.constant 0 : i32
    return %c0_i32, %c0_i32_0 : i32, i32
  }
  func.func @transform_2(%arg0: i32) -> (i32, i32) {
    %c0_i32 = arith.constant 0 : i32
    %c0_i32_0 = arith.constant 0 : i32
    %c0_i32_1 = arith.constant 0 : i32
    return %c0_i32, %c0_i32_0 : i32, i32
  }
  func.func @transform_3(%arg0: i32) -> (i32, i32) {
    %c0_i32 = arith.constant 0 : i32
    %c0_i32_0 = arith.constant 0 : i32
    return %arg0, %c0_i32 : i32, i32
  }
}

module attributes {stable_mosaic.version = 11 : i64} {
  func.func @_matmul_kernel(%arg0: i32, %arg1: memref<32x128xbf16, #tpu.memory_space<vmem>>, %arg2: memref<128x256xbf16, #tpu.memory_space<vmem>>, %arg3: memref<1x256xf32, #tpu.memory_space<vmem>>, %arg4: memref<32x256xf32, #tpu.memory_space<vmem>>) attributes {dimension_semantics = [#tpu.dimension_semantics<parallel>], iteration_bounds = array<i64: 1>, scalar_prefetch = 0 : i64, scratch_operands = 0 : i64, tpu.core_type = #tpu.core_type<tc>, window_params = [{transform_indices = @transform_0, window_bounds = array<i64: 32, 128>}, {pipeline_mode = #tpu.pipeline_mode<synchronous>, transform_indices = @transform_1, window_bounds = array<i64: 128, 256>}, {pipeline_mode = #tpu.pipeline_mode<synchronous>, transform_indices = @transform_2, window_bounds = array<i64: 1, 256>}, {transform_indices = @transform_3, window_bounds = array<i64: 32, 256>}]} {
    %c0 = arith.constant 0 : index
    %c0_0 = arith.constant 0 : index
    %0 = vector.load %arg1[%c0, %c0_0] : memref<32x128xbf16, #tpu.memory_space<vmem>>, vector<32x128xbf16>
    %c0_1 = arith.constant 0 : index
    %c0_2 = arith.constant 0 : index
    %1 = vector.load %arg2[%c0_1, %c0_2] : memref<128x256xbf16, #tpu.memory_space<vmem>>, vector<128x256xbf16>
    %cst = arith.constant dense<0.000000e+00> : vector<32x256xf32>
    %2 = tpu.matmul %0, %1, %cst {dimension_numbers = #tpu.dot_dimension_numbers<[1], [0], [0], [1], [0, 0, 1, 1], [], []>} : vector<32x128xbf16>, vector<128x256xbf16>, vector<32x256xf32> -> vector<32x256xf32>
    %c0_3 = arith.constant 0 : index
    %c0_4 = arith.constant 0 : index
    %3 = vector.load %arg3[%c0_3, %c0_4] : memref<1x256xf32, #tpu.memory_space<vmem>>, vector<1x256xf32>
    %4 = vector.broadcast %3 : vector<1x256xf32> to vector<32x256xf32>
    %5 = arith.addf %2, %4 : vector<32x256xf32>
    %c0_5 = arith.constant 0 : index
    %c0_6 = arith.constant 0 : index
    %6 = vector.load %arg4[%c0_5, %c0_6] : memref<32x256xf32, #tpu.memory_space<vmem>>, vector<32x256xf32>
    tpu.vector_store %arg4[%c0_5, %c0_6], %5 {strides = array<i32>} : memref<32x256xf32, #tpu.memory_space<vmem>>, vector<32x256xf32>,
    return
  }
  func.func @transform_0(%arg0: i32) -> (i32, i32) {
    %c0_i32 = arith.constant 0 : i32
    %c0_i32_0 = arith.constant 0 : i32
    return %arg0, %c0_i32 : i32, i32
  }
  func.func @transform_1(%arg0: i32) -> (i32, i32) {
    %c0_i32 = arith.constant 0 : i32
    %c0_i32_0 = arith.constant 0 : i32
    %c0_i32_1 = arith.constant 0 : i32
    return %c0_i32, %c0_i32_0 : i32, i32
  }
  func.func @transform_2(%arg0: i32) -> (i32, i32) {
    %c0_i32 = arith.constant 0 : i32
    %c0_i32_0 = arith.constant 0 : i32
    %c0_i32_1 = arith.constant 0 : i32
    return %c0_i32, %c0_i32_0 : i32, i32
  }
  func.func @transform_3(%arg0: i32) -> (i32, i32) {
    %c0_i32 = arith.constant 0 : i32
    %c0_i32_0 = arith.constant 0 : i32
    return %arg0, %c0_i32 : i32, i32
  }
}

module attributes {stable_mosaic.version = 11 : i64} {
  func.func @_softmax_bmm_kernel(%arg0: i32, %arg1: memref<32x9x9xbf16, #tpu.memory_space<vmem>>, %arg2: memref<32x9x16xbf16, #tpu.memory_space<vmem>>, %arg3: memref<32x9x16xf32, #tpu.memory_space<vmem>>) attributes {dimension_semantics = [#tpu.dimension_semantics<parallel>], iteration_bounds = array<i64: 2>, scalar_prefetch = 0 : i64, scratch_operands = 0 : i64, tpu.core_type = #tpu.core_type<tc>, window_params = [{transform_indices = @transform_0, window_bounds = array<i64: 32, 9, 9>}, {transform_indices = @transform_1, window_bounds = array<i64: 32, 9, 16>}, {transform_indices = @transform_2, window_bounds = array<i64: 32, 9, 16>}]} {
    %c0 = arith.constant 0 : index
    %c0_0 = arith.constant 0 : index
    %c0_1 = arith.constant 0 : index
    %0 = vector.load %arg1[%c0, %c0_0, %c0_1] : memref<32x9x9xbf16, #tpu.memory_space<vmem>>, vector<32x9x9xbf16>
    %1 = arith.extf %0 : vector<32x9x9xbf16> to vector<32x9x9xf32>
    %cst = arith.constant 2.500000e-01 : f32
    %2 = vector.broadcast %cst : f32 to vector<32x9x9xf32>
    %3 = arith.mulf %1, %2 : vector<32x9x9xf32>
    %cst_2 = arith.constant dense<0xFF800000> : vector<32x9xf32>
    %4 = vector.multi_reduction <maximumf>, %3, %cst_2 [2] : vector<32x9x9xf32> to vector<32x9xf32>
    %5 = vector.shape_cast %4 : vector<32x9xf32> to vector<32x9x1xf32>
    %6 = vector.broadcast %5 : vector<32x9x1xf32> to vector<32x9x9xf32>
    %7 = arith.subf %3, %6 : vector<32x9x9xf32>
    %8 = math.exp %7 : vector<32x9x9xf32>
    %cst_3 = arith.constant dense<0.000000e+00> : vector<32x9xf32>
    %9 = vector.multi_reduction <add>, %8, %cst_3 [2] : vector<32x9x9xf32> to vector<32x9xf32>
    %10 = vector.shape_cast %9 : vector<32x9xf32> to vector<32x9x1xf32>
    %11 = tpu.reciprocal %10 {approx = true} : vector<32x9x1xf32> -> vector<32x9x1xf32>
    %12 = vector.broadcast %11 : vector<32x9x1xf32> to vector<32x9x9xf32>
    %13 = arith.mulf %8, %12 : vector<32x9x9xf32>
    %14 = arith.truncf %13 : vector<32x9x9xf32> to vector<32x9x9xbf16>
    %c0_4 = arith.constant 0 : index
    %c0_5 = arith.constant 0 : index
    %c0_6 = arith.constant 0 : index
    %15 = vector.load %arg2[%c0_4, %c0_5, %c0_6] : memref<32x9x16xbf16, #tpu.memory_space<vmem>>, vector<32x9x16xbf16>
    "tpu.trace_start"() <{level = 10 : i32, message = "gij,gjd->gid"}> : () -> ()
    %cst_7 = arith.constant dense<0.000000e+00> : vector<32x9x16xf32>
    %16 = tpu.matmul %14, %15, %cst_7 {dimension_numbers = #tpu.dot_dimension_numbers<[2], [1], [1], [2], [0, 0, 0, 1, 1, 2], [0], [0]>} : vector<32x9x9xbf16>, vector<32x9x16xbf16>, vector<32x9x16xf32> -> vector<32x9x16xf32>
    "tpu.trace_stop"() : () -> ()
    %c0_8 = arith.constant 0 : index
    %c0_9 = arith.constant 0 : index
    %c0_10 = arith.constant 0 : index
    %17 = vector.load %arg3[%c0_8, %c0_9, %c0_10] : memref<32x9x16xf32, #tpu.memory_space<vmem>>, vector<32x9x16xf32>
    tpu.vector_store %arg3[%c0_8, %c0_9, %c0_10], %16 {strides = array<i32>} : memref<32x9x16xf32, #tpu.memory_space<vmem>>, vector<32x9x16xf32>,
    return
  }
  func.func @transform_0(%arg0: i32) -> (i32, i32, i32) {
    %c0_i32 = arith.constant 0 : i32
    %c0_i32_0 = arith.constant 0 : i32
    %c0_i32_1 = arith.constant 0 : i32
    return %arg0, %c0_i32, %c0_i32_0 : i32, i32, i32
  }
  func.func @transform_1(%arg0: i32) -> (i32, i32, i32) {
    %c0_i32 = arith.constant 0 : i32
    %c0_i32_0 = arith.constant 0 : i32
    %c0_i32_1 = arith.constant 0 : i32
    return %arg0, %c0_i32, %c0_i32_0 : i32, i32, i32
  }
  func.func @transform_2(%arg0: i32) -> (i32, i32, i32) {
    %c0_i32 = arith.constant 0 : i32
    %c0_i32_0 = arith.constant 0 : i32
    %c0_i32_1 = arith.constant 0 : i32
    return %arg0, %c0_i32, %c0_i32_0 : i32, i32, i32
  }
}

module attributes {stable_mosaic.version = 11 : i64} {
  func.func @_matmul_res_kernel(%arg0: i32, %arg1: memref<128x128xbf16, #tpu.memory_space<vmem>>, %arg2: memref<128x128xbf16, #tpu.memory_space<vmem>>, %arg3: memref<1x128xf32, #tpu.memory_space<vmem>>, %arg4: memref<128x128xf32, #tpu.memory_space<vmem>>, %arg5: memref<128x128xf32, #tpu.memory_space<vmem>>) attributes {dimension_semantics = [#tpu.dimension_semantics<parallel>], iteration_bounds = array<i64: 1>, scalar_prefetch = 0 : i64, scratch_operands = 0 : i64, tpu.core_type = #tpu.core_type<tc>, window_params = [{transform_indices = @transform_0, window_bounds = array<i64: 128, 128>}, {pipeline_mode = #tpu.pipeline_mode<synchronous>, transform_indices = @transform_1, window_bounds = array<i64: 128, 128>}, {pipeline_mode = #tpu.pipeline_mode<synchronous>, transform_indices = @transform_2, window_bounds = array<i64: 1, 128>}, {transform_indices = @transform_3, window_bounds = array<i64: 128, 128>}, {transform_indices = @transform_4, window_bounds = array<i64: 128, 128>}]} {
    %c0 = arith.constant 0 : index
    %c0_0 = arith.constant 0 : index
    %0 = vector.load %arg1[%c0, %c0_0] : memref<128x128xbf16, #tpu.memory_space<vmem>>, vector<128x128xbf16>
    %c0_1 = arith.constant 0 : index
    %c0_2 = arith.constant 0 : index
    %1 = vector.load %arg2[%c0_1, %c0_2] : memref<128x128xbf16, #tpu.memory_space<vmem>>, vector<128x128xbf16>
    %cst = arith.constant dense<0.000000e+00> : vector<128x128xf32>
    %2 = tpu.matmul %0, %1, %cst {dimension_numbers = #tpu.dot_dimension_numbers<[1], [0], [0], [1], [0, 0, 1, 1], [], []>} : vector<128x128xbf16>, vector<128x128xbf16>, vector<128x128xf32> -> vector<128x128xf32>
    %c0_3 = arith.constant 0 : index
    %c0_4 = arith.constant 0 : index
    %3 = vector.load %arg3[%c0_3, %c0_4] : memref<1x128xf32, #tpu.memory_space<vmem>>, vector<1x128xf32>
    %4 = vector.broadcast %3 : vector<1x128xf32> to vector<128x128xf32>
    %5 = arith.addf %2, %4 : vector<128x128xf32>
    %c0_5 = arith.constant 0 : index
    %c0_6 = arith.constant 0 : index
    %6 = vector.load %arg4[%c0_5, %c0_6] : memref<128x128xf32, #tpu.memory_space<vmem>>, vector<128x128xf32>
    %7 = arith.addf %5, %6 : vector<128x128xf32>
    %c0_7 = arith.constant 0 : index
    %c0_8 = arith.constant 0 : index
    %8 = vector.load %arg5[%c0_7, %c0_8] : memref<128x128xf32, #tpu.memory_space<vmem>>, vector<128x128xf32>
    tpu.vector_store %arg5[%c0_7, %c0_8], %7 {strides = array<i32>} : memref<128x128xf32, #tpu.memory_space<vmem>>, vector<128x128xf32>,
    return
  }
  func.func @transform_0(%arg0: i32) -> (i32, i32) {
    %c0_i32 = arith.constant 0 : i32
    %c0_i32_0 = arith.constant 0 : i32
    return %arg0, %c0_i32 : i32, i32
  }
  func.func @transform_1(%arg0: i32) -> (i32, i32) {
    %c0_i32 = arith.constant 0 : i32
    %c0_i32_0 = arith.constant 0 : i32
    %c0_i32_1 = arith.constant 0 : i32
    return %c0_i32, %c0_i32_0 : i32, i32
  }
  func.func @transform_2(%arg0: i32) -> (i32, i32) {
    %c0_i32 = arith.constant 0 : i32
    %c0_i32_0 = arith.constant 0 : i32
    %c0_i32_1 = arith.constant 0 : i32
    return %c0_i32, %c0_i32_0 : i32, i32
  }
  func.func @transform_3(%arg0: i32) -> (i32, i32) {
    %c0_i32 = arith.constant 0 : i32
    %c0_i32_0 = arith.constant 0 : i32
    return %arg0, %c0_i32 : i32, i32
  }
  func.func @transform_4(%arg0: i32) -> (i32, i32) {
    %c0_i32 = arith.constant 0 : i32
    %c0_i32_0 = arith.constant 0 : i32
    return %arg0, %c0_i32 : i32, i32
  }
}

module attributes {stable_mosaic.version = 11 : i64} {
  func.func @_ln_matmul_kernel(%arg0: i32, %arg1: memref<128x128xf32, #tpu.memory_space<vmem>>, %arg2: memref<1x128xf32, #tpu.memory_space<vmem>>, %arg3: memref<1x128xf32, #tpu.memory_space<vmem>>, %arg4: memref<128x128xbf16, #tpu.memory_space<vmem>>, %arg5: memref<1x128xf32, #tpu.memory_space<vmem>>, %arg6: memref<128x128xf32, #tpu.memory_space<vmem>>) attributes {dimension_semantics = [#tpu.dimension_semantics<parallel>], iteration_bounds = array<i64: 1>, scalar_prefetch = 0 : i64, scratch_operands = 0 : i64, tpu.core_type = #tpu.core_type<tc>, window_params = [{transform_indices = @transform_0, window_bounds = array<i64: 128, 128>}, {pipeline_mode = #tpu.pipeline_mode<synchronous>, transform_indices = @transform_1, window_bounds = array<i64: 1, 128>}, {pipeline_mode = #tpu.pipeline_mode<synchronous>, transform_indices = @transform_2, window_bounds = array<i64: 1, 128>}, {pipeline_mode = #tpu.pipeline_mode<synchronous>, transform_indices = @transform_3, window_bounds = array<i64: 128, 128>}, {pipeline_mode = #tpu.pipeline_mode<synchronous>, transform_indices = @transform_4, window_bounds = array<i64: 1, 128>}, {transform_indices = @transform_5, window_bounds = array<i64: 128, 128>}]} {
    %c0 = arith.constant 0 : index
    %c0_0 = arith.constant 0 : index
    %0 = vector.load %arg1[%c0, %c0_0] : memref<128x128xf32, #tpu.memory_space<vmem>>, vector<128x128xf32>
    %cst = arith.constant dense<0.000000e+00> : vector<128xf32>
    %1 = vector.multi_reduction <add>, %0, %cst [1] : vector<128x128xf32> to vector<128xf32>
    %2 = vector.shape_cast %1 : vector<128xf32> to vector<128x1xf32>
    %cst_1 = arith.constant 3.200000e+01 : f32
    %3 = vector.broadcast %cst_1 : f32 to vector<128x1xf32>
    %4 = arith.divf %2, %3 : vector<128x1xf32>
    %5 = arith.mulf %0, %0 : vector<128x128xf32>
    %cst_2 = arith.constant dense<0.000000e+00> : vector<128xf32>
    %6 = vector.multi_reduction <add>, %5, %cst_2 [1] : vector<128x128xf32> to vector<128xf32>
    %7 = vector.shape_cast %6 : vector<128xf32> to vector<128x1xf32>
    %cst_3 = arith.constant 3.200000e+01 : f32
    %8 = vector.broadcast %cst_3 : f32 to vector<128x1xf32>
    %9 = arith.divf %7, %8 : vector<128x1xf32>
    %10 = arith.mulf %4, %4 : vector<128x1xf32>
    %11 = arith.subf %9, %10 : vector<128x1xf32>
    %12 = vector.broadcast %4 : vector<128x1xf32> to vector<128x128xf32>
    %13 = arith.subf %0, %12 : vector<128x128xf32>
    %cst_4 = arith.constant 9.99999974E-6 : f32
    %14 = vector.broadcast %cst_4 : f32 to vector<128x1xf32>
    %15 = arith.addf %11, %14 : vector<128x1xf32>
    %16 = math.rsqrt %15 : vector<128x1xf32>
    %17 = vector.broadcast %16 : vector<128x1xf32> to vector<128x128xf32>
    %18 = arith.mulf %13, %17 : vector<128x128xf32>
    %c0_5 = arith.constant 0 : index
    %c0_6 = arith.constant 0 : index
    %19 = vector.load %arg2[%c0_5, %c0_6] : memref<1x128xf32, #tpu.memory_space<vmem>>, vector<1x128xf32>
    %20 = vector.broadcast %19 : vector<1x128xf32> to vector<128x128xf32>
    %21 = arith.mulf %18, %20 : vector<128x128xf32>
    %c0_7 = arith.constant 0 : index
    %c0_8 = arith.constant 0 : index
    %22 = vector.load %arg3[%c0_7, %c0_8] : memref<1x128xf32, #tpu.memory_space<vmem>>, vector<1x128xf32>
    %23 = vector.broadcast %22 : vector<1x128xf32> to vector<128x128xf32>
    %24 = arith.addf %21, %23 : vector<128x128xf32>
    %25 = arith.truncf %24 : vector<128x128xf32> to vector<128x128xbf16>
    %c0_9 = arith.constant 0 : index
    %c0_10 = arith.constant 0 : index
    %26 = vector.load %arg4[%c0_9, %c0_10] : memref<128x128xbf16, #tpu.memory_space<vmem>>, vector<128x128xbf16>
    %cst_11 = arith.constant dense<0.000000e+00> : vector<128x128xf32>
    %27 = tpu.matmul %25, %26, %cst_11 {dimension_numbers = #tpu.dot_dimension_numbers<[1], [0], [0], [1], [0, 0, 1, 1], [], []>} : vector<128x128xbf16>, vector<128x128xbf16>, vector<128x128xf32> -> vector<128x128xf32>
    %c0_12 = arith.constant 0 : index
    %c0_13 = arith.constant 0 : index
    %28 = vector.load %arg5[%c0_12, %c0_13] : memref<1x128xf32, #tpu.memory_space<vmem>>, vector<1x128xf32>
    %29 = vector.broadcast %28 : vector<1x128xf32> to vector<128x128xf32>
    %30 = arith.addf %27, %29 : vector<128x128xf32>
    %c0_14 = arith.constant 0 : index
    %c0_15 = arith.constant 0 : index
    %31 = vector.load %arg6[%c0_14, %c0_15] : memref<128x128xf32, #tpu.memory_space<vmem>>, vector<128x128xf32>
    tpu.vector_store %arg6[%c0_14, %c0_15], %30 {strides = array<i32>} : memref<128x128xf32, #tpu.memory_space<vmem>>, vector<128x128xf32>,
    return
  }
  func.func @transform_0(%arg0: i32) -> (i32, i32) {
    %c0_i32 = arith.constant 0 : i32
    %c0_i32_0 = arith.constant 0 : i32
    return %arg0, %c0_i32 : i32, i32
  }
  func.func @transform_1(%arg0: i32) -> (i32, i32) {
    %c0_i32 = arith.constant 0 : i32
    %c0_i32_0 = arith.constant 0 : i32
    %c0_i32_1 = arith.constant 0 : i32
    return %c0_i32, %c0_i32_0 : i32, i32
  }
  func.func @transform_2(%arg0: i32) -> (i32, i32) {
    %c0_i32 = arith.constant 0 : i32
    %c0_i32_0 = arith.constant 0 : i32
    %c0_i32_1 = arith.constant 0 : i32
    return %c0_i32, %c0_i32_0 : i32, i32
  }
  func.func @transform_3(%arg0: i32) -> (i32, i32) {
    %c0_i32 = arith.constant 0 : i32
    %c0_i32_0 = arith.constant 0 : i32
    %c0_i32_1 = arith.constant 0 : i32
    return %c0_i32, %c0_i32_0 : i32, i32
  }
  func.func @transform_4(%arg0: i32) -> (i32, i32) {
    %c0_i32 = arith.constant 0 : i32
    %c0_i32_0 = arith.constant 0 : i32
    %c0_i32_1 = arith.constant 0 : i32
    return %c0_i32, %c0_i32_0 : i32, i32
  }
  func.func @transform_5(%arg0: i32) -> (i32, i32) {
    %c0_i32 = arith.constant 0 : i32
    %c0_i32_0 = arith.constant 0 : i32
    return %arg0, %c0_i32 : i32, i32
  }
}

module attributes {stable_mosaic.version = 11 : i64} {
  func.func @_matmul_kernel(%arg0: i32, %arg1: memref<32x128xbf16, #tpu.memory_space<vmem>>, %arg2: memref<128x128xbf16, #tpu.memory_space<vmem>>, %arg3: memref<1x128xf32, #tpu.memory_space<vmem>>, %arg4: memref<32x128xf32, #tpu.memory_space<vmem>>) attributes {dimension_semantics = [#tpu.dimension_semantics<parallel>], iteration_bounds = array<i64: 1>, scalar_prefetch = 0 : i64, scratch_operands = 0 : i64, tpu.core_type = #tpu.core_type<tc>, window_params = [{transform_indices = @transform_0, window_bounds = array<i64: 32, 128>}, {pipeline_mode = #tpu.pipeline_mode<synchronous>, transform_indices = @transform_1, window_bounds = array<i64: 128, 128>}, {pipeline_mode = #tpu.pipeline_mode<synchronous>, transform_indices = @transform_2, window_bounds = array<i64: 1, 128>}, {transform_indices = @transform_3, window_bounds = array<i64: 32, 128>}]} {
    %c0 = arith.constant 0 : index
    %c0_0 = arith.constant 0 : index
    %0 = vector.load %arg1[%c0, %c0_0] : memref<32x128xbf16, #tpu.memory_space<vmem>>, vector<32x128xbf16>
    %c0_1 = arith.constant 0 : index
    %c0_2 = arith.constant 0 : index
    %1 = vector.load %arg2[%c0_1, %c0_2] : memref<128x128xbf16, #tpu.memory_space<vmem>>, vector<128x128xbf16>
    %cst = arith.constant dense<0.000000e+00> : vector<32x128xf32>
    %2 = tpu.matmul %0, %1, %cst {dimension_numbers = #tpu.dot_dimension_numbers<[1], [0], [0], [1], [0, 0, 1, 1], [], []>} : vector<32x128xbf16>, vector<128x128xbf16>, vector<32x128xf32> -> vector<32x128xf32>
    %c0_3 = arith.constant 0 : index
    %c0_4 = arith.constant 0 : index
    %3 = vector.load %arg3[%c0_3, %c0_4] : memref<1x128xf32, #tpu.memory_space<vmem>>, vector<1x128xf32>
    %4 = vector.broadcast %3 : vector<1x128xf32> to vector<32x128xf32>
    %5 = arith.addf %2, %4 : vector<32x128xf32>
    %c0_5 = arith.constant 0 : index
    %c0_6 = arith.constant 0 : index
    %6 = vector.load %arg4[%c0_5, %c0_6] : memref<32x128xf32, #tpu.memory_space<vmem>>, vector<32x128xf32>
    tpu.vector_store %arg4[%c0_5, %c0_6], %5 {strides = array<i32>} : memref<32x128xf32, #tpu.memory_space<vmem>>, vector<32x128xf32>,
    return
  }
  func.func @transform_0(%arg0: i32) -> (i32, i32) {
    %c0_i32 = arith.constant 0 : i32
    %c0_i32_0 = arith.constant 0 : i32
    return %arg0, %c0_i32 : i32, i32
  }
  func.func @transform_1(%arg0: i32) -> (i32, i32) {
    %c0_i32 = arith.constant 0 : i32
    %c0_i32_0 = arith.constant 0 : i32
    %c0_i32_1 = arith.constant 0 : i32
    return %c0_i32, %c0_i32_0 : i32, i32
  }
  func.func @transform_2(%arg0: i32) -> (i32, i32) {
    %c0_i32 = arith.constant 0 : i32
    %c0_i32_0 = arith.constant 0 : i32
    %c0_i32_1 = arith.constant 0 : i32
    return %c0_i32, %c0_i32_0 : i32, i32
  }
  func.func @transform_3(%arg0: i32) -> (i32, i32) {
    %c0_i32 = arith.constant 0 : i32
    %c0_i32_0 = arith.constant 0 : i32
    return %arg0, %c0_i32 : i32, i32
  }
}

module attributes {stable_mosaic.version = 11 : i64} {
  func.func @_ln_matmul_kernel(%arg0: i32, %arg1: memref<32x128xf32, #tpu.memory_space<vmem>>, %arg2: memref<1x128xf32, #tpu.memory_space<vmem>>, %arg3: memref<1x128xf32, #tpu.memory_space<vmem>>, %arg4: memref<128x256xbf16, #tpu.memory_space<vmem>>, %arg5: memref<1x256xf32, #tpu.memory_space<vmem>>, %arg6: memref<32x256xf32, #tpu.memory_space<vmem>>) attributes {dimension_semantics = [#tpu.dimension_semantics<parallel>], iteration_bounds = array<i64: 1>, scalar_prefetch = 0 : i64, scratch_operands = 0 : i64, tpu.core_type = #tpu.core_type<tc>, window_params = [{transform_indices = @transform_0, window_bounds = array<i64: 32, 128>}, {pipeline_mode = #tpu.pipeline_mode<synchronous>, transform_indices = @transform_1, window_bounds = array<i64: 1, 128>}, {pipeline_mode = #tpu.pipeline_mode<synchronous>, transform_indices = @transform_2, window_bounds = array<i64: 1, 128>}, {pipeline_mode = #tpu.pipeline_mode<synchronous>, transform_indices = @transform_3, window_bounds = array<i64: 128, 256>}, {pipeline_mode = #tpu.pipeline_mode<synchronous>, transform_indices = @transform_4, window_bounds = array<i64: 1, 256>}, {transform_indices = @transform_5, window_bounds = array<i64: 32, 256>}]} {
    %c0 = arith.constant 0 : index
    %c0_0 = arith.constant 0 : index
    %0 = vector.load %arg1[%c0, %c0_0] : memref<32x128xf32, #tpu.memory_space<vmem>>, vector<32x128xf32>
    %cst = arith.constant dense<0.000000e+00> : vector<32xf32>
    %1 = vector.multi_reduction <add>, %0, %cst [1] : vector<32x128xf32> to vector<32xf32>
    %2 = vector.shape_cast %1 : vector<32xf32> to vector<32x1xf32>
    %cst_1 = arith.constant 6.400000e+01 : f32
    %3 = vector.broadcast %cst_1 : f32 to vector<32x1xf32>
    %4 = arith.divf %2, %3 : vector<32x1xf32>
    %5 = arith.mulf %0, %0 : vector<32x128xf32>
    %cst_2 = arith.constant dense<0.000000e+00> : vector<32xf32>
    %6 = vector.multi_reduction <add>, %5, %cst_2 [1] : vector<32x128xf32> to vector<32xf32>
    %7 = vector.shape_cast %6 : vector<32xf32> to vector<32x1xf32>
    %cst_3 = arith.constant 6.400000e+01 : f32
    %8 = vector.broadcast %cst_3 : f32 to vector<32x1xf32>
    %9 = arith.divf %7, %8 : vector<32x1xf32>
    %10 = arith.mulf %4, %4 : vector<32x1xf32>
    %11 = arith.subf %9, %10 : vector<32x1xf32>
    %12 = vector.broadcast %4 : vector<32x1xf32> to vector<32x128xf32>
    %13 = arith.subf %0, %12 : vector<32x128xf32>
    %cst_4 = arith.constant 9.99999974E-6 : f32
    %14 = vector.broadcast %cst_4 : f32 to vector<32x1xf32>
    %15 = arith.addf %11, %14 : vector<32x1xf32>
    %16 = math.rsqrt %15 : vector<32x1xf32>
    %17 = vector.broadcast %16 : vector<32x1xf32> to vector<32x128xf32>
    %18 = arith.mulf %13, %17 : vector<32x128xf32>
    %c0_5 = arith.constant 0 : index
    %c0_6 = arith.constant 0 : index
    %19 = vector.load %arg2[%c0_5, %c0_6] : memref<1x128xf32, #tpu.memory_space<vmem>>, vector<1x128xf32>
    %20 = vector.broadcast %19 : vector<1x128xf32> to vector<32x128xf32>
    %21 = arith.mulf %18, %20 : vector<32x128xf32>
    %c0_7 = arith.constant 0 : index
    %c0_8 = arith.constant 0 : index
    %22 = vector.load %arg3[%c0_7, %c0_8] : memref<1x128xf32, #tpu.memory_space<vmem>>, vector<1x128xf32>
    %23 = vector.broadcast %22 : vector<1x128xf32> to vector<32x128xf32>
    %24 = arith.addf %21, %23 : vector<32x128xf32>
    %25 = arith.truncf %24 : vector<32x128xf32> to vector<32x128xbf16>
    %c0_9 = arith.constant 0 : index
    %c0_10 = arith.constant 0 : index
    %26 = vector.load %arg4[%c0_9, %c0_10] : memref<128x256xbf16, #tpu.memory_space<vmem>>, vector<128x256xbf16>
    %cst_11 = arith.constant dense<0.000000e+00> : vector<32x256xf32>
    %27 = tpu.matmul %25, %26, %cst_11 {dimension_numbers = #tpu.dot_dimension_numbers<[1], [0], [0], [1], [0, 0, 1, 1], [], []>} : vector<32x128xbf16>, vector<128x256xbf16>, vector<32x256xf32> -> vector<32x256xf32>
    %c0_12 = arith.constant 0 : index
    %c0_13 = arith.constant 0 : index
    %28 = vector.load %arg5[%c0_12, %c0_13] : memref<1x256xf32, #tpu.memory_space<vmem>>, vector<1x256xf32>
    %29 = vector.broadcast %28 : vector<1x256xf32> to vector<32x256xf32>
    %30 = arith.addf %27, %29 : vector<32x256xf32>
    %c0_14 = arith.constant 0 : index
    %c0_15 = arith.constant 0 : index
    %31 = vector.load %arg6[%c0_14, %c0_15] : memref<32x256xf32, #tpu.memory_space<vmem>>, vector<32x256xf32>
    tpu.vector_store %arg6[%c0_14, %c0_15], %30 {strides = array<i32>} : memref<32x256xf32, #tpu.memory_space<vmem>>, vector<32x256xf32>,
    return
  }
  func.func @transform_0(%arg0: i32) -> (i32, i32) {
    %c0_i32 = arith.constant 0 : i32
    %c0_i32_0 = arith.constant 0 : i32
    return %arg0, %c0_i32 : i32, i32
  }
  func.func @transform_1(%arg0: i32) -> (i32, i32) {
    %c0_i32 = arith.constant 0 : i32
    %c0_i32_0 = arith.constant 0 : i32
    %c0_i32_1 = arith.constant 0 : i32
    return %c0_i32, %c0_i32_0 : i32, i32
  }
  func.func @transform_2(%arg0: i32) -> (i32, i32) {
    %c0_i32 = arith.constant 0 : i32
    %c0_i32_0 = arith.constant 0 : i32
    %c0_i32_1 = arith.constant 0 : i32
    return %c0_i32, %c0_i32_0 : i32, i32
  }
  func.func @transform_3(%arg0: i32) -> (i32, i32) {
    %c0_i32 = arith.constant 0 : i32
    %c0_i32_0 = arith.constant 0 : i32
    %c0_i32_1 = arith.constant 0 : i32
    return %c0_i32, %c0_i32_0 : i32, i32
  }
  func.func @transform_4(%arg0: i32) -> (i32, i32) {
    %c0_i32 = arith.constant 0 : i32
    %c0_i32_0 = arith.constant 0 : i32
    %c0_i32_1 = arith.constant 0 : i32
    return %c0_i32, %c0_i32_0 : i32, i32
  }
  func.func @transform_5(%arg0: i32) -> (i32, i32) {
    %c0_i32 = arith.constant 0 : i32
    %c0_i32_0 = arith.constant 0 : i32
    return %arg0, %c0_i32 : i32, i32
  }
}

module attributes {stable_mosaic.version = 11 : i64} {
  func.func @_attention_kernel(%arg0: i32, %arg1: memref<8x16x16xbf16, #tpu.memory_space<vmem>>, %arg2: memref<8x16x16xbf16, #tpu.memory_space<vmem>>, %arg3: memref<8x16x16xbf16, #tpu.memory_space<vmem>>, %arg4: memref<8x16x16xf32, #tpu.memory_space<vmem>>) attributes {dimension_semantics = [#tpu.dimension_semantics<parallel>], iteration_bounds = array<i64: 1>, scalar_prefetch = 0 : i64, scratch_operands = 0 : i64, tpu.core_type = #tpu.core_type<tc>, window_params = [{transform_indices = @transform_0, window_bounds = array<i64: 8, 16, 16>}, {transform_indices = @transform_1, window_bounds = array<i64: 8, 16, 16>}, {transform_indices = @transform_2, window_bounds = array<i64: 8, 16, 16>}, {transform_indices = @transform_3, window_bounds = array<i64: 8, 16, 16>}]} {
    %c0 = arith.constant 0 : index
    %c0_0 = arith.constant 0 : index
    %c0_1 = arith.constant 0 : index
    %0 = vector.load %arg1[%c0, %c0_0, %c0_1] : memref<8x16x16xbf16, #tpu.memory_space<vmem>>, vector<8x16x16xbf16>
    %c0_2 = arith.constant 0 : index
    %c0_3 = arith.constant 0 : index
    %c0_4 = arith.constant 0 : index
    %1 = vector.load %arg2[%c0_2, %c0_3, %c0_4] : memref<8x16x16xbf16, #tpu.memory_space<vmem>>, vector<8x16x16xbf16>
    "tpu.trace_start"() <{level = 10 : i32, message = "gqd,gkd->gqk"}> : () -> ()
    %cst = arith.constant dense<0.000000e+00> : vector<8x16x16xf32>
    %2 = tpu.matmul %0, %1, %cst {dimension_numbers = #tpu.dot_dimension_numbers<[2], [2], [1], [1], [0, 0, 0, 1, 1, 1], [0], [0]>} : vector<8x16x16xbf16>, vector<8x16x16xbf16>, vector<8x16x16xf32> -> vector<8x16x16xf32>
    "tpu.trace_stop"() : () -> ()
    %cst_5 = arith.constant 2.500000e-01 : f32
    %3 = vector.broadcast %cst_5 : f32 to vector<8x16x16xf32>
    %4 = arith.mulf %2, %3 : vector<8x16x16xf32>
    %cst_6 = arith.constant dense<0xFF800000> : vector<8x16xf32>
    %5 = vector.multi_reduction <maximumf>, %4, %cst_6 [2] : vector<8x16x16xf32> to vector<8x16xf32>
    %6 = vector.shape_cast %5 : vector<8x16xf32> to vector<8x16x1xf32>
    %7 = vector.broadcast %6 : vector<8x16x1xf32> to vector<8x16x16xf32>
    %8 = arith.subf %4, %7 : vector<8x16x16xf32>
    %9 = math.exp %8 : vector<8x16x16xf32>
    %cst_7 = arith.constant dense<0.000000e+00> : vector<8x16xf32>
    %10 = vector.multi_reduction <add>, %9, %cst_7 [2] : vector<8x16x16xf32> to vector<8x16xf32>
    %11 = vector.shape_cast %10 : vector<8x16xf32> to vector<8x16x1xf32>
    %12 = tpu.reciprocal %11 {approx = true} : vector<8x16x1xf32> -> vector<8x16x1xf32>
    %13 = vector.broadcast %12 : vector<8x16x1xf32> to vector<8x16x16xf32>
    %14 = arith.mulf %9, %13 : vector<8x16x16xf32>
    %15 = arith.truncf %14 : vector<8x16x16xf32> to vector<8x16x16xbf16>
    %c0_8 = arith.constant 0 : index
    %c0_9 = arith.constant 0 : index
    %c0_10 = arith.constant 0 : index
    %16 = vector.load %arg3[%c0_8, %c0_9, %c0_10] : memref<8x16x16xbf16, #tpu.memory_space<vmem>>, vector<8x16x16xbf16>
    "tpu.trace_start"() <{level = 10 : i32, message = "gqk,gkd->gqd"}> : () -> ()
    %cst_11 = arith.constant dense<0.000000e+00> : vector<8x16x16xf32>
    %17 = tpu.matmul %15, %16, %cst_11 {dimension_numbers = #tpu.dot_dimension_numbers<[2], [1], [1], [2], [0, 0, 0, 1, 1, 2], [0], [0]>} : vector<8x16x16xbf16>, vector<8x16x16xbf16>, vector<8x16x16xf32> -> vector<8x16x16xf32>
    "tpu.trace_stop"() : () -> ()
    %c0_12 = arith.constant 0 : index
    %c0_13 = arith.constant 0 : index
    %c0_14 = arith.constant 0 : index
    %18 = vector.load %arg4[%c0_12, %c0_13, %c0_14] : memref<8x16x16xf32, #tpu.memory_space<vmem>>, vector<8x16x16xf32>
    tpu.vector_store %arg4[%c0_12, %c0_13, %c0_14], %17 {strides = array<i32>} : memref<8x16x16xf32, #tpu.memory_space<vmem>>, vector<8x16x16xf32>,
    return
  }
  func.func @transform_0(%arg0: i32) -> (i32, i32, i32) {
    %c0_i32 = arith.constant 0 : i32
    %c0_i32_0 = arith.constant 0 : i32
    %c0_i32_1 = arith.constant 0 : i32
    return %arg0, %c0_i32, %c0_i32_0 : i32, i32, i32
  }
  func.func @transform_1(%arg0: i32) -> (i32, i32, i32) {
    %c0_i32 = arith.constant 0 : i32
    %c0_i32_0 = arith.constant 0 : i32
    %c0_i32_1 = arith.constant 0 : i32
    return %arg0, %c0_i32, %c0_i32_0 : i32, i32, i32
  }
  func.func @transform_2(%arg0: i32) -> (i32, i32, i32) {
    %c0_i32 = arith.constant 0 : i32
    %c0_i32_0 = arith.constant 0 : i32
    %c0_i32_1 = arith.constant 0 : i32
    return %arg0, %c0_i32, %c0_i32_0 : i32, i32, i32
  }
  func.func @transform_3(%arg0: i32) -> (i32, i32, i32) {
    %c0_i32 = arith.constant 0 : i32
    %c0_i32_0 = arith.constant 0 : i32
    %c0_i32_1 = arith.constant 0 : i32
    return %arg0, %c0_i32, %c0_i32_0 : i32, i32, i32
  }
}

module attributes {stable_mosaic.version = 11 : i64} {
  func.func @_matmul_res_kernel(%arg0: i32, %arg1: memref<32x128xbf16, #tpu.memory_space<vmem>>, %arg2: memref<128x128xbf16, #tpu.memory_space<vmem>>, %arg3: memref<1x128xf32, #tpu.memory_space<vmem>>, %arg4: memref<32x128xf32, #tpu.memory_space<vmem>>, %arg5: memref<32x128xf32, #tpu.memory_space<vmem>>) attributes {dimension_semantics = [#tpu.dimension_semantics<parallel>], iteration_bounds = array<i64: 1>, scalar_prefetch = 0 : i64, scratch_operands = 0 : i64, tpu.core_type = #tpu.core_type<tc>, window_params = [{transform_indices = @transform_0, window_bounds = array<i64: 32, 128>}, {pipeline_mode = #tpu.pipeline_mode<synchronous>, transform_indices = @transform_1, window_bounds = array<i64: 128, 128>}, {pipeline_mode = #tpu.pipeline_mode<synchronous>, transform_indices = @transform_2, window_bounds = array<i64: 1, 128>}, {transform_indices = @transform_3, window_bounds = array<i64: 32, 128>}, {transform_indices = @transform_4, window_bounds = array<i64: 32, 128>}]} {
    %c0 = arith.constant 0 : index
    %c0_0 = arith.constant 0 : index
    %0 = vector.load %arg1[%c0, %c0_0] : memref<32x128xbf16, #tpu.memory_space<vmem>>, vector<32x128xbf16>
    %c0_1 = arith.constant 0 : index
    %c0_2 = arith.constant 0 : index
    %1 = vector.load %arg2[%c0_1, %c0_2] : memref<128x128xbf16, #tpu.memory_space<vmem>>, vector<128x128xbf16>
    %cst = arith.constant dense<0.000000e+00> : vector<32x128xf32>
    %2 = tpu.matmul %0, %1, %cst {dimension_numbers = #tpu.dot_dimension_numbers<[1], [0], [0], [1], [0, 0, 1, 1], [], []>} : vector<32x128xbf16>, vector<128x128xbf16>, vector<32x128xf32> -> vector<32x128xf32>
    %c0_3 = arith.constant 0 : index
    %c0_4 = arith.constant 0 : index
    %3 = vector.load %arg3[%c0_3, %c0_4] : memref<1x128xf32, #tpu.memory_space<vmem>>, vector<1x128xf32>
    %4 = vector.broadcast %3 : vector<1x128xf32> to vector<32x128xf32>
    %5 = arith.addf %2, %4 : vector<32x128xf32>
    %c0_5 = arith.constant 0 : index
    %c0_6 = arith.constant 0 : index
    %6 = vector.load %arg4[%c0_5, %c0_6] : memref<32x128xf32, #tpu.memory_space<vmem>>, vector<32x128xf32>
    %7 = arith.addf %5, %6 : vector<32x128xf32>
    %c0_7 = arith.constant 0 : index
    %c0_8 = arith.constant 0 : index
    %8 = vector.load %arg5[%c0_7, %c0_8] : memref<32x128xf32, #tpu.memory_space<vmem>>, vector<32x128xf32>
    tpu.vector_store %arg5[%c0_7, %c0_8], %7 {strides = array<i32>} : memref<32x128xf32, #tpu.memory_space<vmem>>, vector<32x128xf32>,
    return
  }
  func.func @transform_0(%arg0: i32) -> (i32, i32) {
    %c0_i32 = arith.constant 0 : i32
    %c0_i32_0 = arith.constant 0 : i32
    return %arg0, %c0_i32 : i32, i32
  }
  func.func @transform_1(%arg0: i32) -> (i32, i32) {
    %c0_i32 = arith.constant 0 : i32
    %c0_i32_0 = arith.constant 0 : i32
    %c0_i32_1 = arith.constant 0 : i32
    return %c0_i32, %c0_i32_0 : i32, i32
  }
  func.func @transform_2(%arg0: i32) -> (i32, i32) {
    %c0_i32 = arith.constant 0 : i32
    %c0_i32_0 = arith.constant 0 : i32
    %c0_i32_1 = arith.constant 0 : i32
    return %c0_i32, %c0_i32_0 : i32, i32
  }
  func.func @transform_3(%arg0: i32) -> (i32, i32) {
    %c0_i32 = arith.constant 0 : i32
    %c0_i32_0 = arith.constant 0 : i32
    return %arg0, %c0_i32 : i32, i32
  }
  func.func @transform_4(%arg0: i32) -> (i32, i32) {
    %c0_i32 = arith.constant 0 : i32
    %c0_i32_0 = arith.constant 0 : i32
    return %arg0, %c0_i32 : i32, i32
  }
}

module attributes {stable_mosaic.version = 11 : i64} {
  func.func @_ln_matmul_kernel(%arg0: i32, %arg1: memref<32x128xf32, #tpu.memory_space<vmem>>, %arg2: memref<1x128xf32, #tpu.memory_space<vmem>>, %arg3: memref<1x128xf32, #tpu.memory_space<vmem>>, %arg4: memref<128x128xbf16, #tpu.memory_space<vmem>>, %arg5: memref<1x128xf32, #tpu.memory_space<vmem>>, %arg6: memref<32x128xf32, #tpu.memory_space<vmem>>) attributes {dimension_semantics = [#tpu.dimension_semantics<parallel>], iteration_bounds = array<i64: 1>, scalar_prefetch = 0 : i64, scratch_operands = 0 : i64, tpu.core_type = #tpu.core_type<tc>, window_params = [{transform_indices = @transform_0, window_bounds = array<i64: 32, 128>}, {pipeline_mode = #tpu.pipeline_mode<synchronous>, transform_indices = @transform_1, window_bounds = array<i64: 1, 128>}, {pipeline_mode = #tpu.pipeline_mode<synchronous>, transform_indices = @transform_2, window_bounds = array<i64: 1, 128>}, {pipeline_mode = #tpu.pipeline_mode<synchronous>, transform_indices = @transform_3, window_bounds = array<i64: 128, 128>}, {pipeline_mode = #tpu.pipeline_mode<synchronous>, transform_indices = @transform_4, window_bounds = array<i64: 1, 128>}, {transform_indices = @transform_5, window_bounds = array<i64: 32, 128>}]} {
    %c0 = arith.constant 0 : index
    %c0_0 = arith.constant 0 : index
    %0 = vector.load %arg1[%c0, %c0_0] : memref<32x128xf32, #tpu.memory_space<vmem>>, vector<32x128xf32>
    %cst = arith.constant dense<0.000000e+00> : vector<32xf32>
    %1 = vector.multi_reduction <add>, %0, %cst [1] : vector<32x128xf32> to vector<32xf32>
    %2 = vector.shape_cast %1 : vector<32xf32> to vector<32x1xf32>
    %cst_1 = arith.constant 6.400000e+01 : f32
    %3 = vector.broadcast %cst_1 : f32 to vector<32x1xf32>
    %4 = arith.divf %2, %3 : vector<32x1xf32>
    %5 = arith.mulf %0, %0 : vector<32x128xf32>
    %cst_2 = arith.constant dense<0.000000e+00> : vector<32xf32>
    %6 = vector.multi_reduction <add>, %5, %cst_2 [1] : vector<32x128xf32> to vector<32xf32>
    %7 = vector.shape_cast %6 : vector<32xf32> to vector<32x1xf32>
    %cst_3 = arith.constant 6.400000e+01 : f32
    %8 = vector.broadcast %cst_3 : f32 to vector<32x1xf32>
    %9 = arith.divf %7, %8 : vector<32x1xf32>
    %10 = arith.mulf %4, %4 : vector<32x1xf32>
    %11 = arith.subf %9, %10 : vector<32x1xf32>
    %12 = vector.broadcast %4 : vector<32x1xf32> to vector<32x128xf32>
    %13 = arith.subf %0, %12 : vector<32x128xf32>
    %cst_4 = arith.constant 9.99999974E-6 : f32
    %14 = vector.broadcast %cst_4 : f32 to vector<32x1xf32>
    %15 = arith.addf %11, %14 : vector<32x1xf32>
    %16 = math.rsqrt %15 : vector<32x1xf32>
    %17 = vector.broadcast %16 : vector<32x1xf32> to vector<32x128xf32>
    %18 = arith.mulf %13, %17 : vector<32x128xf32>
    %c0_5 = arith.constant 0 : index
    %c0_6 = arith.constant 0 : index
    %19 = vector.load %arg2[%c0_5, %c0_6] : memref<1x128xf32, #tpu.memory_space<vmem>>, vector<1x128xf32>
    %20 = vector.broadcast %19 : vector<1x128xf32> to vector<32x128xf32>
    %21 = arith.mulf %18, %20 : vector<32x128xf32>
    %c0_7 = arith.constant 0 : index
    %c0_8 = arith.constant 0 : index
    %22 = vector.load %arg3[%c0_7, %c0_8] : memref<1x128xf32, #tpu.memory_space<vmem>>, vector<1x128xf32>
    %23 = vector.broadcast %22 : vector<1x128xf32> to vector<32x128xf32>
    %24 = arith.addf %21, %23 : vector<32x128xf32>
    %25 = arith.truncf %24 : vector<32x128xf32> to vector<32x128xbf16>
    %c0_9 = arith.constant 0 : index
    %c0_10 = arith.constant 0 : index
    %26 = vector.load %arg4[%c0_9, %c0_10] : memref<128x128xbf16, #tpu.memory_space<vmem>>, vector<128x128xbf16>
    %cst_11 = arith.constant dense<0.000000e+00> : vector<32x128xf32>
    %27 = tpu.matmul %25, %26, %cst_11 {dimension_numbers = #tpu.dot_dimension_numbers<[1], [0], [0], [1], [0, 0, 1, 1], [], []>} : vector<32x128xbf16>, vector<128x128xbf16>, vector<32x128xf32> -> vector<32x128xf32>
    %c0_12 = arith.constant 0 : index
    %c0_13 = arith.constant 0 : index
    %28 = vector.load %arg5[%c0_12, %c0_13] : memref<1x128xf32, #tpu.memory_space<vmem>>, vector<1x128xf32>
    %29 = vector.broadcast %28 : vector<1x128xf32> to vector<32x128xf32>
    %30 = arith.addf %27, %29 : vector<32x128xf32>
    %c0_14 = arith.constant 0 : index
    %c0_15 = arith.constant 0 : index
    %31 = vector.load %arg6[%c0_14, %c0_15] : memref<32x128xf32, #tpu.memory_space<vmem>>, vector<32x128xf32>
    tpu.vector_store %arg6[%c0_14, %c0_15], %30 {strides = array<i32>} : memref<32x128xf32, #tpu.memory_space<vmem>>, vector<32x128xf32>,
    return
  }
  func.func @transform_0(%arg0: i32) -> (i32, i32) {
    %c0_i32 = arith.constant 0 : i32
    %c0_i32_0 = arith.constant 0 : i32
    return %arg0, %c0_i32 : i32, i32
  }
  func.func @transform_1(%arg0: i32) -> (i32, i32) {
    %c0_i32 = arith.constant 0 : i32
    %c0_i32_0 = arith.constant 0 : i32
    %c0_i32_1 = arith.constant 0 : i32
    return %c0_i32, %c0_i32_0 : i32, i32
  }
  func.func @transform_2(%arg0: i32) -> (i32, i32) {
    %c0_i32 = arith.constant 0 : i32
    %c0_i32_0 = arith.constant 0 : i32
    %c0_i32_1 = arith.constant 0 : i32
    return %c0_i32, %c0_i32_0 : i32, i32
  }
  func.func @transform_3(%arg0: i32) -> (i32, i32) {
    %c0_i32 = arith.constant 0 : i32
    %c0_i32_0 = arith.constant 0 : i32
    %c0_i32_1 = arith.constant 0 : i32
    return %c0_i32, %c0_i32_0 : i32, i32
  }
  func.func @transform_4(%arg0: i32) -> (i32, i32) {
    %c0_i32 = arith.constant 0 : i32
    %c0_i32_0 = arith.constant 0 : i32
    %c0_i32_1 = arith.constant 0 : i32
    return %c0_i32, %c0_i32_0 : i32, i32
  }
  func.func @transform_5(%arg0: i32) -> (i32, i32) {
    %c0_i32 = arith.constant 0 : i32
    %c0_i32_0 = arith.constant 0 : i32
    return %arg0, %c0_i32 : i32, i32
  }
}

module attributes {stable_mosaic.version = 11 : i64} {
  func.func @_matmul_kernel(%arg0: i32, %arg1: memref<40x128xbf16, #tpu.memory_space<vmem>>, %arg2: memref<128x128xbf16, #tpu.memory_space<vmem>>, %arg3: memref<1x128xf32, #tpu.memory_space<vmem>>, %arg4: memref<40x128xf32, #tpu.memory_space<vmem>>) attributes {dimension_semantics = [#tpu.dimension_semantics<parallel>], iteration_bounds = array<i64: 1>, scalar_prefetch = 0 : i64, scratch_operands = 0 : i64, tpu.core_type = #tpu.core_type<tc>, window_params = [{transform_indices = @transform_0, window_bounds = array<i64: 40, 128>}, {pipeline_mode = #tpu.pipeline_mode<synchronous>, transform_indices = @transform_1, window_bounds = array<i64: 128, 128>}, {pipeline_mode = #tpu.pipeline_mode<synchronous>, transform_indices = @transform_2, window_bounds = array<i64: 1, 128>}, {transform_indices = @transform_3, window_bounds = array<i64: 40, 128>}]} {
    %c0 = arith.constant 0 : index
    %c0_0 = arith.constant 0 : index
    %0 = vector.load %arg1[%c0, %c0_0] : memref<40x128xbf16, #tpu.memory_space<vmem>>, vector<40x128xbf16>
    %c0_1 = arith.constant 0 : index
    %c0_2 = arith.constant 0 : index
    %1 = vector.load %arg2[%c0_1, %c0_2] : memref<128x128xbf16, #tpu.memory_space<vmem>>, vector<128x128xbf16>
    %cst = arith.constant dense<0.000000e+00> : vector<40x128xf32>
    %2 = tpu.matmul %0, %1, %cst {dimension_numbers = #tpu.dot_dimension_numbers<[1], [0], [0], [1], [0, 0, 1, 1], [], []>} : vector<40x128xbf16>, vector<128x128xbf16>, vector<40x128xf32> -> vector<40x128xf32>
    %c0_3 = arith.constant 0 : index
    %c0_4 = arith.constant 0 : index
    %3 = vector.load %arg3[%c0_3, %c0_4] : memref<1x128xf32, #tpu.memory_space<vmem>>, vector<1x128xf32>
    %4 = vector.broadcast %3 : vector<1x128xf32> to vector<40x128xf32>
    %5 = arith.addf %2, %4 : vector<40x128xf32>
    %c0_5 = arith.constant 0 : index
    %c0_6 = arith.constant 0 : index
    %6 = vector.load %arg4[%c0_5, %c0_6] : memref<40x128xf32, #tpu.memory_space<vmem>>, vector<40x128xf32>
    tpu.vector_store %arg4[%c0_5, %c0_6], %5 {strides = array<i32>} : memref<40x128xf32, #tpu.memory_space<vmem>>, vector<40x128xf32>,
    return
  }
  func.func @transform_0(%arg0: i32) -> (i32, i32) {
    %c0_i32 = arith.constant 0 : i32
    %c0_i32_0 = arith.constant 0 : i32
    return %arg0, %c0_i32 : i32, i32
  }
  func.func @transform_1(%arg0: i32) -> (i32, i32) {
    %c0_i32 = arith.constant 0 : i32
    %c0_i32_0 = arith.constant 0 : i32
    %c0_i32_1 = arith.constant 0 : i32
    return %c0_i32, %c0_i32_0 : i32, i32
  }
  func.func @transform_2(%arg0: i32) -> (i32, i32) {
    %c0_i32 = arith.constant 0 : i32
    %c0_i32_0 = arith.constant 0 : i32
    %c0_i32_1 = arith.constant 0 : i32
    return %c0_i32, %c0_i32_0 : i32, i32
  }
  func.func @transform_3(%arg0: i32) -> (i32, i32) {
    %c0_i32 = arith.constant 0 : i32
    %c0_i32_0 = arith.constant 0 : i32
    return %arg0, %c0_i32 : i32, i32
  }
}

module attributes {stable_mosaic.version = 11 : i64} {
  func.func @_layernorm_kernel(%arg0: i32, %arg1: memref<40x128xf32, #tpu.memory_space<vmem>>, %arg2: memref<1x128xf32, #tpu.memory_space<vmem>>, %arg3: memref<1x128xf32, #tpu.memory_space<vmem>>, %arg4: memref<40x128xf32, #tpu.memory_space<vmem>>) attributes {dimension_semantics = [#tpu.dimension_semantics<parallel>], iteration_bounds = array<i64: 1>, scalar_prefetch = 0 : i64, scratch_operands = 0 : i64, tpu.core_type = #tpu.core_type<tc>, window_params = [{transform_indices = @transform_0, window_bounds = array<i64: 40, 128>}, {pipeline_mode = #tpu.pipeline_mode<synchronous>, transform_indices = @transform_1, window_bounds = array<i64: 1, 128>}, {pipeline_mode = #tpu.pipeline_mode<synchronous>, transform_indices = @transform_2, window_bounds = array<i64: 1, 128>}, {transform_indices = @transform_3, window_bounds = array<i64: 40, 128>}]} {
    %c0 = arith.constant 0 : index
    %c0_0 = arith.constant 0 : index
    %0 = vector.load %arg1[%c0, %c0_0] : memref<40x128xf32, #tpu.memory_space<vmem>>, vector<40x128xf32>
    %cst = arith.constant dense<0.000000e+00> : vector<40xf32>
    %1 = vector.multi_reduction <add>, %0, %cst [1] : vector<40x128xf32> to vector<40xf32>
    %2 = vector.shape_cast %1 : vector<40xf32> to vector<40x1xf32>
    %cst_1 = arith.constant 6.400000e+01 : f32
    %3 = vector.broadcast %cst_1 : f32 to vector<40x1xf32>
    %4 = arith.divf %2, %3 : vector<40x1xf32>
    %5 = arith.mulf %0, %0 : vector<40x128xf32>
    %cst_2 = arith.constant dense<0.000000e+00> : vector<40xf32>
    %6 = vector.multi_reduction <add>, %5, %cst_2 [1] : vector<40x128xf32> to vector<40xf32>
    %7 = vector.shape_cast %6 : vector<40xf32> to vector<40x1xf32>
    %cst_3 = arith.constant 6.400000e+01 : f32
    %8 = vector.broadcast %cst_3 : f32 to vector<40x1xf32>
    %9 = arith.divf %7, %8 : vector<40x1xf32>
    %10 = arith.mulf %4, %4 : vector<40x1xf32>
    %11 = arith.subf %9, %10 : vector<40x1xf32>
    %12 = vector.broadcast %4 : vector<40x1xf32> to vector<40x128xf32>
    %13 = arith.subf %0, %12 : vector<40x128xf32>
    %cst_4 = arith.constant 9.99999974E-6 : f32
    %14 = vector.broadcast %cst_4 : f32 to vector<40x1xf32>
    %15 = arith.addf %11, %14 : vector<40x1xf32>
    %16 = math.rsqrt %15 : vector<40x1xf32>
    %17 = vector.broadcast %16 : vector<40x1xf32> to vector<40x128xf32>
    %18 = arith.mulf %13, %17 : vector<40x128xf32>
    %c0_5 = arith.constant 0 : index
    %c0_6 = arith.constant 0 : index
    %19 = vector.load %arg2[%c0_5, %c0_6] : memref<1x128xf32, #tpu.memory_space<vmem>>, vector<1x128xf32>
    %20 = vector.broadcast %19 : vector<1x128xf32> to vector<40x128xf32>
    %21 = arith.mulf %18, %20 : vector<40x128xf32>
    %c0_7 = arith.constant 0 : index
    %c0_8 = arith.constant 0 : index
    %22 = vector.load %arg3[%c0_7, %c0_8] : memref<1x128xf32, #tpu.memory_space<vmem>>, vector<1x128xf32>
    %23 = vector.broadcast %22 : vector<1x128xf32> to vector<40x128xf32>
    %24 = arith.addf %21, %23 : vector<40x128xf32>
    %c0_9 = arith.constant 0 : index
    %c0_10 = arith.constant 0 : index
    %25 = vector.load %arg4[%c0_9, %c0_10] : memref<40x128xf32, #tpu.memory_space<vmem>>, vector<40x128xf32>
    tpu.vector_store %arg4[%c0_9, %c0_10], %24 {strides = array<i32>} : memref<40x128xf32, #tpu.memory_space<vmem>>, vector<40x128xf32>,
    return
  }
  func.func @transform_0(%arg0: i32) -> (i32, i32) {
    %c0_i32 = arith.constant 0 : i32
    %c0_i32_0 = arith.constant 0 : i32
    return %arg0, %c0_i32 : i32, i32
  }
  func.func @transform_1(%arg0: i32) -> (i32, i32) {
    %c0_i32 = arith.constant 0 : i32
    %c0_i32_0 = arith.constant 0 : i32
    %c0_i32_1 = arith.constant 0 : i32
    return %c0_i32, %c0_i32_0 : i32, i32
  }
  func.func @transform_2(%arg0: i32) -> (i32, i32) {
    %c0_i32 = arith.constant 0 : i32
    %c0_i32_0 = arith.constant 0 : i32
    %c0_i32_1 = arith.constant 0 : i32
    return %c0_i32, %c0_i32_0 : i32, i32
  }
  func.func @transform_3(%arg0: i32) -> (i32, i32) {
    %c0_i32 = arith.constant 0 : i32
    %c0_i32_0 = arith.constant 0 : i32
    return %arg0, %c0_i32 : i32, i32
  }
}

module attributes {stable_mosaic.version = 11 : i64} {
  func.func @_matmul_kernel(%arg0: i32, %arg1: memref<8x128xbf16, #tpu.memory_space<vmem>>, %arg2: memref<128x128xbf16, #tpu.memory_space<vmem>>, %arg3: memref<1x128xf32, #tpu.memory_space<vmem>>, %arg4: memref<8x128xf32, #tpu.memory_space<vmem>>) attributes {dimension_semantics = [#tpu.dimension_semantics<parallel>], iteration_bounds = array<i64: 1>, scalar_prefetch = 0 : i64, scratch_operands = 0 : i64, tpu.core_type = #tpu.core_type<tc>, window_params = [{transform_indices = @transform_0, window_bounds = array<i64: 8, 128>}, {pipeline_mode = #tpu.pipeline_mode<synchronous>, transform_indices = @transform_1, window_bounds = array<i64: 128, 128>}, {pipeline_mode = #tpu.pipeline_mode<synchronous>, transform_indices = @transform_2, window_bounds = array<i64: 1, 128>}, {transform_indices = @transform_3, window_bounds = array<i64: 8, 128>}]} {
    %c0 = arith.constant 0 : index
    %c0_0 = arith.constant 0 : index
    %0 = vector.load %arg1[%c0, %c0_0] : memref<8x128xbf16, #tpu.memory_space<vmem>>, vector<8x128xbf16>
    %c0_1 = arith.constant 0 : index
    %c0_2 = arith.constant 0 : index
    %1 = vector.load %arg2[%c0_1, %c0_2] : memref<128x128xbf16, #tpu.memory_space<vmem>>, vector<128x128xbf16>
    %cst = arith.constant dense<0.000000e+00> : vector<8x128xf32>
    %2 = tpu.matmul %0, %1, %cst {dimension_numbers = #tpu.dot_dimension_numbers<[1], [0], [0], [1], [0, 0, 1, 1], [], []>} : vector<8x128xbf16>, vector<128x128xbf16>, vector<8x128xf32> -> vector<8x128xf32>
    %c0_3 = arith.constant 0 : index
    %c0_4 = arith.constant 0 : index
    %3 = vector.load %arg3[%c0_3, %c0_4] : memref<1x128xf32, #tpu.memory_space<vmem>>, vector<1x128xf32>
    %4 = vector.broadcast %3 : vector<1x128xf32> to vector<8x128xf32>
    %5 = arith.addf %2, %4 : vector<8x128xf32>
    %c0_5 = arith.constant 0 : index
    %c0_6 = arith.constant 0 : index
    %6 = vector.load %arg4[%c0_5, %c0_6] : memref<8x128xf32, #tpu.memory_space<vmem>>, vector<8x128xf32>
    tpu.vector_store %arg4[%c0_5, %c0_6], %5 {strides = array<i32>} : memref<8x128xf32, #tpu.memory_space<vmem>>, vector<8x128xf32>,
    return
  }
  func.func @transform_0(%arg0: i32) -> (i32, i32) {
    %c0_i32 = arith.constant 0 : i32
    %c0_i32_0 = arith.constant 0 : i32
    return %arg0, %c0_i32 : i32, i32
  }
  func.func @transform_1(%arg0: i32) -> (i32, i32) {
    %c0_i32 = arith.constant 0 : i32
    %c0_i32_0 = arith.constant 0 : i32
    %c0_i32_1 = arith.constant 0 : i32
    return %c0_i32, %c0_i32_0 : i32, i32
  }
  func.func @transform_2(%arg0: i32) -> (i32, i32) {
    %c0_i32 = arith.constant 0 : i32
    %c0_i32_0 = arith.constant 0 : i32
    %c0_i32_1 = arith.constant 0 : i32
    return %c0_i32, %c0_i32_0 : i32, i32
  }
  func.func @transform_3(%arg0: i32) -> (i32, i32) {
    %c0_i32 = arith.constant 0 : i32
    %c0_i32_0 = arith.constant 0 : i32
    return %arg0, %c0_i32 : i32, i32
  }
}

module attributes {stable_mosaic.version = 11 : i64} {
  func.func @_attention_kernel(%arg0: i32, %arg1: memref<8x1x16xbf16, #tpu.memory_space<vmem>>, %arg2: memref<8x17x16xbf16, #tpu.memory_space<vmem>>, %arg3: memref<8x17x16xbf16, #tpu.memory_space<vmem>>, %arg4: memref<8x1x16xf32, #tpu.memory_space<vmem>>) attributes {dimension_semantics = [#tpu.dimension_semantics<parallel>], iteration_bounds = array<i64: 1>, scalar_prefetch = 0 : i64, scratch_operands = 0 : i64, tpu.core_type = #tpu.core_type<tc>, window_params = [{transform_indices = @transform_0, window_bounds = array<i64: 8, 1, 16>}, {transform_indices = @transform_1, window_bounds = array<i64: 8, 17, 16>}, {transform_indices = @transform_2, window_bounds = array<i64: 8, 17, 16>}, {transform_indices = @transform_3, window_bounds = array<i64: 8, 1, 16>}]} {
    %c0 = arith.constant 0 : index
    %c0_0 = arith.constant 0 : index
    %c0_1 = arith.constant 0 : index
    %0 = vector.load %arg1[%c0, %c0_0, %c0_1] : memref<8x1x16xbf16, #tpu.memory_space<vmem>>, vector<8x1x16xbf16>
    %c0_2 = arith.constant 0 : index
    %c0_3 = arith.constant 0 : index
    %c0_4 = arith.constant 0 : index
    %1 = vector.load %arg2[%c0_2, %c0_3, %c0_4] : memref<8x17x16xbf16, #tpu.memory_space<vmem>>, vector<8x17x16xbf16>
    "tpu.trace_start"() <{level = 10 : i32, message = "gqd,gkd->gqk"}> : () -> ()
    %cst = arith.constant dense<0.000000e+00> : vector<8x1x17xf32>
    %2 = tpu.matmul %0, %1, %cst {dimension_numbers = #tpu.dot_dimension_numbers<[2], [2], [1], [1], [0, 0, 0, 1, 1, 1], [0], [0]>} : vector<8x1x16xbf16>, vector<8x17x16xbf16>, vector<8x1x17xf32> -> vector<8x1x17xf32>
    "tpu.trace_stop"() : () -> ()
    %cst_5 = arith.constant 2.500000e-01 : f32
    %3 = vector.broadcast %cst_5 : f32 to vector<8x1x17xf32>
    %4 = arith.mulf %2, %3 : vector<8x1x17xf32>
    %cst_6 = arith.constant dense<0xFF800000> : vector<8x1xf32>
    %5 = vector.multi_reduction <maximumf>, %4, %cst_6 [2] : vector<8x1x17xf32> to vector<8x1xf32>
    %6 = vector.shape_cast %5 : vector<8x1xf32> to vector<8x1x1xf32>
    %7 = vector.broadcast %6 : vector<8x1x1xf32> to vector<8x1x17xf32>
    %8 = arith.subf %4, %7 : vector<8x1x17xf32>
    %9 = math.exp %8 : vector<8x1x17xf32>
    %cst_7 = arith.constant dense<0.000000e+00> : vector<8x1xf32>
    %10 = vector.multi_reduction <add>, %9, %cst_7 [2] : vector<8x1x17xf32> to vector<8x1xf32>
    %11 = vector.shape_cast %10 : vector<8x1xf32> to vector<8x1x1xf32>
    %12 = tpu.reciprocal %11 {approx = true} : vector<8x1x1xf32> -> vector<8x1x1xf32>
    %13 = vector.broadcast %12 : vector<8x1x1xf32> to vector<8x1x17xf32>
    %14 = arith.mulf %9, %13 : vector<8x1x17xf32>
    %15 = arith.truncf %14 : vector<8x1x17xf32> to vector<8x1x17xbf16>
    %c0_8 = arith.constant 0 : index
    %c0_9 = arith.constant 0 : index
    %c0_10 = arith.constant 0 : index
    %16 = vector.load %arg3[%c0_8, %c0_9, %c0_10] : memref<8x17x16xbf16, #tpu.memory_space<vmem>>, vector<8x17x16xbf16>
    "tpu.trace_start"() <{level = 10 : i32, message = "gqk,gkd->gqd"}> : () -> ()
    %cst_11 = arith.constant dense<0.000000e+00> : vector<8x1x16xf32>
    %17 = tpu.matmul %15, %16, %cst_11 {dimension_numbers = #tpu.dot_dimension_numbers<[2], [1], [1], [2], [0, 0, 0, 1, 1, 2], [0], [0]>} : vector<8x1x17xbf16>, vector<8x17x16xbf16>, vector<8x1x16xf32> -> vector<8x1x16xf32>
    "tpu.trace_stop"() : () -> ()
    %c0_12 = arith.constant 0 : index
    %c0_13 = arith.constant 0 : index
    %c0_14 = arith.constant 0 : index
    %18 = vector.load %arg4[%c0_12, %c0_13, %c0_14] : memref<8x1x16xf32, #tpu.memory_space<vmem>>, vector<8x1x16xf32>
    tpu.vector_store %arg4[%c0_12, %c0_13, %c0_14], %17 {strides = array<i32>} : memref<8x1x16xf32, #tpu.memory_space<vmem>>, vector<8x1x16xf32>,
    return
  }
  func.func @transform_0(%arg0: i32) -> (i32, i32, i32) {
    %c0_i32 = arith.constant 0 : i32
    %c0_i32_0 = arith.constant 0 : i32
    %c0_i32_1 = arith.constant 0 : i32
    return %arg0, %c0_i32, %c0_i32_0 : i32, i32, i32
  }
  func.func @transform_1(%arg0: i32) -> (i32, i32, i32) {
    %c0_i32 = arith.constant 0 : i32
    %c0_i32_0 = arith.constant 0 : i32
    %c0_i32_1 = arith.constant 0 : i32
    return %arg0, %c0_i32, %c0_i32_0 : i32, i32, i32
  }
  func.func @transform_2(%arg0: i32) -> (i32, i32, i32) {
    %c0_i32 = arith.constant 0 : i32
    %c0_i32_0 = arith.constant 0 : i32
    %c0_i32_1 = arith.constant 0 : i32
    return %arg0, %c0_i32, %c0_i32_0 : i32, i32, i32
  }
  func.func @transform_3(%arg0: i32) -> (i32, i32, i32) {
    %c0_i32 = arith.constant 0 : i32
    %c0_i32_0 = arith.constant 0 : i32
    %c0_i32_1 = arith.constant 0 : i32
    return %arg0, %c0_i32, %c0_i32_0 : i32, i32, i32
  }
}

module attributes {stable_mosaic.version = 11 : i64} {
  func.func @_ln_matmul_kernel(%arg0: i32, %arg1: memref<8x128xf32, #tpu.memory_space<vmem>>, %arg2: memref<1x128xf32, #tpu.memory_space<vmem>>, %arg3: memref<1x128xf32, #tpu.memory_space<vmem>>, %arg4: memref<128x128xbf16, #tpu.memory_space<vmem>>, %arg5: memref<1x128xf32, #tpu.memory_space<vmem>>, %arg6: memref<8x128xf32, #tpu.memory_space<vmem>>) attributes {dimension_semantics = [#tpu.dimension_semantics<parallel>], iteration_bounds = array<i64: 1>, scalar_prefetch = 0 : i64, scratch_operands = 0 : i64, tpu.core_type = #tpu.core_type<tc>, window_params = [{transform_indices = @transform_0, window_bounds = array<i64: 8, 128>}, {pipeline_mode = #tpu.pipeline_mode<synchronous>, transform_indices = @transform_1, window_bounds = array<i64: 1, 128>}, {pipeline_mode = #tpu.pipeline_mode<synchronous>, transform_indices = @transform_2, window_bounds = array<i64: 1, 128>}, {pipeline_mode = #tpu.pipeline_mode<synchronous>, transform_indices = @transform_3, window_bounds = array<i64: 128, 128>}, {pipeline_mode = #tpu.pipeline_mode<synchronous>, transform_indices = @transform_4, window_bounds = array<i64: 1, 128>}, {transform_indices = @transform_5, window_bounds = array<i64: 8, 128>}]} {
    %c0 = arith.constant 0 : index
    %c0_0 = arith.constant 0 : index
    %0 = vector.load %arg1[%c0, %c0_0] : memref<8x128xf32, #tpu.memory_space<vmem>>, vector<8x128xf32>
    %cst = arith.constant dense<0.000000e+00> : vector<8xf32>
    %1 = vector.multi_reduction <add>, %0, %cst [1] : vector<8x128xf32> to vector<8xf32>
    %2 = vector.shape_cast %1 : vector<8xf32> to vector<8x1xf32>
    %cst_1 = arith.constant 6.400000e+01 : f32
    %3 = vector.broadcast %cst_1 : f32 to vector<8x1xf32>
    %4 = arith.divf %2, %3 : vector<8x1xf32>
    %5 = arith.mulf %0, %0 : vector<8x128xf32>
    %cst_2 = arith.constant dense<0.000000e+00> : vector<8xf32>
    %6 = vector.multi_reduction <add>, %5, %cst_2 [1] : vector<8x128xf32> to vector<8xf32>
    %7 = vector.shape_cast %6 : vector<8xf32> to vector<8x1xf32>
    %cst_3 = arith.constant 6.400000e+01 : f32
    %8 = vector.broadcast %cst_3 : f32 to vector<8x1xf32>
    %9 = arith.divf %7, %8 : vector<8x1xf32>
    %10 = arith.mulf %4, %4 : vector<8x1xf32>
    %11 = arith.subf %9, %10 : vector<8x1xf32>
    %12 = vector.broadcast %4 : vector<8x1xf32> to vector<8x128xf32>
    %13 = arith.subf %0, %12 : vector<8x128xf32>
    %cst_4 = arith.constant 9.99999974E-6 : f32
    %14 = vector.broadcast %cst_4 : f32 to vector<8x1xf32>
    %15 = arith.addf %11, %14 : vector<8x1xf32>
    %16 = math.rsqrt %15 : vector<8x1xf32>
    %17 = vector.broadcast %16 : vector<8x1xf32> to vector<8x128xf32>
    %18 = arith.mulf %13, %17 : vector<8x128xf32>
    %c0_5 = arith.constant 0 : index
    %c0_6 = arith.constant 0 : index
    %19 = vector.load %arg2[%c0_5, %c0_6] : memref<1x128xf32, #tpu.memory_space<vmem>>, vector<1x128xf32>
    %20 = vector.broadcast %19 : vector<1x128xf32> to vector<8x128xf32>
    %21 = arith.mulf %18, %20 : vector<8x128xf32>
    %c0_7 = arith.constant 0 : index
    %c0_8 = arith.constant 0 : index
    %22 = vector.load %arg3[%c0_7, %c0_8] : memref<1x128xf32, #tpu.memory_space<vmem>>, vector<1x128xf32>
    %23 = vector.broadcast %22 : vector<1x128xf32> to vector<8x128xf32>
    %24 = arith.addf %21, %23 : vector<8x128xf32>
    %25 = arith.truncf %24 : vector<8x128xf32> to vector<8x128xbf16>
    %c0_9 = arith.constant 0 : index
    %c0_10 = arith.constant 0 : index
    %26 = vector.load %arg4[%c0_9, %c0_10] : memref<128x128xbf16, #tpu.memory_space<vmem>>, vector<128x128xbf16>
    %cst_11 = arith.constant dense<0.000000e+00> : vector<8x128xf32>
    %27 = tpu.matmul %25, %26, %cst_11 {dimension_numbers = #tpu.dot_dimension_numbers<[1], [0], [0], [1], [0, 0, 1, 1], [], []>} : vector<8x128xbf16>, vector<128x128xbf16>, vector<8x128xf32> -> vector<8x128xf32>
    %c0_12 = arith.constant 0 : index
    %c0_13 = arith.constant 0 : index
    %28 = vector.load %arg5[%c0_12, %c0_13] : memref<1x128xf32, #tpu.memory_space<vmem>>, vector<1x128xf32>
    %29 = vector.broadcast %28 : vector<1x128xf32> to vector<8x128xf32>
    %30 = arith.addf %27, %29 : vector<8x128xf32>
    %c0_14 = arith.constant 0 : index
    %c0_15 = arith.constant 0 : index
    %31 = vector.load %arg6[%c0_14, %c0_15] : memref<8x128xf32, #tpu.memory_space<vmem>>, vector<8x128xf32>
    tpu.vector_store %arg6[%c0_14, %c0_15], %30 {strides = array<i32>} : memref<8x128xf32, #tpu.memory_space<vmem>>, vector<8x128xf32>,
    return
  }
  func.func @transform_0(%arg0: i32) -> (i32, i32) {
    %c0_i32 = arith.constant 0 : i32
    %c0_i32_0 = arith.constant 0 : i32
    return %arg0, %c0_i32 : i32, i32
  }
  func.func @transform_1(%arg0: i32) -> (i32, i32) {
    %c0_i32 = arith.constant 0 : i32
    %c0_i32_0 = arith.constant 0 : i32
    %c0_i32_1 = arith.constant 0 : i32
    return %c0_i32, %c0_i32_0 : i32, i32
  }
  func.func @transform_2(%arg0: i32) -> (i32, i32) {
    %c0_i32 = arith.constant 0 : i32
    %c0_i32_0 = arith.constant 0 : i32
    %c0_i32_1 = arith.constant 0 : i32
    return %c0_i32, %c0_i32_0 : i32, i32
  }
  func.func @transform_3(%arg0: i32) -> (i32, i32) {
    %c0_i32 = arith.constant 0 : i32
    %c0_i32_0 = arith.constant 0 : i32
    %c0_i32_1 = arith.constant 0 : i32
    return %c0_i32, %c0_i32_0 : i32, i32
  }
  func.func @transform_4(%arg0: i32) -> (i32, i32) {
    %c0_i32 = arith.constant 0 : i32
    %c0_i32_0 = arith.constant 0 : i32
    %c0_i32_1 = arith.constant 0 : i32
    return %c0_i32, %c0_i32_0 : i32, i32
  }
  func.func @transform_5(%arg0: i32) -> (i32, i32) {
    %c0_i32 = arith.constant 0 : i32
    %c0_i32_0 = arith.constant 0 : i32
    return %arg0, %c0_i32 : i32, i32
  }
}

module attributes {stable_mosaic.version = 11 : i64} {
  func.func @_matmul_res_kernel(%arg0: i32, %arg1: memref<8x128xbf16, #tpu.memory_space<vmem>>, %arg2: memref<128x128xbf16, #tpu.memory_space<vmem>>, %arg3: memref<1x128xf32, #tpu.memory_space<vmem>>, %arg4: memref<8x128xf32, #tpu.memory_space<vmem>>, %arg5: memref<8x128xf32, #tpu.memory_space<vmem>>) attributes {dimension_semantics = [#tpu.dimension_semantics<parallel>], iteration_bounds = array<i64: 1>, scalar_prefetch = 0 : i64, scratch_operands = 0 : i64, tpu.core_type = #tpu.core_type<tc>, window_params = [{transform_indices = @transform_0, window_bounds = array<i64: 8, 128>}, {pipeline_mode = #tpu.pipeline_mode<synchronous>, transform_indices = @transform_1, window_bounds = array<i64: 128, 128>}, {pipeline_mode = #tpu.pipeline_mode<synchronous>, transform_indices = @transform_2, window_bounds = array<i64: 1, 128>}, {transform_indices = @transform_3, window_bounds = array<i64: 8, 128>}, {transform_indices = @transform_4, window_bounds = array<i64: 8, 128>}]} {
    %c0 = arith.constant 0 : index
    %c0_0 = arith.constant 0 : index
    %0 = vector.load %arg1[%c0, %c0_0] : memref<8x128xbf16, #tpu.memory_space<vmem>>, vector<8x128xbf16>
    %c0_1 = arith.constant 0 : index
    %c0_2 = arith.constant 0 : index
    %1 = vector.load %arg2[%c0_1, %c0_2] : memref<128x128xbf16, #tpu.memory_space<vmem>>, vector<128x128xbf16>
    %cst = arith.constant dense<0.000000e+00> : vector<8x128xf32>
    %2 = tpu.matmul %0, %1, %cst {dimension_numbers = #tpu.dot_dimension_numbers<[1], [0], [0], [1], [0, 0, 1, 1], [], []>} : vector<8x128xbf16>, vector<128x128xbf16>, vector<8x128xf32> -> vector<8x128xf32>
    %c0_3 = arith.constant 0 : index
    %c0_4 = arith.constant 0 : index
    %3 = vector.load %arg3[%c0_3, %c0_4] : memref<1x128xf32, #tpu.memory_space<vmem>>, vector<1x128xf32>
    %4 = vector.broadcast %3 : vector<1x128xf32> to vector<8x128xf32>
    %5 = arith.addf %2, %4 : vector<8x128xf32>
    %c0_5 = arith.constant 0 : index
    %c0_6 = arith.constant 0 : index
    %6 = vector.load %arg4[%c0_5, %c0_6] : memref<8x128xf32, #tpu.memory_space<vmem>>, vector<8x128xf32>
    %7 = arith.addf %5, %6 : vector<8x128xf32>
    %c0_7 = arith.constant 0 : index
    %c0_8 = arith.constant 0 : index
    %8 = vector.load %arg5[%c0_7, %c0_8] : memref<8x128xf32, #tpu.memory_space<vmem>>, vector<8x128xf32>
    tpu.vector_store %arg5[%c0_7, %c0_8], %7 {strides = array<i32>} : memref<8x128xf32, #tpu.memory_space<vmem>>, vector<8x128xf32>,
    return
  }
  func.func @transform_0(%arg0: i32) -> (i32, i32) {
    %c0_i32 = arith.constant 0 : i32
    %c0_i32_0 = arith.constant 0 : i32
    return %arg0, %c0_i32 : i32, i32
  }
  func.func @transform_1(%arg0: i32) -> (i32, i32) {
    %c0_i32 = arith.constant 0 : i32
    %c0_i32_0 = arith.constant 0 : i32
    %c0_i32_1 = arith.constant 0 : i32
    return %c0_i32, %c0_i32_0 : i32, i32
  }
  func.func @transform_2(%arg0: i32) -> (i32, i32) {
    %c0_i32 = arith.constant 0 : i32
    %c0_i32_0 = arith.constant 0 : i32
    %c0_i32_1 = arith.constant 0 : i32
    return %c0_i32, %c0_i32_0 : i32, i32
  }
  func.func @transform_3(%arg0: i32) -> (i32, i32) {
    %c0_i32 = arith.constant 0 : i32
    %c0_i32_0 = arith.constant 0 : i32
    return %arg0, %c0_i32 : i32, i32
  }
  func.func @transform_4(%arg0: i32) -> (i32, i32) {
    %c0_i32 = arith.constant 0 : i32
    %c0_i32_0 = arith.constant 0 : i32
    return %arg0, %c0_i32 : i32, i32
  }
}

</mosaic_0001>

<bundles_post_ra>
// kernel: volo_forward.46
= control target key start
LH: loop header
LB: loop body
LE: loop exit
PB: predicated region body
PF: predicated region fallthrough
CT: control target
= control target key end

     0   :  { %s1076_s12 = smov 0   ;;  %s1253_s0 = inlined_call_operand.vmem [shape: bf16[512,256], index: 0, kind: input, shape index: {}]   ;;  %s1254_s1 = inlined_call_operand.vmem [shape: bf16[256,128], index: 1, kind: input, shape index: {}]   ;;  %s1255_s2 = inlined_call_operand.vmem [shape: f32[1,128], index: 2, kind: input, shape index: {}]   ;;  %s1256_s3 = inlined_call_operand.vmem [shape: f32[512,128], index: 3, kind: output, shape index: {}]  }
   0x1 LB: > { %s786_s13 = sadd.s32 4294967295, %s1054_s12   ;;  %p790_p0 = scmp.ge.s32.totalorder %s1054_s12, 1  ;;  %s1054_s12 = sphi %s1076_s12, %s13_s12  }
   0x2   : > { %p139_p1 = scmp.lt.s32.totalorder %s1054_s12, 3 }
   0x4   : > { %p140_p2 = pnand %p790_p0, %p139_p1 }
   0x5   : > { %v984_v0 = vld [vmem:[%s1254_s1 + $0x40] sm:$0xff] (!%p140_p2)   ;;  %s791_s16 = sshll.u32 (!%p140_p2), %s786_s13, 5  ;;  %v986_v2 = vld [vmem:[%s1254_s1 + $0x48] sm:$0xff] (!%p140_p2)   ;;  %v988_v4 = vld [vmem:[%s1254_s1 + $0x50] sm:$0xff] (!%p140_p2)  }
   0x6   : > { %143 = sbr.rel (%p140_p2) target bundleno = 316 (0x13c), region = 32  ;;  %v985_v1 = vld [vmem:[%s1254_s1] sm:$0xff] (!%p140_p2)   ;;  %848 = vmatprep.subr.bf16.mxu0 (!%p140_p2), %v984_v0  ;;  %960 = vmatprep.subr.bf16.mxu1 (!%p140_p2), %v984_v0  ;;  %v987_v3 = vld [vmem:[%s1254_s1 + $0x8] sm:$0xff] (!%p140_p2)   ;;  %p165_p3 = scmp.lt.s32.totalorder (!%p140_p2), %s791_s16, 63  ;;  %v989_v5 = vld [vmem:[%s1254_s1 + $0x10] sm:$0xff] (!%p140_p2)  }
   0x7   : > { %849 = vmatpush3.bf16.msra.mxu0 (!%p140_p2), %v985_v1  ;;  %968 = vmatpush3.bf16.msra.mxu1 (!%p140_p2), %v985_v1  ;;  %v990_v6 = vld [vmem:[%s1254_s1 + $0x58] sm:$0xff] (!%p140_p2)   ;;  %v992_v8 = vld [vmem:[%s1254_s1 + $0x60] sm:$0xff] (!%p140_p2)   ;;  %v994_v10 = vld [vmem:[%s1254_s1 + $0x68] sm:$0xff] (!%p140_p2)  }
   0x8   : > { %850 = vmatprep.subr.bf16.mxu0 (!%p140_p2), %v986_v2  ;;  %961 = vmatprep.subr.bf16.mxu1 (!%p140_p2), %v986_v2  ;;  %v991_v7 = vld [vmem:[%s1254_s1 + $0x18] sm:$0xff] (!%p140_p2)   ;;  %v993_v9 = vld [vmem:[%s1254_s1 + $0x20] sm:$0xff] (!%p140_p2)   ;;  %v995_v13 = vld [vmem:[%s1254_s1 + $0x28] sm:$0xff] (!%p140_p2)  }
   0x9   : > { %v996_v14 = vld [vmem:[%s1254_s1 + $0x70] sm:$0xff] (!%p140_p2)   ;;  %v998_v16 = vld [vmem:[%s1254_s1 + $0x78] sm:$0xff] (!%p140_p2)   ;;  %v1177_v50 = vld [vmem:[%s1255_s2] ss:$0 sm:$0xff] (!%p140_p2) }
   0xa   : > { %v997_v15 = vld [vmem:[%s1254_s1 + $0x30] sm:$0xff] (!%p140_p2)   ;;  %v999_v17 = vld [vmem:[%s1254_s1 + $0x38] sm:$0xff] (!%p140_p2)  }
   0xb   : > { %851 = vmatpush3.bf16.msra.mxu0 (!%p140_p2), %v987_v3  ;;  %969 = vmatpush3.bf16.msra.mxu1 (!%p140_p2), %v987_v3 }
   0xc   : > { %852 = vmatprep.subr.bf16.mxu0 (!%p140_p2), %v988_v4  ;;  %962 = vmatprep.subr.bf16.mxu1 (!%p140_p2), %v988_v4 }
   0xd   : > { %s1258_s16 = smov (!%p165_p3, %s791_s16), 63 }
   0xe   : > { %s847_s4 = sshll.u32 %s1258_s16, 3 }
   0xf   : > { %853 = vmatpush3.bf16.msra.mxu0 %v989_v5  ;;  %970 = vmatpush3.bf16.msra.mxu1 %v989_v5  ;;  %s1119_s9 = scalar_lea.vmem %s1253_s0, %s847_s4  ;;  %s1186_s30 = scalar_lea.vmem %s1256_s3, %s847_s4 }
  0x10   : > { %854 = vmatprep.subr.bf16.mxu0 %v990_v6  ;;  %963 = vmatprep.subr.bf16.mxu1 %v990_v6  ;;  %v1002_v11 = vld [vmem:[%s1119_s9 + $0x4] ss:$8 sps:$4 sm:$0xff]   ;;  %v1000_v18 = vld [vmem:[%s1119_s9] ss:$8 sps:$4 sm:$0xff]   ;;  %v1006_v20 = vld [vmem:[%s1119_s9 + $0x14] ss:$8 sps:$4 sm:$0xff]  }
  0x11   : > { %v1005_v12 = vld [vmem:[%s1119_s9 + $0x84] ss:$8 sps:$4 sm:$0xff]   ;;  %537 = vmatprep.mubr.bf16.mxu0 %v1002_v11  ;;  %v1003_v19 = vld [vmem:[%s1119_s9 + $0x80] ss:$8 sps:$4 sm:$0xff]   ;;  %v1008_v21 = vld [vmem:[%s1119_s9 + $0x94] ss:$8 sps:$4 sm:$0xff]  }
  0x12   : > { %601 = vmatprep.mubr.bf16.mxu1 %v1005_v12  ;;  %v1010_v22 = vld [vmem:[%s1119_s9 + $0x10] ss:$8 sps:$4 sm:$0xff]   ;;  %v1012_v24 = vld [vmem:[%s1119_s9 + $0x24] ss:$8 sps:$4 sm:$0xff]   ;;  %v1016_v26 = vld [vmem:[%s1119_s9 + $0x20] ss:$8 sps:$4 sm:$0xff]  }
  0x13   : > { %855 = vmatpush3.bf16.msra.mxu0 %v991_v7  ;;  %971 = vmatpush3.bf16.msra.mxu1 %v991_v7  ;;  %v1011_v23 = vld [vmem:[%s1119_s9 + $0x90] ss:$8 sps:$4 sm:$0xff]   ;;  %v1014_v25 = vld [vmem:[%s1119_s9 + $0xa4] ss:$8 sps:$4 sm:$0xff]   ;;  %v1017_v27 = vld [vmem:[%s1119_s9 + $0xa0] ss:$8 sps:$4 sm:$0xff]  }
  0x14   : > { %856 = vmatprep.subr.bf16.mxu0 %v992_v8  ;;  %964 = vmatprep.subr.bf16.mxu1 %v992_v8  ;;  %v1018_v28 = vld [vmem:[%s1119_s9 + $0x34] ss:$8 sps:$4 sm:$0xff]   ;;  %v1022_v30 = vld [vmem:[%s1119_s9 + $0x30] ss:$8 sps:$4 sm:$0xff]   ;;  %v1024_v32 = vld [vmem:[%s1119_s9 + $0x44] ss:$8 sps:$4 sm:$0xff]  }
  0x15   : > { %v1020_v29 = vld [vmem:[%s1119_s9 + $0xb4] ss:$8 sps:$4 sm:$0xff]   ;;  %v1023_v31 = vld [vmem:[%s1119_s9 + $0xb0] ss:$8 sps:$4 sm:$0xff]   ;;  %v1026_v33 = vld [vmem:[%s1119_s9 + $0xc4] ss:$8 sps:$4 sm:$0xff]  }
  0x16   : > { %v1028_v34 = vld [vmem:[%s1119_s9 + $0x40] ss:$8 sps:$4 sm:$0xff]   ;;  %v1030_v36 = vld [vmem:[%s1119_s9 + $0x54] ss:$8 sps:$4 sm:$0xff]   ;;  %v1034_v38 = vld [vmem:[%s1119_s9 + $0x50] ss:$8 sps:$4 sm:$0xff]  }
  0x17   : > { %857 = vmatpush3.bf16.msra.mxu0 %v993_v9  ;;  %972 = vmatpush3.bf16.msra.mxu1 %v993_v9  ;;  %v1029_v35 = vld [vmem:[%s1119_s9 + $0xc0] ss:$8 sps:$4 sm:$0xff]   ;;  %v1032_v37 = vld [vmem:[%s1119_s9 + $0xd4] ss:$8 sps:$4 sm:$0xff]   ;;  %v1035_v39 = vld [vmem:[%s1119_s9 + $0xd0] ss:$8 sps:$4 sm:$0xff]  }
  0x18   : > { %858 = vmatprep.subr.bf16.mxu0 %v994_v10  ;;  %965 = vmatprep.subr.bf16.mxu1 %v994_v10  ;;  %v1036_v40 = vld [vmem:[%s1119_s9 + $0x64] ss:$8 sps:$4 sm:$0xff]   ;;  %v1040_v42 = vld [vmem:[%s1119_s9 + $0x60] ss:$8 sps:$4 sm:$0xff]   ;;  %v1042_v44 = vld [vmem:[%s1119_s9 + $0x74] ss:$8 sps:$4 sm:$0xff]  }
  0x19   : > { %v1038_v41 = vld [vmem:[%s1119_s9 + $0xe4] ss:$8 sps:$4 sm:$0xff]   ;;  %v1041_v43 = vld [vmem:[%s1119_s9 + $0xe0] ss:$8 sps:$4 sm:$0xff]   ;;  %v1044_v45 = vld [vmem:[%s1119_s9 + $0xf4] ss:$8 sps:$4 sm:$0xff]  }
  0x1a   : > { %v1046_v46 = vld [vmem:[%s1119_s9 + $0x70] ss:$8 sps:$4 sm:$0xff]  }
  0x1b   : > { %859 = vmatpush3.bf16.msra.mxu0 %v995_v13  ;;  %973 = vmatpush3.bf16.msra.mxu1 %v995_v13  ;;  %v1047_v47 = vld [vmem:[%s1119_s9 + $0xf0] ss:$8 sps:$4 sm:$0xff]  }
  0x1c   : > { %860 = vmatprep.subr.bf16.mxu0 %v996_v14  ;;  %966 = vmatprep.subr.bf16.mxu1 %v996_v14 }
  0x1f   : > { %861 = vmatpush3.bf16.msra.mxu0 %v997_v15  ;;  %974 = vmatpush3.bf16.msra.mxu1 %v997_v15 }
  0x20   : > { %862 = vmatprep.subr.bf16.mxu0 %v998_v16  ;;  %967 = vmatprep.subr.bf16.mxu1 %v998_v16 }
  0x23   : > { %863 = vmatpush3.bf16.msra.mxu0 %v999_v17  ;;  %975 = vmatpush3.bf16.msra.mxu1 %v999_v17 }
  0x26   : > { %538 = vmatmul.mubr.bf16.vlgmr.msra.gmra.mrb[0].mxu0 %v1000_v18  ;;  %602 = vmatmul.mubr.bf16.vlgmr.msra.gmra.mrb[0].mxu1 %v1003_v19 }
  0x27   : > { %545 = vmatprep.mubr.bf16.mxu0 %v1006_v20  ;;  %609 = vmatprep.mubr.bf16.mxu1 %v1008_v21 }
  0x2e   : > { %546 = vmatmul.mubr.bf16.gmra.mrb[4].mxu0 %v1010_v22  ;;  %610 = vmatmul.mubr.bf16.gmra.mrb[4].mxu1 %v1011_v23 }
  0x2f   : > { %553 = vmatprep.mubr.bf16.mxu0 %v1012_v24  ;;  %617 = vmatprep.mubr.bf16.mxu1 %v1014_v25 }
  0x36   : > { %554 = vmatmul.mubr.bf16.gmra.mrb[8].mxu0 %v1016_v26  ;;  %618 = vmatmul.mubr.bf16.gmra.mrb[8].mxu1 %v1017_v27 }
  0x37   : > { %561 = vmatprep.mubr.bf16.mxu0 %v1018_v28  ;;  %625 = vmatprep.mubr.bf16.mxu1 %v1020_v29 }
  0x3e   : > { %562 = vmatmul.mubr.bf16.gmra.mrb[12].mxu0 %v1022_v30  ;;  %626 = vmatmul.mubr.bf16.gmra.mrb[12].mxu1 %v1023_v31 }
  0x3f   : > { %569 = vmatprep.mubr.bf16.mxu0 %v1024_v32  ;;  %633 = vmatprep.mubr.bf16.mxu1 %v1026_v33 }
  0x46   : > { %570 = vmatmul.mubr.bf16.gmra.mrb[16].mxu0 %v1028_v34  ;;  %634 = vmatmul.mubr.bf16.gmra.mrb[16].mxu1 %v1029_v35 }
  0x47   : > { %577 = vmatprep.mubr.bf16.mxu0 %v1030_v36  ;;  %641 = vmatprep.mubr.bf16.mxu1 %v1032_v37 }
  0x4e   : > { %578 = vmatmul.mubr.bf16.gmra.mrb[20].mxu0 %v1034_v38  ;;  %642 = vmatmul.mubr.bf16.gmra.mrb[20].mxu1 %v1035_v39 }
  0x4f   : > { %585 = vmatprep.mubr.bf16.mxu0 %v1036_v40  ;;  %649 = vmatprep.mubr.bf16.mxu1 %v1038_v41 }
  0x56   : > { %586 = vmatmul.mubr.bf16.gmra.mrb[24].mxu0 %v1040_v42  ;;  %650 = vmatmul.mubr.bf16.gmra.mrb[24].mxu1 %v1041_v43 }
  0x57   : > { %593 = vmatprep.mubr.bf16.mxu0 %v1042_v44  ;;  %657 = vmatprep.mubr.bf16.mxu1 %v1044_v45 }
  0x5e   : > { %594 = vmatmul.mubr.bf16.gmra.mrb[28].mxu0 %v1046_v46  ;;  %658 = vmatmul.mubr.bf16.gmra.mrb[28].mxu1 %v1047_v47 }
  0xf9   : > { %v864_v48 = vpop.f32.mrb[0].mxu0  ;;  %v912_v49 = vpop.f32.mrb[0].mxu1 }
  0xfa   : > { %v865_v51 = vpop.f32.mrb[1].mxu0  ;;  %v913_v52 = vpop.f32.mrb[1].mxu1 }
  0xfb   : > { %v866_v53 = vadd.f32 %v865_v51, %v864_v48  ;;  %v914_v54 = vadd.f32 %v913_v52, %v912_v49  ;;  %v867_v55 = vpop.f32.mrb[2].mxu0  ;;  %v915_v56 = vpop.f32.mrb[2].mxu1 }
  0xfc   : > { %v868_v57 = vpop.f32.mrb[3].mxu0  ;;  %v916_v58 = vpop.f32.mrb[3].mxu1 }
  0xfd   : > { %v540_v59 = vadd.f32 %v866_v53, %v1177_v50  ;;  %v604_v60 = vadd.f32 %v914_v54, %v1177_v50  ;;  %v869_v61 = vadd.f32 %v868_v57, %v867_v55  ;;  %v917_v62 = vadd.f32 %v916_v58, %v915_v56 }
  0xff   : > { %v666_v63 = vmax.f32 %v540_v59, 0.0  ;;  %v682_v0 = vmax.f32 %v604_v60, 0.0  ;;  %v543_v1 = vadd.f32 %v869_v61, %v1177_v50  ;;  %v607_v2 = vadd.f32 %v917_v62, %v1177_v50 }
 0x101   : > { %698 = vst [vmem:[%s1186_s30] sm:$0xff] %v666_v63  ;;  %714 = vst [vmem:[%s1186_s30 + $0x80] sm:$0xff] %v682_v0  ;;  %v667_v3 = vmax.f32 %v543_v1, 0.0  ;;  %v683_v4 = vmax.f32 %v607_v2, 0.0  ;;  %v870_v5 = vpop.f32.mrb[4].mxu0  ;;  %v918_v6 = vpop.f32.mrb[4].mxu1 }
 0x102   : > { %v871_v7 = vpop.f32.mrb[5].mxu0  ;;  %v919_v8 = vpop.f32.mrb[5].mxu1 }
 0x103   : > { %699 = vst [vmem:[%s1186_s30 + $0x8] sm:$0xff] %v667_v3  ;;  %715 = vst [vmem:[%s1186_s30 + $0x88] sm:$0xff] %v683_v4  ;;  %v872_v9 = vadd.f32 %v871_v7, %v870_v5  ;;  %v920_v10 = vadd.f32 %v919_v8, %v918_v6  ;;  %v873_v11 = vpop.f32.mrb[6].mxu0  ;;  %v921_v12 = vpop.f32.mrb[6].mxu1 }
 0x104   : > { %v874_v13 = vpop.f32.mrb[7].mxu0  ;;  %v922_v14 = vpop.f32.mrb[7].mxu1 }
 0x105   : > { %v548_v15 = vadd.f32 %v872_v9, %v1177_v50  ;;  %v612_v16 = vadd.f32 %v920_v10, %v1177_v50  ;;  %v875_v17 = vadd.f32 %v874_v13, %v873_v11  ;;  %v923_v18 = vadd.f32 %v922_v14, %v921_v12 }
 0x107   : > { %v668_v19 = vmax.f32 %v548_v15, 0.0  ;;  %v684_v20 = vmax.f32 %v612_v16, 0.0  ;;  %v551_v21 = vadd.f32 %v875_v17, %v1177_v50  ;;  %v615_v22 = vadd.f32 %v923_v18, %v1177_v50 }
 0x109   : > { %700 = vst [vmem:[%s1186_s30 + $0x10] sm:$0xff] %v668_v19  ;;  %716 = vst [vmem:[%s1186_s30 + $0x90] sm:$0xff] %v684_v20  ;;  %v669_v23 = vmax.f32 %v551_v21, 0.0  ;;  %v685_v24 = vmax.f32 %v615_v22, 0.0  ;;  %v876_v25 = vpop.f32.mrb[8].mxu0  ;;  %v924_v26 = vpop.f32.mrb[8].mxu1 }
 0x10a   : > { %v877_v27 = vpop.f32.mrb[9].mxu0  ;;  %v925_v28 = vpop.f32.mrb[9].mxu1 }
 0x10b   : > { %701 = vst [vmem:[%s1186_s30 + $0x18] sm:$0xff] %v669_v23  ;;  %717 = vst [vmem:[%s1186_s30 + $0x98] sm:$0xff] %v685_v24  ;;  %v878_v29 = vadd.f32 %v877_v27, %v876_v25  ;;  %v926_v30 = vadd.f32 %v925_v28, %v924_v26  ;;  %v879_v31 = vpop.f32.mrb[10].mxu0  ;;  %v927_v32 = vpop.f32.mrb[10].mxu1 }
 0x10c   : > { %v880_v33 = vpop.f32.mrb[11].mxu0  ;;  %v928_v34 = vpop.f32.mrb[11].mxu1 }
 0x10d   : > { %v556_v35 = vadd.f32 %v878_v29, %v1177_v50  ;;  %v620_v36 = vadd.f32 %v926_v30, %v1177_v50  ;;  %v881_v37 = vadd.f32 %v880_v33, %v879_v31  ;;  %v929_v38 = vadd.f32 %v928_v34, %v927_v32 }
 0x10f   : > { %v670_v39 = vmax.f32 %v556_v35, 0.0  ;;  %v686_v40 = vmax.f32 %v620_v36, 0.0  ;;  %v559_v41 = vadd.f32 %v881_v37, %v1177_v50  ;;  %v623_v42 = vadd.f32 %v929_v38, %v1177_v50 }
 0x111   : > { %702 = vst [vmem:[%s1186_s30 + $0x20] sm:$0xff] %v670_v39  ;;  %718 = vst [vmem:[%s1186_s30 + $0xa0] sm:$0xff] %v686_v40  ;;  %v671_v43 = vmax.f32 %v559_v41, 0.0  ;;  %v687_v44 = vmax.f32 %v623_v42, 0.0  ;;  %v882_v45 = vpop.f32.mrb[12].mxu0  ;;  %v930_v46 = vpop.f32.mrb[12].mxu1 }
 0x112   : > { %v883_v47 = vpop.f32.mrb[13].mxu0  ;;  %v931_v48 = vpop.f32.mrb[13].mxu1 }
 0x113   : > { %703 = vst [vmem:[%s1186_s30 + $0x28] sm:$0xff] %v671_v43  ;;  %719 = vst [vmem:[%s1186_s30 + $0xa8] sm:$0xff] %v687_v44  ;;  %v884_v49 = vadd.f32 %v883_v47, %v882_v45  ;;  %v932_v51 = vadd.f32 %v931_v48, %v930_v46  ;;  %v885_v52 = vpop.f32.mrb[14].mxu0  ;;  %v933_v53 = vpop.f32.mrb[14].mxu1 }
 0x114   : > { %v886_v54 = vpop.f32.mrb[15].mxu0  ;;  %v934_v55 = vpop.f32.mrb[15].mxu1 }
 0x115   : > { %v564_v56 = vadd.f32 %v884_v49, %v1177_v50  ;;  %v628_v57 = vadd.f32 %v932_v51, %v1177_v50  ;;  %v887_v58 = vadd.f32 %v886_v54, %v885_v52  ;;  %v935_v59 = vadd.f32 %v934_v55, %v933_v53 }
 0x117   : > { %v672_v60 = vmax.f32 %v564_v56, 0.0  ;;  %v688_v61 = vmax.f32 %v628_v57, 0.0  ;;  %v567_v62 = vadd.f32 %v887_v58, %v1177_v50  ;;  %v631_v63 = vadd.f32 %v935_v59, %v1177_v50 }
 0x119   : > { %704 = vst [vmem:[%s1186_s30 + $0x30] sm:$0xff] %v672_v60  ;;  %720 = vst [vmem:[%s1186_s30 + $0xb0] sm:$0xff] %v688_v61  ;;  %v673_v0 = vmax.f32 %v567_v62, 0.0  ;;  %v689_v1 = vmax.f32 %v631_v63, 0.0  ;;  %v888_v2 = vpop.f32.mrb[16].mxu0  ;;  %v936_v3 = vpop.f32.mrb[16].mxu1 }
 0x11a   : > { %v889_v4 = vpop.f32.mrb[17].mxu0  ;;  %v937_v5 = vpop.f32.mrb[17].mxu1 }
 0x11b   : > { %705 = vst [vmem:[%s1186_s30 + $0x38] sm:$0xff] %v673_v0  ;;  %721 = vst [vmem:[%s1186_s30 + $0xb8] sm:$0xff] %v689_v1  ;;  %v890_v6 = vadd.f32 %v889_v4, %v888_v2  ;;  %v938_v7 = vadd.f32 %v937_v5, %v936_v3  ;;  %v891_v8 = vpop.f32.mrb[18].mxu0  ;;  %v939_v9 = vpop.f32.mrb[18].mxu1 }
 0x11c   : > { %v892_v10 = vpop.f32.mrb[19].mxu0  ;;  %v940_v11 = vpop.f32.mrb[19].mxu1 }
 0x11d   : > { %v572_v12 = vadd.f32 %v890_v6, %v1177_v50  ;;  %v636_v13 = vadd.f32 %v938_v7, %v1177_v50  ;;  %v893_v14 = vadd.f32 %v892_v10, %v891_v8  ;;  %v941_v15 = vadd.f32 %v940_v11, %v939_v9 }
 0x11f   : > { %v674_v16 = vmax.f32 %v572_v12, 0.0  ;;  %v690_v17 = vmax.f32 %v636_v13, 0.0  ;;  %v575_v18 = vadd.f32 %v893_v14, %v1177_v50  ;;  %v639_v19 = vadd.f32 %v941_v15, %v1177_v50 }
 0x121   : > { %706 = vst [vmem:[%s1186_s30 + $0x40] sm:$0xff] %v674_v16  ;;  %722 = vst [vmem:[%s1186_s30 + $0xc0] sm:$0xff] %v690_v17  ;;  %v675_v20 = vmax.f32 %v575_v18, 0.0  ;;  %v691_v21 = vmax.f32 %v639_v19, 0.0  ;;  %v894_v22 = vpop.f32.mrb[20].mxu0  ;;  %v942_v23 = vpop.f32.mrb[20].mxu1 }
 0x122   : > { %v895_v24 = vpop.f32.mrb[21].mxu0  ;;  %v943_v25 = vpop.f32.mrb[21].mxu1 }
 0x123   : > { %707 = vst [vmem:[%s1186_s30 + $0x48] sm:$0xff] %v675_v20  ;;  %723 = vst [vmem:[%s1186_s30 + $0xc8] sm:$0xff] %v691_v21  ;;  %v896_v26 = vadd.f32 %v895_v24, %v894_v22  ;;  %v944_v27 = vadd.f32 %v943_v25, %v942_v23  ;;  %v897_v28 = vpop.f32.mrb[22].mxu0  ;;  %v945_v29 = vpop.f32.mrb[22].mxu1 }
 0x124   : > { %v898_v30 = vpop.f32.mrb[23].mxu0  ;;  %v946_v31 = vpop.f32.mrb[23].mxu1 }
 0x125   : > { %v580_v32 = vadd.f32 %v896_v26, %v1177_v50  ;;  %v644_v33 = vadd.f32 %v944_v27, %v1177_v50  ;;  %v899_v34 = vadd.f32 %v898_v30, %v897_v28  ;;  %v947_v35 = vadd.f32 %v946_v31, %v945_v29 }
 0x127   : > { %v676_v36 = vmax.f32 %v580_v32, 0.0  ;;  %v692_v37 = vmax.f32 %v644_v33, 0.0  ;;  %v583_v38 = vadd.f32 %v899_v34, %v1177_v50  ;;  %v647_v39 = vadd.f32 %v947_v35, %v1177_v50 }
 0x129   : > { %708 = vst [vmem:[%s1186_s30 + $0x50] sm:$0xff] %v676_v36  ;;  %724 = vst [vmem:[%s1186_s30 + $0xd0] sm:$0xff] %v692_v37  ;;  %v677_v40 = vmax.f32 %v583_v38, 0.0  ;;  %v693_v41 = vmax.f32 %v647_v39, 0.0  ;;  %v900_v42 = vpop.f32.mrb[24].mxu0  ;;  %v948_v43 = vpop.f32.mrb[24].mxu1 }
 0x12a   : > { %v901_v44 = vpop.f32.mrb[25].mxu0  ;;  %v949_v45 = vpop.f32.mrb[25].mxu1 }
 0x12b   : > { %709 = vst [vmem:[%s1186_s30 + $0x58] sm:$0xff] %v677_v40  ;;  %725 = vst [vmem:[%s1186_s30 + $0xd8] sm:$0xff] %v693_v41  ;;  %v902_v46 = vadd.f32 %v901_v44, %v900_v42  ;;  %v950_v47 = vadd.f32 %v949_v45, %v948_v43  ;;  %v903_v48 = vpop.f32.mrb[26].mxu0  ;;  %v951_v49 = vpop.f32.mrb[26].mxu1 }
 0x12c   : > { %v904_v51 = vpop.f32.mrb[27].mxu0  ;;  %v952_v52 = vpop.f32.mrb[27].mxu1 }
 0x12d   : > { %v588_v53 = vadd.f32 %v902_v46, %v1177_v50  ;;  %v652_v54 = vadd.f32 %v950_v47, %v1177_v50  ;;  %v905_v55 = vadd.f32 %v904_v51, %v903_v48  ;;  %v953_v56 = vadd.f32 %v952_v52, %v951_v49 }
 0x12f   : > { %v678_v57 = vmax.f32 %v588_v53, 0.0  ;;  %v694_v58 = vmax.f32 %v652_v54, 0.0  ;;  %v591_v59 = vadd.f32 %v905_v55, %v1177_v50  ;;  %v655_v60 = vadd.f32 %v953_v56, %v1177_v50 }
 0x131   : > { %710 = vst [vmem:[%s1186_s30 + $0x60] sm:$0xff] %v678_v57  ;;  %726 = vst [vmem:[%s1186_s30 + $0xe0] sm:$0xff] %v694_v58  ;;  %v679_v61 = vmax.f32 %v591_v59, 0.0  ;;  %v695_v62 = vmax.f32 %v655_v60, 0.0  ;;  %v906_v63 = vpop.f32.mrb[28].mxu0  ;;  %v954_v0 = vpop.f32.mrb[28].mxu1 }
 0x132   : > { %v907_v1 = vpop.f32.mrb[29].mxu0  ;;  %v955_v2 = vpop.f32.mrb[29].mxu1 }
 0x133   : > { %711 = vst [vmem:[%s1186_s30 + $0x68] sm:$0xff] %v679_v61  ;;  %727 = vst [vmem:[%s1186_s30 + $0xe8] sm:$0xff] %v695_v62  ;;  %v908_v3 = vadd.f32 %v907_v1, %v906_v63  ;;  %v956_v4 = vadd.f32 %v955_v2, %v954_v0  ;;  %v909_v5 = vpop.f32.mrb[30].mxu0  ;;  %v957_v6 = vpop.f32.mrb[30].mxu1 }
 0x134   : > { %v910_v7 = vpop.f32.mrb[31].mxu0  ;;  %v958_v8 = vpop.f32.mrb[31].mxu1 }
 0x135   : > { %v596_v9 = vadd.f32 %v908_v3, %v1177_v50  ;;  %v660_v10 = vadd.f32 %v956_v4, %v1177_v50  ;;  %v911_v11 = vadd.f32 %v910_v7, %v909_v5  ;;  %v959_v12 = vadd.f32 %v958_v8, %v957_v6 }
 0x137   : > { %v680_v13 = vmax.f32 %v596_v9, 0.0  ;;  %v696_v14 = vmax.f32 %v660_v10, 0.0  ;;  %v599_v15 = vadd.f32 %v911_v11, %v1177_v50  ;;  %v663_v16 = vadd.f32 %v959_v12, %v1177_v50 }
 0x139   : > { %712 = vst [vmem:[%s1186_s30 + $0x70] sm:$0xff] %v680_v13  ;;  %728 = vst [vmem:[%s1186_s30 + $0xf0] sm:$0xff] %v696_v14  ;;  %v681_v17 = vmax.f32 %v599_v15, 0.0  ;;  %v697_v18 = vmax.f32 %v663_v16, 0.0 }
 0x13b   : > { %713 = vst [vmem:[%s1186_s30 + $0x78] sm:$0xff] %v681_v17  ;;  %729 = vst [vmem:[%s1186_s30 + $0xf8] sm:$0xff] %v697_v18 }
 0x13c PF: > { %s13_s12 = sadd.s32 1, %s1054_s12  }
 0x13d   : > { %p10_p4 = scmp.ge.s32.totalorder %s13_s12, 4  }
 0x13f   :  { %12 = sbr.rel (!%p10_p4) target bundleno = 1 (0x1), region = 62 }

// kernel: volo_forward.49
= control target key start
LH: loop header
LB: loop body
LE: loop exit
PB: predicated region body
PF: predicated region fallthrough
CT: control target
= control target key end

     0   :  { %s483_s1 = inlined_call_operand.vmem [shape: bf16[128,128], index: 1, kind: input, shape index: {}]   ;;  %s484_s0 = inlined_call_operand.vmem [shape: bf16[128,128], index: 0, kind: input, shape index: {}]   ;;  %s485_s2 = inlined_call_operand.vmem [shape: f32[1,128], index: 2, kind: input, shape index: {}]   ;;  %s486_s3 = inlined_call_operand.vmem [shape: f32[128,128], index: 3, kind: output, shape index: {}]  }
   0x1   :  { %v348_v0 = vld [vmem:[%s483_s1] sm:$0xff]   ;;  %v349_v1 = vld [vmem:[%s483_s1 + $0x8] sm:$0xff]   ;;  %v350_v2 = vld [vmem:[%s483_s1 + $0x10] sm:$0xff]  }
   0x2   :  { %300 = vmatprep.subr.bf16.mxu0 %v348_v0  ;;  %332 = vmatprep.subr.bf16.mxu1 %v348_v0  ;;  %v351_v3 = vld [vmem:[%s483_s1 + $0x18] sm:$0xff]   ;;  %v356_v4 = vld [vmem:[%s484_s0] sm:$0xff]   ;;  %v353_v7 = vld [vmem:[%s483_s1 + $0x28] sm:$0xff]  }
   0x3   :  { %301 = vmatpush3.bf16.msra.mxu0 %v348_v0  ;;  %340 = vmatpush3.bf16.msra.mxu1 %v348_v0  ;;  %v357_v5 = vld [vmem:[%s484_s0 + $0x20] sm:$0xff]   ;;  %v354_v8 = vld [vmem:[%s483_s1 + $0x30] sm:$0xff]   ;;  %v355_v9 = vld [vmem:[%s483_s1 + $0x38] sm:$0xff]  }
   0x4   :  { %302 = vmatprep.subr.bf16.mxu0 %v349_v1  ;;  %333 = vmatprep.subr.bf16.mxu1 %v349_v1  ;;  %v352_v6 = vld [vmem:[%s483_s1 + $0x20] sm:$0xff]   ;;  %v358_v10 = vld [vmem:[%s484_s0 + $0x8] sm:$0xff]   ;;  %v360_v12 = vld [vmem:[%s484_s0 + $0x10] sm:$0xff]  }
   0x5   :  { %316 = vmatprep.mubr.bf16.mxu0 %v356_v4  ;;  %324 = vmatprep.mubr.bf16.mxu1 %v357_v5  ;;  %v359_v11 = vld [vmem:[%s484_s0 + $0x28] sm:$0xff]   ;;  %v361_v13 = vld [vmem:[%s484_s0 + $0x30] sm:$0xff]   ;;  %v362_v14 = vld [vmem:[%s484_s0 + $0x18] sm:$0xff]  }
   0x6   :  { %v363_v15 = vld [vmem:[%s484_s0 + $0x38] sm:$0xff]   ;;  %v267_v16 = vld [vmem:[%s485_s2] ss:$0 sm:$0xff] }
   0x7   :  { %303 = vmatpush3.bf16.msra.mxu0 %v349_v1  ;;  %341 = vmatpush3.bf16.msra.mxu1 %v349_v1 }
   0x8   :  { %304 = vmatprep.subr.bf16.mxu0 %v350_v2  ;;  %334 = vmatprep.subr.bf16.mxu1 %v350_v2 }
   0xb   :  { %305 = vmatpush3.bf16.msra.mxu0 %v350_v2  ;;  %342 = vmatpush3.bf16.msra.mxu1 %v350_v2 }
   0xc   :  { %306 = vmatprep.subr.bf16.mxu0 %v351_v3  ;;  %335 = vmatprep.subr.bf16.mxu1 %v351_v3 }
   0xf   :  { %307 = vmatpush3.bf16.msra.mxu0 %v351_v3  ;;  %343 = vmatpush3.bf16.msra.mxu1 %v351_v3 }
  0x10   :  { %308 = vmatprep.subr.bf16.mxu0 %v352_v6  ;;  %336 = vmatprep.subr.bf16.mxu1 %v352_v6 }
  0x13   :  { %309 = vmatpush3.bf16.msra.mxu0 %v352_v6  ;;  %344 = vmatpush3.bf16.msra.mxu1 %v352_v6 }
  0x14   :  { %310 = vmatprep.subr.bf16.mxu0 %v353_v7  ;;  %337 = vmatprep.subr.bf16.mxu1 %v353_v7 }
  0x17   :  { %311 = vmatpush3.bf16.msra.mxu0 %v353_v7  ;;  %345 = vmatpush3.bf16.msra.mxu1 %v353_v7 }
  0x18   :  { %312 = vmatprep.subr.bf16.mxu0 %v354_v8  ;;  %338 = vmatprep.subr.bf16.mxu1 %v354_v8 }
  0x1b   :  { %313 = vmatpush3.bf16.msra.mxu0 %v354_v8  ;;  %346 = vmatpush3.bf16.msra.mxu1 %v354_v8 }
  0x1c   :  { %314 = vmatprep.subr.bf16.mxu0 %v355_v9  ;;  %339 = vmatprep.subr.bf16.mxu1 %v355_v9 }
  0x1f   :  { %315 = vmatpush3.bf16.msra.mxu0 %v355_v9  ;;  %347 = vmatpush3.bf16.msra.mxu1 %v355_v9 }
  0x22   :  { %317 = vmatmul.mubr.bf16.vlgmr.msra.gmra.mrb[0].mxu0 %v358_v10  ;;  %325 = vmatmul.mubr.bf16.vlgmr.msra.gmra.mrb[0].mxu1 %v359_v11 }
  0x23   :  { %320 = vmatprep.mubr.bf16.mxu0 %v360_v12  ;;  %328 = vmatprep.mubr.bf16.mxu1 %v361_v13 }
  0x2a   :  { %321 = vmatmul.mubr.bf16.gmra.mrb[4].mxu0 %v362_v14  ;;  %329 = vmatmul.mubr.bf16.gmra.mrb[4].mxu1 %v363_v15 }
  0xf5   :  { %v318_v17 = vpop.f32.mrb[0].mxu0  ;;  %v326_v18 = vpop.f32.mrb[0].mxu1 }
  0xf6   :  { %v193_v19 = vadd.f32 %v318_v17, %v267_v16  ;;  %v225_v20 = vadd.f32 %v326_v18, %v267_v16  ;;  %v184_v21 = vpop.f32.mrb[1].mxu0  ;;  %v216_v22 = vpop.f32.mrb[1].mxu1 }
  0xf7   :  { %v185_v23 = vadd.f32 %v267_v16, %v184_v21  ;;  %v217_v24 = vadd.f32 %v267_v16, %v216_v22  ;;  %v319_v25 = vpop.f32.mrb[2].mxu0  ;;  %v327_v26 = vpop.f32.mrb[2].mxu1 }
  0xf8   :  { %249 = vst [vmem:[%s486_s3 + $0x10] sm:$0xff] %v193_v19  ;;  %257 = vst [vmem:[%s486_s3 + $0x50] sm:$0xff] %v225_v20  ;;  %v196_v27 = vadd.f32 %v319_v25, %v267_v16  ;;  %v228_v28 = vadd.f32 %v327_v26, %v267_v16  ;;  %v187_v29 = vpop.f32.mrb[3].mxu0  ;;  %v219_v30 = vpop.f32.mrb[3].mxu1 }
  0xf9   :  { %247 = vst [vmem:[%s486_s3] sm:$0xff] %v185_v23  ;;  %255 = vst [vmem:[%s486_s3 + $0x40] sm:$0xff] %v217_v24  ;;  %v188_v31 = vadd.f32 %v267_v16, %v187_v29  ;;  %v220_v32 = vadd.f32 %v267_v16, %v219_v30 }
  0xfa   :  { %250 = vst [vmem:[%s486_s3 + $0x18] sm:$0xff] %v196_v27  ;;  %258 = vst [vmem:[%s486_s3 + $0x58] sm:$0xff] %v228_v28 }
  0xfb   :  { %248 = vst [vmem:[%s486_s3 + $0x8] sm:$0xff] %v188_v31  ;;  %256 = vst [vmem:[%s486_s3 + $0x48] sm:$0xff] %v220_v32 }
  0xfd   :  { %v322_v33 = vpop.f32.mrb[4].mxu0  ;;  %v330_v34 = vpop.f32.mrb[4].mxu1 }
  0xfe   :  { %v209_v35 = vadd.f32 %v322_v33, %v267_v16  ;;  %v241_v36 = vadd.f32 %v330_v34, %v267_v16  ;;  %v200_v37 = vpop.f32.mrb[5].mxu0  ;;  %v232_v38 = vpop.f32.mrb[5].mxu1 }
  0xff   :  { %v201_v39 = vadd.f32 %v267_v16, %v200_v37  ;;  %v233_v40 = vadd.f32 %v267_v16, %v232_v38  ;;  %v323_v41 = vpop.f32.mrb[6].mxu0  ;;  %v331_v42 = vpop.f32.mrb[6].mxu1 }
 0x100   :  { %253 = vst [vmem:[%s486_s3 + $0x30] sm:$0xff] %v209_v35  ;;  %261 = vst [vmem:[%s486_s3 + $0x70] sm:$0xff] %v241_v36  ;;  %v212_v43 = vadd.f32 %v323_v41, %v267_v16  ;;  %v244_v44 = vadd.f32 %v331_v42, %v267_v16  ;;  %v203_v45 = vpop.f32.mrb[7].mxu0  ;;  %v235_v46 = vpop.f32.mrb[7].mxu1 }
 0x101   :  { %251 = vst [vmem:[%s486_s3 + $0x20] sm:$0xff] %v201_v39  ;;  %259 = vst [vmem:[%s486_s3 + $0x60] sm:$0xff] %v233_v40  ;;  %v204_v47 = vadd.f32 %v267_v16, %v203_v45  ;;  %v236_v48 = vadd.f32 %v267_v16, %v235_v46 }
 0x102   :  { %254 = vst [vmem:[%s486_s3 + $0x38] sm:$0xff] %v212_v43  ;;  %262 = vst [vmem:[%s486_s3 + $0x78] sm:$0xff] %v244_v44 }
 0x103   :  { %252 = vst [vmem:[%s486_s3 + $0x28] sm:$0xff] %v204_v47  ;;  %260 = vst [vmem:[%s486_s3 + $0x68] sm:$0xff] %v236_v48 }

// kernel: volo_forward.50
= control target key start
LH: loop header
LB: loop body
LE: loop exit
PB: predicated region body
PF: predicated region fallthrough
CT: control target
= control target key end

     0   :  { %s709_s0 = inlined_call_operand.vmem [shape: f32[128,128], index: 0, kind: input, shape index: {}]   ;;  %s710_s1 = inlined_call_operand.vmem [shape: f32[1,128], index: 1, kind: input, shape index: {}]   ;;  %s711_s2 = inlined_call_operand.vmem [shape: f32[1,128], index: 2, kind: input, shape index: {}]   ;;  %s712_s3 = inlined_call_operand.vmem [shape: f32[128,128], index: 3, kind: output, shape index: {}]  }
   0x1   :  { %v362_v0 = vld [vmem:[%s709_s0 + $0x10] sm:$0xff]  ;;  %v367_v1 = vld [vmem:[%s709_s0] sm:$0xff]  ;;  %v374_v2 = vld [vmem:[%s709_s0 + $0x18] sm:$0xff] }
   0x2   :  { %34 = vadd.xlane.f32.xlu1 %v362_v0  ;;  %30 = vadd.xlane.f32.xlu0 %v367_v1  ;;  %v379_v3 = vld [vmem:[%s709_s0 + $0x8] sm:$0xff]  ;;  %v391_v5 = vld [vmem:[%s709_s0 + $0x20] sm:$0xff]  ;;  %v398_v6 = vld [vmem:[%s709_s0 + $0x38] sm:$0xff]  ;;  %v79_v17 = vmul.f32 %v367_v1, %v367_v1  ;;  %v82_v18 = vmul.f32 %v374_v2, %v374_v2  ;;  %v81_v19 = vmul.f32 %v362_v0, %v362_v0 }
   0x3   :  { %v386_v4 = vld [vmem:[%s709_s0 + $0x28] sm:$0xff]  ;;  %v403_v7 = vld [vmem:[%s709_s0 + $0x30] sm:$0xff]  ;;  %v415_v9 = vld [vmem:[%s709_s0 + $0x40] sm:$0xff]  ;;  %v80_v16 = vmul.f32 %v379_v3, %v379_v3  ;;  %v83_v21 = vmul.f32 %v391_v5, %v391_v5  ;;  %v86_v22 = vmul.f32 %v398_v6, %v398_v6 }
   0x4   :  { %v410_v8 = vld [vmem:[%s709_s0 + $0x48] sm:$0xff]  ;;  %v422_v10 = vld [vmem:[%s709_s0 + $0x58] sm:$0xff]  ;;  %v427_v11 = vld [vmem:[%s709_s0 + $0x50] sm:$0xff]  ;;  %v84_v20 = vmul.f32 %v386_v4, %v386_v4  ;;  %v85_v23 = vmul.f32 %v403_v7, %v403_v7  ;;  %v87_v25 = vmul.f32 %v415_v9, %v415_v9 }
   0x5   :  { %v434_v12 = vld [vmem:[%s709_s0 + $0x68] sm:$0xff]  ;;  %v439_v13 = vld [vmem:[%s709_s0 + $0x60] sm:$0xff]  ;;  %v446_v14 = vld [vmem:[%s709_s0 + $0x78] sm:$0xff]  ;;  %v88_v24 = vmul.f32 %v410_v8, %v410_v8  ;;  %v90_v26 = vmul.f32 %v422_v10, %v422_v10  ;;  %v89_v27 = vmul.f32 %v427_v11, %v427_v11 }
   0x6   :  { %36 = vadd.xlane.f32.xlu1 %v374_v2  ;;  %32 = vadd.xlane.f32.xlu0 %v379_v3  ;;  %v451_v15 = vld [vmem:[%s709_s0 + $0x70] sm:$0xff]  ;;  %v92_v28 = vmul.f32 %v434_v12, %v434_v12  ;;  %v91_v29 = vmul.f32 %v439_v13, %v439_v13  ;;  %v94_v30 = vmul.f32 %v446_v14, %v446_v14 }
   0x7   :  { %v93_v31 = vmul.f32 %v451_v15, %v451_v15 }
   0xa   :  { %40 = vadd.xlane.f32.xlu1 %v386_v4  ;;  %38 = vadd.xlane.f32.xlu0 %v391_v5 }
   0xe   :  { %44 = vadd.xlane.f32.xlu1 %v398_v6  ;;  %42 = vadd.xlane.f32.xlu0 %v403_v7 }
  0x12   :  { %48 = vadd.xlane.f32.xlu1 %v410_v8  ;;  %46 = vadd.xlane.f32.xlu0 %v415_v9 }
  0x16   :  { %52 = vadd.xlane.f32.xlu1 %v422_v10  ;;  %50 = vadd.xlane.f32.xlu0 %v427_v11 }
  0x1a   :  { %56 = vadd.xlane.f32.xlu1 %v434_v12  ;;  %54 = vadd.xlane.f32.xlu0 %v439_v13 }
  0x1e   :  { %60 = vadd.xlane.f32.xlu1 %v446_v14  ;;  %58 = vadd.xlane.f32.xlu0 %v451_v15 }
  0x22   :  { %97 = vadd.xlane.f32.xlu1 %v80_v16  ;;  %95 = vadd.xlane.f32.xlu0 %v79_v17 }
  0x26   :  { %101 = vadd.xlane.f32.xlu1 %v82_v18  ;;  %99 = vadd.xlane.f32.xlu0 %v81_v19 }
  0x2a   :  { %105 = vadd.xlane.f32.xlu1 %v84_v20  ;;  %103 = vadd.xlane.f32.xlu0 %v83_v21 }
  0x2e   :  { %109 = vadd.xlane.f32.xlu1 %v86_v22  ;;  %107 = vadd.xlane.f32.xlu0 %v85_v23 }
  0x32   :  { %113 = vadd.xlane.f32.xlu1 %v88_v24  ;;  %111 = vadd.xlane.f32.xlu0 %v87_v25 }
  0x36   :  { %117 = vadd.xlane.f32.xlu1 %v90_v26  ;;  %115 = vadd.xlane.f32.xlu0 %v89_v27 }
  0x3a   :  { %121 = vadd.xlane.f32.xlu1 %v92_v28  ;;  %119 = vadd.xlane.f32.xlu0 %v91_v29 }
  0x3e   :  { %125 = vadd.xlane.f32.xlu1 %v94_v30  ;;  %123 = vadd.xlane.f32.xlu0 %v93_v31 }
  0x8f   :  { %v35_v32 = vpop.xlane.xlu1 %34  ;;  %v31_v33 = vpop.xlane.xlu0 %30 }
  0x90   :  { %v499_v48 = vmul.f32 0.03125, %v31_v33  ;;  %v503_v50 = vmul.f32 0.03125, %v35_v32 }
  0x92   :  { %v143_v54 = vmul.f32 %v499_v48, %v499_v48  ;;  %v145_v61 = vmul.f32 %v503_v50, %v503_v50 }
  0x93   :  { %v37_v34 = vpop.xlane.xlu1 %36  ;;  %v33_v35 = vpop.xlane.xlu0 %32 }
  0x94   :  { %v501_v49 = vmul.f32 0.03125, %v33_v35  ;;  %v505_v51 = vmul.f32 0.03125, %v37_v34  ;;  %v177_v34 = vsub.f32 %v362_v0, %v503_v50  ;;  %v175_v35 = vsub.f32 %v367_v1, %v499_v48 }
  0x96   :  { %v144_v55 = vmul.f32 %v501_v49, %v501_v49  ;;  %v146_v62 = vmul.f32 %v505_v51, %v505_v51 }
  0x97   :  { %v41_v36 = vpop.xlane.xlu1 %40  ;;  %v39_v37 = vpop.xlane.xlu0 %38 }
  0x98   :  { %v511_v58 = vmul.f32 0.03125, %v41_v36  ;;  %v517_v63 = vmul.f32 0.03125, %v39_v37  ;;  %v178_v36 = vsub.f32 %v374_v2, %v505_v51  ;;  %v176_v37 = vsub.f32 %v379_v3, %v501_v49 }
  0x9a   :  { %v148_v22 = vmul.f32 %v511_v58, %v511_v58  ;;  %v147_v25 = vmul.f32 %v517_v63, %v517_v63  ;;  %v179_v49 = vsub.f32 %v391_v5, %v517_v63 }
  0x9b   :  { %v45_v38 = vpop.xlane.xlu1 %44  ;;  %v43_v39 = vpop.xlane.xlu0 %42 }
  0x9c   :  { %v523_v26 = vmul.f32 0.03125, %v45_v38  ;;  %v525_v27 = vmul.f32 0.03125, %v43_v39 }
  0x9f   :  { %v49_v40 = vpop.xlane.xlu1 %48  ;;  %v47_v41 = vpop.xlane.xlu0 %46 }
  0xa0   :  { %v535_v38 = vmul.f32 0.03125, %v49_v40  ;;  %v180_v40 = vsub.f32 %v386_v4, %v511_v58 }
  0xa3   :  { %v487_v42 = vpop.xlane.xlu1 %52  ;;  %v489_v43 = vpop.xlane.xlu0 %50 }
  0xa7   :  { %v491_v44 = vpop.xlane.xlu1 %56  ;;  %v493_v45 = vpop.xlane.xlu0 %54 }
  0xab   :  { %v495_v46 = vpop.xlane.xlu1 %60  ;;  %v497_v47 = vpop.xlane.xlu0 %58 }
  0xaf   :  { %v98_v52 = vpop.xlane.xlu1 %97  ;;  %v96_v53 = vpop.xlane.xlu0 %95 }
  0xb0   :  { %v128_v56 = vmul.f32 0.03125, %v98_v52  ;;  %v127_v57 = vmul.f32 0.03125, %v96_v53  ;;  %v150_v53 = vmul.f32 %v523_v26, %v523_v26 }
  0xb2   :  { %v160_v59 = vsub.f32 %v128_v56, %v144_v55  ;;  %v159_v60 = vsub.f32 %v127_v57, %v143_v54  ;;  %v149_v54 = vmul.f32 %v525_v27, %v525_v27  ;;  %v541_v55 = vmul.f32 0.03125, %v47_v41 }
  0xb3   :  { %v102_v16 = vpop.xlane.xlu1 %101  ;;  %v100_v17 = vpop.xlane.xlu0 %99  ;;  %v152_v41 = vmul.f32 %v535_v38, %v535_v38 }
  0xb4   :  { %v192_v18 = vadd.f32 1e-05, %v160_v59  ;;  %v191_v19 = vadd.f32 1e-05, %v159_v60  ;;  %v130_v20 = vmul.f32 0.03125, %v102_v16  ;;  %v129_v21 = vmul.f32 0.03125, %v100_v17 }
  0xb5   :  { %v182_v60 = vsub.f32 %v398_v6, %v523_v26  ;;  %v151_v17 = vmul.f32 %v541_v55, %v541_v55 }
  0xb6   :  { %307 = vrsqrt.f32 %v192_v18  ;;  %v162_v23 = vsub.f32 %v130_v20, %v146_v62  ;;  %v161_v24 = vsub.f32 %v129_v21, %v145_v61  ;;  %v550_v61 = vmul.f32 0.03125, %v487_v42  ;;  %v565_v42 = vld [vmem:[%s710_s1] ss:$0 sm:$0xff] }
  0xb7   :  { %309 = vrsqrt.f32 %v191_v19  ;;  %v106_v28 = vpop.xlane.xlu1 %105  ;;  %v104_v29 = vpop.xlane.xlu0 %103  ;;  %v557_v18 = vmul.f32 0.03125, %v489_v43  ;;  %v560_v19 = vmul.f32 0.03125, %v491_v44  ;;  %v181_v43 = vsub.f32 %v403_v7, %v525_v27 }
  0xb8   :  { %v194_v30 = vadd.f32 1e-05, %v162_v23  ;;  %v193_v31 = vadd.f32 1e-05, %v161_v24  ;;  %v132_v32 = vmul.f32 0.03125, %v106_v28  ;;  %v131_v33 = vmul.f32 0.03125, %v104_v29 }
  0xb9   :  { %v154_v44 = vmul.f32 %v550_v61, %v550_v61 }
  0xba   :  { %311 = vrsqrt.f32 %v194_v30  ;;  %v164_v39 = vsub.f32 %v132_v32, %v148_v22  ;;  %v163_v52 = vsub.f32 %v131_v33, %v147_v25  ;;  %v572_v30 = vmul.f32 0.03125, %v493_v45  ;;  %v577_v32 = vld [vmem:[%s711_s2] ss:$0 sm:$0xff] }
  0xbb   :  { %313 = vrsqrt.f32 %v193_v31  ;;  %v110_v1 = vpop.xlane.xlu1 %109  ;;  %v108_v48 = vpop.xlane.xlu0 %107 }
  0xbc   :  { %v196_v56 = vadd.f32 1e-05, %v164_v39  ;;  %v195_v57 = vadd.f32 1e-05, %v163_v52  ;;  %v134_v59 = vmul.f32 0.03125, %v110_v1  ;;  %v133_v3 = vmul.f32 0.03125, %v108_v48 }
  0xbe   :  { %315 = vrsqrt.f32 %v196_v56  ;;  %v166_v62 = vsub.f32 %v134_v59, %v150_v53  ;;  %v165_v16 = vsub.f32 %v133_v3, %v149_v54  ;;  %v153_v53 = vmul.f32 %v557_v18, %v557_v18 }
  0xbf   :  { %317 = vrsqrt.f32 %v195_v57  ;;  %v114_v20 = vpop.xlane.xlu1 %113  ;;  %v112_v21 = vpop.xlane.xlu0 %111  ;;  %v156_v54 = vmul.f32 %v560_v19, %v560_v19 }
  0xc0   :  { %v308_v22 = vpop.eup %307  ;;  %v198_v23 = vadd.f32 1e-05, %v166_v62  ;;  %v197_v24 = vadd.f32 1e-05, %v165_v16  ;;  %v136_v25 = vmul.f32 0.03125, %v114_v20  ;;  %v135_v28 = vmul.f32 0.03125, %v112_v21 }
  0xc1   :  { %v310_v29 = vpop.eup %309  ;;  %v224_v31 = vmul.f32 %v308_v22, %v176_v37 }
  0xc2   :  { %v223_v33 = vmul.f32 %v310_v29, %v175_v35  ;;  %319 = vrsqrt.f32 %v198_v23  ;;  %v168_v39 = vsub.f32 %v136_v25, %v152_v41  ;;  %v167_v52 = vsub.f32 %v135_v28, %v151_v17 }
  0xc3   :  { %v247_v1 = vmul.f32 %v565_v42, %v224_v31  ;;  %321 = vrsqrt.f32 %v197_v24  ;;  %v118_v45 = vpop.xlane.xlu1 %117  ;;  %v116_v37 = vpop.xlane.xlu0 %115  ;;  %v155_v41 = vmul.f32 %v572_v30, %v572_v30  ;;  %v596_v23 = vmul.f32 0.03125, %v495_v46 }
  0xc4   :  { %v312_v48 = vpop.eup %311  ;;  %v246_v56 = vmul.f32 %v565_v42, %v223_v33  ;;  %v200_v57 = vadd.f32 1e-05, %v168_v39  ;;  %v199_v59 = vadd.f32 1e-05, %v167_v52  ;;  %v138_v35 = vmul.f32 0.03125, %v118_v45 }
  0xc5   :  { %v314_v3 = vpop.eup %313  ;;  %v270_v62 = vadd.f32 %v577_v32, %v247_v1  ;;  %v226_v16 = vmul.f32 %v312_v48, %v178_v36  ;;  %v137_v17 = vmul.f32 0.03125, %v116_v37  ;;  %v607_v29 = vmul.f32 0.03125, %v497_v47 }
  0xc6   :  { %v269_v20 = vadd.f32 %v577_v32, %v246_v56  ;;  %v225_v21 = vmul.f32 %v314_v3, %v177_v34  ;;  %323 = vrsqrt.f32 %v200_v57  ;;  %v170_v22 = vsub.f32 %v138_v35, %v154_v44 }
  0xc7   :  { %286 = vst [vmem:[%s712_s3 + $0x8] sm:$0xff] %v270_v62  ;;  %v249_v24 = vmul.f32 %v565_v42, %v226_v16  ;;  %325 = vrsqrt.f32 %v199_v59  ;;  %v169_v2 = vsub.f32 %v137_v17, %v153_v53  ;;  %v122_v51 = vpop.xlane.xlu1 %121  ;;  %v120_v36 = vpop.xlane.xlu0 %119  ;;  %v158_v1 = vmul.f32 %v596_v23, %v596_v23 }
  0xc8   :  { %v316_v25 = vpop.eup %315  ;;  %285 = vst [vmem:[%s712_s3] sm:$0xff] %v269_v20  ;;  %v248_v0 = vmul.f32 %v565_v42, %v225_v21  ;;  %v202_v50 = vadd.f32 1e-05, %v170_v22  ;;  %v140_v46 = vmul.f32 0.03125, %v122_v51  ;;  %v139_v34 = vmul.f32 0.03125, %v120_v36 }
  0xc9   :  { %v318_v28 = vpop.eup %317  ;;  %v272_v44 = vadd.f32 %v577_v32, %v249_v24  ;;  %v228_v31 = vmul.f32 %v316_v25, %v180_v40  ;;  %v201_v33 = vadd.f32 1e-05, %v169_v2  ;;  %v157_v48 = vmul.f32 %v607_v29, %v607_v29 }
  0xca   :  { %v271_v39 = vadd.f32 %v577_v32, %v248_v0  ;;  %v227_v52 = vmul.f32 %v318_v28, %v179_v49  ;;  %327 = vrsqrt.f32 %v202_v50  ;;  %v172_v53 = vsub.f32 %v140_v46, %v156_v54 }
  0xcb   :  { %288 = vst [vmem:[%s712_s3 + $0x18] sm:$0xff] %v272_v44  ;;  %v251_v47 = vmul.f32 %v565_v42, %v228_v31  ;;  %329 = vrsqrt.f32 %v201_v33  ;;  %v171_v4 = vsub.f32 %v139_v34, %v155_v41  ;;  %v126_v58 = vpop.xlane.xlu1 %125  ;;  %v124_v40 = vpop.xlane.xlu0 %123  ;;  %v184_v62 = vsub.f32 %v410_v8, %v535_v38 }
  0xcc   :  { %v320_v45 = vpop.eup %319  ;;  %287 = vst [vmem:[%s712_s3 + $0x10] sm:$0xff] %v271_v39  ;;  %v250_v5 = vmul.f32 %v565_v42, %v227_v52  ;;  %v204_v63 = vadd.f32 1e-05, %v172_v53  ;;  %v142_v49 = vmul.f32 0.03125, %v126_v58  ;;  %v141_v54 = vmul.f32 0.03125, %v124_v40 }
  0xcd   :  { %v322_v37 = vpop.eup %321  ;;  %v274_v56 = vadd.f32 %v577_v32, %v251_v47  ;;  %v230_v57 = vmul.f32 %v320_v45, %v182_v60  ;;  %v203_v59 = vadd.f32 1e-05, %v171_v4  ;;  %v183_v60 = vsub.f32 %v415_v9, %v541_v55 }
  0xce   :  { %v273_v35 = vadd.f32 %v577_v32, %v250_v5  ;;  %v229_v3 = vmul.f32 %v322_v37, %v181_v43  ;;  %331 = vrsqrt.f32 %v204_v63  ;;  %v174_v41 = vsub.f32 %v142_v49, %v158_v1 }
  0xcf   :  { %290 = vst [vmem:[%s712_s3 + $0x28] sm:$0xff] %v274_v56  ;;  %v253_v16 = vmul.f32 %v565_v42, %v230_v57  ;;  %333 = vrsqrt.f32 %v203_v59  ;;  %v173_v6 = vsub.f32 %v141_v54, %v157_v48  ;;  %v186_v22 = vsub.f32 %v422_v10, %v550_v61 }
  0xd0   :  { %v324_v26 = vpop.eup %323  ;;  %289 = vst [vmem:[%s712_s3 + $0x20] sm:$0xff] %v273_v35  ;;  %v252_v7 = vmul.f32 %v565_v42, %v229_v3  ;;  %v206_v27 = vadd.f32 1e-05, %v174_v41  ;;  %v185_v24 = vsub.f32 %v427_v11, %v557_v18  ;;  %v188_v0 = vsub.f32 %v434_v12, %v560_v19 }
  0xd1   :  { %v326_v8 = vpop.eup %325  ;;  %v276_v38 = vadd.f32 %v577_v32, %v253_v16  ;;  %v232_v43 = vmul.f32 %v324_v26, %v184_v62  ;;  %v205_v17 = vadd.f32 1e-05, %v173_v6  ;;  %v187_v50 = vsub.f32 %v439_v13, %v572_v30 }
  0xd2   :  { %v275_v20 = vadd.f32 %v577_v32, %v252_v7  ;;  %v231_v21 = vmul.f32 %v326_v8, %v183_v60  ;;  %335 = vrsqrt.f32 %v206_v27  ;;  %v190_v31 = vsub.f32 %v446_v14, %v596_v23 }
  0xd3   :  { %292 = vst [vmem:[%s712_s3 + $0x38] sm:$0xff] %v276_v38  ;;  %v255_v9 = vmul.f32 %v565_v42, %v232_v43  ;;  %337 = vrsqrt.f32 %v205_v17  ;;  %v189_v33 = vsub.f32 %v451_v15, %v607_v29 }
  0xd4   :  { %v328_v55 = vpop.eup %327  ;;  %291 = vst [vmem:[%s712_s3 + $0x30] sm:$0xff] %v275_v20  ;;  %v254_v2 = vmul.f32 %v565_v42, %v231_v21 }
  0xd5   :  { %v330_v51 = vpop.eup %329  ;;  %v278_v10 = vadd.f32 %v577_v32, %v255_v9  ;;  %v234_v61 = vmul.f32 %v328_v55, %v186_v22 }
  0xd6   :  { %v277_v36 = vadd.f32 %v577_v32, %v254_v2  ;;  %v233_v25 = vmul.f32 %v330_v51, %v185_v24 }
  0xd7   :  { %294 = vst [vmem:[%s712_s3 + $0x48] sm:$0xff] %v278_v10  ;;  %v257_v11 = vmul.f32 %v565_v42, %v234_v61 }
  0xd8   :  { %v332_v18 = vpop.eup %331  ;;  %293 = vst [vmem:[%s712_s3 + $0x40] sm:$0xff] %v277_v36  ;;  %v256_v46 = vmul.f32 %v565_v42, %v233_v25 }
  0xd9   :  { %v334_v34 = vpop.eup %333  ;;  %v280_v28 = vadd.f32 %v577_v32, %v257_v11  ;;  %v236_v12 = vmul.f32 %v332_v18, %v188_v0 }
  0xda   :  { %v279_v19 = vadd.f32 %v577_v32, %v256_v46  ;;  %v235_v44 = vmul.f32 %v334_v34, %v187_v50 }
  0xdb   :  { %296 = vst [vmem:[%s712_s3 + $0x58] sm:$0xff] %v280_v28  ;;  %v259_v13 = vmul.f32 %v565_v42, %v236_v12 }
  0xdc   :  { %v336_v30 = vpop.eup %335  ;;  %295 = vst [vmem:[%s712_s3 + $0x50] sm:$0xff] %v279_v19  ;;  %v258_v39 = vmul.f32 %v565_v42, %v235_v44 }
  0xdd   :  { %v338_v52 = vpop.eup %337  ;;  %v282_v53 = vadd.f32 %v577_v32, %v259_v13  ;;  %v238_v14 = vmul.f32 %v336_v30, %v190_v31 }
  0xde   :  { %v281_v23 = vadd.f32 %v577_v32, %v258_v39  ;;  %v237_v1 = vmul.f32 %v338_v52, %v189_v33 }
  0xdf   :  { %298 = vst [vmem:[%s712_s3 + $0x68] sm:$0xff] %v282_v53  ;;  %v261_v47 = vmul.f32 %v565_v42, %v238_v14 }
  0xe0   :  { %297 = vst [vmem:[%s712_s3 + $0x60] sm:$0xff] %v281_v23  ;;  %v260_v15 = vmul.f32 %v565_v42, %v237_v1 }
  0xe1   :  { %v284_v29 = vadd.f32 %v577_v32, %v261_v47 }
  0xe2   :  { %v283_v4 = vadd.f32 %v577_v32, %v260_v15 }
  0xe3   :  { %300 = vst [vmem:[%s712_s3 + $0x78] sm:$0xff] %v284_v29 }
  0xe4   :  { %299 = vst [vmem:[%s712_s3 + $0x70] sm:$0xff] %v283_v4 }

// kernel: volo_forward.52
= control target key start
LH: loop header
LB: loop body
LE: loop exit
PB: predicated region body
PF: predicated region fallthrough
CT: control target
= control target key end

     0   :  { %v265_v1 = vmov 0   ;;  %v37_v19 = vlaneseq  ;;  %s367_s1 = inlined_call_operand.vmem [shape: bf16[128,256], index: 1, kind: input, shape index: {}]   ;;  %s368_s0 = inlined_call_operand.vmem [shape: bf16[32,128], index: 0, kind: input, shape index: {}]   ;;  %s369_s2 = inlined_call_operand.vmem [shape: f32[1,256], index: 2, kind: input, shape index: {}]   ;;  %s370_s3 = inlined_call_operand.vmem [shape: f32[32,256], index: 3, kind: output, shape index: {}]  }
   0x1   :  { %v239_v0 = vld [vmem:[%s367_s1 + $0x4] ss:$8 sps:$4 sm:$0xff]   ;;  %171 = vmatprep.mubr.bf16.mxu0 %v265_v1  ;;  %181 = vmatprep.mubr.bf16.mxu1 %v265_v1  ;;  %v241_v2 = vld [vmem:[%s367_s1] ss:$8 sps:$4 sm:$0xff]   ;;  %v242_v3 = vld [vmem:[%s367_s1 + $0x14] ss:$8 sps:$4 sm:$0xff]  }
   0x2   :  { %139 = vmatprep.subr.bf16.mxu0 %v239_v0  ;;  %222 = vmatprep.subr.bf16.mxu1 %v239_v0  ;;  %v244_v4 = vld [vmem:[%s367_s1 + $0x10] ss:$8 sps:$4 sm:$0xff]   ;;  %v245_v5 = vld [vmem:[%s367_s1 + $0x24] ss:$8 sps:$4 sm:$0xff]   ;;  %v247_v6 = vld [vmem:[%s367_s1 + $0x20] ss:$8 sps:$4 sm:$0xff]  }
   0x3   :  { %140 = vmatpush1.bf16.msra.mxu0 %v241_v2  ;;  %230 = vmatpush1.bf16.msra.mxu1 %v241_v2  ;;  %v248_v7 = vld [vmem:[%s367_s1 + $0x34] ss:$8 sps:$4 sm:$0xff]   ;;  %v250_v8 = vld [vmem:[%s367_s1 + $0x30] ss:$8 sps:$4 sm:$0xff]   ;;  %v251_v9 = vld [vmem:[%s367_s1 + $0x44] ss:$8 sps:$4 sm:$0xff]  }
   0x4   :  { %141 = vmatprep.subr.bf16.mxu0 %v242_v3  ;;  %223 = vmatprep.subr.bf16.mxu1 %v242_v3  ;;  %v253_v10 = vld [vmem:[%s367_s1 + $0x40] ss:$8 sps:$4 sm:$0xff]   ;;  %v254_v11 = vld [vmem:[%s367_s1 + $0x54] ss:$8 sps:$4 sm:$0xff]   ;;  %v256_v12 = vld [vmem:[%s367_s1 + $0x50] ss:$8 sps:$4 sm:$0xff]  }
   0x5   :  { %v257_v13 = vld [vmem:[%s367_s1 + $0x64] ss:$8 sps:$4 sm:$0xff]   ;;  %v259_v14 = vld [vmem:[%s367_s1 + $0x60] ss:$8 sps:$4 sm:$0xff]   ;;  %v260_v15 = vld [vmem:[%s367_s1 + $0x74] ss:$8 sps:$4 sm:$0xff]  }
   0x6   :  { %v262_v16 = vld [vmem:[%s367_s1 + $0x70] ss:$8 sps:$4 sm:$0xff]   ;;  %v263_v17 = vld [vmem:[%s368_s0] sm:$0xff]   ;;  %v264_v18 = vld [vmem:[%s368_s0 + $0x8] sm:$0xff]   ;;  %v38_v20 = vshrl.u32 %v37_v19, 7 }
   0x7   :  { %142 = vmatpush1.bf16.msra.mxu0 %v244_v4  ;;  %231 = vmatpush1.bf16.msra.mxu1 %v244_v4  ;;  %v35_v22 = vld [vmem:[%s369_s2] sm:$0x3] }
   0x8   :  { %143 = vmatprep.subr.bf16.mxu0 %v245_v5  ;;  %224 = vmatprep.subr.bf16.mxu1 %v245_v5  ;;  %v39_v21 = vsub.s32 0, %v38_v20  ;;  %v43_v23 = vsub.s32 1, %v38_v20 }
   0xa   :  { %v40_v24 = vrot.slane %v35_v22, %v39_v21  ;;  %v44_v25 = vrot.slane %v35_v22, %v43_v23 }
   0xb   :  { %144 = vmatpush1.bf16.msra.mxu0 %v247_v6  ;;  %232 = vmatpush1.bf16.msra.mxu1 %v247_v6 }
   0xc   :  { %145 = vmatprep.subr.bf16.mxu0 %v248_v7  ;;  %225 = vmatprep.subr.bf16.mxu1 %v248_v7 }
   0xf   :  { %146 = vmatpush1.bf16.msra.mxu0 %v250_v8  ;;  %233 = vmatpush1.bf16.msra.mxu1 %v250_v8 }
  0x10   :  { %147 = vmatprep.subr.bf16.mxu0 %v251_v9  ;;  %226 = vmatprep.subr.bf16.mxu1 %v251_v9 }
  0x13   :  { %148 = vmatpush1.bf16.msra.mxu0 %v253_v10  ;;  %234 = vmatpush1.bf16.msra.mxu1 %v253_v10 }
  0x14   :  { %149 = vmatprep.subr.bf16.mxu0 %v254_v11  ;;  %227 = vmatprep.subr.bf16.mxu1 %v254_v11 }
  0x17   :  { %150 = vmatpush1.bf16.msra.mxu0 %v256_v12  ;;  %235 = vmatpush1.bf16.msra.mxu1 %v256_v12 }
  0x18   :  { %151 = vmatprep.subr.bf16.mxu0 %v257_v13  ;;  %228 = vmatprep.subr.bf16.mxu1 %v257_v13 }
  0x1b   :  { %152 = vmatpush1.bf16.msra.mxu0 %v259_v14  ;;  %236 = vmatpush1.bf16.msra.mxu1 %v259_v14 }
  0x1c   :  { %153 = vmatprep.subr.bf16.mxu0 %v260_v15  ;;  %229 = vmatprep.subr.bf16.mxu1 %v260_v15 }
  0x1f   :  { %154 = vmatpush1.bf16.msra.mxu0 %v262_v16  ;;  %237 = vmatpush1.bf16.msra.mxu1 %v262_v16 }
  0x22   :  { %172 = vmatmul.mubr.bf16.vlgmr.msra.gmra.mrb[0].mxu0 %v263_v17  ;;  %182 = vmatmul.mubr.bf16.vlgmr.msra.gmra.mrb[0].mxu1 %v264_v18 }
  0xf5   :  { %v173_v26 = vpop.f32.mrb[0].mxu0  ;;  %v183_v27 = vpop.f32.mrb[0].mxu1 }
  0xf6   :  { %v174_v28 = vadd.f32 %v173_v26, %v40_v24  ;;  %v184_v29 = vadd.f32 %v183_v27, %v40_v24  ;;  %v175_v30 = vpop.f32.mrb[1].mxu0  ;;  %v185_v31 = vpop.f32.mrb[1].mxu1 }
  0xf7   :  { %v176_v32 = vadd.f32 %v175_v30, %v44_v25  ;;  %v186_v33 = vadd.f32 %v185_v31, %v44_v25  ;;  %v177_v34 = vpop.f32.mrb[2].mxu0  ;;  %v187_v35 = vpop.f32.mrb[2].mxu1 }
  0xf8   :  { %192 = vst [vmem:[%s370_s3] sm:$0xff] %v174_v28  ;;  %196 = vst [vmem:[%s370_s3 + $0x20] sm:$0xff] %v184_v29  ;;  %v178_v36 = vadd.f32 %v177_v34, %v40_v24  ;;  %v188_v37 = vadd.f32 %v187_v35, %v40_v24  ;;  %v179_v38 = vpop.f32.mrb[3].mxu0  ;;  %v189_v39 = vpop.f32.mrb[3].mxu1 }
  0xf9   :  { %193 = vst [vmem:[%s370_s3 + $0x8] sm:$0xff] %v176_v32  ;;  %197 = vst [vmem:[%s370_s3 + $0x28] sm:$0xff] %v186_v33  ;;  %v180_v40 = vadd.f32 %v179_v38, %v44_v25  ;;  %v190_v41 = vadd.f32 %v189_v39, %v44_v25 }
  0xfa   :  { %194 = vst [vmem:[%s370_s3 + $0x10] sm:$0xff] %v178_v36  ;;  %198 = vst [vmem:[%s370_s3 + $0x30] sm:$0xff] %v188_v37 }
  0xfb   :  { %195 = vst [vmem:[%s370_s3 + $0x18] sm:$0xff] %v180_v40  ;;  %199 = vst [vmem:[%s370_s3 + $0x38] sm:$0xff] %v190_v41 }

// kernel: volo_forward.53
= control target key start
LH: loop header
LB: loop body
LE: loop exit
PB: predicated region body
PF: predicated region fallthrough
CT: control target
= control target key end

     0   :  { %s3640_s9 = smov 0   ;;  %s4685_s0 = inlined_call_operand.vmem [shape: bf16[64,9,9], index: 0, kind: input, shape index: {}]   ;;  %s4686_s1 = inlined_call_operand.vmem [shape: bf16[64,9,16], index: 1, kind: input, shape index: {}]   ;;  %s4687_s2 = inlined_call_operand.vmem [shape: f32[64,9,16], index: 2, kind: output, shape index: {}]  }
   0x1 LB: > { %s2976_s10 = sadd.s32 4294967295, %s3620_s9   ;;  %p2980_p0 = scmp.ge.s32.totalorder %s3620_s9, 1  ;;  %s3620_s9 = sphi %s3640_s9, %s12_s9  }
   0x2   : > { %p126_p1 = scmp.lt.s32.totalorder %s3620_s9, 3 }
   0x4   : > { %p127_p2 = pnand %p2980_p0, %p126_p1 }
   0x6   : > { %130 = sbr.rel (%p127_p2) target bundleno = 683 (0x2ab), region = 28 }
   0xd   : > { %s2981_s11 = sshll.u32 %s2976_s10, 5  ;;  %vm370_vm0 = vcmask 72704   ;;  %vm374_vm1 = vcmask 65536   ;;  %vm1180_vm2 = vcmask 1043456   ;;  %vm1181_vm3 = vcmask 1044480  }
   0xe   : > { %p157_p3 = scmp.lt.s32.totalorder %s2981_s11, 63  ;;  %vm3624_vm4 = vmmov 0   ;;  %vm2840_vm5 = vcmask 130048   ;;  %vm2842_vm6 = vcmask 122880  }
  0x10   : > { %s4788_s11 = smov (!%p157_p3, %s2981_s11), 63 }
  0x11   : > { %s3056_s12 = sshll.u32 %s4788_s11, 3  ;;  %s3058_s19 = sshll.u32 %s4788_s11, 4 }
  0x12   : > { %s3656_s15 = scalar_lea.vmem %s4685_s0, %s3056_s12  ;;  %s4047_s18 = scalar_lea.vmem %s4686_s1, %s3056_s12 }
  0x13   : > { %v178_v0 = vld [vmem:[%s3656_s15] ss:$8 sps:$4 sm:$0xff]   ;;  %v179_v1 = vld [vmem:[%s3656_s15 + $0x4] sm:$0x1]  ;;  %v181_v2 = vld [vmem:[%s3656_s15 + $0xc] sm:$0x1]  ;;  %s4552_s22 = scalar_lea.vmem %s4687_s2, %s3058_s19 }
  0x14   : > { %v242_v3 = vunpack.c.l.bf16 %v178_v0  ;;  %v244_v4 = vunpack.c.h.bf16 %v178_v0  ;;  %v243_v5 = vunpack.c.l.bf16 %v179_v1  ;;  %v245_v6 = vunpack.c.l.bf16 %v181_v2  ;;  %v182_v7 = vld [vmem:[%s3656_s15 + $0x10] ss:$8 sps:$4 sm:$0xff]   ;;  %v183_v8 = vld [vmem:[%s3656_s15 + $0x14] sm:$0x1]  ;;  %v185_v15 = vld [vmem:[%s3656_s15 + $0x1c] sm:$0x1] }
  0x15   : > { %v246_v9 = vunpack.c.l.bf16 %v182_v7  ;;  %v247_v10 = vunpack.c.l.bf16 %v183_v8  ;;  %v248_v18 = vunpack.c.h.bf16 %v182_v7  ;;  %v249_v19 = vunpack.c.l.bf16 %v185_v15  ;;  %v186_v24 = vld [vmem:[%s3656_s15 + $0x20] ss:$8 sps:$4 sm:$0xff]   ;;  %v187_v25 = vld [vmem:[%s3656_s15 + $0x24] sm:$0x1]  ;;  %v189_v32 = vld [vmem:[%s3656_s15 + $0x2c] sm:$0x1] }
  0x16   : > { %v3663_v11 = vmul.f32 0.25, %v242_v3  ;;  %v3665_v12 = vmul.f32 0.25, %v244_v4  ;;  %v3667_v13 = vmul.f32 0.25, %v243_v5  ;;  %v3669_v14 = vmul.f32 0.25, %v245_v6  ;;  %v190_v39 = vld [vmem:[%s3656_s15 + $0x30] ss:$8 sps:$4 sm:$0xff]  }
  0x17   : > { %v3680_v22 = vmul.f32 0.25, %v246_v9  ;;  %v3682_v23 = vmul.f32 0.25, %v247_v10  ;;  %v3686_v26 = vmul.f32 0.25, %v248_v18  ;;  %v3688_v27 = vmul.f32 0.25, %v249_v19  ;;  %v191_v40 = vld [vmem:[%s3656_s15 + $0x34] sm:$0x1] }
  0x18   : > { %v371_v16 = vsel %vm370_vm0, %v3663_v11, -inf  ;;  %v378_v17 = vsel %vm370_vm0, %v3665_v12, -inf  ;;  %v375_v20 = vsel %vm374_vm1, %v3667_v13, -inf  ;;  %v381_v21 = vsel %vm374_vm1, %v3669_v14, -inf  ;;  %v193_v47 = vld [vmem:[%s3656_s15 + $0x3c] sm:$0x1] }
  0x19   : > { %372 = vmax.xlane.f32.xlu0 %v371_v16  ;;  %379 = vmax.xlane.f32.xlu1 %v378_v17  ;;  %v384_v28 = vsel %vm370_vm0, %v3680_v22, -inf  ;;  %v387_v29 = vsel %vm374_vm1, %v3682_v23, -inf  ;;  %v250_v30 = vunpack.c.l.bf16 %v186_v24  ;;  %v251_v31 = vunpack.c.l.bf16 %v187_v25  ;;  %v194_v54 = vld [vmem:[%s3656_s15 + $0x40] ss:$8 sps:$4 sm:$0xff]   ;;  %v195_v55 = vld [vmem:[%s3656_s15 + $0x44] sm:$0x1] }
  0x1a   : > { %v390_v33 = vsel %vm370_vm0, %v3686_v26, -inf  ;;  %v393_v34 = vsel %vm374_vm1, %v3688_v27, -inf  ;;  %v252_v37 = vunpack.c.h.bf16 %v186_v24  ;;  %v253_v38 = vunpack.c.l.bf16 %v189_v32  ;;  %v197_v62 = vld [vmem:[%s3656_s15 + $0x4c] sm:$0x1]  ;;  %v198_v5 = vld [vmem:[%s3656_s15 + $0x50] ss:$8 sps:$4 sm:$0xff]  }
  0x1b   : > { %v3699_v35 = vmul.f32 0.25, %v250_v30  ;;  %v3701_v36 = vmul.f32 0.25, %v251_v31  ;;  %v254_v41 = vunpack.c.l.bf16 %v190_v39  ;;  %v255_v42 = vunpack.c.l.bf16 %v191_v40  ;;  %v199_v6 = vld [vmem:[%s3656_s15 + $0x54] sm:$0x1]  ;;  %v201_v17 = vld [vmem:[%s3656_s15 + $0x5c] sm:$0x1] }
  0x1c   : > { %v3709_v45 = vmul.f32 0.25, %v252_v37  ;;  %v3711_v46 = vmul.f32 0.25, %v253_v38  ;;  %v256_v48 = vunpack.c.h.bf16 %v190_v39  ;;  %v257_v49 = vunpack.c.l.bf16 %v193_v47  ;;  %v205_v38 = vld [vmem:[%s3656_s15 + $0x6c] sm:$0x1]  ;;  %v206_v47 = vld [vmem:[%s3656_s15 + $0x70] ss:$8 sps:$4 sm:$0xff]  }
  0x1d   : > { %376 = vmax.xlane.f32.xlu0 %v375_v20  ;;  %382 = vmax.xlane.f32.xlu1 %v381_v21  ;;  %v396_v43 = vsel %vm370_vm0, %v3699_v35, -inf  ;;  %v399_v44 = vsel %vm374_vm1, %v3701_v36, -inf  ;;  %v3718_v52 = vmul.f32 0.25, %v254_v41  ;;  %v3720_v53 = vmul.f32 0.25, %v255_v42 }
  0x1e   : > { %v402_v50 = vsel %vm370_vm0, %v3709_v45, -inf  ;;  %v405_v51 = vsel %vm374_vm1, %v3711_v46, -inf  ;;  %v3724_v56 = vmul.f32 0.25, %v256_v48  ;;  %v3726_v57 = vmul.f32 0.25, %v257_v49  ;;  %v207_v48 = vld [vmem:[%s3656_s15 + $0x74] sm:$0x1] }
  0x1f   : > { %v408_v58 = vsel %vm370_vm0, %v3718_v52, -inf  ;;  %v411_v59 = vsel %vm374_vm1, %v3720_v53, -inf  ;;  %v258_v60 = vunpack.c.l.bf16 %v194_v54  ;;  %v259_v61 = vunpack.c.l.bf16 %v195_v55 }
  0x20   : > { %v414_v63 = vsel %vm370_vm0, %v3724_v56, -inf  ;;  %v417_v0 = vsel %vm374_vm1, %v3726_v57, -inf  ;;  %v260_v3 = vunpack.c.h.bf16 %v194_v54  ;;  %v261_v4 = vunpack.c.l.bf16 %v197_v62 }
  0x21   : > { %385 = vmax.xlane.f32.xlu0 %v384_v28  ;;  %388 = vmax.xlane.f32.xlu1 %v387_v29  ;;  %v3737_v1 = vmul.f32 0.25, %v258_v60  ;;  %v3739_v2 = vmul.f32 0.25, %v259_v61  ;;  %v262_v7 = vunpack.c.l.bf16 %v198_v5  ;;  %v263_v8 = vunpack.c.l.bf16 %v199_v6  ;;  %v202_v28 = vld [vmem:[%s3656_s15 + $0x60] ss:$8 sps:$4 sm:$0xff]   ;;  %v203_v29 = vld [vmem:[%s3656_s15 + $0x64] sm:$0x1] }
  0x22   : > { %v3747_v15 = vmul.f32 0.25, %v260_v3  ;;  %v3749_v16 = vmul.f32 0.25, %v261_v4  ;;  %v264_v18 = vunpack.c.h.bf16 %v198_v5  ;;  %v265_v19 = vunpack.c.l.bf16 %v201_v17  ;;  %v210_v4 = vld [vmem:[%s3656_s15 + $0x80] ss:$8 sps:$4 sm:$0xff]   ;;  %v211_v5 = vld [vmem:[%s3656_s15 + $0x84] sm:$0x1] }
  0x23   : > { %v420_v9 = vsel %vm370_vm0, %v3737_v1, -inf  ;;  %v423_v10 = vsel %vm374_vm1, %v3739_v2, -inf  ;;  %v3756_v24 = vmul.f32 0.25, %v262_v7  ;;  %v3758_v25 = vmul.f32 0.25, %v263_v8 }
  0x24   : > { %v426_v20 = vsel %vm370_vm0, %v3747_v15, -inf  ;;  %v429_v21 = vsel %vm374_vm1, %v3749_v16, -inf  ;;  %v3762_v30 = vmul.f32 0.25, %v264_v18  ;;  %v3764_v31 = vmul.f32 0.25, %v265_v19  ;;  %v213_v18 = vld [vmem:[%s3656_s15 + $0x8c] sm:$0x1] }
  0x25   : > { %391 = vmax.xlane.f32.xlu0 %v390_v33  ;;  %394 = vmax.xlane.f32.xlu1 %v393_v34  ;;  %v432_v32 = vsel %vm370_vm0, %v3756_v24, -inf  ;;  %v435_v33 = vsel %vm374_vm1, %v3758_v25, -inf  ;;  %v266_v34 = vunpack.c.l.bf16 %v202_v28  ;;  %v267_v37 = vunpack.c.l.bf16 %v203_v29 }
  0x26   : > { %v438_v39 = vsel %vm370_vm0, %v3762_v30, -inf  ;;  %v441_v40 = vsel %vm374_vm1, %v3764_v31, -inf  ;;  %v270_v49 = vunpack.c.l.bf16 %v206_v47  ;;  %v272_v60 = vunpack.c.h.bf16 %v206_v47  ;;  %v217_v47 = vld [vmem:[%s3656_s15 + $0x9c] sm:$0x1] }
  0x27   : > { %v3775_v41 = vmul.f32 0.25, %v266_v34  ;;  %v3777_v42 = vmul.f32 0.25, %v267_v37  ;;  %v275_v17 = vunpack.c.l.bf16 %v211_v5  ;;  %v276_v29 = vunpack.c.h.bf16 %v210_v4  ;;  %v215_v34 = vld [vmem:[%s3656_s15 + $0x94] sm:$0x1] }
  0x28   : > { %v3800_v6 = vmul.f32 0.25, %v272_v60  ;;  %v218_v60 = vld [vmem:[%s3656_s15 + $0xa0] ss:$8 sps:$4 sm:$0xff]  }
  0x29   : > { %397 = vmax.xlane.f32.xlu0 %v396_v43  ;;  %400 = vmax.xlane.f32.xlu1 %v399_v44  ;;  %v268_v43 = vunpack.c.h.bf16 %v202_v28  ;;  %v269_v44 = vunpack.c.l.bf16 %v205_v38  ;;  %v447_v54 = vsel %vm374_vm1, %v3777_v42, -inf  ;;  %v3815_v28 = vmul.f32 0.25, %v275_v17 }
  0x2a   : > { %v462_v19 = vsel %vm370_vm0, %v3800_v6, -inf  ;;  %v279_v38 = vunpack.c.l.bf16 %v215_v34  ;;  %v223_v34 = vld [vmem:[%s3656_s15 + $0xb4] sm:$0x1] }
  0x2b   : > { %v3785_v55 = vmul.f32 0.25, %v268_v43  ;;  %v3823_v43 = vmul.f32 0.25, %v276_v29  ;;  %v284_v29 = vunpack.c.h.bf16 %v218_v60 }
  0x2d   : > { %403 = vmax.xlane.f32.xlu0 %v402_v50  ;;  %406 = vmax.xlane.f32.xlu1 %v405_v51  ;;  %v271_v50 = vunpack.c.l.bf16 %v207_v48  ;;  %v444_v51 = vsel %vm370_vm0, %v3775_v41, -inf  ;;  %v450_v62 = vsel %vm370_vm0, %v3785_v55, -inf }
  0x2f   : > { %v3796_v3 = vmul.f32 0.25, %v271_v50  ;;  %v474_v50 = vsel %vm370_vm0, %v3823_v43, -inf }
  0x31   : > { %409 = vmax.xlane.f32.xlu0 %v408_v58  ;;  %412 = vmax.xlane.f32.xlu1 %v411_v59  ;;  %v3787_v58 = vmul.f32 0.25, %v269_v44  ;;  %v209_v59 = vld [vmem:[%s3656_s15 + $0x7c] sm:$0x1] }
  0x32   : > { %v273_v61 = vunpack.c.l.bf16 %v209_v59  ;;  %v3834_v59 = vmul.f32 0.25, %v279_v38  ;;  %v287_v38 = vunpack.c.l.bf16 %v223_v34  ;;  %v229_v34 = vld [vmem:[%s3656_s15 + $0xcc] sm:$0x1] }
  0x34   : > { %v3802_v7 = vmul.f32 0.25, %v273_v61  ;;  %v219_v61 = vld [vmem:[%s3656_s15 + $0xa4] sm:$0x1]  ;;  %v483_v5 = vsel %vm374_vm1, %v3834_v59, -inf }
  0x35   : > { %415 = vmax.xlane.f32.xlu0 %v414_v63  ;;  %418 = vmax.xlane.f32.xlu1 %v417_v0  ;;  %v453_v63 = vsel %vm374_vm1, %v3787_v58, -inf  ;;  %v3794_v0 = vmul.f32 0.25, %v270_v49  ;;  %v281_v49 = vunpack.c.l.bf16 %v217_v47  ;;  %v3861_v47 = vmul.f32 0.25, %v284_v29 }
  0x37   : > { %v456_v8 = vsel %vm370_vm0, %v3794_v0, -inf }
  0x39   : > { %421 = vmax.xlane.f32.xlu0 %v420_v9  ;;  %424 = vmax.xlane.f32.xlu1 %v423_v10  ;;  %v459_v9 = vsel %vm374_vm1, %v3796_v3, -inf  ;;  %v274_v10 = vunpack.c.l.bf16 %v210_v4 }
  0x3d   : > { %427 = vmax.xlane.f32.xlu0 %v426_v20  ;;  %430 = vmax.xlane.f32.xlu1 %v429_v21  ;;  %v465_v20 = vsel %vm374_vm1, %v3802_v7, -inf  ;;  %v3813_v21 = vmul.f32 0.25, %v274_v10  ;;  %v221_v10 = vld [vmem:[%s3656_s15 + $0xac] sm:$0x1] }
  0x41   : > { %433 = vmax.xlane.f32.xlu0 %v432_v32  ;;  %436 = vmax.xlane.f32.xlu1 %v435_v33  ;;  %v277_v32 = vunpack.c.l.bf16 %v213_v18  ;;  %v214_v33 = vld [vmem:[%s3656_s15 + $0x90] ss:$8 sps:$4 sm:$0xff]  }
  0x42   : > { %v278_v37 = vunpack.c.l.bf16 %v214_v33  ;;  %v280_v48 = vunpack.c.h.bf16 %v214_v33  ;;  %v222_v33 = vld [vmem:[%s3656_s15 + $0xb0] ss:$8 sps:$4 sm:$0xff]  }
  0x43   : > { %v3825_v44 = vmul.f32 0.25, %v277_v32  ;;  %v285_v32 = vunpack.c.l.bf16 %v221_v10 }
  0x45   : > { %439 = vmax.xlane.f32.xlu0 %v438_v39  ;;  %442 = vmax.xlane.f32.xlu1 %v441_v40  ;;  %v468_v39 = vsel %vm370_vm0, %v3813_v21, -inf  ;;  %v471_v40 = vsel %vm374_vm1, %v3815_v28, -inf }
  0x49   : > { %445 = vmax.xlane.f32.xlu0 %v444_v51  ;;  %448 = vmax.xlane.f32.xlu1 %v447_v54  ;;  %v477_v51 = vsel %vm374_vm1, %v3825_v44, -inf  ;;  %v3832_v54 = vmul.f32 0.25, %v278_v37  ;;  %v286_v37 = vunpack.c.l.bf16 %v222_v33 }
  0x4b   : > { %v480_v4 = vsel %vm370_vm0, %v3832_v54, -inf }
  0x4d   : > { %451 = vmax.xlane.f32.xlu0 %v450_v62  ;;  %454 = vmax.xlane.f32.xlu1 %v453_v63  ;;  %v3838_v62 = vmul.f32 0.25, %v280_v48  ;;  %v3840_v63 = vmul.f32 0.25, %v281_v49  ;;  %v3863_v48 = vmul.f32 0.25, %v285_v32  ;;  %v225_v49 = vld [vmem:[%s3656_s15 + $0xbc] sm:$0x1] }
  0x4f   : > { %v486_v17 = vsel %vm370_vm0, %v3838_v62, -inf  ;;  %v489_v18 = vsel %vm374_vm1, %v3840_v63, -inf }
  0x51   : > { %457 = vmax.xlane.f32.xlu0 %v456_v8  ;;  %460 = vmax.xlane.f32.xlu1 %v459_v9  ;;  %v282_v8 = vunpack.c.l.bf16 %v218_v60  ;;  %v283_v9 = vunpack.c.l.bf16 %v219_v61  ;;  %v498_v60 = vsel %vm370_vm0, %v3861_v47, -inf  ;;  %v501_v61 = vsel %vm374_vm1, %v3863_v48, -inf }
  0x55   : > { %463 = vmax.xlane.f32.xlu0 %v462_v19  ;;  %466 = vmax.xlane.f32.xlu1 %v465_v20  ;;  %v3851_v19 = vmul.f32 0.25, %v282_v8  ;;  %v3853_v20 = vmul.f32 0.25, %v283_v9  ;;  %v226_v8 = vld [vmem:[%s3656_s15 + $0xc0] ss:$8 sps:$4 sm:$0xff]   ;;  %v227_v9 = vld [vmem:[%s3656_s15 + $0xc4] sm:$0x1] }
  0x56   : > { %v290_v32 = vunpack.c.l.bf16 %v226_v8 }
  0x59   : > { %469 = vmax.xlane.f32.xlu0 %v468_v39  ;;  %472 = vmax.xlane.f32.xlu1 %v471_v40  ;;  %v492_v39 = vsel %vm370_vm0, %v3851_v19, -inf  ;;  %v495_v40 = vsel %vm374_vm1, %v3853_v20, -inf }
  0x5d   : > { %475 = vmax.xlane.f32.xlu0 %v474_v50  ;;  %478 = vmax.xlane.f32.xlu1 %v477_v51  ;;  %v288_v50 = vunpack.c.h.bf16 %v222_v33  ;;  %v289_v51 = vunpack.c.l.bf16 %v225_v49  ;;  %v291_v33 = vunpack.c.l.bf16 %v227_v9  ;;  %v292_v49 = vunpack.c.h.bf16 %v226_v8  ;;  %v233_v8 = vld [vmem:[%s3656_s15 + $0xdc] sm:$0x1] }
  0x5f   : > { %v3876_v10 = vmul.f32 0.25, %v288_v50  ;;  %v293_v50 = vunpack.c.l.bf16 %v229_v34 }
  0x61   : > { %481 = vmax.xlane.f32.xlu0 %v480_v4  ;;  %484 = vmax.xlane.f32.xlu1 %v483_v5  ;;  %v3870_v4 = vmul.f32 0.25, %v286_v37  ;;  %v3872_v5 = vmul.f32 0.25, %v287_v38  ;;  %4722 = vst [vmem:[#allocation2_spill] sm:$0xff] %v3876_v10  ;;  %v510_v37 = vsel %vm370_vm0, %v3876_v10, -inf }
  0x63   : > { %v507_v29 = vsel %vm374_vm1, %v3872_v5, -inf }
  0x65   : > { %487 = vmax.xlane.f32.xlu0 %v486_v17  ;;  %490 = vmax.xlane.f32.xlu1 %v489_v18  ;;  %v3878_v17 = vmul.f32 0.25, %v289_v51  ;;  %v504_v18 = vsel %vm370_vm0, %v3870_v4, -inf  ;;  %v230_v51 = vld [vmem:[%s3656_s15 + $0xd0] ss:$8 sps:$4 sm:$0xff]  }
  0x66   : > { %v296_v34 = vunpack.c.h.bf16 %v230_v51 }
  0x67   : > { %4723 = vst [vmem:[#allocation3_spill] sm:$0xff] %v3878_v17  ;;  %v513_v38 = vsel %vm374_vm1, %v3878_v17, -inf }
  0x69   : > { %493 = vmax.xlane.f32.xlu0 %v492_v39  ;;  %496 = vmax.xlane.f32.xlu1 %v495_v40  ;;  %v3889_v39 = vmul.f32 0.25, %v290_v32  ;;  %v3891_v40 = vmul.f32 0.25, %v291_v33  ;;  %v3899_v32 = vmul.f32 0.25, %v292_v49  ;;  %v3901_v33 = vmul.f32 0.25, %v293_v50  ;;  %v234_v49 = vld [vmem:[%s3656_s15 + $0xe0] ss:$8 sps:$4 sm:$0xff]  }
  0x6a   : > { %v3914_v50 = vmul.f32 0.25, %v296_v34 }
  0x6b   : > { %4724 = vst [vmem:[#allocation4_spill] sm:$0xff] %v3889_v39  ;;  %4725 = vst [vmem:[#allocation5_spill] sm:$0xff] %v3891_v40 }
  0x6c   : > { %4726 = vst [vmem:[#allocation6_spill] sm:$0xff] %v3899_v32  ;;  %4727 = vst [vmem:[#allocation7_spill] sm:$0xff] %v3901_v33 }
  0x6d   : > { %499 = vmax.xlane.f32.xlu0 %v498_v60  ;;  %502 = vmax.xlane.f32.xlu1 %v501_v61  ;;  %v231_v60 = vld [vmem:[%s3656_s15 + $0xd4] sm:$0x1]  ;;  %v294_v61 = vunpack.c.l.bf16 %v230_v51  ;;  %4730 = vst [vmem:[#allocation10_spill] sm:$0xff] %v3914_v50 }
  0x6e   : > { %v295_v9 = vunpack.c.l.bf16 %v231_v60  ;;  %v525_v60 = vsel %vm374_vm1, %v3901_v33, -inf }
  0x70   : > { %v3910_v17 = vmul.f32 0.25, %v295_v9  ;;  %v237_v9 = vld [vmem:[%s3656_s15 + $0xec] sm:$0x1] }
  0x71   : > { %505 = vmax.xlane.f32.xlu0 %v504_v18  ;;  %508 = vmax.xlane.f32.xlu1 %v507_v29  ;;  %v516_v18 = vsel %vm370_vm0, %v3889_v39, -inf  ;;  %v519_v29 = vsel %vm374_vm1, %v3891_v40, -inf  ;;  %v3908_v39 = vmul.f32 0.25, %v294_v61  ;;  %v235_v40 = vld [vmem:[%s3656_s15 + $0xe4] sm:$0x1]  ;;  %v298_v61 = vunpack.c.l.bf16 %v234_v49 }
  0x72   : > { %4729 = vst [vmem:[#allocation9_spill] sm:$0xff] %v3910_v17  ;;  %v301_v33 = vunpack.c.l.bf16 %v237_v9 }
  0x73   : > { %4728 = vst [vmem:[#allocation8_spill] sm:$0xff] %v3908_v39 }
  0x75   : > { %511 = vmax.xlane.f32.xlu0 %v510_v37  ;;  %514 = vmax.xlane.f32.xlu1 %v513_v38  ;;  %v297_v37 = vunpack.c.l.bf16 %v233_v8  ;;  %v522_v38 = vsel %vm370_vm0, %v3899_v32, -inf  ;;  %v299_v8 = vunpack.c.l.bf16 %v235_v40  ;;  %v238_v32 = vld [vmem:[%s3656_s15 + $0xf0] ss:$8 sps:$4 sm:$0xff]  }
  0x76   : > { %v302_v40 = vunpack.c.l.bf16 %v238_v32 }
  0x77   : > { %v3916_v51 = vmul.f32 0.25, %v297_v37  ;;  %v3927_v37 = vmul.f32 0.25, %v298_v61  ;;  %v3939_v61 = vmul.f32 0.25, %v301_v33 }
  0x79   : > { %517 = vmax.xlane.f32.xlu0 %v516_v18  ;;  %520 = vmax.xlane.f32.xlu1 %v519_v29  ;;  %v528_v18 = vsel %vm370_vm0, %v3908_v39, -inf  ;;  %v531_v29 = vsel %vm374_vm1, %v3910_v17, -inf  ;;  %v537_v34 = vsel %vm374_vm1, %v3916_v51, -inf  ;;  %4731 = vst [vmem:[#allocation11_spill] sm:$0xff] %v3927_v37  ;;  %v300_v39 = vunpack.c.h.bf16 %v234_v49  ;;  %v239_v17 = vld [vmem:[%s3656_s15 + $0xf4] sm:$0x1] }
  0x7a   : > { %4732 = vst [vmem:[#allocation12_spill] sm:$0xff] %v3939_v61  ;;  %v304_v49 = vunpack.c.h.bf16 %v238_v32 }
  0x7b   : > { %v3937_v10 = vmul.f32 0.25, %v300_v39 }
  0x7c   : > { %v3954_v32 = vmul.f32 0.25, %v304_v49 }
  0x7d   : > { %523 = vmax.xlane.f32.xlu0 %v522_v38  ;;  %526 = vmax.xlane.f32.xlu1 %v525_v60  ;;  %v534_v38 = vsel %vm370_vm0, %v3914_v50, -inf  ;;  %v3929_v60 = vmul.f32 0.25, %v299_v8  ;;  %v241_v8 = vld [vmem:[%s3656_s15 + $0xfc] sm:$0x1] }
  0x7e   : > { %v305_v9 = vunpack.c.l.bf16 %v241_v8  ;;  %4735 = vst [vmem:[#allocation15_spill] sm:$0xff] %v3954_v32 }
  0x7f   : > { %v543_v50 = vsel %vm374_vm1, %v3929_v60, -inf }
  0x81   : > { %529 = vmax.xlane.f32.xlu0 %v528_v18  ;;  %532 = vmax.xlane.f32.xlu1 %v531_v29  ;;  %v303_v18 = vunpack.c.l.bf16 %v239_v17  ;;  %v540_v29 = vsel %vm370_vm0, %v3927_v37, -inf  ;;  %v549_v17 = vsel %vm374_vm1, %v3939_v61, -inf }
  0x83   : > { %v3948_v37 = vmul.f32 0.25, %v303_v18 }
  0x85   : > { %535 = vmax.xlane.f32.xlu0 %v534_v38  ;;  %538 = vmax.xlane.f32.xlu1 %v537_v34  ;;  %v546_v38 = vsel %vm370_vm0, %v3937_v10, -inf  ;;  %v3946_v34 = vmul.f32 0.25, %v302_v40  ;;  %4734 = vst [vmem:[#allocation14_spill] sm:$0xff] %v3948_v37  ;;  %v555_v33 = vsel %vm374_vm1, %v3948_v37, -inf  ;;  %v558_v40 = vsel %vm370_vm0, %v3954_v32, -inf }
  0x87   : > { %4733 = vst [vmem:[#allocation13_spill] sm:$0xff] %v3946_v34  ;;  %v552_v39 = vsel %vm370_vm0, %v3946_v34, -inf }
  0x89   : > { %541 = vmax.xlane.f32.xlu0 %v540_v29  ;;  %544 = vmax.xlane.f32.xlu1 %v543_v50  ;;  %v3956_v50 = vmul.f32 0.25, %v305_v9 }
  0x8b   : > { %4736 = vst [vmem:[#allocation16_spill] sm:$0xff] %v3956_v50  ;;  %v561_v18 = vsel %vm374_vm1, %v3956_v50, -inf }
  0x8d   : > { %547 = vmax.xlane.f32.xlu0 %v546_v38  ;;  %550 = vmax.xlane.f32.xlu1 %v549_v17 }
  0x91   : > { %553 = vmax.xlane.f32.xlu0 %v552_v39  ;;  %556 = vmax.xlane.f32.xlu1 %v555_v33 }
  0x95   : > { %559 = vmax.xlane.f32.xlu0 %v558_v40  ;;  %562 = vmax.xlane.f32.xlu1 %v561_v18 }
  0xa6   : > { %v373_v29 = vpop.xlane.xlu0 %372  ;;  %v380_v8 = vpop.xlane.xlu1 %379 }
  0xa7   : > { %v564_v38 = vsub.f32 %v3663_v11, %v373_v29  ;;  %v566_v17 = vsub.f32 %v3665_v12, %v380_v8 }
  0xa9   : > { %v628_v49 = vmul.f32 1.442695, %v564_v38  ;;  %v632_v37 = vmul.f32 1.442695, %v566_v17 }
  0xaa   : > { %v377_v9 = vpop.xlane.xlu0 %376  ;;  %v383_v34 = vpop.xlane.xlu1 %382 }
  0xab   : > { %3358 = vpow2.f32 %v628_v49  ;;  %v565_v39 = vsub.f32 %v3667_v13, %v377_v9  ;;  %v567_v33 = vsub.f32 %v3669_v14, %v383_v34 }
  0xac   : > { %3360 = vpow2.f32 %v632_v37 }
  0xad   : > { %v630_v32 = vmul.f32 1.442695, %v565_v39  ;;  %v634_v50 = vmul.f32 1.442695, %v567_v33 }
  0xae   : > { %v386_v40 = vpop.xlane.xlu0 %385  ;;  %v389_v18 = vpop.xlane.xlu1 %388 }
  0xaf   : > { %3362 = vpow2.f32 %v630_v32  ;;  %v568_v61 = vsub.f32 %v3680_v22, %v386_v40  ;;  %v569_v11 = vsub.f32 %v3682_v23, %v389_v18 }
  0xb0   : > { %3364 = vpow2.f32 %v634_v50 }
  0xb1   : > { %v636_v12 = vmul.f32 1.442695, %v568_v61  ;;  %v638_v29 = vmul.f32 1.442695, %v569_v11 }
  0xb2   : > { %v392_v8 = vpop.xlane.xlu0 %391  ;;  %v395_v38 = vpop.xlane.xlu1 %394 }
  0xb3   : > { %3366 = vpow2.f32 %v636_v12  ;;  %v570_v13 = vsub.f32 %v3686_v26, %v392_v8  ;;  %v571_v14 = vsub.f32 %v3688_v27, %v395_v38 }
  0xb4   : > { %3368 = vpow2.f32 %v638_v29 }
  0xb5   : > { %v3970_v37 = vpop.eup %3358  ;;  %v640_v34 = vmul.f32 1.442695, %v570_v13  ;;  %v642_v17 = vmul.f32 1.442695, %v571_v14 }
  0xb6   : > { %v3972_v32 = vpop.eup %3360  ;;  %v398_v22 = vpop.xlane.xlu0 %397  ;;  %v756_v23 = vsel %vm370_vm0, %v3970_v37, 0.0 }
  0xb7   : > { %v401_v61 = vpop.xlane.xlu1 %400  ;;  %3370 = vpow2.f32 %v640_v34  ;;  %v572_v50 = vsub.f32 %v3699_v35, %v398_v22  ;;  %757 = vadd.xlane.f32.xlu0 %v756_v23  ;;  %v762_v27 = vsel %vm370_vm0, %v3972_v32, 0.0 }
  0xb8   : > { %v573_v26 = vsub.f32 %v3701_v36, %v401_v61  ;;  %3372 = vpow2.f32 %v642_v17 }
  0xb9   : > { %v3980_v49 = vpop.eup %3362  ;;  %v644_v9 = vmul.f32 1.442695, %v572_v50 }
  0xba   : > { %v646_v39 = vmul.f32 1.442695, %v573_v26  ;;  %v3982_v33 = vpop.eup %3364  ;;  %v404_v40 = vpop.xlane.xlu0 %403  ;;  %v759_v18 = vsel %vm374_vm1, %v3980_v49, 0.0 }
  0xbb   : > { %v407_v11 = vpop.xlane.xlu1 %406  ;;  %3374 = vpow2.f32 %v644_v9  ;;  %v574_v35 = vsub.f32 %v3709_v45, %v404_v40  ;;  %763 = vadd.xlane.f32.xlu0 %v762_v27  ;;  %760 = vadd.xlane.f32.xlu1 %v759_v18  ;;  %v765_v12 = vsel %vm374_vm1, %v3982_v33, 0.0 }
  0xbc   : > { %v575_v36 = vsub.f32 %v3711_v46, %v407_v11  ;;  %3376 = vpow2.f32 %v646_v39 }
  0xbd   : > { %v3990_v29 = vpop.eup %3366  ;;  %v648_v8 = vmul.f32 1.442695, %v574_v35 }
  0xbe   : > { %v650_v38 = vmul.f32 1.442695, %v575_v36  ;;  %v3992_v13 = vpop.eup %3368  ;;  %v410_v14 = vpop.xlane.xlu0 %409  ;;  %v768_v34 = vsel %vm370_vm0, %v3990_v29, 0.0 }
  0xbf   : > { %v413_v17 = vpop.xlane.xlu1 %412  ;;  %3378 = vpow2.f32 %v648_v8  ;;  %v576_v45 = vsub.f32 %v3718_v52, %v410_v14  ;;  %766 = vadd.xlane.f32.xlu1 %v765_v12  ;;  %769 = vadd.xlane.f32.xlu0 %v768_v34  ;;  %v771_v22 = vsel %vm374_vm1, %v3992_v13, 0.0 }
  0xc0   : > { %v577_v46 = vsub.f32 %v3720_v53, %v413_v17  ;;  %3380 = vpow2.f32 %v650_v38 }
  0xc1   : > { %v4000_v23 = vpop.eup %3370  ;;  %v652_v61 = vmul.f32 1.442695, %v576_v45 }
  0xc2   : > { %v654_v50 = vmul.f32 1.442695, %v577_v46  ;;  %v4002_v26 = vpop.eup %3372  ;;  %v416_v27 = vpop.xlane.xlu0 %415  ;;  %v774_v9 = vsel %vm370_vm0, %v4000_v23, 0.0 }
  0xc3   : > { %v419_v39 = vpop.xlane.xlu1 %418  ;;  %3382 = vpow2.f32 %v652_v61  ;;  %v578_v52 = vsub.f32 %v3724_v56, %v416_v27  ;;  %772 = vadd.xlane.f32.xlu1 %v771_v22  ;;  %775 = vadd.xlane.f32.xlu0 %v774_v9  ;;  %v777_v40 = vsel %vm374_vm1, %v4002_v26, 0.0 }
  0xc4   : > { %v579_v53 = vsub.f32 %v3726_v57, %v419_v39  ;;  %3384 = vpow2.f32 %v654_v50 }
  0xc5   : > { %v4010_v18 = vpop.eup %3374  ;;  %v656_v11 = vmul.f32 1.442695, %v578_v52 }
  0xc6   : > { %v658_v35 = vmul.f32 1.442695, %v579_v53  ;;  %v4012_v36 = vpop.eup %3376  ;;  %v422_v12 = vpop.xlane.xlu0 %421  ;;  %v780_v8 = vsel %vm370_vm0, %v4010_v18, 0.0 }
  0xc7   : > { %v425_v38 = vpop.xlane.xlu1 %424  ;;  %3386 = vpow2.f32 %v656_v11  ;;  %v580_v56 = vsub.f32 %v3737_v1, %v422_v12  ;;  %778 = vadd.xlane.f32.xlu1 %v777_v40  ;;  %781 = vadd.xlane.f32.xlu0 %v780_v8  ;;  %v783_v14 = vsel %vm374_vm1, %v4012_v36, 0.0 }
  0xc8   : > { %v581_v57 = vsub.f32 %v3739_v2, %v425_v38  ;;  %3388 = vpow2.f32 %v658_v35 }
  0xc9   : > { %v4020_v34 = vpop.eup %3378  ;;  %v660_v17 = vmul.f32 1.442695, %v580_v56 }
  0xca   : > { %v662_v45 = vmul.f32 1.442695, %v581_v57  ;;  %v4022_v46 = vpop.eup %3380  ;;  %v428_v22 = vpop.xlane.xlu0 %427  ;;  %v786_v61 = vsel %vm370_vm0, %v4020_v34, 0.0 }
  0xcb   : > { %v431_v50 = vpop.xlane.xlu1 %430  ;;  %3390 = vpow2.f32 %v660_v17  ;;  %v582_v1 = vsub.f32 %v3747_v15, %v428_v22  ;;  %784 = vadd.xlane.f32.xlu1 %v783_v14  ;;  %787 = vadd.xlane.f32.xlu0 %v786_v61  ;;  %v789_v27 = vsel %vm374_vm1, %v4022_v46, 0.0  ;;  %v3326_v61 = vld [vmem:[%s4047_s18] sm:$0x1f]  }
  0xcc   : > { %v583_v2 = vsub.f32 %v3749_v16, %v431_v50  ;;  %3392 = vpow2.f32 %v662_v45  ;;  %v3622_v50 = vmov 65535  }
  0xcd   : > { %v4030_v9 = vpop.eup %3382  ;;  %v664_v39 = vmul.f32 1.442695, %v582_v1  ;;  %v1182_v1 = vsel %vm1180_vm2, 4294967295, %v3622_v50 }
  0xce   : > { %v666_v52 = vmul.f32 1.442695, %v583_v2  ;;  %v4032_v53 = vpop.eup %3384  ;;  %v434_v40 = vpop.xlane.xlu0 %433  ;;  %v792_v11 = vsel %vm370_vm0, %v4030_v9, 0.0 }
  0xcf   : > { %v437_v15 = vpop.xlane.xlu1 %436  ;;  %3394 = vpow2.f32 %v664_v39  ;;  %v584_v35 = vsub.f32 %v3756_v24, %v434_v40  ;;  %790 = vadd.xlane.f32.xlu1 %v789_v27  ;;  %793 = vadd.xlane.f32.xlu0 %v792_v11  ;;  %v795_v12 = vsel %vm374_vm1, %v4032_v53, 0.0 }
  0xd0   : > { %v585_v16 = vsub.f32 %v3758_v25, %v437_v15  ;;  %3396 = vpow2.f32 %v666_v52  ;;  %v4703_v52 = vmov 0.0  }
  0xd1   : > { %v4040_v8 = vpop.eup %3386  ;;  %v668_v38 = vmul.f32 1.442695, %v584_v35  ;;  %3123 = vmatprep.subr.bf16.mxu0 %v4703_v52  ;;  %3129 = vmatprep.subr.bf16.mxu1 %v4703_v52 }
  0xd2   : > { %v670_v56 = vmul.f32 1.442695, %v585_v16  ;;  %v4049_v24 = vpop.eup %3388  ;;  %v440_v57 = vpop.xlane.xlu0 %439  ;;  %v798_v25 = vsel %vm370_vm0, %v4040_v8, 0.0  ;;  %v3327_v16 = vld [vmem:[%s4047_s18 + $0x8] sm:$0x1f]   ;;  %3125 = vmatprep.mubr.msk.bf16.mxu0 %vm3624_vm4, %v4703_v52  ;;  %3131 = vmatprep.mubr.msk.bf16.mxu1 %vm3624_vm4, %v4703_v52 }
  0xd3   : > { %v443_v14 = vpop.xlane.xlu1 %442  ;;  %3398 = vpow2.f32 %v668_v38  ;;  %v586_v17 = vsub.f32 %v3762_v30, %v440_v57  ;;  %796 = vadd.xlane.f32.xlu1 %v795_v12  ;;  %799 = vadd.xlane.f32.xlu0 %v798_v25  ;;  %v801_v22 = vsel %vm374_vm1, %v4049_v24, 0.0  ;;  %v4062_v30 = vsel %vm1181_vm3, %v1182_v1, 0 }
  0xd4   : > { %v587_v45 = vsub.f32 %v3764_v31, %v443_v14  ;;  %3400 = vpow2.f32 %v670_v56  ;;  %v1185_v35 = vand.u32 %v3326_v61, %v4062_v30  ;;  %v1237_v57 = vand.u32 %v3327_v16, %v4062_v30 }
  0xd5   : > { %v4058_v2 = vpop.eup %3390  ;;  %v672_v27 = vmul.f32 1.442695, %v586_v17 }
  0xd6   : > { %v674_v39 = vmul.f32 1.442695, %v587_v45  ;;  %v4065_v31 = vpop.eup %3392  ;;  %v446_v40 = vpop.xlane.xlu0 %445  ;;  %v804_v11 = vsel %vm370_vm0, %v4058_v2, 0.0  ;;  %3124 = vmatpush3.bf16.msra.mxu0 %v1185_v35  ;;  %3130 = vmatpush3.bf16.msra.mxu1 %v1237_v57 }
  0xd7   : > { %v449_v15 = vpop.xlane.xlu1 %448  ;;  %3402 = vpow2.f32 %v672_v27  ;;  %v588_v12 = vsub.f32 %v3775_v41, %v446_v40  ;;  %802 = vadd.xlane.f32.xlu1 %v801_v22  ;;  %805 = vadd.xlane.f32.xlu0 %v804_v11  ;;  %v807_v56 = vsel %vm374_vm1, %v4065_v31, 0.0 }
  0xd8   : > { %v589_v38 = vsub.f32 %v3777_v42, %v449_v15  ;;  %3404 = vpow2.f32 %v674_v39  ;;  %3135 = vmatprep.subr.bf16.mxu0 %v4703_v52  ;;  %3141 = vmatprep.subr.bf16.mxu1 %v4703_v52 }
  0xd9   : > { %v4076_v25 = vpop.eup %3394  ;;  %v676_v14 = vmul.f32 1.442695, %v588_v12 }
  0xda   : > { %v678_v17 = vmul.f32 1.442695, %v589_v38  ;;  %v4082_v41 = vpop.eup %3396  ;;  %v452_v42 = vpop.xlane.xlu0 %451  ;;  %v810_v45 = vsel %vm370_vm0, %v4076_v25, 0.0 }
  0xdb   : > { %v455_v22 = vpop.xlane.xlu1 %454  ;;  %3406 = vpow2.f32 %v676_v14  ;;  %v590_v61 = vsub.f32 %v3785_v55, %v452_v42  ;;  %808 = vadd.xlane.f32.xlu1 %v807_v56  ;;  %811 = vadd.xlane.f32.xlu0 %v810_v45  ;;  %v813_v1 = vsel %vm374_vm1, %v4082_v41, 0.0 }
  0xdc   : > { %v591_v50 = vsub.f32 %v3787_v58, %v455_v22  ;;  %3408 = vpow2.f32 %v678_v17 }
  0xdd   : > { %v4092_v27 = vpop.eup %3398  ;;  %v680_v39 = vmul.f32 1.442695, %v590_v61 }
  0xde   : > { %v682_v40 = vmul.f32 1.442695, %v591_v50  ;;  %v4094_v11 = vpop.eup %3400  ;;  %v458_v15 = vpop.xlane.xlu0 %457  ;;  %v816_v55 = vsel %vm370_vm0, %v4092_v27, 0.0 }
  0xdf   : > { %v461_v35 = vpop.xlane.xlu1 %460  ;;  %3410 = vpow2.f32 %v680_v39  ;;  %v592_v58 = vsub.f32 %v3794_v0, %v458_v15  ;;  %814 = vadd.xlane.f32.xlu1 %v813_v1  ;;  %817 = vadd.xlane.f32.xlu0 %v816_v55  ;;  %v819_v12 = vsel %vm374_vm1, %v4094_v11, 0.0 }
  0xe0   : > { %v593_v16 = vsub.f32 %v3796_v3, %v461_v35  ;;  %3412 = vpow2.f32 %v682_v40 }
  0xe1   : > { %v4102_v38 = vpop.eup %3402  ;;  %v684_v56 = vmul.f32 1.442695, %v592_v58 }
  0xe2   : > { %v686_v57 = vmul.f32 1.442695, %v593_v16  ;;  %v4104_v14 = vpop.eup %3404  ;;  %v464_v17 = vpop.xlane.xlu0 %463  ;;  %v822_v42 = vsel %vm370_vm0, %v4102_v38, 0.0 }
  0xe3   : > { %v467_v45 = vpop.xlane.xlu1 %466  ;;  %3414 = vpow2.f32 %v684_v56  ;;  %v594_v0 = vsub.f32 %v3800_v6, %v464_v17  ;;  %820 = vadd.xlane.f32.xlu1 %v819_v12  ;;  %823 = vadd.xlane.f32.xlu0 %v822_v42  ;;  %v825_v22 = vsel %vm374_vm1, %v4104_v14, 0.0 }
  0xe4   : > { %v595_v3 = vsub.f32 %v3802_v7, %v467_v45  ;;  %3416 = vpow2.f32 %v686_v57 }
  0xe5   : > { %v4112_v61 = vpop.eup %3406  ;;  %v688_v50 = vmul.f32 1.442695, %v594_v0 }
  0xe6   : > { %v690_v1 = vmul.f32 1.442695, %v595_v3  ;;  %v4114_v39 = vpop.eup %3408  ;;  %v470_v40 = vpop.xlane.xlu0 %469  ;;  %v828_v15 = vsel %vm370_vm0, %v4112_v61, 0.0 }
  0xe7   : > { %v473_v55 = vpop.xlane.xlu1 %472  ;;  %3418 = vpow2.f32 %v688_v50  ;;  %v596_v6 = vsub.f32 %v3813_v21, %v470_v40  ;;  %826 = vadd.xlane.f32.xlu1 %v825_v22  ;;  %829 = vadd.xlane.f32.xlu0 %v828_v15  ;;  %v831_v35 = vsel %vm374_vm1, %v4114_v39, 0.0 }
  0xe8   : > { %v597_v7 = vsub.f32 %v3815_v28, %v473_v55  ;;  %3420 = vpow2.f32 %v690_v1 }
  0xe9   : > { %v4122_v58 = vpop.eup %3410  ;;  %v692_v16 = vmul.f32 1.442695, %v596_v6 }
  0xea   : > { %v694_v12 = vmul.f32 1.442695, %v597_v7  ;;  %v4124_v56 = vpop.eup %3412  ;;  %v476_v57 = vpop.xlane.xlu0 %475  ;;  %v834_v17 = vsel %vm370_vm0, %v4122_v58, 0.0 }
  0xeb   : > { %v479_v42 = vpop.xlane.xlu1 %478  ;;  %3422 = vpow2.f32 %v692_v16  ;;  %v598_v21 = vsub.f32 %v3823_v43, %v476_v57  ;;  %832 = vadd.xlane.f32.xlu1 %v831_v35  ;;  %835 = vadd.xlane.f32.xlu0 %v834_v17  ;;  %v837_v45 = vsel %vm374_vm1, %v4124_v56, 0.0 }
  0xec   : > { %v599_v28 = vsub.f32 %v3825_v44, %v479_v42  ;;  %3424 = vpow2.f32 %v694_v12 }
  0xed   : > { %v4132_v0 = vpop.eup %3414  ;;  %v696_v3 = vmul.f32 1.442695, %v598_v21 }
  0xee   : > { %v698_v22 = vmul.f32 1.442695, %v599_v28  ;;  %v4134_v50 = vpop.eup %3416  ;;  %v482_v1 = vpop.xlane.xlu0 %481  ;;  %v840_v40 = vsel %vm370_vm0, %v4132_v0, 0.0 }
  0xef   : > { %v485_v15 = vpop.xlane.xlu1 %484  ;;  %3426 = vpow2.f32 %v696_v3  ;;  %v600_v43 = vsub.f32 %v3832_v54, %v482_v1  ;;  %838 = vadd.xlane.f32.xlu1 %v837_v45  ;;  %841 = vadd.xlane.f32.xlu0 %v840_v40  ;;  %v843_v55 = vsel %vm374_vm1, %v4134_v50, 0.0 }
  0xf0   : > { %v601_v44 = vsub.f32 %v3834_v59, %v485_v15  ;;  %3428 = vpow2.f32 %v698_v22 }
  0xf1   : > { %v4142_v6 = vpop.eup %3418  ;;  %v700_v7 = vmul.f32 1.442695, %v600_v43 }
  0xf2   : > { %v702_v35 = vmul.f32 1.442695, %v601_v44  ;;  %v4144_v16 = vpop.eup %3420  ;;  %v488_v12 = vpop.xlane.xlu0 %487  ;;  %v846_v57 = vsel %vm370_vm0, %v4142_v6, 0.0 }
  0xf3   : > { %v491_v17 = vpop.xlane.xlu1 %490  ;;  %3430 = vpow2.f32 %v700_v7  ;;  %v602_v54 = vsub.f32 %v3838_v62, %v488_v12  ;;  %844 = vadd.xlane.f32.xlu1 %v843_v55  ;;  %847 = vadd.xlane.f32.xlu0 %v846_v57  ;;  %v849_v42 = vsel %vm374_vm1, %v4144_v16, 0.0 }
  0xf4   : > { %v603_v59 = vsub.f32 %v3840_v63, %v491_v17  ;;  %3432 = vpow2.f32 %v702_v35 }
  0xf5   : > { %v4152_v21 = vpop.eup %3422  ;;  %v704_v28 = vmul.f32 1.442695, %v602_v54 }
  0xf6   : > { %v706_v45 = vmul.f32 1.442695, %v603_v59  ;;  %v4154_v3 = vpop.eup %3424  ;;  %v494_v22 = vpop.xlane.xlu0 %493  ;;  %v852_v1 = vsel %vm370_vm0, %v4152_v21, 0.0 }
  0xf7   : > { %v497_v40 = vpop.xlane.xlu1 %496  ;;  %3434 = vpow2.f32 %v704_v28  ;;  %v604_v62 = vsub.f32 %v3851_v19, %v494_v22  ;;  %850 = vadd.xlane.f32.xlu1 %v849_v42  ;;  %853 = vadd.xlane.f32.xlu0 %v852_v1  ;;  %v855_v15 = vsel %vm374_vm1, %v4154_v3, 0.0 }
  0xf8   : > { %v605_v63 = vsub.f32 %v3853_v20, %v497_v40  ;;  %3436 = vpow2.f32 %v706_v45 }
  0xf9   : > { %v4162_v43 = vpop.eup %3426  ;;  %v708_v44 = vmul.f32 1.442695, %v604_v62 }
  0xfa   : > { %v710_v55 = vmul.f32 1.442695, %v605_v63  ;;  %v4164_v7 = vpop.eup %3428  ;;  %v500_v35 = vpop.xlane.xlu0 %499  ;;  %v858_v12 = vsel %vm370_vm0, %v4162_v43, 0.0 }
  0xfb   : > { %v503_v57 = vpop.xlane.xlu1 %502  ;;  %3438 = vpow2.f32 %v708_v44  ;;  %v606_v19 = vsub.f32 %v3861_v47, %v500_v35  ;;  %856 = vadd.xlane.f32.xlu1 %v855_v15  ;;  %859 = vadd.xlane.f32.xlu0 %v858_v12  ;;  %v861_v17 = vsel %vm374_vm1, %v4164_v7, 0.0 }
  0xfc   : > { %v607_v20 = vsub.f32 %v3863_v48, %v503_v57  ;;  %3440 = vpow2.f32 %v710_v55 }
  0xfd   : > { %v4172_v54 = vpop.eup %3430  ;;  %v712_v59 = vmul.f32 1.442695, %v606_v19 }
  0xfe   : > { %v714_v42 = vmul.f32 1.442695, %v607_v20  ;;  %v4174_v28 = vpop.eup %3432  ;;  %v506_v45 = vpop.xlane.xlu0 %505  ;;  %v864_v22 = vsel %vm370_vm0, %v4172_v54, 0.0 }
  0xff   : > { %v509_v1 = vpop.xlane.xlu1 %508  ;;  %3442 = vpow2.f32 %v712_v59  ;;  %v608_v47 = vsub.f32 %v3870_v4, %v506_v45  ;;  %862 = vadd.xlane.f32.xlu1 %v861_v17  ;;  %865 = vadd.xlane.f32.xlu0 %v864_v22  ;;  %v867_v40 = vsel %vm374_vm1, %v4174_v28, 0.0  ;;  %v4737_v4 = vld [vmem:[#allocation2_spill] sm:$0xff] }
 0x100   : > { %v609_v48 = vsub.f32 %v3872_v5, %v509_v1  ;;  %3444 = vpow2.f32 %v714_v42  ;;  %v4738_v5 = vld [vmem:[#allocation3_spill] sm:$0xff] }
 0x101   : > { %v4182_v62 = vpop.eup %3434  ;;  %v716_v63 = vmul.f32 1.442695, %v608_v47 }
 0x102   : > { %v718_v15 = vmul.f32 1.442695, %v609_v48  ;;  %v4184_v44 = vpop.eup %3436  ;;  %v512_v55 = vpop.xlane.xlu0 %511  ;;  %v870_v35 = vsel %vm370_vm0, %v4182_v62, 0.0  ;;  %v4739_v48 = vld [vmem:[#allocation4_spill] sm:$0xff] }
 0x103   : > { %v515_v12 = vpop.xlane.xlu1 %514  ;;  %3446 = vpow2.f32 %v716_v63  ;;  %v610_v57 = vsub.f32 %v4737_v4, %v512_v55  ;;  %868 = vadd.xlane.f32.xlu1 %v867_v40  ;;  %871 = vadd.xlane.f32.xlu0 %v870_v35  ;;  %v873_v20 = vsel %vm374_vm1, %v4184_v44, 0.0  ;;  %v4740_v63 = vld [vmem:[#allocation5_spill] sm:$0xff] }
 0x104   : > { %v611_v19 = vsub.f32 %v4738_v5, %v515_v12  ;;  %3448 = vpow2.f32 %v718_v15 }
 0x105   : > { %v4192_v17 = vpop.eup %3438  ;;  %v720_v59 = vmul.f32 1.442695, %v610_v57 }
 0x106   : > { %v722_v42 = vmul.f32 1.442695, %v611_v19  ;;  %v4194_v45 = vpop.eup %3440  ;;  %v518_v22 = vpop.xlane.xlu0 %517  ;;  %v876_v1 = vsel %vm370_vm0, %v4192_v17, 0.0 }
 0x107   : > { %v521_v47 = vpop.xlane.xlu1 %520  ;;  %3450 = vpow2.f32 %v720_v59  ;;  %v612_v40 = vsub.f32 %v4739_v48, %v518_v22  ;;  %874 = vadd.xlane.f32.xlu1 %v873_v20  ;;  %877 = vadd.xlane.f32.xlu0 %v876_v1  ;;  %v879_v55 = vsel %vm374_vm1, %v4194_v45, 0.0  ;;  %v4743_v20 = vld [vmem:[#allocation6_spill] sm:$0xff] }
 0x108   : > { %v613_v15 = vsub.f32 %v4740_v63, %v521_v47  ;;  %3452 = vpow2.f32 %v722_v42  ;;  %v4744_v42 = vld [vmem:[#allocation7_spill] sm:$0xff] }
 0x109   : > { %v4202_v35 = vpop.eup %3442  ;;  %v724_v12 = vmul.f32 1.442695, %v612_v40 }
 0x10a   : > { %4741 = vst [vmem:[#allocation2_spill] sm:$0xff] %v4202_v35  ;;  %v726_v4 = vmul.f32 1.442695, %v613_v15  ;;  %v4204_v57 = vpop.eup %3444  ;;  %v524_v5 = vpop.xlane.xlu0 %523  ;;  %v882_v19 = vsel %vm370_vm0, %v4202_v35, 0.0 }
 0x10b   : > { %4742 = vst [vmem:[#allocation3_spill] sm:$0xff] %v4204_v57  ;;  %v527_v59 = vpop.xlane.xlu1 %526  ;;  %3454 = vpow2.f32 %v724_v12  ;;  %v614_v22 = vsub.f32 %v4743_v20, %v524_v5  ;;  %880 = vadd.xlane.f32.xlu1 %v879_v55  ;;  %883 = vadd.xlane.f32.xlu0 %v882_v19  ;;  %v885_v47 = vsel %vm374_vm1, %v4204_v57, 0.0  ;;  %v4746_v55 = vld [vmem:[#allocation8_spill] sm:$0xff] }
 0x10c   : > { %v615_v1 = vsub.f32 %v4744_v42, %v527_v59  ;;  %3456 = vpow2.f32 %v726_v4  ;;  %v4747_v4 = vld [vmem:[#allocation9_spill] sm:$0xff] }
 0x10d   : > { %v4212_v48 = vpop.eup %3446  ;;  %v728_v40 = vmul.f32 1.442695, %v614_v22 }
 0x10e   : > { %4745 = vst [vmem:[#allocation4_spill] sm:$0xff] %v4212_v48  ;;  %v730_v63 = vmul.f32 1.442695, %v615_v1  ;;  %v4214_v15 = vpop.eup %3448  ;;  %v530_v52 = vpop.xlane.xlu0 %529  ;;  %v888_v12 = vsel %vm370_vm0, %v4212_v48, 0.0 }
 0x10f   : > { %v533_v35 = vpop.xlane.xlu1 %532  ;;  %3458 = vpow2.f32 %v728_v40  ;;  %v616_v5 = vsub.f32 %v4746_v55, %v530_v52  ;;  %886 = vadd.xlane.f32.xlu1 %v885_v47  ;;  %889 = vadd.xlane.f32.xlu0 %v888_v12  ;;  %v891_v59 = vsel %vm374_vm1, %v4214_v15, 0.0  ;;  %v4749_v52 = vld [vmem:[#allocation10_spill] sm:$0xff] }
 0x110   : > { %v617_v19 = vsub.f32 %v4747_v4, %v533_v35  ;;  %3460 = vpow2.f32 %v730_v63 }
 0x111   : > { %v4222_v20 = vpop.eup %3450  ;;  %v732_v22 = vmul.f32 1.442695, %v616_v5 }
 0x112   : > { %4748 = vst [vmem:[#allocation5_spill] sm:$0xff] %v4222_v20  ;;  %v734_v42 = vmul.f32 1.442695, %v617_v19  ;;  %v4224_v1 = vpop.eup %3452  ;;  %v536_v57 = vpop.xlane.xlu0 %535  ;;  %v894_v40 = vsel %vm370_vm0, %v4222_v20, 0.0 }
 0x113   : > { %v539_v48 = vpop.xlane.xlu1 %538  ;;  %3462 = vpow2.f32 %v732_v22  ;;  %v618_v47 = vsub.f32 %v4749_v52, %v536_v57  ;;  %892 = vadd.xlane.f32.xlu1 %v891_v59  ;;  %895 = vadd.xlane.f32.xlu0 %v894_v40  ;;  %v897_v63 = vsel %vm374_vm1, %v4224_v1, 0.0  ;;  %v4751_v57 = vld [vmem:[#allocation11_spill] sm:$0xff] }
 0x114   : > { %v619_v35 = vsub.f32 %v3916_v51, %v539_v48  ;;  %3464 = vpow2.f32 %v734_v42 }
 0x115   : > { %v4232_v12 = vpop.eup %3454  ;;  %v736_v55 = vmul.f32 1.442695, %v618_v47 }
 0x116   : > { %4750 = vst [vmem:[#allocation6_spill] sm:$0xff] %v4232_v12  ;;  %v738_v5 = vmul.f32 1.442695, %v619_v35  ;;  %v4234_v4 = vpop.eup %3456  ;;  %v542_v19 = vpop.xlane.xlu0 %541  ;;  %v900_v22 = vsel %vm370_vm0, %v4232_v12, 0.0 }
 0x117   : > { %v545_v20 = vpop.xlane.xlu1 %544  ;;  %3466 = vpow2.f32 %v736_v55  ;;  %v620_v59 = vsub.f32 %v4751_v57, %v542_v19  ;;  %898 = vadd.xlane.f32.xlu1 %v897_v63  ;;  %901 = vadd.xlane.f32.xlu0 %v900_v22  ;;  %v903_v48 = vsel %vm374_vm1, %v4234_v4, 0.0 }
 0x118   : > { %v621_v51 = vsub.f32 %v3929_v60, %v545_v20  ;;  %3468 = vpow2.f32 %v738_v5  ;;  %v4754_v60 = vld [vmem:[#allocation12_spill] sm:$0xff] }
 0x119   : > { %v4242_v42 = vpop.eup %3458  ;;  %v740_v40 = vmul.f32 1.442695, %v620_v59 }
 0x11a   : > { %4752 = vst [vmem:[#allocation7_spill] sm:$0xff] %v4242_v42  ;;  %v742_v52 = vmul.f32 1.442695, %v621_v51  ;;  %v4244_v47 = vpop.eup %3460  ;;  %v548_v35 = vpop.xlane.xlu0 %547  ;;  %v906_v55 = vsel %vm370_vm0, %v4242_v42, 0.0 }
 0x11b   : > { %4753 = vst [vmem:[#allocation8_spill] sm:$0xff] %v4244_v47  ;;  %v551_v12 = vpop.xlane.xlu1 %550  ;;  %3470 = vpow2.f32 %v740_v40  ;;  %v622_v63 = vsub.f32 %v3937_v10, %v548_v35  ;;  %904 = vadd.xlane.f32.xlu1 %v903_v48  ;;  %907 = vadd.xlane.f32.xlu0 %v906_v55  ;;  %v909_v5 = vsel %vm374_vm1, %v4244_v47, 0.0  ;;  %v4756_v10 = vld [vmem:[#allocation13_spill] sm:$0xff] }
 0x11c   : > { %v623_v20 = vsub.f32 %v4754_v60, %v551_v12  ;;  %3472 = vpow2.f32 %v742_v52  ;;  %v4757_v12 = vld [vmem:[#allocation14_spill] sm:$0xff] }
 0x11d   : > { %v4252_v19 = vpop.eup %3462  ;;  %v744_v22 = vmul.f32 1.442695, %v622_v63 }
 0x11e   : > { %4755 = vst [vmem:[#allocation9_spill] sm:$0xff] %v4252_v19  ;;  %v746_v57 = vmul.f32 1.442695, %v623_v20  ;;  %v4254_v59 = vpop.eup %3464  ;;  %v554_v51 = vpop.xlane.xlu0 %553  ;;  %v912_v40 = vsel %vm370_vm0, %v4252_v19, 0.0 }
 0x11f   : > { %v557_v42 = vpop.xlane.xlu1 %556  ;;  %3474 = vpow2.f32 %v744_v22  ;;  %v624_v48 = vsub.f32 %v4756_v10, %v554_v51  ;;  %910 = vadd.xlane.f32.xlu1 %v909_v5  ;;  %913 = vadd.xlane.f32.xlu0 %v912_v40  ;;  %v915_v35 = vsel %vm374_vm1, %v4254_v59, 0.0  ;;  %v4759_v5 = vld [vmem:[#allocation15_spill] sm:$0xff] }
 0x120   : > { %v625_v52 = vsub.f32 %v4757_v12, %v557_v42  ;;  %3476 = vpow2.f32 %v746_v57  ;;  %v4760_v42 = vld [vmem:[#allocation16_spill] sm:$0xff] }
 0x121   : > { %v4262_v55 = vpop.eup %3466  ;;  %v748_v63 = vmul.f32 1.442695, %v624_v48 }
 0x122   : > { %4758 = vst [vmem:[#allocation10_spill] sm:$0xff] %v4262_v55  ;;  %v750_v60 = vmul.f32 1.442695, %v625_v52  ;;  %v4264_v20 = vpop.eup %3468  ;;  %v560_v47 = vpop.xlane.xlu0 %559  ;;  %v918_v22 = vsel %vm370_vm0, %v4262_v55, 0.0 }
 0x123   : > { %v563_v19 = vpop.xlane.xlu1 %562  ;;  %3478 = vpow2.f32 %v748_v63  ;;  %v626_v51 = vsub.f32 %v4759_v5, %v560_v47  ;;  %916 = vadd.xlane.f32.xlu1 %v915_v35  ;;  %919 = vadd.xlane.f32.xlu0 %v918_v22  ;;  %v921_v40 = vsel %vm374_vm1, %v4264_v20, 0.0 }
 0x124   : > { %v627_v57 = vsub.f32 %v4760_v42, %v563_v19  ;;  %3480 = vpow2.f32 %v750_v60 }
 0x125   : > { %v4272_v10 = vpop.eup %3470  ;;  %v752_v48 = vmul.f32 1.442695, %v626_v51 }
 0x126   : > { %4761 = vst [vmem:[#allocation11_spill] sm:$0xff] %v4272_v10  ;;  %v754_v12 = vmul.f32 1.442695, %v627_v57  ;;  %v4274_v52 = vpop.eup %3472  ;;  %v924_v55 = vsel %vm370_vm0, %v4272_v10, 0.0 }
 0x127   : > { %4762 = vst [vmem:[#allocation12_spill] sm:$0xff] %v4274_v52  ;;  %3482 = vpow2.f32 %v752_v48  ;;  %922 = vadd.xlane.f32.xlu1 %v921_v40  ;;  %925 = vadd.xlane.f32.xlu0 %v924_v55  ;;  %v927_v47 = vsel %vm374_vm1, %v4274_v52, 0.0 }
 0x128   : > { %3484 = vpow2.f32 %v754_v12 }
 0x129   : > { %v4280_v19 = vpop.eup %3474 }
 0x12a   : > { %4763 = vst [vmem:[#allocation13_spill] sm:$0xff] %v4280_v19  ;;  %v4282_v35 = vpop.eup %3476  ;;  %v930_v63 = vsel %vm370_vm0, %v4280_v19, 0.0 }
 0x12b   : > { %4764 = vst [vmem:[#allocation14_spill] sm:$0xff] %v4282_v35  ;;  %928 = vadd.xlane.f32.xlu1 %v927_v47  ;;  %931 = vadd.xlane.f32.xlu0 %v930_v63  ;;  %v933_v60 = vsel %vm374_vm1, %v4282_v35, 0.0 }
 0x12d   : > { %v4288_v22 = vpop.eup %3478 }
 0x12e   : > { %4765 = vst [vmem:[#allocation15_spill] sm:$0xff] %v4288_v22  ;;  %v4290_v5 = vpop.eup %3480  ;;  %v936_v55 = vsel %vm370_vm0, %v4288_v22, 0.0 }
 0x12f   : > { %4766 = vst [vmem:[#allocation16_spill] sm:$0xff] %v4290_v5  ;;  %934 = vadd.xlane.f32.xlu1 %v933_v60  ;;  %937 = vadd.xlane.f32.xlu0 %v936_v55  ;;  %v939_v51 = vsel %vm374_vm1, %v4290_v5, 0.0 }
 0x131   : > { %v4296_v42 = vpop.eup %3482 }
 0x132   : > { %4767 = vst [vmem:[#allocation17_spill] sm:$0xff] %v4296_v42  ;;  %v4298_v57 = vpop.eup %3484  ;;  %v942_v40 = vsel %vm370_vm0, %v4296_v42, 0.0 }
 0x133   : > { %4768 = vst [vmem:[#allocation18_spill] sm:$0xff] %v4298_v57  ;;  %940 = vadd.xlane.f32.xlu1 %v939_v51  ;;  %943 = vadd.xlane.f32.xlu0 %v942_v40  ;;  %v945_v48 = vsel %vm374_vm1, %v4298_v57, 0.0  ;;  %v3328_v40 = vld [vmem:[%s4047_s18 + $0x10] sm:$0x1f]  }
 0x137   : > { %946 = vadd.xlane.f32.xlu1 %v945_v48 }
 0x144   : > { %v758_v12 = vpop.xlane.xlu0 %757 }
 0x145   : > { %3486 = vrcp.f32 %v758_v12 }
 0x148   : > { %v761_v47 = vpop.xlane.xlu1 %760  ;;  %v764_v63 = vpop.xlane.xlu0 %763 }
 0x149   : > { %3488 = vrcp.f32 %v761_v47 }
 0x14a   : > { %3490 = vrcp.f32 %v764_v63  ;;  %v1289_v63 = vand.u32 %v3328_v40, %v4062_v30 }
 0x14c   : > { %v767_v60 = vpop.xlane.xlu1 %766  ;;  %v770_v55 = vpop.xlane.xlu0 %769 }
 0x14d   : > { %3492 = vrcp.f32 %v767_v60  ;;  %v3329_v60 = vld [vmem:[%s4047_s18 + $0x18] sm:$0x1f]  }
 0x14e   : > { %3494 = vrcp.f32 %v770_v55 }
 0x14f   : > { %v3487_v51 = vpop.eup %3486 }
 0x150   : > { %v773_v5 = vpop.xlane.xlu1 %772  ;;  %v776_v42 = vpop.xlane.xlu0 %775  ;;  %v1012_v12 = vmul.f32 %v3487_v51, %v3970_v37 }
 0x151   : > { %3496 = vrcp.f32 %v773_v5 }
 0x152   : > { %3498 = vrcp.f32 %v776_v42 }
 0x153   : > { %v3489_v22 = vpop.eup %3488 }
 0x154   : > { %v779_v57 = vpop.xlane.xlu1 %778  ;;  %v782_v48 = vpop.xlane.xlu0 %781  ;;  %v1013_v35 = vmul.f32 %v3489_v22, %v3980_v49  ;;  %v1341_v49 = vand.u32 %v3329_v60, %v4062_v30  ;;  %v4769_v22 = vmov 0.0  }
 0x155   : > { %v3491_v47 = vpop.eup %3490  ;;  %3500 = vrcp.f32 %v779_v57 }
 0x156   : > { %v1076_v55 = vpack.c.bf16 %v1013_v35, %v1012_v12  ;;  %3502 = vrcp.f32 %v782_v48  ;;  %v1014_v42 = vmul.f32 %v3491_v47, %v3972_v32  ;;  %v3330_v35 = vld [vmem:[%s4047_s18 + $0x20] sm:$0x1f]   ;;  %v3331_v48 = vld [vmem:[%s4047_s18 + $0x28] sm:$0x1f]  }
 0x157   : > { %v3493_v19 = vpop.eup %3492 }
 0x158   : > { %v785_v52 = vpop.xlane.xlu1 %784  ;;  %3126 = vmatmul.mubr.msk.bf16.vlgmr.msra.gmra.mrb[0].mxu0 %vm370_vm0, %v1076_v55  ;;  %v788_v5 = vpop.xlane.xlu0 %787  ;;  %v1015_v10 = vmul.f32 %v3493_v19, %v3982_v33 }
 0x159   : > { %v3495_v37 = vpop.eup %3494  ;;  %3504 = vrcp.f32 %v785_v52  ;;  %3136 = vmatpush3.bf16.msra.mxu0 %v1289_v63  ;;  %3137 = vmatprep.mubr.msk.bf16.mxu0 %vm3624_vm4, %v4769_v22 }
 0x15a   : > { %v1077_v57 = vpack.c.bf16 %v1015_v10, %v1014_v42  ;;  %3147 = vmatprep.subr.bf16.mxu0 %v4769_v22  ;;  %3506 = vrcp.f32 %v788_v5  ;;  %v1016_v40 = vmul.f32 %v3495_v37, %v3990_v29  ;;  %v1393_v10 = vand.u32 %v3330_v35, %v4062_v30  ;;  %v3332_v42 = vld [vmem:[%s4047_s18 + $0x30] sm:$0x1f]  }
 0x15b   : > { %v3497_v51 = vpop.eup %3496  ;;  %v1445_v5 = vand.u32 %v3331_v48, %v4062_v30 }
 0x15c   : > { %v1017_v32 = vmul.f32 %v3497_v51, %v3992_v13  ;;  %v791_v33 = vpop.xlane.xlu1 %790  ;;  %3132 = vmatmul.mubr.msk.bf16.vlgmr.msra.gmra.mrb[0].mxu1 %vm370_vm0, %v1077_v57  ;;  %v794_v52 = vpop.xlane.xlu0 %793 }
 0x15d   : > { %v3499_v19 = vpop.eup %3498  ;;  %3508 = vrcp.f32 %v791_v33  ;;  %3142 = vmatpush3.bf16.msra.mxu1 %v1341_v49  ;;  %3143 = vmatprep.mubr.msk.bf16.mxu1 %vm3624_vm4, %v4769_v22 }
 0x15e   : > { %v1078_v12 = vpack.c.bf16 %v1017_v32, %v1016_v40  ;;  %3153 = vmatprep.subr.bf16.mxu1 %v4769_v22  ;;  %3510 = vrcp.f32 %v794_v52  ;;  %v1018_v13 = vmul.f32 %v3499_v19, %v4000_v23  ;;  %v1497_v40 = vand.u32 %v3332_v42, %v4062_v30  ;;  %v3333_v32 = vld [vmem:[%s4047_s18 + $0x38] sm:$0x1f]   ;;  %v3335_v42 = vld [vmem:[%s4047_s18 + $0x48] sm:$0x1f]  }
 0x15f   : > { %v3501_v29 = vpop.eup %3500 }
 0x160   : > { %v1019_v47 = vmul.f32 %v3501_v29, %v4002_v26  ;;  %v797_v63 = vpop.xlane.xlu1 %796  ;;  %3138 = vmatmul.mubr.msk.bf16.vlgmr.msra.gmra.mrb[4].mxu0 %vm370_vm0, %v1078_v12  ;;  %v800_v60 = vpop.xlane.xlu0 %799  ;;  %v1549_v12 = vand.u32 %v3333_v32, %v4062_v30  ;;  %v3334_v29 = vld [vmem:[%s4047_s18 + $0x40] sm:$0x1f]  }
 0x161   : > { %v3503_v55 = vpop.eup %3502  ;;  %3512 = vrcp.f32 %v797_v63  ;;  %3148 = vmatpush3.bf16.msra.mxu0 %v1393_v10  ;;  %3149 = vmatprep.mubr.msk.bf16.mxu0 %vm3624_vm4, %v4769_v22 }
 0x162   : > { %v1079_v37 = vpack.c.bf16 %v1019_v47, %v1018_v13  ;;  %3159 = vmatprep.subr.bf16.mxu0 %v4769_v22  ;;  %3514 = vrcp.f32 %v800_v60  ;;  %v1020_v26 = vmul.f32 %v3503_v55, %v4010_v18 }
 0x163   : > { %v3505_v23 = vpop.eup %3504 }
 0x164   : > { %v1021_v49 = vmul.f32 %v3505_v23, %v4012_v36  ;;  %v803_v35 = vpop.xlane.xlu1 %802  ;;  %3144 = vmatmul.mubr.msk.bf16.vlgmr.msra.gmra.mrb[4].mxu1 %vm370_vm0, %v1079_v37  ;;  %v806_v57 = vpop.xlane.xlu0 %805 }
 0x165   : > { %v3507_v51 = vpop.eup %3506  ;;  %3516 = vrcp.f32 %v803_v35  ;;  %3154 = vmatpush3.bf16.msra.mxu1 %v1445_v5  ;;  %3155 = vmatprep.mubr.msk.bf16.mxu1 %vm3624_vm4, %v4769_v22  ;;  %v1601_v5 = vand.u32 %v3334_v29, %v4062_v30 }
 0x166   : > { %v1080_v33 = vpack.c.bf16 %v1021_v49, %v1020_v26  ;;  %3165 = vmatprep.subr.bf16.mxu1 %v4769_v22  ;;  %3518 = vrcp.f32 %v806_v57  ;;  %v1022_v36 = vmul.f32 %v3507_v51, %v4020_v34  ;;  %v1653_v57 = vand.u32 %v3335_v42, %v4062_v30  ;;  %v3336_v51 = vld [vmem:[%s4047_s18 + $0x50] sm:$0x1f]  }
 0x167   : > { %v3509_v18 = vpop.eup %3508 }
 0x168   : > { %v1023_v52 = vmul.f32 %v3509_v18, %v4022_v46  ;;  %v809_v19 = vpop.xlane.xlu1 %808  ;;  %3150 = vmatmul.mubr.msk.bf16.vlgmr.msra.gmra.mrb[8].mxu0 %vm370_vm0, %v1080_v33  ;;  %v812_v10 = vpop.xlane.xlu0 %811 }
 0x169   : > { %v3511_v48 = vpop.eup %3510  ;;  %3520 = vrcp.f32 %v809_v19  ;;  %3160 = vmatpush3.bf16.msra.mxu0 %v1497_v40  ;;  %3161 = vmatprep.mubr.msk.bf16.mxu0 %vm3624_vm4, %v4769_v22  ;;  %v3337_v19 = vld [vmem:[%s4047_s18 + $0x58] sm:$0x1f]  }
 0x16a   : > { %v1081_v13 = vpack.c.bf16 %v1023_v52, %v1022_v36  ;;  %3171 = vmatprep.subr.bf16.mxu0 %v4769_v22  ;;  %3522 = vrcp.f32 %v812_v10  ;;  %v1024_v46 = vmul.f32 %v3511_v48, %v4030_v9  ;;  %v1705_v52 = vand.u32 %v3336_v51, %v4062_v30 }
 0x16b   : > { %v3513_v34 = vpop.eup %3512 }
 0x16c   : > { %v1025_v47 = vmul.f32 %v3513_v34, %v4032_v53  ;;  %v815_v63 = vpop.xlane.xlu1 %814  ;;  %3156 = vmatmul.mubr.msk.bf16.vlgmr.msra.gmra.mrb[8].mxu1 %vm370_vm0, %v1081_v13  ;;  %v818_v60 = vpop.xlane.xlu0 %817  ;;  %v1757_v34 = vand.u32 %v3337_v19, %v4062_v30 }
 0x16d   : > { %v3515_v55 = vpop.eup %3514  ;;  %3524 = vrcp.f32 %v815_v63  ;;  %3166 = vmatpush3.bf16.msra.mxu1 %v1549_v12  ;;  %3167 = vmatprep.mubr.msk.bf16.mxu1 %vm3624_vm4, %v4769_v22 }
 0x16e   : > { %v1082_v37 = vpack.c.bf16 %v1025_v47, %v1024_v46  ;;  %3177 = vmatprep.subr.bf16.mxu1 %v4769_v22  ;;  %3526 = vrcp.f32 %v818_v60  ;;  %v1026_v53 = vmul.f32 %v3515_v55, %v4040_v8  ;;  %v3338_v46 = vld [vmem:[%s4047_s18 + $0x60] sm:$0x1f]  }
 0x16f   : > { %v3517_v9 = vpop.eup %3516  ;;  %v1809_v42 = vand.u32 %v3338_v46, %v4062_v30 }
 0x170   : > { %v1027_v23 = vmul.f32 %v3517_v9, %v4049_v24  ;;  %v821_v26 = vpop.xlane.xlu1 %820  ;;  %3162 = vmatmul.mubr.msk.bf16.vlgmr.msra.gmra.mrb[12].mxu0 %vm370_vm0, %v1082_v37  ;;  %v824_v49 = vpop.xlane.xlu0 %823  ;;  %v3339_v37 = vld [vmem:[%s4047_s18 + $0x68] sm:$0x1f]  }
 0x171   : > { %v3519_v35 = vpop.eup %3518  ;;  %3528 = vrcp.f32 %v821_v26  ;;  %3172 = vmatpush3.bf16.msra.mxu0 %v1601_v5  ;;  %3173 = vmatprep.mubr.msk.bf16.mxu0 %vm3624_vm4, %v4769_v22 }
 0x172   : > { %v1083_v40 = vpack.c.bf16 %v1027_v23, %v1026_v53  ;;  %3183 = vmatprep.subr.bf16.mxu0 %v4769_v22  ;;  %3530 = vrcp.f32 %v824_v49  ;;  %v1028_v24 = vmul.f32 %v3519_v35, %v4058_v2  ;;  %v1861_v35 = vand.u32 %v3339_v37, %v4062_v30  ;;  %v3344_v37 = vld [vmem:[%s4047_s18 + $0x90] sm:$0x1f]  }
 0x173   : > { %v3521_v8 = vpop.eup %3520 }
 0x174   : > { %v1029_v32 = vmul.f32 %v3521_v8, %v4065_v31  ;;  %v827_v33 = vpop.xlane.xlu1 %826  ;;  %3168 = vmatmul.mubr.msk.bf16.vlgmr.msra.gmra.mrb[12].mxu1 %vm370_vm0, %v1083_v40  ;;  %v830_v18 = vpop.xlane.xlu0 %829 }
 0x175   : > { %v3523_v36 = vpop.eup %3522  ;;  %3532 = vrcp.f32 %v827_v33  ;;  %3178 = vmatpush3.bf16.msra.mxu1 %v1653_v57  ;;  %3179 = vmatprep.mubr.msk.bf16.mxu1 %vm3624_vm4, %v4769_v22  ;;  %v3340_v57 = vld [vmem:[%s4047_s18 + $0x70] sm:$0x1f]  }
 0x176   : > { %v1084_v10 = vpack.c.bf16 %v1029_v32, %v1028_v24  ;;  %3189 = vmatprep.subr.bf16.mxu1 %v4769_v22  ;;  %3534 = vrcp.f32 %v830_v18  ;;  %v1030_v31 = vmul.f32 %v3523_v36, %v4076_v25  ;;  %v1913_v33 = vand.u32 %v3340_v57, %v4062_v30  ;;  %v3341_v18 = vld [vmem:[%s4047_s18 + $0x78] sm:$0x1f]  }
 0x177   : > { %v3525_v2 = vpop.eup %3524 }
 0x178   : > { %v1031_v48 = vmul.f32 %v3525_v2, %v4082_v41  ;;  %v833_v12 = vpop.xlane.xlu1 %832  ;;  %3174 = vmatmul.mubr.msk.bf16.vlgmr.msra.gmra.mrb[16].mxu0 %vm370_vm0, %v1084_v10  ;;  %v836_v29 = vpop.xlane.xlu0 %835 }
 0x179   : > { %v3527_v13 = vpop.eup %3526  ;;  %3536 = vrcp.f32 %v833_v12  ;;  %3184 = vmatpush3.bf16.msra.mxu0 %v1705_v52  ;;  %3185 = vmatprep.mubr.msk.bf16.mxu0 %vm3624_vm4, %v4769_v22 }
 0x17a   : > { %v1085_v47 = vpack.c.bf16 %v1031_v48, %v1030_v31  ;;  %3195 = vmatprep.subr.bf16.mxu0 %v4769_v22  ;;  %3538 = vrcp.f32 %v836_v29  ;;  %v1032_v41 = vmul.f32 %v3527_v13, %v4092_v27  ;;  %v1965_v31 = vand.u32 %v3341_v18, %v4062_v30  ;;  %v3342_v48 = vld [vmem:[%s4047_s18 + $0x80] sm:$0x1f]  }
 0x17b   : > { %v3529_v25 = vpop.eup %3528 }
 0x17c   : > { %v1033_v63 = vmul.f32 %v3529_v25, %v4094_v11  ;;  %v839_v60 = vpop.xlane.xlu1 %838  ;;  %3180 = vmatmul.mubr.msk.bf16.vlgmr.msra.gmra.mrb[16].mxu1 %vm370_vm0, %v1085_v47  ;;  %v842_v55 = vpop.xlane.xlu0 %841  ;;  %v2017_v47 = vand.u32 %v3342_v48, %v4062_v30  ;;  %v3343_v25 = vld [vmem:[%s4047_s18 + $0x88] sm:$0x1f]  }
 0x17d   : > { %v3531_v5 = vpop.eup %3530  ;;  %3540 = vrcp.f32 %v839_v60  ;;  %3190 = vmatpush3.bf16.msra.mxu1 %v1757_v34  ;;  %3191 = vmatprep.mubr.msk.bf16.mxu1 %vm3624_vm4, %v4769_v22 }
 0x17e   : > { %v1086_v9 = vpack.c.bf16 %v1033_v63, %v1032_v41  ;;  %3201 = vmatprep.subr.bf16.mxu1 %v4769_v22  ;;  %3542 = vrcp.f32 %v842_v55  ;;  %v1034_v11 = vmul.f32 %v3531_v5, %v4102_v38 }
 0x17f   : > { %v3533_v27 = vpop.eup %3532 }
 0x180   : > { %v1035_v53 = vmul.f32 %v3533_v27, %v4104_v14  ;;  %v845_v23 = vpop.xlane.xlu1 %844  ;;  %3186 = vmatmul.mubr.msk.bf16.vlgmr.msra.gmra.mrb[20].mxu0 %vm370_vm0, %v1086_v9  ;;  %v848_v26 = vpop.xlane.xlu0 %847 }
 0x181   : > { %v3535_v49 = vpop.eup %3534  ;;  %3544 = vrcp.f32 %v845_v23  ;;  %3196 = vmatpush3.bf16.msra.mxu0 %v1809_v42  ;;  %3197 = vmatprep.mubr.msk.bf16.mxu0 %vm3624_vm4, %v4769_v22  ;;  %v2069_v42 = vand.u32 %v3343_v25, %v4062_v30 }
 0x182   : > { %v1087_v51 = vpack.c.bf16 %v1035_v53, %v1034_v11  ;;  %3207 = vmatprep.subr.bf16.mxu0 %v4769_v22  ;;  %3546 = vrcp.f32 %v848_v26  ;;  %v1036_v14 = vmul.f32 %v3535_v49, %v4112_v61  ;;  %v2121_v26 = vand.u32 %v3344_v37, %v4062_v30  ;;  %v3345_v49 = vld [vmem:[%s4047_s18 + $0x98] sm:$0x1f]  }
 0x183   : > { %v3537_v38 = vpop.eup %3536 }
 0x184   : > { %v1037_v40 = vmul.f32 %v3537_v38, %v4114_v39  ;;  %v851_v8 = vpop.xlane.xlu1 %850  ;;  %3192 = vmatmul.mubr.msk.bf16.vlgmr.msra.gmra.mrb[20].mxu1 %vm370_vm0, %v1087_v51  ;;  %v854_v24 = vpop.xlane.xlu0 %853 }
 0x185   : > { %v3539_v32 = vpop.eup %3538  ;;  %3548 = vrcp.f32 %v851_v8  ;;  %3202 = vmatpush3.bf16.msra.mxu1 %v1861_v35  ;;  %3203 = vmatprep.mubr.msk.bf16.mxu1 %vm3624_vm4, %v4769_v22  ;;  %v3346_v8 = vld [vmem:[%s4047_s18 + $0xa0] sm:$0x1f]  }
 0x186   : > { %v1088_v36 = vpack.c.bf16 %v1037_v40, %v1036_v14  ;;  %3213 = vmatprep.subr.bf16.mxu1 %v4769_v22  ;;  %3550 = vrcp.f32 %v854_v24  ;;  %v1038_v39 = vmul.f32 %v3539_v32, %v4122_v58  ;;  %v2173_v40 = vand.u32 %v3345_v49, %v4062_v30  ;;  %v3351_v49 = vld [vmem:[%s4047_s18 + $0xc8] sm:$0x1f]  }
 0x187   : > { %v3541_v61 = vpop.eup %3540 }
 0x188   : > { %v1039_v52 = vmul.f32 %v3541_v61, %v4124_v56  ;;  %v857_v19 = vpop.xlane.xlu1 %856  ;;  %3198 = vmatmul.mubr.msk.bf16.vlgmr.msra.gmra.mrb[24].mxu0 %vm370_vm0, %v1088_v36  ;;  %v860_v10 = vpop.xlane.xlu0 %859  ;;  %v2225_v61 = vand.u32 %v3346_v8, %v4062_v30  ;;  %v3352_v8 = vld [vmem:[%s4047_s18 + $0xd0] sm:$0x1f]  }
 0x189   : > { %v3543_v2 = vpop.eup %3542  ;;  %3552 = vrcp.f32 %v857_v19  ;;  %3208 = vmatpush3.bf16.msra.mxu0 %v1913_v33  ;;  %3209 = vmatprep.mubr.msk.bf16.mxu0 %vm3624_vm4, %v4769_v22 }
 0x18a   : > { %v1089_v12 = vpack.c.bf16 %v1039_v52, %v1038_v39  ;;  %3219 = vmatprep.subr.bf16.mxu0 %v4769_v22  ;;  %3554 = vrcp.f32 %v860_v10  ;;  %v1040_v56 = vmul.f32 %v3543_v2, %v4132_v0  ;;  %v3347_v39 = vld [vmem:[%s4047_s18 + $0xa8] sm:$0x1f]  }
 0x18b   : > { %v3545_v58 = vpop.eup %3544  ;;  %v2277_v48 = vand.u32 %v3347_v39, %v4062_v30  ;;  %v3353_v39 = vld [vmem:[%s4047_s18 + $0xd8] sm:$0x1f]  }
 0x18c   : > { %v1041_v29 = vmul.f32 %v3545_v58, %v4134_v50  ;;  %v863_v13 = vpop.xlane.xlu1 %862  ;;  %3204 = vmatmul.mubr.msk.bf16.vlgmr.msra.gmra.mrb[24].mxu1 %vm370_vm0, %v1089_v12  ;;  %v866_v34 = vpop.xlane.xlu0 %865  ;;  %v3348_v12 = vld [vmem:[%s4047_s18 + $0xb0] sm:$0x1f]  }
 0x18d   : > { %v3547_v46 = vpop.eup %3546  ;;  %3556 = vrcp.f32 %v863_v13  ;;  %3214 = vmatpush3.bf16.msra.mxu1 %v1965_v31  ;;  %3215 = vmatprep.mubr.msk.bf16.mxu1 %vm3624_vm4, %v4769_v22 }
 0x18e   : > { %v1090_v41 = vpack.c.bf16 %v1041_v29, %v1040_v56  ;;  %3225 = vmatprep.subr.bf16.mxu1 %v4769_v22  ;;  %3558 = vrcp.f32 %v866_v34  ;;  %v1042_v50 = vmul.f32 %v3547_v46, %v4142_v6  ;;  %v2329_v46 = vand.u32 %v3348_v12, %v4062_v30 }
 0x18f   : > { %v3549_v0 = vpop.eup %3548  ;;  %v2589_v12 = vand.u32 %v3353_v39, %v4062_v30 }
 0x190   : > { %v1043_v63 = vmul.f32 %v3549_v0, %v4144_v16  ;;  %v869_v60 = vpop.xlane.xlu1 %868  ;;  %3210 = vmatmul.mubr.msk.bf16.vlgmr.msra.gmra.mrb[28].mxu0 %vm370_vm0, %v1090_v41  ;;  %v872_v55 = vpop.xlane.xlu0 %871  ;;  %v4771_v0 = vld [vmem:[#allocation3_spill] sm:$0xff] }
 0x191   : > { %v3551_v5 = vpop.eup %3550  ;;  %3560 = vrcp.f32 %v869_v60  ;;  %3220 = vmatpush3.bf16.msra.mxu0 %v2017_v47  ;;  %3221 = vmatprep.mubr.msk.bf16.mxu0 %vm3624_vm4, %v4769_v22  ;;  %v3349_v47 = vld [vmem:[%s4047_s18 + $0xb8] sm:$0x1f]  }
 0x192   : > { %v1091_v9 = vpack.c.bf16 %v1043_v63, %v1042_v50  ;;  %3231 = vmatprep.subr.bf16.mxu0 %v4769_v22  ;;  %3562 = vrcp.f32 %v872_v55  ;;  %v1044_v16 = vmul.f32 %v3551_v5, %v4152_v21  ;;  %v2381_v5 = vand.u32 %v3349_v47, %v4062_v30 }
 0x193   : > { %v3553_v6 = vpop.eup %3552 }
 0x194   : > { %v1045_v27 = vmul.f32 %v3553_v6, %v4154_v3  ;;  %v875_v11 = vpop.xlane.xlu1 %874  ;;  %3216 = vmatmul.mubr.msk.bf16.vlgmr.msra.gmra.mrb[28].mxu1 %vm370_vm0, %v1091_v9  ;;  %v878_v53 = vpop.xlane.xlu0 %877  ;;  %v4772_v6 = vld [vmem:[#allocation4_spill] sm:$0xff] }
 0x195   : > { %v3555_v23 = vpop.eup %3554  ;;  %3564 = vrcp.f32 %v875_v11  ;;  %3226 = vmatpush3.bf16.msra.mxu1 %v2069_v42  ;;  %3227 = vmatprep.mubr.msk.bf16.mxu1 %vm3624_vm4, %v4769_v22  ;;  %v3350_v42 = vld [vmem:[%s4047_s18 + $0xc0] sm:$0x1f]  }
 0x196   : > { %v1092_v35 = vpack.c.bf16 %v1045_v27, %v1044_v16  ;;  %3237 = vmatprep.subr.bf16.mxu1 %v4769_v22  ;;  %3566 = vrcp.f32 %v878_v53  ;;  %v1046_v3 = vmul.f32 %v3555_v23, %v4162_v43 }
 0x197   : > { %v3557_v21 = vpop.eup %3556 }
 0x198   : > { %v1047_v57 = vmul.f32 %v3557_v21, %v4164_v7  ;;  %v881_v51 = vpop.xlane.xlu1 %880  ;;  %3222 = vmatmul.mubr.msk.bf16.vlgmr.msra.gmra.mrb[32].mxu0 %vm370_vm0, %v1092_v35  ;;  %v884_v38 = vpop.xlane.xlu0 %883 }
 0x199   : > { %v3559_v14 = vpop.eup %3558  ;;  %3568 = vrcp.f32 %v881_v51  ;;  %3232 = vmatpush3.bf16.msra.mxu0 %v2121_v26  ;;  %3233 = vmatprep.mubr.msk.bf16.mxu0 %vm3624_vm4, %v4769_v22  ;;  %v2433_v26 = vand.u32 %v3350_v42, %v4062_v30  ;;  %v3356_v42 = vld [vmem:[%s4047_s18 + $0xf0] sm:$0x1f]  }
 0x19a   : > { %v1093_v24 = vpack.c.bf16 %v1047_v57, %v1046_v3  ;;  %3243 = vmatprep.subr.bf16.mxu0 %v4769_v22  ;;  %3570 = vrcp.f32 %v884_v38  ;;  %v1048_v7 = vmul.f32 %v3559_v14, %v4172_v54 }
 0x19b   : > { %v3561_v43 = vpop.eup %3560 }
 0x19c   : > { %v1049_v32 = vmul.f32 %v3561_v43, %v4174_v28  ;;  %v887_v33 = vpop.xlane.xlu1 %886  ;;  %3228 = vmatmul.mubr.msk.bf16.vlgmr.msra.gmra.mrb[32].mxu1 %vm370_vm0, %v1093_v24  ;;  %v890_v18 = vpop.xlane.xlu0 %889 }
 0x19d   : > { %v3563_v36 = vpop.eup %3562  ;;  %3572 = vrcp.f32 %v887_v33  ;;  %3238 = vmatpush3.bf16.msra.mxu1 %v2173_v40  ;;  %3239 = vmatprep.mubr.msk.bf16.mxu1 %vm3624_vm4, %v4769_v22  ;;  %v2485_v40 = vand.u32 %v3351_v49, %v4062_v30 }
 0x19e   : > { %v1094_v52 = vpack.c.bf16 %v1049_v32, %v1048_v7  ;;  %3249 = vmatprep.subr.bf16.mxu1 %v4769_v22  ;;  %3574 = vrcp.f32 %v890_v18  ;;  %v1050_v28 = vmul.f32 %v3563_v36, %v4182_v62 }
 0x19f   : > { %v3565_v54 = vpop.eup %3564 }
 0x1a0   : > { %v1051_v19 = vmul.f32 %v3565_v54, %v4184_v44  ;;  %v893_v10 = vpop.xlane.xlu1 %892  ;;  %3234 = vmatmul.mubr.msk.bf16.vlgmr.msra.gmra.mrb[36].mxu0 %vm370_vm0, %v1094_v52  ;;  %v896_v2 = vpop.xlane.xlu0 %895 }
 0x1a1   : > { %v3567_v31 = vpop.eup %3566  ;;  %3576 = vrcp.f32 %v893_v10  ;;  %3244 = vmatpush3.bf16.msra.mxu0 %v2225_v61  ;;  %3245 = vmatprep.mubr.msk.bf16.mxu0 %vm3624_vm4, %v4769_v22  ;;  %v2537_v61 = vand.u32 %v3352_v8, %v4062_v30  ;;  %v4783_v8 = vld [vmem:[#allocation15_spill] sm:$0xff] }
 0x1a2   : > { %v1095_v58 = vpack.c.bf16 %v1051_v19, %v1050_v28  ;;  %3255 = vmatprep.subr.bf16.mxu0 %v4769_v22  ;;  %3578 = vrcp.f32 %v896_v2  ;;  %v1052_v44 = vmul.f32 %v3567_v31, %v4192_v17  ;;  %v4776_v19 = vld [vmem:[#allocation8_spill] sm:$0xff] }
 0x1a3   : > { %v3569_v62 = vpop.eup %3568 }
 0x1a4   : > { %v1053_v56 = vmul.f32 %v3569_v62, %v4194_v45  ;;  %v899_v29 = vpop.xlane.xlu1 %898  ;;  %3240 = vmatmul.mubr.msk.bf16.vlgmr.msra.gmra.mrb[36].mxu1 %vm370_vm0, %v1095_v58  ;;  %v902_v13 = vpop.xlane.xlu0 %901  ;;  %v4770_v45 = vld [vmem:[#allocation2_spill] sm:$0xff] }
 0x1a5   : > { %v3571_v34 = vpop.eup %3570  ;;  %3580 = vrcp.f32 %v899_v29  ;;  %3250 = vmatpush3.bf16.msra.mxu1 %v2277_v48  ;;  %3251 = vmatprep.mubr.msk.bf16.mxu1 %vm3624_vm4, %v4769_v22  ;;  %v3354_v58 = vld [vmem:[%s4047_s18 + $0xe0] sm:$0x1f]  }
 0x1a6   : > { %v1096_v25 = vpack.c.bf16 %v1053_v56, %v1052_v44  ;;  %3261 = vmatprep.subr.bf16.mxu1 %v4769_v22  ;;  %3582 = vrcp.f32 %v902_v13  ;;  %v1054_v41 = vmul.f32 %v3571_v34, %v4770_v45  ;;  %v4777_v56 = vld [vmem:[#allocation9_spill] sm:$0xff] }
 0x1a7   : > { %v3573_v17 = vpop.eup %3572 }
 0x1a8   : > { %v1055_v50 = vmul.f32 %v3573_v17, %v4771_v0  ;;  %v905_v63 = vpop.xlane.xlu1 %904  ;;  %3246 = vmatmul.mubr.msk.bf16.vlgmr.msra.gmra.mrb[40].mxu0 %vm370_vm0, %v1096_v25  ;;  %v908_v60 = vpop.xlane.xlu0 %907  ;;  %v2641_v25 = vand.u32 %v3354_v58, %v4062_v30  ;;  %v3355_v17 = vld [vmem:[%s4047_s18 + $0xe8] sm:$0x1f]  }
 0x1a9   : > { %v3575_v55 = vpop.eup %3574  ;;  %3584 = vrcp.f32 %v905_v63  ;;  %3256 = vmatpush3.bf16.msra.mxu0 %v2329_v46  ;;  %3257 = vmatprep.mubr.msk.bf16.mxu0 %vm3624_vm4, %v4769_v22 }
 0x1aa   : > { %v1097_v37 = vpack.c.bf16 %v1055_v50, %v1054_v41  ;;  %3267 = vmatprep.subr.bf16.mxu0 %v4769_v22  ;;  %3586 = vrcp.f32 %v908_v60  ;;  %v1056_v16 = vmul.f32 %v3575_v55, %v4772_v6 }
 0x1ab   : > { %v3577_v9 = vpop.eup %3576 }
 0x1ac   : > { %v1057_v27 = vmul.f32 %v3577_v9, %v4214_v15  ;;  %v911_v11 = vpop.xlane.xlu1 %910  ;;  %3252 = vmatmul.mubr.msk.bf16.vlgmr.msra.gmra.mrb[40].mxu1 %vm370_vm0, %v1097_v37  ;;  %v914_v53 = vpop.xlane.xlu0 %913  ;;  %v4773_v15 = vld [vmem:[#allocation5_spill] sm:$0xff] }
 0x1ad   : > { %v3579_v23 = vpop.eup %3578  ;;  %3588 = vrcp.f32 %v911_v11  ;;  %3262 = vmatpush3.bf16.msra.mxu1 %v2381_v5  ;;  %3263 = vmatprep.mubr.msk.bf16.mxu1 %vm3624_vm4, %v4769_v22  ;;  %v2693_v5 = vand.u32 %v3355_v17, %v4062_v30 }
 0x1ae   : > { %v1098_v35 = vpack.c.bf16 %v1057_v27, %v1056_v16  ;;  %3273 = vmatprep.subr.bf16.mxu1 %v4769_v22  ;;  %3590 = vrcp.f32 %v914_v53  ;;  %v1058_v3 = vmul.f32 %v3579_v23, %v4773_v15  ;;  %v4780_v16 = vld [vmem:[#allocation12_spill] sm:$0xff]  ;;  %v2745_v23 = vand.u32 %v3356_v42, %v4062_v30 }
 0x1af   : > { %v3581_v21 = vpop.eup %3580 }
 0x1b0   : > { %v1059_v57 = vmul.f32 %v3581_v21, %v4224_v1  ;;  %v917_v51 = vpop.xlane.xlu1 %916  ;;  %3258 = vmatmul.mubr.msk.bf16.vlgmr.msra.gmra.mrb[44].mxu0 %vm370_vm0, %v1098_v35  ;;  %v920_v38 = vpop.xlane.xlu0 %919  ;;  %v4774_v1 = vld [vmem:[#allocation6_spill] sm:$0xff]  ;;  %v4781_v21 = vld [vmem:[#allocation13_spill] sm:$0xff] }
 0x1b1   : > { %v3583_v14 = vpop.eup %3582  ;;  %3592 = vrcp.f32 %v917_v51  ;;  %3268 = vmatpush3.bf16.msra.mxu0 %v2433_v26  ;;  %3269 = vmatprep.mubr.msk.bf16.mxu0 %vm3624_vm4, %v4769_v22  ;;  %v3357_v26 = vld [vmem:[%s4047_s18 + $0xf8] sm:$0x1f]  }
 0x1b2   : > { %v1099_v24 = vpack.c.bf16 %v1059_v57, %v1058_v3  ;;  %3279 = vmatprep.subr.bf16.mxu0 %v4769_v22  ;;  %3594 = vrcp.f32 %v920_v38  ;;  %v1060_v7 = vmul.f32 %v3583_v14, %v4774_v1  ;;  %v4782_v3 = vld [vmem:[#allocation14_spill] sm:$0xff]  ;;  %v2797_v38 = vand.u32 %v3357_v26, %v4062_v30  ;;  %v4785_v30 = vld [vmem:[#allocation17_spill] sm:$0xff] }
 0x1b3   : > { %v3585_v43 = vpop.eup %3584 }
 0x1b4   : > { %v1061_v32 = vmul.f32 %v3585_v43, %v4234_v4  ;;  %v923_v33 = vpop.xlane.xlu1 %922  ;;  %3264 = vmatmul.mubr.msk.bf16.vlgmr.msra.gmra.mrb[44].mxu1 %vm370_vm0, %v1099_v24  ;;  %v926_v18 = vpop.xlane.xlu0 %925  ;;  %v4775_v4 = vld [vmem:[#allocation7_spill] sm:$0xff]  ;;  %v4784_v43 = vld [vmem:[#allocation16_spill] sm:$0xff] }
 0x1b5   : > { %v3587_v36 = vpop.eup %3586  ;;  %3596 = vrcp.f32 %v923_v33  ;;  %3274 = vmatpush3.bf16.msra.mxu1 %v2485_v40  ;;  %3275 = vmatprep.mubr.msk.bf16.mxu1 %vm3624_vm4, %v4769_v22 }
 0x1b6   : > { %v1100_v52 = vpack.c.bf16 %v1061_v32, %v1060_v7  ;;  %3285 = vmatprep.subr.bf16.mxu1 %v4769_v22  ;;  %3598 = vrcp.f32 %v926_v18  ;;  %v1062_v28 = vmul.f32 %v3587_v36, %v4775_v4  ;;  %v4786_v36 = vld [vmem:[#allocation18_spill] sm:$0xff] }
 0x1b7   : > { %v3589_v54 = vpop.eup %3588 }
 0x1b8   : > { %v1063_v10 = vmul.f32 %v3589_v54, %v4776_v19  ;;  %v929_v2 = vpop.xlane.xlu1 %928  ;;  %3270 = vmatmul.mubr.msk.bf16.vlgmr.msra.gmra.mrb[48].mxu0 %vm370_vm0, %v1100_v52  ;;  %v932_v31 = vpop.xlane.xlu0 %931 }
 0x1b9   : > { %v3591_v48 = vpop.eup %3590  ;;  %3600 = vrcp.f32 %v929_v2  ;;  %3280 = vmatpush3.bf16.msra.mxu0 %v2537_v61  ;;  %3281 = vmatprep.mubr.msk.bf16.mxu0 %vm3624_vm4, %v4769_v22 }
 0x1ba   : > { %v1101_v62 = vpack.c.bf16 %v1063_v10, %v1062_v28  ;;  %3291 = vmatprep.subr.bf16.mxu0 %v4769_v22  ;;  %3602 = vrcp.f32 %v932_v31  ;;  %v1064_v29 = vmul.f32 %v3591_v48, %v4777_v56 }
 0x1bb   : > { %v3593_v44 = vpop.eup %3592 }
 0x1bc   : > { %v1065_v13 = vmul.f32 %v3593_v44, %v4254_v59  ;;  %v935_v34 = vpop.xlane.xlu1 %934  ;;  %3276 = vmatmul.mubr.msk.bf16.vlgmr.msra.gmra.mrb[48].mxu1 %vm370_vm0, %v1101_v62  ;;  %v938_v46 = vpop.xlane.xlu0 %937  ;;  %v4778_v59 = vld [vmem:[#allocation10_spill] sm:$0xff] }
 0x1bd   : > { %v3595_v47 = vpop.eup %3594  ;;  %3604 = vrcp.f32 %v935_v34  ;;  %3286 = vmatpush3.bf16.msra.mxu1 %v2589_v12  ;;  %3287 = vmatprep.mubr.msk.bf16.mxu1 %vm3624_vm4, %v4769_v22 }
 0x1be   : > { %v1102_v45 = vpack.c.bf16 %v1065_v13, %v1064_v29  ;;  %3297 = vmatprep.subr.bf16.mxu1 %v4769_v22  ;;  %3606 = vrcp.f32 %v938_v46  ;;  %v1066_v0 = vmul.f32 %v3595_v47, %v4778_v59 }
 0x1bf   : > { %v3597_v41 = vpop.eup %3596 }
 0x1c0   : > { %v1067_v50 = vmul.f32 %v3597_v41, %v4264_v20  ;;  %v941_v63 = vpop.xlane.xlu1 %940  ;;  %3282 = vmatmul.mubr.msk.bf16.vlgmr.msra.gmra.mrb[52].mxu0 %vm370_vm0, %v1102_v45  ;;  %v944_v60 = vpop.xlane.xlu0 %943  ;;  %v4779_v20 = vld [vmem:[#allocation11_spill] sm:$0xff] }
 0x1c1   : > { %v3599_v55 = vpop.eup %3598  ;;  %3608 = vrcp.f32 %v941_v63  ;;  %3292 = vmatpush3.bf16.msra.mxu0 %v2641_v25  ;;  %3293 = vmatprep.mubr.msk.bf16.mxu0 %vm3624_vm4, %v4769_v22 }
 0x1c2   : > { %v1103_v37 = vpack.c.bf16 %v1067_v50, %v1066_v0  ;;  %3303 = vmatprep.subr.bf16.mxu0 %v4769_v22  ;;  %3610 = vrcp.f32 %v944_v60  ;;  %v1068_v6 = vmul.f32 %v3599_v55, %v4779_v20 }
 0x1c3   : > { %v3601_v9 = vpop.eup %3600 }
 0x1c4   : > { %v1069_v27 = vmul.f32 %v3601_v9, %v4780_v16  ;;  %v947_v11 = vpop.xlane.xlu1 %946  ;;  %3288 = vmatmul.mubr.msk.bf16.vlgmr.msra.gmra.mrb[52].mxu1 %vm370_vm0, %v1103_v37  ;;  %v3603_v53 = vpop.eup %3602 }
 0x1c5   : > { %3612 = vrcp.f32 %v947_v11  ;;  %3298 = vmatpush3.bf16.msra.mxu1 %v2693_v5  ;;  %3299 = vmatprep.mubr.msk.bf16.mxu1 %vm3624_vm4, %v4769_v22  ;;  %v1070_v15 = vmul.f32 %v3603_v53, %v4781_v21 }
 0x1c6   : > { %v1104_v49 = vpack.c.bf16 %v1069_v27, %v1068_v6  ;;  %3309 = vmatprep.subr.bf16.mxu1 %v4769_v22 }
 0x1c7   : > { %v3605_v35 = vpop.eup %3604 }
 0x1c8   : > { %v1071_v57 = vmul.f32 %v3605_v35, %v4782_v3  ;;  %3294 = vmatmul.mubr.msk.bf16.vlgmr.msra.gmra.mrb[56].mxu0 %vm370_vm0, %v1104_v49  ;;  %v3607_v51 = vpop.eup %3606 }
 0x1c9   : > { %3304 = vmatpush3.bf16.msra.mxu0 %v2745_v23  ;;  %3305 = vmatprep.mubr.msk.bf16.mxu0 %vm3624_vm4, %v4769_v22  ;;  %v1072_v24 = vmul.f32 %v3607_v51, %v4783_v8 }
 0x1ca   : > { %v1105_v14 = vpack.c.bf16 %v1071_v57, %v1070_v15 }
 0x1cb   : > { %v3609_v40 = vpop.eup %3608 }
 0x1cc   : > { %v1073_v1 = vmul.f32 %v3609_v40, %v4784_v43  ;;  %3300 = vmatmul.mubr.msk.bf16.vlgmr.msra.gmra.mrb[56].mxu1 %vm370_vm0, %v1105_v14  ;;  %v3611_v7 = vpop.eup %3610 }
 0x1cd   : > { %3310 = vmatpush3.bf16.msra.mxu1 %v2797_v38  ;;  %3311 = vmatprep.mubr.msk.bf16.mxu1 %vm3624_vm4, %v4769_v22  ;;  %v1074_v18 = vmul.f32 %v3611_v7, %v4785_v30 }
 0x1ce   : > { %v1106_v32 = vpack.c.bf16 %v1073_v1, %v1072_v24 }
 0x1cf   : > { %v3613_v33 = vpop.eup %3612 }
 0x1d0   : > { %v1075_v61 = vmul.f32 %v3613_v33, %v4786_v36  ;;  %3306 = vmatmul.mubr.msk.bf16.vlgmr.msra.gmra.mrb[60].mxu0 %vm370_vm0, %v1106_v32 }
 0x1d2   : > { %v1107_v39 = vpack.c.bf16 %v1075_v61, %v1074_v18 }
 0x1d4   : > { %3312 = vmatmul.mubr.msk.bf16.vlgmr.msra.gmra.mrb[60].mxu1 %vm370_vm0, %v1107_v39 }
 0x22b   : > { %v1221_v22 = vpop.f32.mrb[0].mxu0 }
 0x22c   : > { %2841 = vst.msk [vmem:[%s4552_s22] sm:$0xff] %vm2840_vm5, %v1221_v22  ;;  %v3127_v52 = vpop.f32.mrb[1].mxu0 }
 0x22d   : > { %v1224_v54 = vpop.f32.mrb[2].mxu0 }
 0x22e   : > { %2843 = vst.msk [vmem:[%s4552_s22 + $0x8] sm:$0x1] %vm2842_vm6, %v1224_v54  ;;  %v3128_v4 = vpop.f32.mrb[3].mxu0 }
 0x22f   : > { %v1273_v28 = vpop.f32.mrb[0].mxu1 }
 0x230   : > { %2844 = vst.msk [vmem:[%s4552_s22 + $0x10] sm:$0xff] %vm2840_vm5, %v1273_v28  ;;  %v3133_v19 = vpop.f32.mrb[1].mxu1 }
 0x231   : > { %v1276_v10 = vpop.f32.mrb[2].mxu1 }
 0x232   : > { %2845 = vst.msk [vmem:[%s4552_s22 + $0x18] sm:$0x1] %vm2842_vm6, %v1276_v10  ;;  %v3134_v2 = vpop.f32.mrb[3].mxu1 }
 0x233   : > { %v1325_v31 = vpop.f32.mrb[4].mxu0 }
 0x234   : > { %2846 = vst.msk [vmem:[%s4552_s22 + $0x20] sm:$0xff] %vm2840_vm5, %v1325_v31  ;;  %v3139_v48 = vpop.f32.mrb[5].mxu0 }
 0x235   : > { %v1328_v12 = vpop.f32.mrb[6].mxu0 }
 0x236   : > { %2847 = vst.msk [vmem:[%s4552_s22 + $0x28] sm:$0x1] %vm2842_vm6, %v1328_v12  ;;  %v3140_v58 = vpop.f32.mrb[7].mxu0 }
 0x237   : > { %v1377_v62 = vpop.f32.mrb[4].mxu1 }
 0x238   : > { %2848 = vst.msk [vmem:[%s4552_s22 + $0x30] sm:$0xff] %vm2840_vm5, %v1377_v62  ;;  %v3145_v44 = vpop.f32.mrb[5].mxu1 }
 0x239   : > { %v1380_v56 = vpop.f32.mrb[6].mxu1 }
 0x23a   : > { %2849 = vst.msk [vmem:[%s4552_s22 + $0x38] sm:$0x1] %vm2842_vm6, %v1380_v56  ;;  %v3146_v29 = vpop.f32.mrb[7].mxu1 }
 0x23b   : > { %v1429_v13 = vpop.f32.mrb[8].mxu0 }
 0x23c   : > { %2850 = vst.msk [vmem:[%s4552_s22 + $0x40] sm:$0xff] %vm2840_vm5, %v1429_v13  ;;  %v3151_v34 = vpop.f32.mrb[9].mxu0 }
 0x23d   : > { %v1432_v46 = vpop.f32.mrb[10].mxu0 }
 0x23e   : > { %2851 = vst.msk [vmem:[%s4552_s22 + $0x48] sm:$0x1] %vm2842_vm6, %v1432_v46  ;;  %v3152_v47 = vpop.f32.mrb[11].mxu0 }
 0x23f   : > { %v1481_v25 = vpop.f32.mrb[8].mxu1 }
 0x240   : > { %2852 = vst.msk [vmem:[%s4552_s22 + $0x50] sm:$0xff] %vm2840_vm5, %v1481_v25  ;;  %v3157_v17 = vpop.f32.mrb[9].mxu1 }
 0x241   : > { %v1484_v45 = vpop.f32.mrb[10].mxu1 }
 0x242   : > { %2853 = vst.msk [vmem:[%s4552_s22 + $0x58] sm:$0x1] %vm2842_vm6, %v1484_v45  ;;  %v3158_v41 = vpop.f32.mrb[11].mxu1 }
 0x243   : > { %v1533_v59 = vpop.f32.mrb[12].mxu0 }
 0x244   : > { %2854 = vst.msk [vmem:[%s4552_s22 + $0x60] sm:$0xff] %vm2840_vm5, %v1533_v59  ;;  %v3163_v0 = vpop.f32.mrb[13].mxu0 }
 0x245   : > { %v1536_v50 = vpop.f32.mrb[14].mxu0 }
 0x246   : > { %2855 = vst.msk [vmem:[%s4552_s22 + $0x68] sm:$0x1] %vm2842_vm6, %v1536_v50  ;;  %v3164_v63 = vpop.f32.mrb[15].mxu0 }
 0x247   : > { %v1585_v60 = vpop.f32.mrb[12].mxu1 }
 0x248   : > { %2856 = vst.msk [vmem:[%s4552_s22 + $0x70] sm:$0xff] %vm2840_vm5, %v1585_v60  ;;  %v3169_v55 = vpop.f32.mrb[13].mxu1 }
 0x249   : > { %v1588_v5 = vpop.f32.mrb[14].mxu1 }
 0x24a   : > { %2857 = vst.msk [vmem:[%s4552_s22 + $0x78] sm:$0x1] %vm2842_vm6, %v1588_v5  ;;  %v3170_v42 = vpop.f32.mrb[15].mxu1 }
 0x24b   : > { %v1637_v37 = vpop.f32.mrb[16].mxu0 }
 0x24c   : > { %2858 = vst.msk [vmem:[%s4552_s22 + $0x80] sm:$0xff] %vm2840_vm5, %v1637_v37  ;;  %v3175_v9 = vpop.f32.mrb[17].mxu0 }
 0x24d   : > { %v1640_v20 = vpop.f32.mrb[18].mxu0 }
 0x24e   : > { %2859 = vst.msk [vmem:[%s4552_s22 + $0x88] sm:$0x1] %vm2842_vm6, %v1640_v20  ;;  %v3176_v6 = vpop.f32.mrb[19].mxu0 }
 0x24f   : > { %v1689_v16 = vpop.f32.mrb[16].mxu1 }
 0x250   : > { %2860 = vst.msk [vmem:[%s4552_s22 + $0x90] sm:$0xff] %vm2840_vm5, %v1689_v16  ;;  %v3181_v27 = vpop.f32.mrb[17].mxu1 }
 0x251   : > { %v1692_v11 = vpop.f32.mrb[18].mxu1 }
 0x252   : > { %2861 = vst.msk [vmem:[%s4552_s22 + $0x98] sm:$0x1] %vm2842_vm6, %v1692_v11  ;;  %v3182_v53 = vpop.f32.mrb[19].mxu1 }
 0x253   : > { %v1741_v23 = vpop.f32.mrb[20].mxu0 }
 0x254   : > { %2862 = vst.msk [vmem:[%s4552_s22 + $0xa0] sm:$0xff] %vm2840_vm5, %v1741_v23  ;;  %v3187_v26 = vpop.f32.mrb[21].mxu0 }
 0x255   : > { %v1744_v49 = vpop.f32.mrb[22].mxu0 }
 0x256   : > { %2863 = vst.msk [vmem:[%s4552_s22 + $0xa8] sm:$0x1] %vm2842_vm6, %v1744_v49  ;;  %v3188_v35 = vpop.f32.mrb[23].mxu0 }
 0x257   : > { %v1793_v21 = vpop.f32.mrb[20].mxu1 }
 0x258   : > { %2864 = vst.msk [vmem:[%s4552_s22 + $0xb0] sm:$0xff] %vm2840_vm5, %v1793_v21  ;;  %v3193_v15 = vpop.f32.mrb[21].mxu1 }
 0x259   : > { %v1796_v3 = vpop.f32.mrb[22].mxu1 }
 0x25a   : > { %2865 = vst.msk [vmem:[%s4552_s22 + $0xb8] sm:$0x1] %vm2842_vm6, %v1796_v3  ;;  %v3194_v57 = vpop.f32.mrb[23].mxu1 }
 0x25b   : > { %v1845_v51 = vpop.f32.mrb[24].mxu0 }
 0x25c   : > { %2866 = vst.msk [vmem:[%s4552_s22 + $0xc0] sm:$0xff] %vm2840_vm5, %v1845_v51  ;;  %v3199_v38 = vpop.f32.mrb[25].mxu0 }
 0x25d   : > { %v1848_v14 = vpop.f32.mrb[26].mxu0 }
 0x25e   : > { %2867 = vst.msk [vmem:[%s4552_s22 + $0xc8] sm:$0x1] %vm2842_vm6, %v1848_v14  ;;  %v3200_v40 = vpop.f32.mrb[27].mxu0 }
 0x25f   : > { %v1897_v8 = vpop.f32.mrb[24].mxu1 }
 0x260   : > { %2868 = vst.msk [vmem:[%s4552_s22 + $0xd0] sm:$0xff] %vm2840_vm5, %v1897_v8  ;;  %v3205_v24 = vpop.f32.mrb[25].mxu1 }
 0x261   : > { %v1900_v43 = vpop.f32.mrb[26].mxu1 }
 0x262   : > { %2869 = vst.msk [vmem:[%s4552_s22 + $0xd8] sm:$0x1] %vm2842_vm6, %v1900_v43  ;;  %v3206_v1 = vpop.f32.mrb[27].mxu1 }
 0x263   : > { %v1949_v7 = vpop.f32.mrb[28].mxu0 }
 0x264   : > { %2870 = vst.msk [vmem:[%s4552_s22 + $0xe0] sm:$0xff] %vm2840_vm5, %v1949_v7  ;;  %v3211_v32 = vpop.f32.mrb[29].mxu0 }
 0x265   : > { %v1952_v33 = vpop.f32.mrb[30].mxu0 }
 0x266   : > { %2871 = vst.msk [vmem:[%s4552_s22 + $0xe8] sm:$0x1] %vm2842_vm6, %v1952_v33  ;;  %v3212_v30 = vpop.f32.mrb[31].mxu0 }
 0x267   : > { %v2001_v18 = vpop.f32.mrb[28].mxu1 }
 0x268   : > { %2872 = vst.msk [vmem:[%s4552_s22 + $0xf0] sm:$0xff] %vm2840_vm5, %v2001_v18  ;;  %v3217_v36 = vpop.f32.mrb[29].mxu1 }
 0x269   : > { %v2004_v61 = vpop.f32.mrb[30].mxu1 }
 0x26a   : > { %2873 = vst.msk [vmem:[%s4552_s22 + $0xf8] sm:$0x1] %vm2842_vm6, %v2004_v61  ;;  %v3218_v39 = vpop.f32.mrb[31].mxu1 }
 0x26b   : > { %v2053_v22 = vpop.f32.mrb[32].mxu0 }
 0x26c   : > { %2874 = vst.msk [vmem:[%s4552_s22 + $0x100] sm:$0xff] %vm2840_vm5, %v2053_v22  ;;  %v3223_v52 = vpop.f32.mrb[33].mxu0 }
 0x26d   : > { %v2056_v54 = vpop.f32.mrb[34].mxu0 }
 0x26e   : > { %2875 = vst.msk [vmem:[%s4552_s22 + $0x108] sm:$0x1] %vm2842_vm6, %v2056_v54  ;;  %v3224_v4 = vpop.f32.mrb[35].mxu0 }
 0x26f   : > { %v2105_v28 = vpop.f32.mrb[32].mxu1 }
 0x270   : > { %2876 = vst.msk [vmem:[%s4552_s22 + $0x110] sm:$0xff] %vm2840_vm5, %v2105_v28  ;;  %v3229_v19 = vpop.f32.mrb[33].mxu1 }
 0x271   : > { %v2108_v10 = vpop.f32.mrb[34].mxu1 }
 0x272   : > { %2877 = vst.msk [vmem:[%s4552_s22 + $0x118] sm:$0x1] %vm2842_vm6, %v2108_v10  ;;  %v3230_v2 = vpop.f32.mrb[35].mxu1 }
 0x273   : > { %v2157_v31 = vpop.f32.mrb[36].mxu0 }
 0x274   : > { %2878 = vst.msk [vmem:[%s4552_s22 + $0x120] sm:$0xff] %vm2840_vm5, %v2157_v31  ;;  %v3235_v48 = vpop.f32.mrb[37].mxu0 }
 0x275   : > { %v2160_v12 = vpop.f32.mrb[38].mxu0 }
 0x276   : > { %2879 = vst.msk [vmem:[%s4552_s22 + $0x128] sm:$0x1] %vm2842_vm6, %v2160_v12  ;;  %v3236_v58 = vpop.f32.mrb[39].mxu0 }
 0x277   : > { %v2209_v62 = vpop.f32.mrb[36].mxu1 }
 0x278   : > { %2880 = vst.msk [vmem:[%s4552_s22 + $0x130] sm:$0xff] %vm2840_vm5, %v2209_v62  ;;  %v3241_v44 = vpop.f32.mrb[37].mxu1 }
 0x279   : > { %v2212_v56 = vpop.f32.mrb[38].mxu1 }
 0x27a   : > { %2881 = vst.msk [vmem:[%s4552_s22 + $0x138] sm:$0x1] %vm2842_vm6, %v2212_v56  ;;  %v3242_v29 = vpop.f32.mrb[39].mxu1 }
 0x27b   : > { %v2261_v13 = vpop.f32.mrb[40].mxu0 }
 0x27c   : > { %2882 = vst.msk [vmem:[%s4552_s22 + $0x140] sm:$0xff] %vm2840_vm5, %v2261_v13  ;;  %v3247_v34 = vpop.f32.mrb[41].mxu0 }
 0x27d   : > { %v2264_v46 = vpop.f32.mrb[42].mxu0 }
 0x27e   : > { %2883 = vst.msk [vmem:[%s4552_s22 + $0x148] sm:$0x1] %vm2842_vm6, %v2264_v46  ;;  %v3248_v47 = vpop.f32.mrb[43].mxu0 }
 0x27f   : > { %v2313_v25 = vpop.f32.mrb[40].mxu1 }
 0x280   : > { %2884 = vst.msk [vmem:[%s4552_s22 + $0x150] sm:$0xff] %vm2840_vm5, %v2313_v25  ;;  %v3253_v17 = vpop.f32.mrb[41].mxu1 }
 0x281   : > { %v2316_v45 = vpop.f32.mrb[42].mxu1 }
 0x282   : > { %2885 = vst.msk [vmem:[%s4552_s22 + $0x158] sm:$0x1] %vm2842_vm6, %v2316_v45  ;;  %v3254_v41 = vpop.f32.mrb[43].mxu1 }
 0x283   : > { %v2365_v59 = vpop.f32.mrb[44].mxu0 }
 0x284   : > { %2886 = vst.msk [vmem:[%s4552_s22 + $0x160] sm:$0xff] %vm2840_vm5, %v2365_v59  ;;  %v3259_v0 = vpop.f32.mrb[45].mxu0 }
 0x285   : > { %v2368_v50 = vpop.f32.mrb[46].mxu0 }
 0x286   : > { %2887 = vst.msk [vmem:[%s4552_s22 + $0x168] sm:$0x1] %vm2842_vm6, %v2368_v50  ;;  %v3260_v63 = vpop.f32.mrb[47].mxu0 }
 0x287   : > { %v2417_v60 = vpop.f32.mrb[44].mxu1 }
 0x288   : > { %2888 = vst.msk [vmem:[%s4552_s22 + $0x170] sm:$0xff] %vm2840_vm5, %v2417_v60  ;;  %v3265_v55 = vpop.f32.mrb[45].mxu1 }
 0x289   : > { %v2420_v5 = vpop.f32.mrb[46].mxu1 }
 0x28a   : > { %2889 = vst.msk [vmem:[%s4552_s22 + $0x178] sm:$0x1] %vm2842_vm6, %v2420_v5  ;;  %v3266_v42 = vpop.f32.mrb[47].mxu1 }
 0x28b   : > { %v2469_v37 = vpop.f32.mrb[48].mxu0 }
 0x28c   : > { %2890 = vst.msk [vmem:[%s4552_s22 + $0x180] sm:$0xff] %vm2840_vm5, %v2469_v37  ;;  %v3271_v9 = vpop.f32.mrb[49].mxu0 }
 0x28d   : > { %v2472_v20 = vpop.f32.mrb[50].mxu0 }
 0x28e   : > { %2891 = vst.msk [vmem:[%s4552_s22 + $0x188] sm:$0x1] %vm2842_vm6, %v2472_v20  ;;  %v3272_v6 = vpop.f32.mrb[51].mxu0 }
 0x28f   : > { %v2521_v16 = vpop.f32.mrb[48].mxu1 }
 0x290   : > { %2892 = vst.msk [vmem:[%s4552_s22 + $0x190] sm:$0xff] %vm2840_vm5, %v2521_v16  ;;  %v3277_v27 = vpop.f32.mrb[49].mxu1 }
 0x291   : > { %v2524_v11 = vpop.f32.mrb[50].mxu1 }
 0x292   : > { %2893 = vst.msk [vmem:[%s4552_s22 + $0x198] sm:$0x1] %vm2842_vm6, %v2524_v11  ;;  %v3278_v53 = vpop.f32.mrb[51].mxu1 }
 0x293   : > { %v2573_v23 = vpop.f32.mrb[52].mxu0 }
 0x294   : > { %2894 = vst.msk [vmem:[%s4552_s22 + $0x1a0] sm:$0xff] %vm2840_vm5, %v2573_v23  ;;  %v3283_v26 = vpop.f32.mrb[53].mxu0 }
 0x295   : > { %v2576_v49 = vpop.f32.mrb[54].mxu0 }
 0x296   : > { %2895 = vst.msk [vmem:[%s4552_s22 + $0x1a8] sm:$0x1] %vm2842_vm6, %v2576_v49  ;;  %v3284_v35 = vpop.f32.mrb[55].mxu0 }
 0x297   : > { %v2625_v21 = vpop.f32.mrb[52].mxu1 }
 0x298   : > { %2896 = vst.msk [vmem:[%s4552_s22 + $0x1b0] sm:$0xff] %vm2840_vm5, %v2625_v21  ;;  %v3289_v15 = vpop.f32.mrb[53].mxu1 }
 0x299   : > { %v2628_v3 = vpop.f32.mrb[54].mxu1 }
 0x29a   : > { %2897 = vst.msk [vmem:[%s4552_s22 + $0x1b8] sm:$0x1] %vm2842_vm6, %v2628_v3  ;;  %v3290_v57 = vpop.f32.mrb[55].mxu1 }
 0x29b   : > { %v2677_v51 = vpop.f32.mrb[56].mxu0 }
 0x29c   : > { %2898 = vst.msk [vmem:[%s4552_s22 + $0x1c0] sm:$0xff] %vm2840_vm5, %v2677_v51  ;;  %v3295_v38 = vpop.f32.mrb[57].mxu0 }
 0x29d   : > { %v2680_v14 = vpop.f32.mrb[58].mxu0 }
 0x29e   : > { %2899 = vst.msk [vmem:[%s4552_s22 + $0x1c8] sm:$0x1] %vm2842_vm6, %v2680_v14  ;;  %v3296_v40 = vpop.f32.mrb[59].mxu0 }
 0x29f   : > { %v2729_v8 = vpop.f32.mrb[56].mxu1 }
 0x2a0   : > { %2900 = vst.msk [vmem:[%s4552_s22 + $0x1d0] sm:$0xff] %vm2840_vm5, %v2729_v8  ;;  %v3301_v24 = vpop.f32.mrb[57].mxu1 }
 0x2a1   : > { %v2732_v43 = vpop.f32.mrb[58].mxu1 }
 0x2a2   : > { %2901 = vst.msk [vmem:[%s4552_s22 + $0x1d8] sm:$0x1] %vm2842_vm6, %v2732_v43  ;;  %v3302_v1 = vpop.f32.mrb[59].mxu1 }
 0x2a3   : > { %v2781_v7 = vpop.f32.mrb[60].mxu0 }
 0x2a4   : > { %2902 = vst.msk [vmem:[%s4552_s22 + $0x1e0] sm:$0xff] %vm2840_vm5, %v2781_v7  ;;  %v3307_v32 = vpop.f32.mrb[61].mxu0 }
 0x2a5   : > { %v2784_v33 = vpop.f32.mrb[62].mxu0 }
 0x2a6   : > { %2903 = vst.msk [vmem:[%s4552_s22 + $0x1e8] sm:$0x1] %vm2842_vm6, %v2784_v33  ;;  %v3308_v30 = vpop.f32.mrb[63].mxu0 }
 0x2a7   : > { %v2833_v18 = vpop.f32.mrb[60].mxu1 }
 0x2a8   : > { %2904 = vst.msk [vmem:[%s4552_s22 + $0x1f0] sm:$0xff] %vm2840_vm5, %v2833_v18  ;;  %v3313_v36 = vpop.f32.mrb[61].mxu1 }
 0x2a9   : > { %v2836_v61 = vpop.f32.mrb[62].mxu1 }
 0x2aa   : > { %2905 = vst.msk [vmem:[%s4552_s22 + $0x1f8] sm:$0x1] %vm2842_vm6, %v2836_v61  ;;  %v3314_v39 = vpop.f32.mrb[63].mxu1 }
 0x2ab PF: > { %s12_s9 = sadd.s32 1, %s3620_s9  }
 0x2ac   : > { %p9_p4 = scmp.ge.s32.totalorder %s12_s9, 4  }
 0x2ae   :  { %11 = sbr.rel (!%p9_p4) target bundleno = 1 (0x1), region = 61 }

// kernel: volo_forward.54
= control target key start
LH: loop header
LB: loop body
LE: loop exit
PB: predicated region body
PF: predicated region fallthrough
CT: control target
= control target key end

     0   :  { %s589_s1 = inlined_call_operand.vmem [shape: bf16[128,128], index: 1, kind: input, shape index: {}]   ;;  %s590_s0 = inlined_call_operand.vmem [shape: bf16[128,128], index: 0, kind: input, shape index: {}]   ;;  %s591_s2 = inlined_call_operand.vmem [shape: f32[1,128], index: 2, kind: input, shape index: {}]   ;;  %s592_s3 = inlined_call_operand.vmem [shape: f32[128,128], index: 3, kind: input, shape index: {}]   ;;  %s593_s4 = inlined_call_operand.vmem [shape: f32[128,128], index: 4, kind: output, shape index: {}]  }
   0x1   :  { %v383_v0 = vld [vmem:[%s589_s1] sm:$0xff]   ;;  %v384_v1 = vld [vmem:[%s589_s1 + $0x8] sm:$0xff]   ;;  %v385_v2 = vld [vmem:[%s589_s1 + $0x10] sm:$0xff]  }
   0x2   :  { %335 = vmatprep.subr.bf16.mxu0 %v383_v0  ;;  %367 = vmatprep.subr.bf16.mxu1 %v383_v0  ;;  %v386_v3 = vld [vmem:[%s589_s1 + $0x18] sm:$0xff]   ;;  %v391_v4 = vld [vmem:[%s590_s0] sm:$0xff]   ;;  %v388_v7 = vld [vmem:[%s589_s1 + $0x28] sm:$0xff]  }
   0x3   :  { %336 = vmatpush3.bf16.msra.mxu0 %v383_v0  ;;  %375 = vmatpush3.bf16.msra.mxu1 %v383_v0  ;;  %v392_v5 = vld [vmem:[%s590_s0 + $0x20] sm:$0xff]   ;;  %v389_v8 = vld [vmem:[%s589_s1 + $0x30] sm:$0xff]   ;;  %v390_v9 = vld [vmem:[%s589_s1 + $0x38] sm:$0xff]  }
   0x4   :  { %337 = vmatprep.subr.bf16.mxu0 %v384_v1  ;;  %368 = vmatprep.subr.bf16.mxu1 %v384_v1  ;;  %v387_v6 = vld [vmem:[%s589_s1 + $0x20] sm:$0xff]   ;;  %v393_v10 = vld [vmem:[%s590_s0 + $0x8] sm:$0xff]   ;;  %v395_v12 = vld [vmem:[%s590_s0 + $0x10] sm:$0xff]  }
   0x5   :  { %351 = vmatprep.mubr.bf16.mxu0 %v391_v4  ;;  %359 = vmatprep.mubr.bf16.mxu1 %v392_v5  ;;  %v394_v11 = vld [vmem:[%s590_s0 + $0x28] sm:$0xff]   ;;  %v396_v13 = vld [vmem:[%s590_s0 + $0x30] sm:$0xff]   ;;  %v397_v14 = vld [vmem:[%s590_s0 + $0x18] sm:$0xff]  }
   0x6   :  { %v398_v15 = vld [vmem:[%s590_s0 + $0x38] sm:$0xff]   ;;  %v475_v16 = vld [vmem:[%s591_s2] ss:$0 sm:$0xff]  ;;  %v252_v18 = vld [vmem:[%s592_s3 + $0x10] sm:$0xff] }
   0x7   :  { %338 = vmatpush3.bf16.msra.mxu0 %v384_v1  ;;  %376 = vmatpush3.bf16.msra.mxu1 %v384_v1  ;;  %v260_v20 = vld [vmem:[%s592_s3 + $0x50] sm:$0xff]  ;;  %v250_v24 = vld [vmem:[%s592_s3] sm:$0xff]  ;;  %v253_v30 = vld [vmem:[%s592_s3 + $0x18] sm:$0xff] }
   0x8   :  { %339 = vmatprep.subr.bf16.mxu0 %v385_v2  ;;  %369 = vmatprep.subr.bf16.mxu1 %v385_v2  ;;  %v258_v26 = vld [vmem:[%s592_s3 + $0x40] sm:$0xff]  ;;  %v261_v32 = vld [vmem:[%s592_s3 + $0x58] sm:$0xff]  ;;  %v251_v38 = vld [vmem:[%s592_s3 + $0x8] sm:$0xff] }
   0x9   :  { %v259_v40 = vld [vmem:[%s592_s3 + $0x48] sm:$0xff]  ;;  %v256_v50 = vld [vmem:[%s592_s3 + $0x30] sm:$0xff]  ;;  %v254_v56 = vld [vmem:[%s592_s3 + $0x20] sm:$0xff] }
   0xa   :  { %v264_v52 = vld [vmem:[%s592_s3 + $0x70] sm:$0xff]  ;;  %v262_v58 = vld [vmem:[%s592_s3 + $0x60] sm:$0xff]  ;;  %v257_v62 = vld [vmem:[%s592_s3 + $0x38] sm:$0xff] }
   0xb   :  { %340 = vmatpush3.bf16.msra.mxu0 %v385_v2  ;;  %377 = vmatpush3.bf16.msra.mxu1 %v385_v2  ;;  %v265_v0 = vld [vmem:[%s592_s3 + $0x78] sm:$0xff] }
   0xc   :  { %341 = vmatprep.subr.bf16.mxu0 %v386_v3  ;;  %370 = vmatprep.subr.bf16.mxu1 %v386_v3 }
   0xf   :  { %342 = vmatpush3.bf16.msra.mxu0 %v386_v3  ;;  %378 = vmatpush3.bf16.msra.mxu1 %v386_v3 }
  0x10   :  { %343 = vmatprep.subr.bf16.mxu0 %v387_v6  ;;  %371 = vmatprep.subr.bf16.mxu1 %v387_v6 }
  0x13   :  { %344 = vmatpush3.bf16.msra.mxu0 %v387_v6  ;;  %379 = vmatpush3.bf16.msra.mxu1 %v387_v6  ;;  %v255_v6 = vld [vmem:[%s592_s3 + $0x28] sm:$0xff] }
  0x14   :  { %345 = vmatprep.subr.bf16.mxu0 %v388_v7  ;;  %372 = vmatprep.subr.bf16.mxu1 %v388_v7 }
  0x17   :  { %346 = vmatpush3.bf16.msra.mxu0 %v388_v7  ;;  %380 = vmatpush3.bf16.msra.mxu1 %v388_v7 }
  0x18   :  { %347 = vmatprep.subr.bf16.mxu0 %v389_v8  ;;  %373 = vmatprep.subr.bf16.mxu1 %v389_v8 }
  0x1b   :  { %348 = vmatpush3.bf16.msra.mxu0 %v389_v8  ;;  %381 = vmatpush3.bf16.msra.mxu1 %v389_v8  ;;  %v263_v8 = vld [vmem:[%s592_s3 + $0x68] sm:$0xff] }
  0x1c   :  { %349 = vmatprep.subr.bf16.mxu0 %v390_v9  ;;  %374 = vmatprep.subr.bf16.mxu1 %v390_v9 }
  0x1f   :  { %350 = vmatpush3.bf16.msra.mxu0 %v390_v9  ;;  %382 = vmatpush3.bf16.msra.mxu1 %v390_v9 }
  0x22   :  { %352 = vmatmul.mubr.bf16.vlgmr.msra.gmra.mrb[0].mxu0 %v393_v10  ;;  %360 = vmatmul.mubr.bf16.vlgmr.msra.gmra.mrb[0].mxu1 %v394_v11 }
  0x23   :  { %355 = vmatprep.mubr.bf16.mxu0 %v395_v12  ;;  %363 = vmatprep.mubr.bf16.mxu1 %v396_v13 }
  0x2a   :  { %356 = vmatmul.mubr.bf16.gmra.mrb[4].mxu0 %v397_v14  ;;  %364 = vmatmul.mubr.bf16.gmra.mrb[4].mxu1 %v398_v15 }
  0xf5   :  { %v353_v17 = vpop.f32.mrb[0].mxu0  ;;  %v361_v19 = vpop.f32.mrb[0].mxu1 }
  0xf6   :  { %v196_v21 = vadd.f32 %v353_v17, %v475_v16  ;;  %v228_v22 = vadd.f32 %v361_v19, %v475_v16  ;;  %v187_v23 = vpop.f32.mrb[1].mxu0  ;;  %v219_v25 = vpop.f32.mrb[1].mxu1 }
  0xf7   :  { %v188_v27 = vadd.f32 %v475_v16, %v187_v23  ;;  %v220_v28 = vadd.f32 %v475_v16, %v219_v25  ;;  %v354_v29 = vpop.f32.mrb[2].mxu0  ;;  %v362_v31 = vpop.f32.mrb[2].mxu1 }
  0xf8   :  { %v268_v33 = vadd.f32 %v252_v18, %v196_v21  ;;  %v276_v34 = vadd.f32 %v260_v20, %v228_v22  ;;  %v199_v35 = vadd.f32 %v354_v29, %v475_v16  ;;  %v231_v36 = vadd.f32 %v362_v31, %v475_v16  ;;  %v190_v37 = vpop.f32.mrb[3].mxu0  ;;  %v222_v39 = vpop.f32.mrb[3].mxu1 }
  0xf9   :  { %v266_v41 = vadd.f32 %v250_v24, %v188_v27  ;;  %v274_v42 = vadd.f32 %v258_v26, %v220_v28  ;;  %v191_v43 = vadd.f32 %v475_v16, %v190_v37  ;;  %v223_v44 = vadd.f32 %v475_v16, %v222_v39 }
  0xfa   :  { %284 = vst [vmem:[%s593_s4 + $0x10] sm:$0xff] %v268_v33  ;;  %292 = vst [vmem:[%s593_s4 + $0x50] sm:$0xff] %v276_v34  ;;  %v269_v45 = vadd.f32 %v253_v30, %v199_v35  ;;  %v277_v46 = vadd.f32 %v261_v32, %v231_v36 }
  0xfb   :  { %282 = vst [vmem:[%s593_s4] sm:$0xff] %v266_v41  ;;  %290 = vst [vmem:[%s593_s4 + $0x40] sm:$0xff] %v274_v42  ;;  %v267_v47 = vadd.f32 %v251_v38, %v191_v43  ;;  %v275_v48 = vadd.f32 %v259_v40, %v223_v44 }
  0xfc   :  { %285 = vst [vmem:[%s593_s4 + $0x18] sm:$0xff] %v269_v45  ;;  %293 = vst [vmem:[%s593_s4 + $0x58] sm:$0xff] %v277_v46 }
  0xfd   :  { %283 = vst [vmem:[%s593_s4 + $0x8] sm:$0xff] %v267_v47  ;;  %291 = vst [vmem:[%s593_s4 + $0x48] sm:$0xff] %v275_v48  ;;  %v357_v49 = vpop.f32.mrb[4].mxu0  ;;  %v365_v51 = vpop.f32.mrb[4].mxu1 }
  0xfe   :  { %v212_v53 = vadd.f32 %v357_v49, %v475_v16  ;;  %v244_v54 = vadd.f32 %v365_v51, %v475_v16  ;;  %v203_v55 = vpop.f32.mrb[5].mxu0  ;;  %v235_v57 = vpop.f32.mrb[5].mxu1 }
  0xff   :  { %v204_v59 = vadd.f32 %v475_v16, %v203_v55  ;;  %v236_v60 = vadd.f32 %v475_v16, %v235_v57  ;;  %v358_v61 = vpop.f32.mrb[6].mxu0  ;;  %v366_v63 = vpop.f32.mrb[6].mxu1 }
 0x100   :  { %v272_v1 = vadd.f32 %v256_v50, %v212_v53  ;;  %v280_v2 = vadd.f32 %v264_v52, %v244_v54  ;;  %v215_v3 = vadd.f32 %v358_v61, %v475_v16  ;;  %v247_v4 = vadd.f32 %v366_v63, %v475_v16  ;;  %v206_v5 = vpop.f32.mrb[7].mxu0  ;;  %v238_v7 = vpop.f32.mrb[7].mxu1 }
 0x101   :  { %v270_v9 = vadd.f32 %v254_v56, %v204_v59  ;;  %v278_v10 = vadd.f32 %v262_v58, %v236_v60  ;;  %v207_v11 = vadd.f32 %v475_v16, %v206_v5  ;;  %v239_v12 = vadd.f32 %v475_v16, %v238_v7 }
 0x102   :  { %288 = vst [vmem:[%s593_s4 + $0x30] sm:$0xff] %v272_v1  ;;  %296 = vst [vmem:[%s593_s4 + $0x70] sm:$0xff] %v280_v2  ;;  %v273_v13 = vadd.f32 %v257_v62, %v215_v3  ;;  %v281_v14 = vadd.f32 %v265_v0, %v247_v4 }
 0x103   :  { %286 = vst [vmem:[%s593_s4 + $0x20] sm:$0xff] %v270_v9  ;;  %294 = vst [vmem:[%s593_s4 + $0x60] sm:$0xff] %v278_v10  ;;  %v271_v15 = vadd.f32 %v255_v6, %v207_v11  ;;  %v279_v16 = vadd.f32 %v263_v8, %v239_v12 }
 0x104   :  { %289 = vst [vmem:[%s593_s4 + $0x38] sm:$0xff] %v273_v13  ;;  %297 = vst [vmem:[%s593_s4 + $0x78] sm:$0xff] %v281_v14 }
 0x105   :  { %287 = vst [vmem:[%s593_s4 + $0x28] sm:$0xff] %v271_v15  ;;  %295 = vst [vmem:[%s593_s4 + $0x68] sm:$0xff] %v279_v16 }

// kernel: volo_forward.55
= control target key start
LH: loop header
LB: loop body
LE: loop exit
PB: predicated region body
PF: predicated region fallthrough
CT: control target
= control target key end

     0   :  { %s974_s0 = inlined_call_operand.vmem [shape: f32[128,128], index: 0, kind: input, shape index: {}]   ;;  %s975_s3 = inlined_call_operand.vmem [shape: bf16[128,128], index: 3, kind: input, shape index: {}]   ;;  %s976_s1 = inlined_call_operand.vmem [shape: f32[1,128], index: 1, kind: input, shape index: {}]   ;;  %s977_s2 = inlined_call_operand.vmem [shape: f32[1,128], index: 2, kind: input, shape index: {}]   ;;  %s978_s4 = inlined_call_operand.vmem [shape: f32[1,128], index: 4, kind: input, shape index: {}]   ;;  %s979_s5 = inlined_call_operand.vmem [shape: f32[128,128], index: 5, kind: output, shape index: {}]  }
   0x1   :  { %v636_v0 = vld [vmem:[%s974_s0 + $0x40] sm:$0xff]  ;;  %v648_v2 = vld [vmem:[%s974_s0 + $0x48] sm:$0xff]  ;;  %v660_v4 = vld [vmem:[%s974_s0 + $0x18] sm:$0xff] }
   0x2   :  { %v641_v1 = vld [vmem:[%s974_s0] sm:$0xff]  ;;  %53 = vadd.xlane.f32.xlu1 %v636_v0  ;;  %v653_v3 = vld [vmem:[%s974_s0 + $0x8] sm:$0xff]  ;;  %v665_v5 = vld [vmem:[%s974_s0 + $0x10] sm:$0xff]  ;;  %v95_v10 = vmul.f32 %v648_v2, %v648_v2  ;;  %v94_v11 = vmul.f32 %v636_v0, %v636_v0  ;;  %v89_v12 = vmul.f32 %v660_v4, %v660_v4 }
   0x3   :  { %37 = vadd.xlane.f32.xlu0 %v641_v1  ;;  %v672_v6 = vld [vmem:[%s974_s0 + $0x58] sm:$0xff]  ;;  %v677_v7 = vld [vmem:[%s974_s0 + $0x50] sm:$0xff]  ;;  %v87_v8 = vmul.f32 %v653_v3, %v653_v3  ;;  %v86_v9 = vmul.f32 %v641_v1, %v641_v1  ;;  %v88_v13 = vmul.f32 %v665_v5, %v665_v5  ;;  %v700_v16 = vld [vmem:[%s974_s0 + $0x28] sm:$0xff] }
   0x4   :  { %v97_v14 = vmul.f32 %v672_v6, %v672_v6  ;;  %v96_v15 = vmul.f32 %v677_v7, %v677_v7  ;;  %v705_v17 = vld [vmem:[%s974_s0 + $0x20] sm:$0xff]  ;;  %v713_v19 = vld [vmem:[%s974_s0 + $0x68] sm:$0xff]  ;;  %v730_v22 = vld [vmem:[%s974_s0 + $0x38] sm:$0xff]  ;;  %v91_v28 = vmul.f32 %v700_v16, %v700_v16 }
   0x5   :  { %v563_v18 = vld [vmem:[%s975_s3] sm:$0xff]   ;;  %v564_v21 = vld [vmem:[%s975_s3 + $0x8] sm:$0xff]   ;;  %v735_v23 = vld [vmem:[%s974_s0 + $0x30] sm:$0xff]  ;;  %v90_v29 = vmul.f32 %v705_v17, %v705_v17  ;;  %v99_v31 = vmul.f32 %v713_v19, %v713_v19  ;;  %v93_v34 = vmul.f32 %v730_v22, %v730_v22 }
   0x6   :  { %55 = vadd.xlane.f32.xlu1 %v648_v2  ;;  %v718_v20 = vld [vmem:[%s974_s0 + $0x60] sm:$0xff]  ;;  %515 = vmatprep.subr.bf16.mxu0 %v563_v18  ;;  %v565_v24 = vld [vmem:[%s975_s3 + $0x10] sm:$0xff]   ;;  %v745_v25 = vld [vmem:[%s974_s0 + $0x78] sm:$0xff]  ;;  %v92_v35 = vmul.f32 %v735_v23, %v735_v23 }
   0x7   :  { %39 = vadd.xlane.f32.xlu0 %v653_v3  ;;  %547 = vmatprep.subr.bf16.mxu1 %v563_v18  ;;  %v750_v26 = vld [vmem:[%s974_s0 + $0x70] sm:$0xff]  ;;  %v566_v27 = vld [vmem:[%s975_s3 + $0x18] sm:$0xff]   ;;  %v567_v30 = vld [vmem:[%s975_s3 + $0x20] sm:$0xff]   ;;  %v98_v32 = vmul.f32 %v718_v20, %v718_v20  ;;  %v101_v37 = vmul.f32 %v745_v25, %v745_v25 }
   0x8   :  { %516 = vmatpush3.bf16.msra.mxu0 %v563_v18  ;;  %555 = vmatpush3.bf16.msra.mxu1 %v563_v18  ;;  %v568_v33 = vld [vmem:[%s975_s3 + $0x28] sm:$0xff]   ;;  %v569_v36 = vld [vmem:[%s975_s3 + $0x30] sm:$0xff]   ;;  %v100_v38 = vmul.f32 %v750_v26, %v750_v26  ;;  %v570_v39 = vld [vmem:[%s975_s3 + $0x38] sm:$0xff]  }
   0x9   :  { %517 = vmatprep.subr.bf16.mxu0 %v564_v21  ;;  %548 = vmatprep.subr.bf16.mxu1 %v564_v21 }
   0xa   :  { %43 = vadd.xlane.f32.xlu1 %v660_v4 }
   0xb   :  { %41 = vadd.xlane.f32.xlu0 %v665_v5 }
   0xc   :  { %518 = vmatpush3.bf16.msra.mxu0 %v564_v21  ;;  %556 = vmatpush3.bf16.msra.mxu1 %v564_v21 }
   0xd   :  { %519 = vmatprep.subr.bf16.mxu0 %v565_v24  ;;  %549 = vmatprep.subr.bf16.mxu1 %v565_v24 }
   0xe   :  { %59 = vadd.xlane.f32.xlu1 %v672_v6 }
   0xf   :  { %57 = vadd.xlane.f32.xlu0 %v677_v7 }
  0x10   :  { %520 = vmatpush3.bf16.msra.mxu0 %v565_v24  ;;  %557 = vmatpush3.bf16.msra.mxu1 %v565_v24 }
  0x11   :  { %521 = vmatprep.subr.bf16.mxu0 %v566_v27  ;;  %550 = vmatprep.subr.bf16.mxu1 %v566_v27 }
  0x12   :  { %104 = vadd.xlane.f32.xlu1 %v87_v8 }
  0x13   :  { %102 = vadd.xlane.f32.xlu0 %v86_v9 }
  0x14   :  { %522 = vmatpush3.bf16.msra.mxu0 %v566_v27  ;;  %558 = vmatpush3.bf16.msra.mxu1 %v566_v27 }
  0x15   :  { %523 = vmatprep.subr.bf16.mxu0 %v567_v30  ;;  %551 = vmatprep.subr.bf16.mxu1 %v567_v30 }
  0x16   :  { %120 = vadd.xlane.f32.xlu1 %v95_v10 }
  0x17   :  { %118 = vadd.xlane.f32.xlu0 %v94_v11 }
  0x18   :  { %524 = vmatpush3.bf16.msra.mxu0 %v567_v30  ;;  %559 = vmatpush3.bf16.msra.mxu1 %v567_v30 }
  0x19   :  { %525 = vmatprep.subr.bf16.mxu0 %v568_v33  ;;  %552 = vmatprep.subr.bf16.mxu1 %v568_v33 }
  0x1a   :  { %108 = vadd.xlane.f32.xlu1 %v89_v12 }
  0x1b   :  { %106 = vadd.xlane.f32.xlu0 %v88_v13 }
  0x1c   :  { %526 = vmatpush3.bf16.msra.mxu0 %v568_v33  ;;  %560 = vmatpush3.bf16.msra.mxu1 %v568_v33 }
  0x1d   :  { %527 = vmatprep.subr.bf16.mxu0 %v569_v36  ;;  %553 = vmatprep.subr.bf16.mxu1 %v569_v36 }
  0x1e   :  { %124 = vadd.xlane.f32.xlu1 %v97_v14 }
  0x1f   :  { %122 = vadd.xlane.f32.xlu0 %v96_v15 }
  0x20   :  { %528 = vmatpush3.bf16.msra.mxu0 %v569_v36  ;;  %561 = vmatpush3.bf16.msra.mxu1 %v569_v36 }
  0x21   :  { %529 = vmatprep.subr.bf16.mxu0 %v570_v39  ;;  %554 = vmatprep.subr.bf16.mxu1 %v570_v39 }
  0x22   :  { %47 = vadd.xlane.f32.xlu1 %v700_v16 }
  0x23   :  { %45 = vadd.xlane.f32.xlu0 %v705_v17 }
  0x24   :  { %530 = vmatpush3.bf16.msra.mxu0 %v570_v39  ;;  %562 = vmatpush3.bf16.msra.mxu1 %v570_v39 }
  0x26   :  { %63 = vadd.xlane.f32.xlu1 %v713_v19 }
  0x27   :  { %61 = vadd.xlane.f32.xlu0 %v718_v20 }
  0x2a   :  { %51 = vadd.xlane.f32.xlu1 %v730_v22 }
  0x2b   :  { %49 = vadd.xlane.f32.xlu0 %v735_v23 }
  0x2e   :  { %67 = vadd.xlane.f32.xlu1 %v745_v25 }
  0x2f   :  { %65 = vadd.xlane.f32.xlu0 %v750_v26 }
  0x32   :  { %112 = vadd.xlane.f32.xlu1 %v91_v28 }
  0x33   :  { %110 = vadd.xlane.f32.xlu0 %v90_v29 }
  0x36   :  { %128 = vadd.xlane.f32.xlu1 %v99_v31 }
  0x37   :  { %126 = vadd.xlane.f32.xlu0 %v98_v32 }
  0x3a   :  { %116 = vadd.xlane.f32.xlu1 %v93_v34 }
  0x3b   :  { %114 = vadd.xlane.f32.xlu0 %v92_v35 }
  0x3e   :  { %132 = vadd.xlane.f32.xlu1 %v101_v37 }
  0x3f   :  { %130 = vadd.xlane.f32.xlu0 %v100_v38 }
  0x8f   :  { %v54_v40 = vpop.xlane.xlu1 %53 }
  0x90   :  { %v38_v41 = vpop.xlane.xlu0 %37  ;;  %v789_v50 = vmul.f32 0.03125, %v54_v40 }
  0x91   :  { %v785_v48 = vmul.f32 0.03125, %v38_v41 }
  0x92   :  { %v158_v61 = vmul.f32 %v789_v50, %v789_v50 }
  0x93   :  { %v56_v42 = vpop.xlane.xlu1 %55  ;;  %v150_v54 = vmul.f32 %v785_v48, %v785_v48 }
  0x94   :  { %v40_v43 = vpop.xlane.xlu0 %39  ;;  %v791_v51 = vmul.f32 0.03125, %v56_v42 }
  0x95   :  { %v787_v49 = vmul.f32 0.03125, %v40_v43 }
  0x96   :  { %v159_v62 = vmul.f32 %v791_v51, %v791_v51 }
  0x97   :  { %v44_v44 = vpop.xlane.xlu1 %43  ;;  %v151_v55 = vmul.f32 %v787_v49, %v787_v49 }
  0x98   :  { %v42_v45 = vpop.xlane.xlu0 %41  ;;  %v797_v58 = vmul.f32 0.03125, %v44_v44 }
  0x99   :  { %v803_v63 = vmul.f32 0.03125, %v42_v45 }
  0x9a   :  { %v153_v14 = vmul.f32 %v797_v58, %v797_v58 }
  0x9b   :  { %v60_v46 = vpop.xlane.xlu1 %59  ;;  %v152_v21 = vmul.f32 %v803_v63, %v803_v63 }
  0x9c   :  { %v58_v47 = vpop.xlane.xlu0 %57  ;;  %v809_v24 = vmul.f32 0.03125, %v60_v46  ;;  %v183_v46 = vsub.f32 %v653_v3, %v787_v49  ;;  %v829_v3 = vld [vmem:[%s977_s2] ss:$0 sm:$0xff]  ;;  %v191_v49 = vsub.f32 %v648_v2, %v791_v51 }
  0x9d   :  { %v811_v27 = vmul.f32 0.03125, %v58_v47 }
  0x9e   :  { %v161_v36 = vmul.f32 %v809_v24, %v809_v24 }
  0x9f   :  { %v105_v52 = vpop.xlane.xlu1 %104  ;;  %v160_v37 = vmul.f32 %v811_v27, %v811_v27 }
  0xa0   :  { %v103_v53 = vpop.xlane.xlu0 %102  ;;  %v135_v56 = vmul.f32 0.03125, %v105_v52 }
  0xa1   :  { %v134_v57 = vmul.f32 0.03125, %v103_v53 }
  0xa2   :  { %v167_v59 = vsub.f32 %v135_v56, %v151_v55  ;;  %v822_v56 = vld [vmem:[%s976_s1] ss:$0 sm:$0xff] }
  0xa3   :  { %v166_v60 = vsub.f32 %v134_v57, %v150_v54  ;;  %v121_v8 = vpop.xlane.xlu1 %120 }
  0xa4   :  { %v119_v9 = vpop.xlane.xlu0 %118  ;;  %v199_v10 = vadd.f32 1e-05, %v167_v59  ;;  %v143_v12 = vmul.f32 0.03125, %v121_v8  ;;  %v182_v59 = vsub.f32 %v641_v1, %v785_v48  ;;  %v190_v1 = vsub.f32 %v636_v0, %v789_v50 }
  0xa5   :  { %v198_v11 = vadd.f32 1e-05, %v166_v60  ;;  %v142_v13 = vmul.f32 0.03125, %v119_v9 }
  0xa6   :  { %571 = vrsqrt.f32 %v199_v10  ;;  %v175_v15 = vsub.f32 %v143_v12, %v159_v62 }
  0xa7   :  { %v174_v18 = vsub.f32 %v142_v13, %v158_v61  ;;  %573 = vrsqrt.f32 %v198_v11  ;;  %v109_v28 = vpop.xlane.xlu1 %108 }
  0xa8   :  { %v107_v29 = vpop.xlane.xlu0 %106  ;;  %v207_v30 = vadd.f32 1e-05, %v175_v15  ;;  %v137_v32 = vmul.f32 0.03125, %v109_v28 }
  0xa9   :  { %v206_v31 = vadd.f32 1e-05, %v174_v18  ;;  %v136_v33 = vmul.f32 0.03125, %v107_v29  ;;  %v184_v29 = vsub.f32 %v665_v5, %v803_v63  ;;  %v192_v5 = vsub.f32 %v677_v7, %v811_v27 }
  0xaa   :  { %575 = vrsqrt.f32 %v207_v30  ;;  %v169_v34 = vsub.f32 %v137_v32, %v153_v14  ;;  %v185_v14 = vsub.f32 %v660_v4, %v797_v58  ;;  %v193_v4 = vsub.f32 %v672_v6, %v809_v24 }
  0xab   :  { %v168_v35 = vsub.f32 %v136_v33, %v152_v21  ;;  %577 = vrsqrt.f32 %v206_v31  ;;  %v125_v38 = vpop.xlane.xlu1 %124 }
  0xac   :  { %v123_v39 = vpop.xlane.xlu0 %122  ;;  %v201_v40 = vadd.f32 1e-05, %v169_v34  ;;  %v145_v42 = vmul.f32 0.03125, %v125_v38 }
  0xad   :  { %v200_v41 = vadd.f32 1e-05, %v168_v35  ;;  %v144_v43 = vmul.f32 0.03125, %v123_v39 }
  0xae   :  { %579 = vrsqrt.f32 %v201_v40  ;;  %v177_v44 = vsub.f32 %v145_v42, %v161_v36 }
  0xaf   :  { %v176_v45 = vsub.f32 %v144_v43, %v160_v37  ;;  %581 = vrsqrt.f32 %v200_v41  ;;  %v48_v47 = vpop.xlane.xlu1 %47 }
  0xb0   :  { %v46_v52 = vpop.xlane.xlu0 %45  ;;  %v572_v53 = vpop.eup %571  ;;  %v209_v54 = vadd.f32 1e-05, %v177_v44  ;;  %v852_v63 = vmul.f32 0.03125, %v48_v47 }
  0xb1   :  { %v208_v55 = vadd.f32 1e-05, %v176_v45  ;;  %v574_v57 = vpop.eup %573  ;;  %v231_v60 = vmul.f32 %v572_v53, %v183_v46  ;;  %v854_v38 = vmul.f32 0.03125, %v46_v52 }
  0xb2   :  { %583 = vrsqrt.f32 %v209_v54  ;;  %v230_v8 = vmul.f32 %v574_v57, %v182_v59  ;;  %v155_v47 = vmul.f32 %v852_v63, %v852_v63 }
  0xb3   :  { %585 = vrsqrt.f32 %v208_v55  ;;  %v64_v61 = vpop.xlane.xlu1 %63  ;;  %v254_v9 = vmul.f32 %v822_v56, %v231_v60  ;;  %v154_v52 = vmul.f32 %v854_v38, %v854_v38 }
  0xb4   :  { %v62_v62 = vpop.xlane.xlu0 %61  ;;  %v576_v10 = vpop.eup %575  ;;  %v253_v48 = vmul.f32 %v822_v56, %v230_v8  ;;  %v858_v42 = vmul.f32 0.03125, %v64_v61 }
  0xb5   :  { %v578_v11 = vpop.eup %577  ;;  %v277_v12 = vadd.f32 %v829_v3, %v254_v9  ;;  %v239_v13 = vmul.f32 %v576_v10, %v191_v49  ;;  %v860_v43 = vmul.f32 0.03125, %v62_v62 }
  0xb6   :  { %v276_v15 = vadd.f32 %v829_v3, %v253_v48  ;;  %v238_v18 = vmul.f32 %v578_v11, %v190_v1  ;;  %v163_v62 = vmul.f32 %v858_v42, %v858_v42 }
  0xb7   :  { %v52_v2 = vpop.xlane.xlu1 %51  ;;  %v262_v21 = vmul.f32 %v822_v56, %v239_v13  ;;  %v162_v8 = vmul.f32 %v860_v43, %v860_v43 }
  0xb8   :  { %v50_v51 = vpop.xlane.xlu0 %49  ;;  %v580_v28 = vpop.eup %579  ;;  %v292_v50 = vpack.c.bf16 %v277_v12, %v276_v15  ;;  %v261_v30 = vmul.f32 %v822_v56, %v238_v18  ;;  %v870_v60 = vmul.f32 0.03125, %v52_v2 }
  0xb9   :  { %v582_v0 = vpop.eup %581  ;;  %v285_v31 = vadd.f32 %v829_v3, %v262_v21  ;;  %v233_v32 = vmul.f32 %v580_v28, %v185_v14  ;;  %v876_v9 = vmul.f32 0.03125, %v50_v51 }
  0xba   :  { %531 = vmatprep.mubr.bf16.mxu0 %v292_v50  ;;  %v284_v34 = vadd.f32 %v829_v3, %v261_v30  ;;  %v232_v35 = vmul.f32 %v582_v0, %v184_v29  ;;  %v157_v15 = vmul.f32 %v870_v60, %v870_v60 }
  0xbb   :  { %v68_v58 = vpop.xlane.xlu1 %67  ;;  %v256_v36 = vmul.f32 %v822_v56, %v233_v32  ;;  %v156_v51 = vmul.f32 %v876_v9, %v876_v9 }
  0xbc   :  { %v66_v33 = vpop.xlane.xlu0 %65  ;;  %v584_v37 = vpop.eup %583  ;;  %v296_v40 = vpack.c.bf16 %v285_v31, %v284_v34  ;;  %v255_v6 = vmul.f32 %v822_v56, %v232_v35  ;;  %v883_v28 = vmul.f32 0.03125, %v68_v58 }
  0xbd   :  { %v586_v39 = vpop.eup %585  ;;  %v279_v24 = vadd.f32 %v829_v3, %v256_v36  ;;  %v241_v41 = vmul.f32 %v584_v37, %v193_v4  ;;  %v885_v29 = vmul.f32 0.03125, %v66_v33 }
  0xbe   :  { %539 = vmatprep.mubr.bf16.mxu1 %v296_v40  ;;  %v278_v7 = vadd.f32 %v829_v3, %v255_v6  ;;  %v240_v27 = vmul.f32 %v586_v39, %v192_v5  ;;  %v165_v36 = vmul.f32 %v883_v28, %v883_v28 }
  0xbf   :  { %v113_v44 = vpop.xlane.xlu1 %112  ;;  %v264_v46 = vmul.f32 %v822_v56, %v241_v41  ;;  %v164_v58 = vmul.f32 %v885_v29, %v885_v29 }
  0xc0   :  { %v111_v45 = vpop.xlane.xlu0 %110  ;;  %v139_v53 = vmul.f32 0.03125, %v113_v44  ;;  %v293_v55 = vpack.c.bf16 %v279_v24, %v278_v7  ;;  %v263_v57 = vmul.f32 %v822_v56, %v240_v27  ;;  %v187_v44 = vsub.f32 %v700_v16, %v852_v63 }
  0xc1   :  { %v138_v54 = vmul.f32 0.03125, %v111_v45  ;;  %v287_v59 = vadd.f32 %v829_v3, %v264_v46  ;;  %v186_v7 = vsub.f32 %v705_v17, %v854_v38  ;;  %v194_v16 = vsub.f32 %v718_v20, %v860_v43 }
  0xc2   :  { %v171_v49 = vsub.f32 %v139_v53, %v155_v47  ;;  %532 = vmatmul.mubr.bf16.vlgmr.msra.gmra.mrb[0].mxu0 %v293_v55  ;;  %v286_v1 = vadd.f32 %v829_v3, %v263_v57 }
  0xc3   :  { %v170_v61 = vsub.f32 %v138_v54, %v154_v52  ;;  %v129_v10 = vpop.xlane.xlu1 %128  ;;  %v195_v54 = vsub.f32 %v713_v19, %v858_v42 }
  0xc4   :  { %v127_v11 = vpop.xlane.xlu0 %126  ;;  %v203_v48 = vadd.f32 1e-05, %v171_v49  ;;  %v147_v13 = vmul.f32 0.03125, %v129_v10  ;;  %v297_v2 = vpack.c.bf16 %v287_v59, %v286_v1 }
  0xc5   :  { %v202_v12 = vadd.f32 1e-05, %v170_v61  ;;  %v146_v14 = vmul.f32 0.03125, %v127_v11 }
  0xc6   :  { %587 = vrsqrt.f32 %v203_v48  ;;  %v179_v18 = vsub.f32 %v147_v13, %v163_v62  ;;  %540 = vmatmul.mubr.bf16.vlgmr.msra.gmra.mrb[0].mxu1 %v297_v2  ;;  %v189_v62 = vsub.f32 %v730_v22, %v870_v60  ;;  %v197_v22 = vsub.f32 %v745_v25, %v883_v28 }
  0xc7   :  { %v178_v21 = vsub.f32 %v146_v14, %v162_v8  ;;  %589 = vrsqrt.f32 %v202_v12  ;;  %v117_v0 = vpop.xlane.xlu1 %116  ;;  %v188_v8 = vsub.f32 %v735_v23, %v876_v9  ;;  %v196_v23 = vsub.f32 %v750_v26, %v885_v29 }
  0xc8   :  { %v115_v50 = vpop.xlane.xlu0 %114  ;;  %v211_v30 = vadd.f32 1e-05, %v179_v18  ;;  %v141_v32 = vmul.f32 0.03125, %v117_v0 }
  0xc9   :  { %v210_v31 = vadd.f32 1e-05, %v178_v21  ;;  %v140_v4 = vmul.f32 0.03125, %v115_v50 }
  0xca   :  { %591 = vrsqrt.f32 %v211_v30  ;;  %v173_v34 = vsub.f32 %v141_v32, %v157_v15  ;;  %v490_v30 = vld [vmem:[%s978_s4] ss:$0 sm:$0xff] }
  0xcb   :  { %v172_v35 = vsub.f32 %v140_v4, %v156_v51  ;;  %593 = vrsqrt.f32 %v210_v31  ;;  %v133_v33 = vpop.xlane.xlu1 %132 }
  0xcc   :  { %v131_v37 = vpop.xlane.xlu0 %130  ;;  %v205_v5 = vadd.f32 1e-05, %v173_v34  ;;  %v149_v40 = vmul.f32 0.03125, %v133_v33 }
  0xcd   :  { %v204_v39 = vadd.f32 1e-05, %v172_v35  ;;  %v148_v6 = vmul.f32 0.03125, %v131_v37 }
  0xce   :  { %595 = vrsqrt.f32 %v205_v5  ;;  %v181_v24 = vsub.f32 %v149_v40, %v165_v36 }
  0xcf   :  { %v180_v41 = vsub.f32 %v148_v6, %v164_v58  ;;  %597 = vrsqrt.f32 %v204_v39 }
  0xd0   :  { %v588_v45 = vpop.eup %587  ;;  %v213_v27 = vadd.f32 1e-05, %v181_v24 }
  0xd1   :  { %v212_v46 = vadd.f32 1e-05, %v180_v41  ;;  %v590_v47 = vpop.eup %589  ;;  %v235_v52 = vmul.f32 %v588_v45, %v187_v44 }
  0xd2   :  { %599 = vrsqrt.f32 %v213_v27  ;;  %v234_v53 = vmul.f32 %v590_v47, %v186_v7 }
  0xd3   :  { %601 = vrsqrt.f32 %v212_v46  ;;  %v258_v55 = vmul.f32 %v822_v56, %v235_v52 }
  0xd4   :  { %v592_v57 = vpop.eup %591  ;;  %v257_v63 = vmul.f32 %v822_v56, %v234_v53 }
  0xd5   :  { %v594_v59 = vpop.eup %593  ;;  %v281_v17 = vadd.f32 %v829_v3, %v258_v55  ;;  %v243_v38 = vmul.f32 %v592_v57, %v195_v54 }
  0xd6   :  { %v280_v49 = vadd.f32 %v829_v3, %v257_v63  ;;  %v242_v61 = vmul.f32 %v594_v59, %v194_v16 }
  0xd7   :  { %v266_v19 = vmul.f32 %v822_v56, %v243_v38 }
  0xd8   :  { %v596_v42 = vpop.eup %595  ;;  %v294_v10 = vpack.c.bf16 %v281_v17, %v280_v49  ;;  %v265_v20 = vmul.f32 %v822_v56, %v242_v61 }
  0xd9   :  { %v598_v43 = vpop.eup %597  ;;  %v289_v11 = vadd.f32 %v829_v3, %v266_v19  ;;  %v237_v1 = vmul.f32 %v596_v42, %v189_v62 }
  0xda   :  { %535 = vmatprep.mubr.bf16.mxu0 %v294_v10  ;;  %v288_v48 = vadd.f32 %v829_v3, %v265_v20  ;;  %v236_v12 = vmul.f32 %v598_v43, %v188_v8 }
  0xdb   :  { %v260_v60 = vmul.f32 %v822_v56, %v237_v1 }
  0xdc   :  { %v600_v13 = vpop.eup %599  ;;  %v298_v9 = vpack.c.bf16 %v289_v11, %v288_v48  ;;  %v259_v14 = vmul.f32 %v822_v56, %v236_v12 }
  0xdd   :  { %v602_v2 = vpop.eup %601  ;;  %v283_v15 = vadd.f32 %v829_v3, %v260_v60  ;;  %v245_v18 = vmul.f32 %v600_v13, %v197_v22 }
  0xde   :  { %543 = vmatprep.mubr.bf16.mxu1 %v298_v9  ;;  %v282_v21 = vadd.f32 %v829_v3, %v259_v14  ;;  %v244_v51 = vmul.f32 %v602_v2, %v196_v23 }
  0xdf   :  { %v268_v0 = vmul.f32 %v822_v56, %v245_v18 }
  0xe0   :  { %v295_v25 = vpack.c.bf16 %v283_v15, %v282_v21  ;;  %v267_v28 = vmul.f32 %v822_v56, %v244_v51 }
  0xe1   :  { %v291_v50 = vadd.f32 %v829_v3, %v268_v0 }
  0xe2   :  { %536 = vmatmul.mubr.bf16.gmra.mrb[4].mxu0 %v295_v25  ;;  %v290_v26 = vadd.f32 %v829_v3, %v267_v28 }
  0xe4   :  { %v299_v29 = vpack.c.bf16 %v291_v50, %v290_v26 }
  0xe6   :  { %544 = vmatmul.mubr.bf16.gmra.mrb[4].mxu1 %v299_v29 }
 0x195   :  { %v533_v31 = vpop.f32.mrb[0].mxu0 }
 0x196   :  { %v414_v32 = vadd.f32 %v533_v31, %v490_v30  ;;  %v405_v4 = vpop.f32.mrb[1].mxu0 }
 0x197   :  { %v406_v34 = vadd.f32 %v490_v30, %v405_v4  ;;  %v534_v35 = vpop.f32.mrb[2].mxu0 }
 0x198   :  { %470 = vst [vmem:[%s979_s5 + $0x10] sm:$0xff] %v414_v32  ;;  %v417_v56 = vadd.f32 %v534_v35, %v490_v30  ;;  %v408_v36 = vpop.f32.mrb[3].mxu0 }
 0x199   :  { %468 = vst [vmem:[%s979_s5] sm:$0xff] %v406_v34  ;;  %v409_v3 = vadd.f32 %v490_v30, %v408_v36  ;;  %v541_v58 = vpop.f32.mrb[0].mxu1 }
 0x19a   :  { %471 = vst [vmem:[%s979_s5 + $0x18] sm:$0xff] %v417_v56  ;;  %v446_v33 = vadd.f32 %v541_v58, %v490_v30  ;;  %v437_v37 = vpop.f32.mrb[1].mxu1 }
 0x19b   :  { %469 = vst [vmem:[%s979_s5 + $0x8] sm:$0xff] %v409_v3  ;;  %v438_v5 = vadd.f32 %v490_v30, %v437_v37  ;;  %v542_v39 = vpop.f32.mrb[2].mxu1 }
 0x19c   :  { %478 = vst [vmem:[%s979_s5 + $0x50] sm:$0xff] %v446_v33  ;;  %v449_v40 = vadd.f32 %v542_v39, %v490_v30  ;;  %v440_v6 = vpop.f32.mrb[3].mxu1 }
 0x19d   :  { %476 = vst [vmem:[%s979_s5 + $0x40] sm:$0xff] %v438_v5  ;;  %v441_v24 = vadd.f32 %v490_v30, %v440_v6 }
 0x19e   :  { %479 = vst [vmem:[%s979_s5 + $0x58] sm:$0xff] %v449_v40 }
 0x19f   :  { %477 = vst [vmem:[%s979_s5 + $0x48] sm:$0xff] %v441_v24 }
 0x1b5   :  { %v537_v41 = vpop.f32.mrb[4].mxu0 }
 0x1b6   :  { %v430_v44 = vadd.f32 %v537_v41, %v490_v30  ;;  %v421_v45 = vpop.f32.mrb[5].mxu0 }
 0x1b7   :  { %v422_v7 = vadd.f32 %v490_v30, %v421_v45  ;;  %v538_v27 = vpop.f32.mrb[6].mxu0 }
 0x1b8   :  { %474 = vst [vmem:[%s979_s5 + $0x30] sm:$0xff] %v430_v44  ;;  %v433_v46 = vadd.f32 %v538_v27, %v490_v30  ;;  %v424_v47 = vpop.f32.mrb[7].mxu0 }
 0x1b9   :  { %472 = vst [vmem:[%s979_s5 + $0x20] sm:$0xff] %v422_v7  ;;  %v425_v52 = vadd.f32 %v490_v30, %v424_v47  ;;  %v545_v53 = vpop.f32.mrb[4].mxu1 }
 0x1ba   :  { %475 = vst [vmem:[%s979_s5 + $0x38] sm:$0xff] %v433_v46  ;;  %v462_v54 = vadd.f32 %v545_v53, %v490_v30  ;;  %v453_v55 = vpop.f32.mrb[5].mxu1 }
 0x1bb   :  { %473 = vst [vmem:[%s979_s5 + $0x28] sm:$0xff] %v425_v52  ;;  %v454_v57 = vadd.f32 %v490_v30, %v453_v55  ;;  %v546_v16 = vpop.f32.mrb[6].mxu1 }
 0x1bc   :  { %482 = vst [vmem:[%s979_s5 + $0x70] sm:$0xff] %v462_v54  ;;  %v465_v63 = vadd.f32 %v546_v16, %v490_v30  ;;  %v456_v59 = vpop.f32.mrb[7].mxu1 }
 0x1bd   :  { %480 = vst [vmem:[%s979_s5 + $0x60] sm:$0xff] %v454_v57  ;;  %v457_v17 = vadd.f32 %v490_v30, %v456_v59 }
 0x1be   :  { %483 = vst [vmem:[%s979_s5 + $0x78] sm:$0xff] %v465_v63 }
 0x1bf   :  { %481 = vst [vmem:[%s979_s5 + $0x68] sm:$0xff] %v457_v17 }

// kernel: volo_forward.64
= control target key start
LH: loop header
LB: loop body
LE: loop exit
PB: predicated region body
PF: predicated region fallthrough
CT: control target
= control target key end

     0   :  { %s275_s1 = inlined_call_operand.vmem [shape: bf16[128,128], index: 1, kind: input, shape index: {}]   ;;  %s276_s0 = inlined_call_operand.vmem [shape: bf16[32,128], index: 0, kind: input, shape index: {}]   ;;  %s277_s2 = inlined_call_operand.vmem [shape: f32[1,128], index: 2, kind: input, shape index: {}]   ;;  %s278_s3 = inlined_call_operand.vmem [shape: f32[32,128], index: 3, kind: output, shape index: {}]  }
   0x1   :  { %v200_v0 = vld [vmem:[%s275_s1] sm:$0xff]   ;;  %v201_v1 = vld [vmem:[%s275_s1 + $0x8] sm:$0xff]   ;;  %v202_v2 = vld [vmem:[%s275_s1 + $0x10] sm:$0xff]  }
   0x2   :  { %180 = vmatprep.subr.bf16.mxu0 %v200_v0  ;;  %v203_v3 = vld [vmem:[%s275_s1 + $0x18] sm:$0xff]   ;;  %v208_v4 = vld [vmem:[%s276_s0] sm:$0xff]   ;;  %v205_v6 = vld [vmem:[%s275_s1 + $0x28] sm:$0xff]  }
   0x3   :  { %181 = vmatpush3.bf16.msra.mxu0 %v200_v0  ;;  %196 = vmatprep.mubr.bf16.mxu0 %v208_v4  ;;  %v204_v5 = vld [vmem:[%s275_s1 + $0x20] sm:$0xff]   ;;  %v206_v7 = vld [vmem:[%s275_s1 + $0x30] sm:$0xff]   ;;  %v207_v8 = vld [vmem:[%s275_s1 + $0x38] sm:$0xff]  }
   0x4   :  { %182 = vmatprep.subr.bf16.mxu0 %v201_v1  ;;  %v209_v9 = vld [vmem:[%s276_s0 + $0x8] sm:$0xff]   ;;  %v159_v10 = vld [vmem:[%s277_s2] ss:$0 sm:$0xff] }
   0x7   :  { %183 = vmatpush3.bf16.msra.mxu0 %v201_v1 }
   0x8   :  { %184 = vmatprep.subr.bf16.mxu0 %v202_v2 }
   0xb   :  { %185 = vmatpush3.bf16.msra.mxu0 %v202_v2 }
   0xc   :  { %186 = vmatprep.subr.bf16.mxu0 %v203_v3 }
   0xf   :  { %187 = vmatpush3.bf16.msra.mxu0 %v203_v3 }
  0x10   :  { %188 = vmatprep.subr.bf16.mxu0 %v204_v5 }
  0x13   :  { %189 = vmatpush3.bf16.msra.mxu0 %v204_v5 }
  0x14   :  { %190 = vmatprep.subr.bf16.mxu0 %v205_v6 }
  0x17   :  { %191 = vmatpush3.bf16.msra.mxu0 %v205_v6 }
  0x18   :  { %192 = vmatprep.subr.bf16.mxu0 %v206_v7 }
  0x1b   :  { %193 = vmatpush3.bf16.msra.mxu0 %v206_v7 }
  0x1c   :  { %194 = vmatprep.subr.bf16.mxu0 %v207_v8 }
  0x1f   :  { %195 = vmatpush3.bf16.msra.mxu0 %v207_v8 }
  0x22   :  { %197 = vmatmul.mubr.bf16.vlgmr.msra.gmra.mrb[0].mxu0 %v209_v9 }
  0xf5   :  { %v198_v11 = vpop.f32.mrb[0].mxu0 }
  0xf6   :  { %v145_v12 = vadd.f32 %v198_v11, %v159_v10  ;;  %v136_v13 = vpop.f32.mrb[1].mxu0 }
  0xf7   :  { %v137_v14 = vadd.f32 %v159_v10, %v136_v13  ;;  %v199_v15 = vpop.f32.mrb[2].mxu0 }
  0xf8   :  { %153 = vst [vmem:[%s278_s3 + $0x10] sm:$0xff] %v145_v12  ;;  %v148_v16 = vadd.f32 %v199_v15, %v159_v10  ;;  %v139_v17 = vpop.f32.mrb[3].mxu0 }
  0xf9   :  { %151 = vst [vmem:[%s278_s3] sm:$0xff] %v137_v14  ;;  %v140_v18 = vadd.f32 %v159_v10, %v139_v17 }
  0xfa   :  { %154 = vst [vmem:[%s278_s3 + $0x18] sm:$0xff] %v148_v16 }
  0xfb   :  { %152 = vst [vmem:[%s278_s3 + $0x8] sm:$0xff] %v140_v18 }

// kernel: volo_forward.65
= control target key start
LH: loop header
LB: loop body
LE: loop exit
PB: predicated region body
PF: predicated region fallthrough
CT: control target
= control target key end

     0   :  { %v342_v21 = vmov 0   ;;  %s490_s0 = inlined_call_operand.vmem [shape: f32[32,128], index: 0, kind: input, shape index: {}]   ;;  %s491_s3 = inlined_call_operand.vmem [shape: bf16[128,256], index: 3, kind: input, shape index: {}]   ;;  %s492_s1 = inlined_call_operand.vmem [shape: f32[1,128], index: 1, kind: input, shape index: {}]   ;;  %s493_s2 = inlined_call_operand.vmem [shape: f32[1,128], index: 2, kind: input, shape index: {}]   ;;  %s494_s4 = inlined_call_operand.vmem [shape: f32[1,256], index: 4, kind: input, shape index: {}]   ;;  %s495_s5 = inlined_call_operand.vmem [shape: f32[32,256], index: 5, kind: output, shape index: {}]  }
   0x1   :  { %v376_v0 = vld [vmem:[%s490_s0 + $0x10] sm:$0xff]  ;;  %v381_v1 = vld [vmem:[%s490_s0] sm:$0xff]  ;;  %v388_v2 = vld [vmem:[%s490_s0 + $0x18] sm:$0xff]  ;;  %242 = vmatprep.mubr.bf16.mxu0 %v342_v21  ;;  %252 = vmatprep.mubr.bf16.mxu1 %v342_v21 }
   0x2   :  { %29 = vadd.xlane.f32.xlu1 %v376_v0  ;;  %25 = vadd.xlane.f32.xlu0 %v381_v1  ;;  %v393_v3 = vld [vmem:[%s490_s0 + $0x8] sm:$0xff]  ;;  %v38_v5 = vmul.f32 %v381_v1, %v381_v1  ;;  %v41_v6 = vmul.f32 %v388_v2, %v388_v2  ;;  %v40_v7 = vmul.f32 %v376_v0, %v376_v0  ;;  %v313_v10 = vld [vmem:[%s491_s3 + $0x14] ss:$8 sps:$4 sm:$0xff]   ;;  %v315_v11 = vld [vmem:[%s491_s3 + $0x10] ss:$8 sps:$4 sm:$0xff]  }
   0x3   :  { %v39_v4 = vmul.f32 %v393_v3, %v393_v3  ;;  %v310_v8 = vld [vmem:[%s491_s3 + $0x4] ss:$8 sps:$4 sm:$0xff]   ;;  %v312_v9 = vld [vmem:[%s491_s3] ss:$8 sps:$4 sm:$0xff]   ;;  %v319_v14 = vld [vmem:[%s491_s3 + $0x34] ss:$8 sps:$4 sm:$0xff]  }
   0x4   :  { %210 = vmatprep.subr.bf16.mxu0 %v310_v8  ;;  %293 = vmatprep.subr.bf16.mxu1 %v310_v8  ;;  %v316_v12 = vld [vmem:[%s491_s3 + $0x24] ss:$8 sps:$4 sm:$0xff]   ;;  %v318_v13 = vld [vmem:[%s491_s3 + $0x20] ss:$8 sps:$4 sm:$0xff]   ;;  %v321_v15 = vld [vmem:[%s491_s3 + $0x30] ss:$8 sps:$4 sm:$0xff]  }
   0x5   :  { %211 = vmatpush1.bf16.msra.mxu0 %v312_v9  ;;  %301 = vmatpush1.bf16.msra.mxu1 %v312_v9  ;;  %v322_v16 = vld [vmem:[%s491_s3 + $0x44] ss:$8 sps:$4 sm:$0xff]   ;;  %v324_v17 = vld [vmem:[%s491_s3 + $0x40] ss:$8 sps:$4 sm:$0xff]   ;;  %v325_v18 = vld [vmem:[%s491_s3 + $0x54] ss:$8 sps:$4 sm:$0xff]  }
   0x6   :  { %31 = vadd.xlane.f32.xlu1 %v388_v2  ;;  %27 = vadd.xlane.f32.xlu0 %v393_v3  ;;  %v327_v19 = vld [vmem:[%s491_s3 + $0x50] ss:$8 sps:$4 sm:$0xff]   ;;  %v328_v20 = vld [vmem:[%s491_s3 + $0x64] ss:$8 sps:$4 sm:$0xff]   ;;  %v330_v22 = vld [vmem:[%s491_s3 + $0x60] ss:$8 sps:$4 sm:$0xff]  }
   0x7   :  { %212 = vmatprep.subr.bf16.mxu0 %v313_v10  ;;  %294 = vmatprep.subr.bf16.mxu1 %v313_v10  ;;  %v331_v23 = vld [vmem:[%s491_s3 + $0x74] ss:$8 sps:$4 sm:$0xff]   ;;  %v333_v24 = vld [vmem:[%s491_s3 + $0x70] ss:$8 sps:$4 sm:$0xff]   ;;  %v275_v56 = vld [vmem:[%s492_s1] ss:$0 sm:$0xff] }
   0x8   :  { %v276_v60 = vld [vmem:[%s493_s2] ss:$0 sm:$0xff] }
   0x9   :  { %213 = vmatpush1.bf16.msra.mxu0 %v315_v11  ;;  %302 = vmatpush1.bf16.msra.mxu1 %v315_v11 }
   0xa   :  { %44 = vadd.xlane.f32.xlu1 %v39_v4  ;;  %42 = vadd.xlane.f32.xlu0 %v38_v5 }
   0xb   :  { %214 = vmatprep.subr.bf16.mxu0 %v316_v12  ;;  %295 = vmatprep.subr.bf16.mxu1 %v316_v12 }
   0xd   :  { %215 = vmatpush1.bf16.msra.mxu0 %v318_v13  ;;  %303 = vmatpush1.bf16.msra.mxu1 %v318_v13 }
   0xe   :  { %48 = vadd.xlane.f32.xlu1 %v41_v6  ;;  %46 = vadd.xlane.f32.xlu0 %v40_v7 }
   0xf   :  { %216 = vmatprep.subr.bf16.mxu0 %v319_v14  ;;  %296 = vmatprep.subr.bf16.mxu1 %v319_v14 }
  0x11   :  { %217 = vmatpush1.bf16.msra.mxu0 %v321_v15  ;;  %304 = vmatpush1.bf16.msra.mxu1 %v321_v15  ;;  %v120_v15 = vlaneseq }
  0x12   :  { %218 = vmatprep.subr.bf16.mxu0 %v322_v16  ;;  %297 = vmatprep.subr.bf16.mxu1 %v322_v16 }
  0x15   :  { %219 = vmatpush1.bf16.msra.mxu0 %v324_v17  ;;  %305 = vmatpush1.bf16.msra.mxu1 %v324_v17 }
  0x16   :  { %220 = vmatprep.subr.bf16.mxu0 %v325_v18  ;;  %298 = vmatprep.subr.bf16.mxu1 %v325_v18 }
  0x19   :  { %221 = vmatpush1.bf16.msra.mxu0 %v327_v19  ;;  %306 = vmatpush1.bf16.msra.mxu1 %v327_v19 }
  0x1a   :  { %222 = vmatprep.subr.bf16.mxu0 %v328_v20  ;;  %299 = vmatprep.subr.bf16.mxu1 %v328_v20 }
  0x1d   :  { %223 = vmatpush1.bf16.msra.mxu0 %v330_v22  ;;  %307 = vmatpush1.bf16.msra.mxu1 %v330_v22 }
  0x1e   :  { %224 = vmatprep.subr.bf16.mxu0 %v331_v23  ;;  %300 = vmatprep.subr.bf16.mxu1 %v331_v23 }
  0x21   :  { %225 = vmatpush1.bf16.msra.mxu0 %v333_v24  ;;  %308 = vmatpush1.bf16.msra.mxu1 %v333_v24 }
  0x8f   :  { %v30_v25 = vpop.xlane.xlu1 %29  ;;  %v26_v26 = vpop.xlane.xlu0 %25 }
  0x90   :  { %v34_v29 = vmul.f32 0.015625, %v26_v26  ;;  %v36_v31 = vmul.f32 0.015625, %v30_v25 }
  0x92   :  { %v54_v35 = vmul.f32 %v34_v29, %v34_v29  ;;  %v56_v41 = vmul.f32 %v36_v31, %v36_v31  ;;  %v62_v55 = vsub.f32 %v381_v1, %v34_v29 }
  0x93   :  { %v32_v27 = vpop.xlane.xlu1 %31  ;;  %v28_v28 = vpop.xlane.xlu0 %27 }
  0x94   :  { %v35_v30 = vmul.f32 0.015625, %v28_v28  ;;  %v37_v32 = vmul.f32 0.015625, %v32_v27 }
  0x96   :  { %v55_v36 = vmul.f32 %v35_v30, %v35_v30  ;;  %v57_v42 = vmul.f32 %v37_v32, %v37_v32  ;;  %v63_v53 = vsub.f32 %v393_v3, %v35_v30  ;;  %v65_v61 = vsub.f32 %v388_v2, %v37_v32 }
  0x97   :  { %v45_v33 = vpop.xlane.xlu1 %44  ;;  %v43_v34 = vpop.xlane.xlu0 %42  ;;  %v64_v3 = vsub.f32 %v376_v0, %v36_v31  ;;  %v121_v2 = vshrl.u32 %v120_v15, 7  ;;  %v118_v0 = vld [vmem:[%s494_s4] sm:$0x3] }
  0x98   :  { %v51_v37 = vmul.f32 0.015625, %v45_v33  ;;  %v50_v38 = vmul.f32 0.015625, %v43_v34 }
  0x99   :  { %v122_v16 = vsub.s32 0, %v121_v2  ;;  %v126_v17 = vsub.s32 1, %v121_v2 }
  0x9a   :  { %v59_v39 = vsub.f32 %v51_v37, %v55_v36  ;;  %v58_v40 = vsub.f32 %v50_v38, %v54_v35 }
  0x9b   :  { %v49_v43 = vpop.xlane.xlu1 %48  ;;  %v47_v44 = vpop.xlane.xlu0 %46  ;;  %v123_v18 = vrot.slane %v118_v0, %v122_v16  ;;  %v127_v19 = vrot.slane %v118_v0, %v126_v17 }
  0x9c   :  { %v67_v45 = vadd.f32 1e-05, %v59_v39  ;;  %v66_v46 = vadd.f32 1e-05, %v58_v40  ;;  %v53_v47 = vmul.f32 0.015625, %v49_v43  ;;  %v52_v48 = vmul.f32 0.015625, %v47_v44 }
  0x9e   :  { %334 = vrsqrt.f32 %v67_v45  ;;  %v61_v49 = vsub.f32 %v53_v47, %v57_v42  ;;  %v60_v50 = vsub.f32 %v52_v48, %v56_v41 }
  0x9f   :  { %336 = vrsqrt.f32 %v66_v46 }
  0xa0   :  { %v69_v51 = vadd.f32 1e-05, %v61_v49  ;;  %v68_v52 = vadd.f32 1e-05, %v60_v50 }
  0xa2   :  { %338 = vrsqrt.f32 %v69_v51 }
  0xa3   :  { %340 = vrsqrt.f32 %v68_v52 }
  0xa8   :  { %v335_v54 = vpop.eup %334 }
  0xa9   :  { %v337_v57 = vpop.eup %336  ;;  %v75_v58 = vmul.f32 %v335_v54, %v63_v53 }
  0xaa   :  { %v74_v59 = vmul.f32 %v337_v57, %v62_v55 }
  0xab   :  { %v86_v62 = vmul.f32 %v275_v56, %v75_v58 }
  0xac   :  { %v339_v63 = vpop.eup %338  ;;  %v85_v4 = vmul.f32 %v275_v56, %v74_v59 }
  0xad   :  { %v341_v5 = vpop.eup %340  ;;  %v97_v1 = vadd.f32 %v276_v60, %v86_v62  ;;  %v77_v6 = vmul.f32 %v339_v63, %v65_v61 }
  0xae   :  { %v96_v7 = vadd.f32 %v276_v60, %v85_v4  ;;  %v76_v8 = vmul.f32 %v341_v5, %v64_v3 }
  0xaf   :  { %v88_v9 = vmul.f32 %v275_v56, %v77_v6 }
  0xb0   :  { %v100_v10 = vpack.c.bf16 %v97_v1, %v96_v7  ;;  %v87_v11 = vmul.f32 %v275_v56, %v76_v8 }
  0xb1   :  { %v99_v12 = vadd.f32 %v276_v60, %v88_v9 }
  0xb2   :  { %243 = vmatmul.mubr.bf16.vlgmr.msra.gmra.mrb[0].mxu0 %v100_v10  ;;  %v98_v13 = vadd.f32 %v276_v60, %v87_v11 }
  0xb4   :  { %v101_v14 = vpack.c.bf16 %v99_v12, %v98_v13 }
  0xb6   :  { %253 = vmatmul.mubr.bf16.vlgmr.msra.gmra.mrb[0].mxu1 %v101_v14 }
 0x185   :  { %v244_v20 = vpop.f32.mrb[0].mxu0 }
 0x186   :  { %v245_v21 = vadd.f32 %v244_v20, %v123_v18  ;;  %v246_v22 = vpop.f32.mrb[1].mxu0 }
 0x187   :  { %v247_v23 = vadd.f32 %v246_v22, %v127_v19  ;;  %v248_v24 = vpop.f32.mrb[2].mxu0 }
 0x188   :  { %263 = vst [vmem:[%s495_s5] sm:$0xff] %v245_v21  ;;  %v249_v25 = vadd.f32 %v248_v24, %v123_v18  ;;  %v250_v26 = vpop.f32.mrb[3].mxu0 }
 0x189   :  { %264 = vst [vmem:[%s495_s5 + $0x8] sm:$0xff] %v247_v23  ;;  %v251_v27 = vadd.f32 %v250_v26, %v127_v19  ;;  %v254_v28 = vpop.f32.mrb[0].mxu1 }
 0x18a   :  { %265 = vst [vmem:[%s495_s5 + $0x10] sm:$0xff] %v249_v25  ;;  %v255_v29 = vadd.f32 %v254_v28, %v123_v18  ;;  %v256_v30 = vpop.f32.mrb[1].mxu1 }
 0x18b   :  { %266 = vst [vmem:[%s495_s5 + $0x18] sm:$0xff] %v251_v27  ;;  %v257_v31 = vadd.f32 %v256_v30, %v127_v19  ;;  %v258_v32 = vpop.f32.mrb[2].mxu1 }
 0x18c   :  { %267 = vst [vmem:[%s495_s5 + $0x20] sm:$0xff] %v255_v29  ;;  %v259_v33 = vadd.f32 %v258_v32, %v123_v18  ;;  %v260_v34 = vpop.f32.mrb[3].mxu1 }
 0x18d   :  { %268 = vst [vmem:[%s495_s5 + $0x28] sm:$0xff] %v257_v31  ;;  %v261_v35 = vadd.f32 %v260_v34, %v127_v19 }
 0x18e   :  { %269 = vst [vmem:[%s495_s5 + $0x30] sm:$0xff] %v259_v33 }
 0x18f   :  { %270 = vst [vmem:[%s495_s5 + $0x38] sm:$0xff] %v261_v35 }

// kernel: volo_forward.66
= control target key start
LH: loop header
LB: loop body
LE: loop exit
PB: predicated region body
PF: predicated region fallthrough
CT: control target
= control target key end

     0   :  { %vm57_vm0 = vcmask 130048   ;;  %v1398_v0 = vmov 0.0   ;;  %vm1399_vm1 = vmmov 0   ;;  %s1788_s1 = inlined_call_operand.vmem [shape: bf16[8,16,16], index: 1, kind: input, shape index: {}]   ;;  %s1789_s0 = inlined_call_operand.vmem [shape: bf16[8,16,16], index: 0, kind: input, shape index: {}]   ;;  %s1790_s2 = inlined_call_operand.vmem [shape: bf16[8,16,16], index: 2, kind: input, shape index: {}]   ;;  %s1791_s3 = inlined_call_operand.vmem [shape: f32[8,16,16], index: 3, kind: output, shape index: {}]  }
   0x1   :  { %1212 = vmatprep.subr.bf16.mxu0 %v1398_v0  ;;  %1218 = vmatprep.subr.bf16.mxu1 %v1398_v0  ;;  %v1310_v1 = vld [vmem:[%s1788_s1] sm:$0xff]   ;;  %v1311_v2 = vld [vmem:[%s1788_s1 + $0x8] sm:$0xff]   ;;  %v1314_v5 = vld [vmem:[%s1788_s1 + $0x10] sm:$0xff]  }
   0x2   :  { %1214 = vmatprep.mubr.msk.bf16.mxu0 %vm1399_vm1, %v1398_v0  ;;  %1220 = vmatprep.mubr.msk.bf16.mxu1 %vm1399_vm1, %v1398_v0  ;;  %v62_v3 = vsel %vm57_vm0, %v1310_v1, 0  ;;  %v119_v4 = vsel %vm57_vm0, %v1311_v2, 0  ;;  %v1315_v6 = vld [vmem:[%s1788_s1 + $0x18] sm:$0xff]   ;;  %v1312_v7 = vld [vmem:[%s1789_s0] sm:$0xff]   ;;  %v1313_v8 = vld [vmem:[%s1789_s0 + $0x8] sm:$0xff]   ;;  %v176_v9 = vsel %vm57_vm0, %v1314_v5, 0 }
   0x3   :  { %1213 = vmatpush3.bf16.xpose.msra.mxu0 %v62_v3  ;;  %1219 = vmatpush3.bf16.xpose.msra.mxu1 %v119_v4  ;;  %v233_v10 = vsel %vm57_vm0, %v1315_v6, 0  ;;  %v1317_v11 = vld [vmem:[%s1788_s1 + $0x20] sm:$0xff]   ;;  %v1319_v12 = vld [vmem:[%s1788_s1 + $0x28] sm:$0xff]   ;;  %v1316_v13 = vld [vmem:[%s1789_s0 + $0x10] sm:$0xff]  }
   0x4   :  { %1224 = vmatprep.subr.bf16.mxu0 %v1398_v0  ;;  %1230 = vmatprep.subr.bf16.mxu1 %v1398_v0  ;;  %v1318_v14 = vld [vmem:[%s1789_s0 + $0x18] sm:$0xff]   ;;  %v290_v15 = vsel %vm57_vm0, %v1317_v11, 0  ;;  %v347_v16 = vsel %vm57_vm0, %v1319_v12, 0  ;;  %v1321_v17 = vld [vmem:[%s1788_s1 + $0x30] sm:$0xff]   ;;  %v1320_v19 = vld [vmem:[%s1789_s0 + $0x20] sm:$0xff]  }
   0x5   :  { %v1323_v18 = vld [vmem:[%s1788_s1 + $0x38] sm:$0xff]   ;;  %v1322_v20 = vld [vmem:[%s1789_s0 + $0x28] sm:$0xff]   ;;  %v404_v21 = vsel %vm57_vm0, %v1321_v17, 0  ;;  %v1324_v23 = vld [vmem:[%s1789_s0 + $0x30] sm:$0xff]  }
   0x6   :  { %v461_v22 = vsel %vm57_vm0, %v1323_v18, 0  ;;  %v1325_v24 = vld [vmem:[%s1789_s0 + $0x38] sm:$0xff]  }
   0xa   :  { %1215 = vmatmul.mubr.msk.bf16.vlgmr.msra.gmra.mrb[0].mxu0 %vm57_vm0, %v1312_v7  ;;  %1221 = vmatmul.mubr.msk.bf16.vlgmr.msra.gmra.mrb[0].mxu1 %vm57_vm0, %v1313_v8 }
   0xb   :  { %1225 = vmatpush3.bf16.xpose.msra.mxu0 %v176_v9  ;;  %1231 = vmatpush3.bf16.xpose.msra.mxu1 %v233_v10 }
   0xc   :  { %1226 = vmatprep.mubr.msk.bf16.mxu0 %vm1399_vm1, %v1398_v0  ;;  %1236 = vmatprep.subr.bf16.mxu0 %v1398_v0 }
   0xd   :  { %1232 = vmatprep.mubr.msk.bf16.mxu1 %vm1399_vm1, %v1398_v0  ;;  %1242 = vmatprep.subr.bf16.mxu1 %v1398_v0 }
  0x12   :  { %1227 = vmatmul.mubr.msk.bf16.vlgmr.msra.gmra.mrb[4].mxu0 %vm57_vm0, %v1316_v13  ;;  %1233 = vmatmul.mubr.msk.bf16.vlgmr.msra.gmra.mrb[4].mxu1 %vm57_vm0, %v1318_v14 }
  0x13   :  { %1237 = vmatpush3.bf16.xpose.msra.mxu0 %v290_v15  ;;  %1243 = vmatpush3.bf16.xpose.msra.mxu1 %v347_v16 }
  0x14   :  { %1238 = vmatprep.mubr.msk.bf16.mxu0 %vm1399_vm1, %v1398_v0  ;;  %1248 = vmatprep.subr.bf16.mxu0 %v1398_v0 }
  0x15   :  { %1244 = vmatprep.mubr.msk.bf16.mxu1 %vm1399_vm1, %v1398_v0  ;;  %1254 = vmatprep.subr.bf16.mxu1 %v1398_v0 }
  0x1a   :  { %1239 = vmatmul.mubr.msk.bf16.vlgmr.msra.gmra.mrb[8].mxu0 %vm57_vm0, %v1320_v19  ;;  %1245 = vmatmul.mubr.msk.bf16.vlgmr.msra.gmra.mrb[8].mxu1 %vm57_vm0, %v1322_v20 }
  0x1b   :  { %1249 = vmatpush3.bf16.xpose.msra.mxu0 %v404_v21  ;;  %1255 = vmatpush3.bf16.xpose.msra.mxu1 %v461_v22 }
  0x1c   :  { %1250 = vmatprep.mubr.msk.bf16.mxu0 %vm1399_vm1, %v1398_v0  ;;  %1256 = vmatprep.mubr.msk.bf16.mxu1 %vm1399_vm1, %v1398_v0 }
  0x1d   :  { %1260 = vmatprep.subr.bf16.mxu0 %v1398_v0  ;;  %1266 = vmatprep.subr.bf16.mxu1 %v1398_v0 }
  0x22   :  { %1251 = vmatmul.mubr.msk.bf16.vlgmr.msra.gmra.mrb[12].mxu0 %vm57_vm0, %v1324_v23  ;;  %1257 = vmatmul.mubr.msk.bf16.vlgmr.msra.gmra.mrb[12].mxu1 %vm57_vm0, %v1325_v24 }
  0x23   :  { %1262 = vmatprep.mubr.msk.bf16.mxu0 %vm1399_vm1, %v1398_v0  ;;  %1268 = vmatprep.mubr.msk.bf16.mxu1 %vm1399_vm1, %v1398_v0 }
  0xdd   :  { %v98_v25 = vpop.f32.mrb[0].mxu0  ;;  %v155_v27 = vpop.f32.mrb[0].mxu1 }
  0xde   :  { %v1514_v26 = vmul.f32 0.25, %v98_v25  ;;  %v1216_v28 = vpop.f32.mrb[1].mxu0  ;;  %v1516_v29 = vmul.f32 0.25, %v155_v27  ;;  %v1222_v31 = vpop.f32.mrb[1].mxu1 }
  0xdf   :  { %v101_v30 = vpop.f32.mrb[2].mxu0  ;;  %v158_v34 = vpop.f32.mrb[2].mxu1 }
  0xe0   :  { %v1518_v32 = vmul.f32 0.25, %v101_v30  ;;  %v1217_v33 = vpop.f32.mrb[3].mxu0  ;;  %v520_v35 = vsel %vm57_vm0, %v1514_v26, -inf  ;;  %v1522_v36 = vmul.f32 0.25, %v158_v34  ;;  %v526_v37 = vsel %vm57_vm0, %v1516_v29, -inf  ;;  %v1223_v38 = vpop.f32.mrb[3].mxu1 }
  0xe1   :  { %521 = vmax.xlane.f32.xlu0 %v520_v35  ;;  %527 = vmax.xlane.f32.xlu1 %v526_v37 }
  0xe2   :  { %v529_v39 = vsel %vm57_vm0, %v1522_v36, -inf  ;;  %v523_v40 = vsel %vm57_vm0, %v1518_v32, -inf }
  0xe5   :  { %524 = vmax.xlane.f32.xlu0 %v523_v40  ;;  %v212_v41 = vpop.f32.mrb[4].mxu0  ;;  %530 = vmax.xlane.f32.xlu1 %v529_v39  ;;  %v269_v44 = vpop.f32.mrb[4].mxu1 }
  0xe6   :  { %v1530_v42 = vmul.f32 0.25, %v212_v41  ;;  %v1228_v43 = vpop.f32.mrb[5].mxu0  ;;  %v1532_v46 = vmul.f32 0.25, %v269_v44  ;;  %v1234_v47 = vpop.f32.mrb[5].mxu1 }
  0xe7   :  { %v215_v45 = vpop.f32.mrb[6].mxu0  ;;  %v272_v51 = vpop.f32.mrb[6].mxu1 }
  0xe8   :  { %v1534_v48 = vmul.f32 0.25, %v215_v45  ;;  %v1229_v49 = vpop.f32.mrb[7].mxu0  ;;  %v532_v50 = vsel %vm57_vm0, %v1530_v42, -inf  ;;  %v1538_v52 = vmul.f32 0.25, %v272_v51  ;;  %v1235_v53 = vpop.f32.mrb[7].mxu1  ;;  %v538_v55 = vsel %vm57_vm0, %v1532_v46, -inf }
  0xe9   :  { %533 = vmax.xlane.f32.xlu0 %v532_v50 }
  0xea   :  { %v535_v54 = vsel %vm57_vm0, %v1534_v48, -inf  ;;  %v541_v56 = vsel %vm57_vm0, %v1538_v52, -inf }
  0xeb   :  { %536 = vmax.xlane.f32.xlu1 %v535_v54 }
  0xed   :  { %539 = vmax.xlane.f32.xlu0 %v538_v55  ;;  %v326_v57 = vpop.f32.mrb[8].mxu0  ;;  %v383_v60 = vpop.f32.mrb[8].mxu1 }
  0xee   :  { %v1546_v58 = vmul.f32 0.25, %v326_v57  ;;  %v1240_v59 = vpop.f32.mrb[9].mxu0  ;;  %v1548_v62 = vmul.f32 0.25, %v383_v60  ;;  %v1246_v63 = vpop.f32.mrb[9].mxu1 }
  0xef   :  { %542 = vmax.xlane.f32.xlu1 %v541_v56  ;;  %v329_v61 = vpop.f32.mrb[10].mxu0  ;;  %v386_v4 = vpop.f32.mrb[10].mxu1 }
  0xf0   :  { %v1550_v1 = vmul.f32 0.25, %v329_v61  ;;  %v1241_v2 = vpop.f32.mrb[11].mxu0  ;;  %v544_v3 = vsel %vm57_vm0, %v1546_v58, -inf  ;;  %v1554_v5 = vmul.f32 0.25, %v386_v4  ;;  %v1247_v6 = vpop.f32.mrb[11].mxu1  ;;  %v550_v8 = vsel %vm57_vm0, %v1548_v62, -inf }
  0xf1   :  { %545 = vmax.xlane.f32.xlu0 %v544_v3 }
  0xf2   :  { %v547_v7 = vsel %vm57_vm0, %v1550_v1, -inf  ;;  %v553_v9 = vsel %vm57_vm0, %v1554_v5, -inf }
  0xf3   :  { %548 = vmax.xlane.f32.xlu1 %v547_v7 }
  0xf5   :  { %551 = vmax.xlane.f32.xlu0 %v550_v8  ;;  %v440_v10 = vpop.f32.mrb[12].mxu0  ;;  %v497_v13 = vpop.f32.mrb[12].mxu1 }
  0xf6   :  { %v1562_v11 = vmul.f32 0.25, %v440_v10  ;;  %v1252_v12 = vpop.f32.mrb[13].mxu0  ;;  %v1564_v15 = vmul.f32 0.25, %v497_v13  ;;  %v1258_v16 = vpop.f32.mrb[13].mxu1 }
  0xf7   :  { %554 = vmax.xlane.f32.xlu1 %v553_v9  ;;  %v443_v14 = vpop.f32.mrb[14].mxu0  ;;  %v500_v20 = vpop.f32.mrb[14].mxu1 }
  0xf8   :  { %v1566_v17 = vmul.f32 0.25, %v443_v14  ;;  %v1253_v18 = vpop.f32.mrb[15].mxu0  ;;  %v556_v19 = vsel %vm57_vm0, %v1562_v11, -inf  ;;  %v1570_v21 = vmul.f32 0.25, %v500_v20  ;;  %v1259_v22 = vpop.f32.mrb[15].mxu1  ;;  %v562_v24 = vsel %vm57_vm0, %v1564_v15, -inf }
  0xf9   :  { %557 = vmax.xlane.f32.xlu0 %v556_v19 }
  0xfa   :  { %v559_v23 = vsel %vm57_vm0, %v1566_v17, -inf  ;;  %v565_v25 = vsel %vm57_vm0, %v1570_v21, -inf }
  0xfb   :  { %560 = vmax.xlane.f32.xlu1 %v559_v23 }
  0xfd   :  { %563 = vmax.xlane.f32.xlu0 %v562_v24 }
  0xff   :  { %566 = vmax.xlane.f32.xlu1 %v565_v25 }
 0x16e   :  { %v522_v27 = vpop.xlane.xlu0 %521  ;;  %v528_v28 = vpop.xlane.xlu1 %527 }
 0x16f   :  { %v568_v30 = vsub.f32 %v1514_v26, %v522_v27  ;;  %v570_v31 = vsub.f32 %v1516_v29, %v528_v28 }
 0x171   :  { %v584_v33 = vmul.f32 1.442695, %v568_v30  ;;  %v588_v34 = vmul.f32 1.442695, %v570_v31 }
 0x172   :  { %v525_v35 = vpop.xlane.xlu0 %524  ;;  %v531_v37 = vpop.xlane.xlu1 %530 }
 0x173   :  { %1334 = vpow2.f32 %v584_v33  ;;  %v569_v38 = vsub.f32 %v1518_v32, %v525_v35  ;;  %v571_v39 = vsub.f32 %v1522_v36, %v531_v37 }
 0x174   :  { %1336 = vpow2.f32 %v588_v34 }
 0x175   :  { %v586_v40 = vmul.f32 1.442695, %v569_v38  ;;  %v590_v41 = vmul.f32 1.442695, %v571_v39 }
 0x176   :  { %v534_v43 = vpop.xlane.xlu0 %533 }
 0x177   :  { %1338 = vpow2.f32 %v586_v40  ;;  %v572_v44 = vsub.f32 %v1530_v42, %v534_v43 }
 0x178   :  { %v537_v45 = vpop.xlane.xlu1 %536  ;;  %1340 = vpow2.f32 %v590_v41 }
 0x179   :  { %v592_v26 = vmul.f32 1.442695, %v572_v44  ;;  %v573_v29 = vsub.f32 %v1534_v48, %v537_v45 }
 0x17a   :  { %v540_v47 = vpop.xlane.xlu0 %539 }
 0x17b   :  { %1342 = vpow2.f32 %v592_v26  ;;  %v594_v49 = vmul.f32 1.442695, %v573_v29  ;;  %v574_v50 = vsub.f32 %v1532_v46, %v540_v47  ;;  %v1326_v47 = vld [vmem:[%s1790_s2] sm:$0xff]  }
 0x17c   :  { %v543_v32 = vpop.xlane.xlu1 %542  ;;  %1261 = vmatpush3.bf16.msra.mxu0 %v1326_v47 }
 0x17d   :  { %v1585_v51 = vpop.eup %1334  ;;  %1344 = vpow2.f32 %v594_v49  ;;  %v596_v36 = vmul.f32 1.442695, %v574_v50  ;;  %v575_v53 = vsub.f32 %v1538_v52, %v543_v32  ;;  %1272 = vmatprep.subr.bf16.mxu0 %v1398_v0  ;;  %v1327_v49 = vld [vmem:[%s1790_s2 + $0x8] sm:$0xff]  }
 0x17e   :  { %v546_v54 = vpop.xlane.xlu0 %545  ;;  %v616_v42 = vsel %vm57_vm0, %v1585_v51, 0.0  ;;  %v1590_v55 = vpop.eup %1336  ;;  %1267 = vmatpush3.bf16.msra.mxu1 %v1327_v49 }
 0x17f   :  { %1346 = vpow2.f32 %v596_v36  ;;  %v598_v48 = vmul.f32 1.442695, %v575_v53  ;;  %v576_v56 = vsub.f32 %v1546_v58, %v546_v54  ;;  %617 = vadd.xlane.f32.xlu0 %v616_v42  ;;  %v622_v52 = vsel %vm57_vm0, %v1590_v55, 0.0  ;;  %1278 = vmatprep.subr.bf16.mxu1 %v1398_v0 }
 0x180   :  { %v549_v57 = vpop.xlane.xlu1 %548 }
 0x181   :  { %v1593_v46 = vpop.eup %1338  ;;  %1348 = vpow2.f32 %v598_v48  ;;  %v600_v59 = vmul.f32 1.442695, %v576_v56  ;;  %v577_v60 = vsub.f32 %v1550_v1, %v549_v57 }
 0x182   :  { %v552_v61 = vpop.xlane.xlu0 %551  ;;  %v619_v63 = vsel %vm57_vm0, %v1593_v46, 0.0  ;;  %v1600_v2 = vpop.eup %1340 }
 0x183   :  { %1350 = vpow2.f32 %v600_v59  ;;  %v602_v3 = vmul.f32 1.442695, %v577_v60  ;;  %v578_v58 = vsub.f32 %v1548_v62, %v552_v61  ;;  %623 = vadd.xlane.f32.xlu0 %v622_v52  ;;  %620 = vadd.xlane.f32.xlu1 %v619_v63  ;;  %v625_v10 = vsel %vm57_vm0, %v1600_v2, 0.0 }
 0x184   :  { %v555_v4 = vpop.xlane.xlu1 %554 }
 0x185   :  { %v1603_v6 = vpop.eup %1342  ;;  %1352 = vpow2.f32 %v602_v3  ;;  %v604_v1 = vmul.f32 1.442695, %v578_v58  ;;  %v579_v7 = vsub.f32 %v1554_v5, %v555_v4  ;;  %v1328_v3 = vld [vmem:[%s1790_s2 + $0x10] sm:$0xff]  }
 0x186   :  { %v558_v8 = vpop.xlane.xlu0 %557  ;;  %v628_v9 = vsel %vm57_vm0, %v1603_v6, 0.0 }
 0x187   :  { %v1610_v12 = vpop.eup %1344  ;;  %1354 = vpow2.f32 %v604_v1  ;;  %v606_v62 = vmul.f32 1.442695, %v579_v7  ;;  %v580_v13 = vsub.f32 %v1562_v11, %v558_v8  ;;  %629 = vadd.xlane.f32.xlu0 %v628_v9  ;;  %626 = vadd.xlane.f32.xlu1 %v625_v10 }
 0x188   :  { %v561_v14 = vpop.xlane.xlu1 %560  ;;  %v631_v22 = vsel %vm57_vm0, %v1610_v12, 0.0 }
 0x189   :  { %v1613_v16 = vpop.eup %1346  ;;  %1356 = vpow2.f32 %v606_v62  ;;  %v608_v5 = vmul.f32 1.442695, %v580_v13  ;;  %v581_v18 = vsub.f32 %v1566_v17, %v561_v14 }
 0x18a   :  { %v564_v19 = vpop.xlane.xlu0 %563  ;;  %v634_v20 = vsel %vm57_vm0, %v1613_v16, 0.0 }
 0x18b   :  { %v1620_v23 = vpop.eup %1348  ;;  %1358 = vpow2.f32 %v608_v5  ;;  %v610_v11 = vmul.f32 1.442695, %v581_v18  ;;  %v582_v24 = vsub.f32 %v1564_v15, %v564_v19  ;;  %635 = vadd.xlane.f32.xlu0 %v634_v20  ;;  %632 = vadd.xlane.f32.xlu1 %v631_v22  ;;  %v1330_v18 = vld [vmem:[%s1790_s2 + $0x20] sm:$0xff]  }
 0x18c   :  { %v567_v25 = vpop.xlane.xlu1 %566  ;;  %v637_v31 = vsel %vm57_vm0, %v1620_v23, 0.0 }
 0x18d   :  { %v1623_v27 = vpop.eup %1350  ;;  %1360 = vpow2.f32 %v610_v11  ;;  %v612_v17 = vmul.f32 1.442695, %v582_v24  ;;  %v583_v28 = vsub.f32 %v1570_v21, %v567_v25  ;;  %v1331_v25 = vld [vmem:[%s1790_s2 + $0x28] sm:$0xff]  }
 0x18e   :  { %v640_v30 = vsel %vm57_vm0, %v1623_v27, 0.0 }
 0x18f   :  { %v1630_v33 = vpop.eup %1352  ;;  %1362 = vpow2.f32 %v612_v17  ;;  %v614_v34 = vmul.f32 1.442695, %v583_v28  ;;  %641 = vadd.xlane.f32.xlu0 %v640_v30  ;;  %638 = vadd.xlane.f32.xlu1 %v637_v31 }
 0x190   :  { %v643_v21 = vsel %vm57_vm0, %v1630_v33, 0.0 }
 0x191   :  { %v1632_v15 = vpop.eup %1354  ;;  %1364 = vpow2.f32 %v614_v34  ;;  %v1332_v34 = vld [vmem:[%s1790_s2 + $0x30] sm:$0xff]  }
 0x192   :  { %v646_v35 = vsel %vm57_vm0, %v1632_v15, 0.0 }
 0x193   :  { %v1638_v37 = vpop.eup %1356  ;;  %647 = vadd.xlane.f32.xlu0 %v646_v35  ;;  %644 = vadd.xlane.f32.xlu1 %v643_v21 }
 0x194   :  { %v649_v40 = vsel %vm57_vm0, %v1638_v37, 0.0 }
 0x195   :  { %v1640_v38 = vpop.eup %1358 }
 0x196   :  { %v652_v39 = vsel %vm57_vm0, %v1640_v38, 0.0 }
 0x197   :  { %v1646_v41 = vpop.eup %1360  ;;  %653 = vadd.xlane.f32.xlu0 %v652_v39  ;;  %650 = vadd.xlane.f32.xlu1 %v649_v40  ;;  %v1333_v40 = vld [vmem:[%s1790_s2 + $0x38] sm:$0xff]  }
 0x198   :  { %v655_v45 = vsel %vm57_vm0, %v1646_v41, 0.0 }
 0x199   :  { %v1648_v43 = vpop.eup %1362 }
 0x19a   :  { %v658_v44 = vsel %vm57_vm0, %v1648_v43, 0.0 }
 0x19b   :  { %v1654_v26 = vpop.eup %1364  ;;  %659 = vadd.xlane.f32.xlu0 %v658_v44  ;;  %656 = vadd.xlane.f32.xlu1 %v655_v45 }
 0x19c   :  { %v661_v29 = vsel %vm57_vm0, %v1654_v26, 0.0 }
 0x19f   :  { %662 = vadd.xlane.f32.xlu1 %v661_v29 }
 0x20c   :  { %v618_v50 = vpop.xlane.xlu0 %617 }
 0x20d   :  { %1366 = vrcp.f32 %v618_v50 }
 0x210   :  { %v624_v32 = vpop.xlane.xlu0 %623  ;;  %v621_v36 = vpop.xlane.xlu1 %620 }
 0x211   :  { %1368 = vrcp.f32 %v621_v36 }
 0x212   :  { %1370 = vrcp.f32 %v624_v32 }
 0x214   :  { %v630_v53 = vpop.xlane.xlu0 %629  ;;  %v627_v54 = vpop.xlane.xlu1 %626 }
 0x215   :  { %1372 = vrcp.f32 %v627_v54 }
 0x216   :  { %1374 = vrcp.f32 %v630_v53 }
 0x217   :  { %v1367_v56 = vpop.eup %1366 }
 0x218   :  { %v636_v42 = vpop.xlane.xlu0 %635  ;;  %v633_v48 = vpop.xlane.xlu1 %632  ;;  %v680_v61 = vmul.f32 %v1367_v56, %v1585_v51 }
 0x219   :  { %1376 = vrcp.f32 %v633_v48 }
 0x21a   :  { %1378 = vrcp.f32 %v636_v42 }
 0x21b   :  { %v1369_v57 = vpop.eup %1368 }
 0x21c   :  { %v642_v59 = vpop.xlane.xlu0 %641  ;;  %v639_v60 = vpop.xlane.xlu1 %638  ;;  %v681_v52 = vmul.f32 %v1369_v57, %v1593_v46  ;;  %v1329_v46 = vld [vmem:[%s1790_s2 + $0x18] sm:$0xff]  }
 0x21d   :  { %v1371_v63 = vpop.eup %1370  ;;  %1380 = vrcp.f32 %v639_v60 }
 0x21e   :  { %v696_v58 = vpack.c.bf16 %v681_v52, %v680_v61  ;;  %1382 = vrcp.f32 %v642_v59  ;;  %v682_v8 = vmul.f32 %v1371_v63, %v1590_v55 }
 0x21f   :  { %v1373_v4 = vpop.eup %1372 }
 0x220   :  { %v648_v1 = vpop.xlane.xlu0 %647  ;;  %v645_v7 = vpop.xlane.xlu1 %644  ;;  %v683_v9 = vmul.f32 %v1373_v4, %v1600_v2  ;;  %1263 = vmatmul.mubr.msk.bf16.vlgmr.msra.gmra.mrb[16].mxu0 %vm57_vm0, %v696_v58 }
 0x221   :  { %v1375_v51 = vpop.eup %1374  ;;  %1384 = vrcp.f32 %v645_v7  ;;  %1273 = vmatpush3.bf16.msra.mxu0 %v1328_v3  ;;  %1274 = vmatprep.mubr.msk.bf16.mxu0 %vm1399_vm1, %v1398_v0 }
 0x222   :  { %v697_v10 = vpack.c.bf16 %v683_v9, %v682_v8  ;;  %1284 = vmatprep.subr.bf16.mxu0 %v1398_v0  ;;  %1386 = vrcp.f32 %v648_v1  ;;  %v684_v2 = vmul.f32 %v1375_v51, %v1603_v6 }
 0x223   :  { %v1377_v62 = vpop.eup %1376 }
 0x224   :  { %v654_v55 = vpop.xlane.xlu0 %653  ;;  %v651_v13 = vpop.xlane.xlu1 %650  ;;  %v685_v14 = vmul.f32 %v1377_v62, %v1610_v12  ;;  %1269 = vmatmul.mubr.msk.bf16.vlgmr.msra.gmra.mrb[16].mxu1 %vm57_vm0, %v697_v10 }
 0x225   :  { %v1379_v5 = vpop.eup %1378  ;;  %1279 = vmatpush3.bf16.msra.mxu1 %v1329_v46  ;;  %1388 = vrcp.f32 %v651_v13  ;;  %1280 = vmatprep.mubr.msk.bf16.mxu1 %vm1399_vm1, %v1398_v0 }
 0x226   :  { %v698_v19 = vpack.c.bf16 %v685_v14, %v684_v2  ;;  %1290 = vmatprep.subr.bf16.mxu1 %v1398_v0  ;;  %1390 = vrcp.f32 %v654_v55  ;;  %v686_v12 = vmul.f32 %v1379_v5, %v1613_v16 }
 0x227   :  { %v1381_v20 = vpop.eup %1380 }
 0x228   :  { %v660_v6 = vpop.xlane.xlu0 %659  ;;  %v657_v22 = vpop.xlane.xlu1 %656  ;;  %v687_v11 = vmul.f32 %v1381_v20, %v1620_v23  ;;  %1275 = vmatmul.mubr.msk.bf16.vlgmr.msra.gmra.mrb[20].mxu0 %vm57_vm0, %v698_v19 }
 0x229   :  { %v1383_v24 = vpop.eup %1382  ;;  %1392 = vrcp.f32 %v657_v22  ;;  %1285 = vmatpush3.bf16.msra.mxu0 %v1330_v18  ;;  %1286 = vmatprep.mubr.msk.bf16.mxu0 %vm1399_vm1, %v1398_v0 }
 0x22a   :  { %1394 = vrcp.f32 %v660_v6  ;;  %v699_v17 = vpack.c.bf16 %v687_v11, %v686_v12  ;;  %1296 = vmatprep.subr.bf16.mxu0 %v1398_v0  ;;  %v688_v23 = vmul.f32 %v1383_v24, %v1623_v27 }
 0x22b   :  { %v1385_v28 = vpop.eup %1384 }
 0x22c   :  { %v663_v16 = vpop.xlane.xlu1 %662  ;;  %v689_v30 = vmul.f32 %v1385_v28, %v1630_v33  ;;  %1281 = vmatmul.mubr.msk.bf16.vlgmr.msra.gmra.mrb[20].mxu1 %vm57_vm0, %v699_v17  ;;  %v1387_v31 = vpop.eup %1386 }
 0x22d   :  { %1396 = vrcp.f32 %v663_v16  ;;  %1291 = vmatpush3.bf16.msra.mxu1 %v1331_v25  ;;  %1292 = vmatprep.mubr.msk.bf16.mxu1 %vm1399_vm1, %v1398_v0  ;;  %v690_v27 = vmul.f32 %v1387_v31, %v1632_v15 }
 0x22e   :  { %v700_v35 = vpack.c.bf16 %v689_v30, %v688_v23  ;;  %1302 = vmatprep.subr.bf16.mxu1 %v1398_v0 }
 0x22f   :  { %v1389_v21 = vpop.eup %1388 }
 0x230   :  { %v691_v33 = vmul.f32 %v1389_v21, %v1638_v37  ;;  %1287 = vmatmul.mubr.msk.bf16.vlgmr.msra.gmra.mrb[24].mxu0 %vm57_vm0, %v700_v35  ;;  %v1391_v39 = vpop.eup %1390 }
 0x231   :  { %1297 = vmatpush3.bf16.msra.mxu0 %v1332_v34  ;;  %1298 = vmatprep.mubr.msk.bf16.mxu0 %vm1399_vm1, %v1398_v0  ;;  %v692_v47 = vmul.f32 %v1391_v39, %v1640_v38 }
 0x232   :  { %v701_v44 = vpack.c.bf16 %v691_v33, %v690_v27 }
 0x233   :  { %v1393_v45 = vpop.eup %1392 }
 0x234   :  { %v1395_v29 = vpop.eup %1394  ;;  %v693_v15 = vmul.f32 %v1393_v45, %v1646_v41  ;;  %1293 = vmatmul.mubr.msk.bf16.vlgmr.msra.gmra.mrb[24].mxu1 %vm57_vm0, %v701_v44 }
 0x235   :  { %1303 = vmatpush3.bf16.msra.mxu1 %v1333_v40  ;;  %1304 = vmatprep.mubr.msk.bf16.mxu1 %vm1399_vm1, %v1398_v0  ;;  %v694_v50 = vmul.f32 %v1395_v29, %v1648_v43 }
 0x236   :  { %v702_v49 = vpack.c.bf16 %v693_v15, %v692_v47 }
 0x237   :  { %v1397_v37 = vpop.eup %1396 }
 0x238   :  { %v695_v32 = vmul.f32 %v1397_v37, %v1654_v26  ;;  %1299 = vmatmul.mubr.msk.bf16.vlgmr.msra.gmra.mrb[28].mxu0 %vm57_vm0, %v702_v49 }
 0x23a   :  { %v703_v36 = vpack.c.bf16 %v695_v32, %v694_v50 }
 0x23c   :  { %1305 = vmatmul.mubr.msk.bf16.vlgmr.msra.gmra.mrb[28].mxu1 %vm57_vm0, %v703_v36 }
 0x2f3   :  { %v763_v38 = vpop.f32.mrb[16].mxu0 }
 0x2f4   :  { %1120 = vst.msk [vmem:[%s1791_s3] sm:$0xff] %vm57_vm0, %v763_v38  ;;  %v1264_v41 = vpop.f32.mrb[17].mxu0 }
 0x2f5   :  { %v766_v53 = vpop.f32.mrb[18].mxu0 }
 0x2f6   :  { %1121 = vst.msk [vmem:[%s1791_s3 + $0x8] sm:$0xff] %vm57_vm0, %v766_v53  ;;  %v1265_v0 = vpop.f32.mrb[19].mxu0 }
 0x2f7   :  { %v813_v43 = vpop.f32.mrb[16].mxu1 }
 0x2f8   :  { %1122 = vst.msk [vmem:[%s1791_s3 + $0x10] sm:$0xff] %vm57_vm0, %v813_v43  ;;  %v1270_v26 = vpop.f32.mrb[17].mxu1 }
 0x2f9   :  { %v816_v54 = vpop.f32.mrb[18].mxu1 }
 0x2fa   :  { %1123 = vst.msk [vmem:[%s1791_s3 + $0x18] sm:$0xff] %vm57_vm0, %v816_v54  ;;  %v1271_v42 = vpop.f32.mrb[19].mxu1 }
 0x2fb   :  { %v863_v48 = vpop.f32.mrb[20].mxu0 }
 0x2fc   :  { %1124 = vst.msk [vmem:[%s1791_s3 + $0x20] sm:$0xff] %vm57_vm0, %v863_v48  ;;  %v1276_v56 = vpop.f32.mrb[21].mxu0 }
 0x2fd   :  { %v866_v57 = vpop.f32.mrb[22].mxu0 }
 0x2fe   :  { %1125 = vst.msk [vmem:[%s1791_s3 + $0x28] sm:$0xff] %vm57_vm0, %v866_v57  ;;  %v1277_v59 = vpop.f32.mrb[23].mxu0 }
 0x2ff   :  { %v913_v60 = vpop.f32.mrb[20].mxu1 }
 0x300   :  { %1126 = vst.msk [vmem:[%s1791_s3 + $0x30] sm:$0xff] %vm57_vm0, %v913_v60  ;;  %v1282_v61 = vpop.f32.mrb[21].mxu1 }
 0x301   :  { %v916_v52 = vpop.f32.mrb[22].mxu1 }
 0x302   :  { %1127 = vst.msk [vmem:[%s1791_s3 + $0x38] sm:$0xff] %vm57_vm0, %v916_v52  ;;  %v1283_v63 = vpop.f32.mrb[23].mxu1 }
 0x303   :  { %v963_v3 = vpop.f32.mrb[24].mxu0 }
 0x304   :  { %1128 = vst.msk [vmem:[%s1791_s3 + $0x40] sm:$0xff] %vm57_vm0, %v963_v3  ;;  %v1288_v58 = vpop.f32.mrb[25].mxu0 }
 0x305   :  { %v966_v4 = vpop.f32.mrb[26].mxu0 }
 0x306   :  { %1129 = vst.msk [vmem:[%s1791_s3 + $0x48] sm:$0xff] %vm57_vm0, %v966_v4  ;;  %v1289_v1 = vpop.f32.mrb[27].mxu0 }
 0x307   :  { %v1013_v7 = vpop.f32.mrb[24].mxu1 }
 0x308   :  { %1130 = vst.msk [vmem:[%s1791_s3 + $0x50] sm:$0xff] %vm57_vm0, %v1013_v7  ;;  %v1294_v8 = vpop.f32.mrb[25].mxu1 }
 0x309   :  { %v1016_v9 = vpop.f32.mrb[26].mxu1 }
 0x30a   :  { %1131 = vst.msk [vmem:[%s1791_s3 + $0x58] sm:$0xff] %vm57_vm0, %v1016_v9  ;;  %v1295_v51 = vpop.f32.mrb[27].mxu1 }
 0x30b   :  { %v1063_v46 = vpop.f32.mrb[28].mxu0 }
 0x30c   :  { %1132 = vst.msk [vmem:[%s1791_s3 + $0x60] sm:$0xff] %vm57_vm0, %v1063_v46  ;;  %v1300_v10 = vpop.f32.mrb[29].mxu0 }
 0x30d   :  { %v1066_v62 = vpop.f32.mrb[30].mxu0 }
 0x30e   :  { %1133 = vst.msk [vmem:[%s1791_s3 + $0x68] sm:$0xff] %vm57_vm0, %v1066_v62  ;;  %v1301_v55 = vpop.f32.mrb[31].mxu0 }
 0x30f   :  { %v1113_v13 = vpop.f32.mrb[28].mxu1 }
 0x310   :  { %1134 = vst.msk [vmem:[%s1791_s3 + $0x70] sm:$0xff] %vm57_vm0, %v1113_v13  ;;  %v1306_v2 = vpop.f32.mrb[29].mxu1 }
 0x311   :  { %v1116_v14 = vpop.f32.mrb[30].mxu1 }
 0x312   :  { %1135 = vst.msk [vmem:[%s1791_s3 + $0x78] sm:$0xff] %vm57_vm0, %v1116_v14  ;;  %v1307_v5 = vpop.f32.mrb[31].mxu1 }

// kernel: volo_forward.67
= control target key start
LH: loop header
LB: loop body
LE: loop exit
PB: predicated region body
PF: predicated region fallthrough
CT: control target
= control target key end

     0   :  { %s303_s1 = inlined_call_operand.vmem [shape: bf16[128,128], index: 1, kind: input, shape index: {}]   ;;  %s304_s0 = inlined_call_operand.vmem [shape: bf16[32,128], index: 0, kind: input, shape index: {}]   ;;  %s305_s2 = inlined_call_operand.vmem [shape: f32[1,128], index: 2, kind: input, shape index: {}]   ;;  %s306_s3 = inlined_call_operand.vmem [shape: f32[32,128], index: 3, kind: input, shape index: {}]   ;;  %s307_s4 = inlined_call_operand.vmem [shape: f32[32,128], index: 4, kind: output, shape index: {}]  }
   0x1   :  { %v211_v0 = vld [vmem:[%s303_s1] sm:$0xff]   ;;  %v212_v1 = vld [vmem:[%s303_s1 + $0x8] sm:$0xff]   ;;  %v213_v2 = vld [vmem:[%s303_s1 + $0x10] sm:$0xff]  }
   0x2   :  { %191 = vmatprep.subr.bf16.mxu0 %v211_v0  ;;  %v214_v3 = vld [vmem:[%s303_s1 + $0x18] sm:$0xff]   ;;  %v219_v4 = vld [vmem:[%s304_s0] sm:$0xff]   ;;  %v216_v6 = vld [vmem:[%s303_s1 + $0x28] sm:$0xff]  }
   0x3   :  { %192 = vmatpush3.bf16.msra.mxu0 %v211_v0  ;;  %207 = vmatprep.mubr.bf16.mxu0 %v219_v4  ;;  %v215_v5 = vld [vmem:[%s303_s1 + $0x20] sm:$0xff]   ;;  %v217_v7 = vld [vmem:[%s303_s1 + $0x30] sm:$0xff]   ;;  %v218_v8 = vld [vmem:[%s303_s1 + $0x38] sm:$0xff]  }
   0x4   :  { %193 = vmatprep.subr.bf16.mxu0 %v212_v1  ;;  %v220_v9 = vld [vmem:[%s304_s0 + $0x8] sm:$0xff]   ;;  %v170_v10 = vld [vmem:[%s305_s2] ss:$0 sm:$0xff]  ;;  %v156_v12 = vld [vmem:[%s306_s3 + $0x10] sm:$0xff] }
   0x5   :  { %v154_v15 = vld [vmem:[%s306_s3] sm:$0xff]  ;;  %v157_v18 = vld [vmem:[%s306_s3 + $0x18] sm:$0xff]  ;;  %v155_v22 = vld [vmem:[%s306_s3 + $0x8] sm:$0xff] }
   0x7   :  { %194 = vmatpush3.bf16.msra.mxu0 %v212_v1 }
   0x8   :  { %195 = vmatprep.subr.bf16.mxu0 %v213_v2 }
   0xb   :  { %196 = vmatpush3.bf16.msra.mxu0 %v213_v2 }
   0xc   :  { %197 = vmatprep.subr.bf16.mxu0 %v214_v3 }
   0xf   :  { %198 = vmatpush3.bf16.msra.mxu0 %v214_v3 }
  0x10   :  { %199 = vmatprep.subr.bf16.mxu0 %v215_v5 }
  0x13   :  { %200 = vmatpush3.bf16.msra.mxu0 %v215_v5 }
  0x14   :  { %201 = vmatprep.subr.bf16.mxu0 %v216_v6 }
  0x17   :  { %202 = vmatpush3.bf16.msra.mxu0 %v216_v6 }
  0x18   :  { %203 = vmatprep.subr.bf16.mxu0 %v217_v7 }
  0x1b   :  { %204 = vmatpush3.bf16.msra.mxu0 %v217_v7 }
  0x1c   :  { %205 = vmatprep.subr.bf16.mxu0 %v218_v8 }
  0x1f   :  { %206 = vmatpush3.bf16.msra.mxu0 %v218_v8 }
  0x22   :  { %208 = vmatmul.mubr.bf16.vlgmr.msra.gmra.mrb[0].mxu0 %v220_v9 }
  0xf5   :  { %v209_v11 = vpop.f32.mrb[0].mxu0 }
  0xf6   :  { %v148_v13 = vadd.f32 %v209_v11, %v170_v10  ;;  %v139_v14 = vpop.f32.mrb[1].mxu0 }
  0xf7   :  { %v140_v16 = vadd.f32 %v170_v10, %v139_v14  ;;  %v210_v17 = vpop.f32.mrb[2].mxu0 }
  0xf8   :  { %v160_v19 = vadd.f32 %v156_v12, %v148_v13  ;;  %v151_v20 = vadd.f32 %v210_v17, %v170_v10  ;;  %v142_v21 = vpop.f32.mrb[3].mxu0 }
  0xf9   :  { %v158_v23 = vadd.f32 %v154_v15, %v140_v16  ;;  %v143_v24 = vadd.f32 %v170_v10, %v142_v21 }
  0xfa   :  { %164 = vst [vmem:[%s307_s4 + $0x10] sm:$0xff] %v160_v19  ;;  %v161_v25 = vadd.f32 %v157_v18, %v151_v20 }
  0xfb   :  { %162 = vst [vmem:[%s307_s4] sm:$0xff] %v158_v23  ;;  %v159_v26 = vadd.f32 %v155_v22, %v143_v24 }
  0xfc   :  { %165 = vst [vmem:[%s307_s4 + $0x18] sm:$0xff] %v161_v25 }
  0xfd   :  { %163 = vst [vmem:[%s307_s4 + $0x8] sm:$0xff] %v159_v26 }

// kernel: volo_forward.68
= control target key start
LH: loop header
LB: loop body
LE: loop exit
PB: predicated region body
PF: predicated region fallthrough
CT: control target
= control target key end

     0   :  { %s398_s0 = inlined_call_operand.vmem [shape: f32[32,128], index: 0, kind: input, shape index: {}]   ;;  %s399_s3 = inlined_call_operand.vmem [shape: bf16[128,128], index: 3, kind: input, shape index: {}]   ;;  %s400_s1 = inlined_call_operand.vmem [shape: f32[1,128], index: 1, kind: input, shape index: {}]   ;;  %s401_s2 = inlined_call_operand.vmem [shape: f32[1,128], index: 2, kind: input, shape index: {}]   ;;  %s402_s4 = inlined_call_operand.vmem [shape: f32[1,128], index: 4, kind: input, shape index: {}]   ;;  %s403_s5 = inlined_call_operand.vmem [shape: f32[32,128], index: 5, kind: output, shape index: {}]  }
   0x1   :  { %v320_v0 = vld [vmem:[%s398_s0 + $0x10] sm:$0xff]  ;;  %v325_v1 = vld [vmem:[%s398_s0] sm:$0xff]  ;;  %v332_v2 = vld [vmem:[%s398_s0 + $0x18] sm:$0xff] }
   0x2   :  { %29 = vadd.xlane.f32.xlu1 %v320_v0  ;;  %25 = vadd.xlane.f32.xlu0 %v325_v1  ;;  %v337_v3 = vld [vmem:[%s398_s0 + $0x8] sm:$0xff]  ;;  %v38_v5 = vmul.f32 %v325_v1, %v325_v1  ;;  %v41_v6 = vmul.f32 %v332_v2, %v332_v2  ;;  %v40_v7 = vmul.f32 %v320_v0, %v320_v0  ;;  %v271_v8 = vld [vmem:[%s399_s3] sm:$0xff]   ;;  %v273_v10 = vld [vmem:[%s399_s3 + $0x10] sm:$0xff]  }
   0x3   :  { %v39_v4 = vmul.f32 %v337_v3, %v337_v3  ;;  %251 = vmatprep.subr.bf16.mxu0 %v271_v8  ;;  %v272_v9 = vld [vmem:[%s399_s3 + $0x8] sm:$0xff]   ;;  %v274_v11 = vld [vmem:[%s399_s3 + $0x18] sm:$0xff]   ;;  %v275_v12 = vld [vmem:[%s399_s3 + $0x20] sm:$0xff]  }
   0x4   :  { %252 = vmatpush3.bf16.msra.mxu0 %v271_v8  ;;  %v276_v13 = vld [vmem:[%s399_s3 + $0x28] sm:$0xff]   ;;  %v277_v14 = vld [vmem:[%s399_s3 + $0x30] sm:$0xff]   ;;  %v278_v15 = vld [vmem:[%s399_s3 + $0x38] sm:$0xff]  }
   0x5   :  { %253 = vmatprep.subr.bf16.mxu0 %v272_v9  ;;  %v230_v47 = vld [vmem:[%s400_s1] ss:$0 sm:$0xff] }
   0x6   :  { %31 = vadd.xlane.f32.xlu1 %v332_v2  ;;  %27 = vadd.xlane.f32.xlu0 %v337_v3  ;;  %v231_v51 = vld [vmem:[%s401_s2] ss:$0 sm:$0xff] }
   0x8   :  { %254 = vmatpush3.bf16.msra.mxu0 %v272_v9 }
   0x9   :  { %255 = vmatprep.subr.bf16.mxu0 %v273_v10 }
   0xa   :  { %44 = vadd.xlane.f32.xlu1 %v39_v4  ;;  %42 = vadd.xlane.f32.xlu0 %v38_v5 }
   0xc   :  { %256 = vmatpush3.bf16.msra.mxu0 %v273_v10 }
   0xd   :  { %257 = vmatprep.subr.bf16.mxu0 %v274_v11 }
   0xe   :  { %48 = vadd.xlane.f32.xlu1 %v41_v6  ;;  %46 = vadd.xlane.f32.xlu0 %v40_v7 }
  0x10   :  { %258 = vmatpush3.bf16.msra.mxu0 %v274_v11 }
  0x11   :  { %259 = vmatprep.subr.bf16.mxu0 %v275_v12 }
  0x14   :  { %260 = vmatpush3.bf16.msra.mxu0 %v275_v12 }
  0x15   :  { %261 = vmatprep.subr.bf16.mxu0 %v276_v13 }
  0x18   :  { %262 = vmatpush3.bf16.msra.mxu0 %v276_v13 }
  0x19   :  { %263 = vmatprep.subr.bf16.mxu0 %v277_v14 }
  0x1c   :  { %264 = vmatpush3.bf16.msra.mxu0 %v277_v14 }
  0x1d   :  { %265 = vmatprep.subr.bf16.mxu0 %v278_v15 }
  0x20   :  { %266 = vmatpush3.bf16.msra.mxu0 %v278_v15 }
  0x8f   :  { %v30_v16 = vpop.xlane.xlu1 %29  ;;  %v26_v17 = vpop.xlane.xlu0 %25 }
  0x90   :  { %v34_v20 = vmul.f32 0.015625, %v26_v17  ;;  %v36_v22 = vmul.f32 0.015625, %v30_v16 }
  0x92   :  { %v54_v26 = vmul.f32 %v34_v20, %v34_v20  ;;  %v56_v32 = vmul.f32 %v36_v22, %v36_v22  ;;  %v62_v46 = vsub.f32 %v325_v1, %v34_v20  ;;  %v64_v55 = vsub.f32 %v320_v0, %v36_v22 }
  0x93   :  { %v32_v18 = vpop.xlane.xlu1 %31  ;;  %v28_v19 = vpop.xlane.xlu0 %27 }
  0x94   :  { %v35_v21 = vmul.f32 0.015625, %v28_v19  ;;  %v37_v23 = vmul.f32 0.015625, %v32_v18 }
  0x96   :  { %v55_v27 = vmul.f32 %v35_v21, %v35_v21  ;;  %v57_v33 = vmul.f32 %v37_v23, %v37_v23  ;;  %v63_v44 = vsub.f32 %v337_v3, %v35_v21  ;;  %v65_v52 = vsub.f32 %v332_v2, %v37_v23  ;;  %v232_v2 = vld [vmem:[%s402_s4] ss:$0 sm:$0xff] }
  0x97   :  { %v45_v24 = vpop.xlane.xlu1 %44  ;;  %v43_v25 = vpop.xlane.xlu0 %42 }
  0x98   :  { %v51_v28 = vmul.f32 0.015625, %v45_v24  ;;  %v50_v29 = vmul.f32 0.015625, %v43_v25 }
  0x9a   :  { %v59_v30 = vsub.f32 %v51_v28, %v55_v27  ;;  %v58_v31 = vsub.f32 %v50_v29, %v54_v26 }
  0x9b   :  { %v49_v34 = vpop.xlane.xlu1 %48  ;;  %v47_v35 = vpop.xlane.xlu0 %46 }
  0x9c   :  { %v67_v36 = vadd.f32 1e-05, %v59_v30  ;;  %v66_v37 = vadd.f32 1e-05, %v58_v31  ;;  %v53_v38 = vmul.f32 0.015625, %v49_v34  ;;  %v52_v39 = vmul.f32 0.015625, %v47_v35 }
  0x9e   :  { %279 = vrsqrt.f32 %v67_v36  ;;  %v61_v40 = vsub.f32 %v53_v38, %v57_v33  ;;  %v60_v41 = vsub.f32 %v52_v39, %v56_v32 }
  0x9f   :  { %281 = vrsqrt.f32 %v66_v37 }
  0xa0   :  { %v69_v42 = vadd.f32 1e-05, %v61_v40  ;;  %v68_v43 = vadd.f32 1e-05, %v60_v41 }
  0xa2   :  { %283 = vrsqrt.f32 %v69_v42 }
  0xa3   :  { %285 = vrsqrt.f32 %v68_v43 }
  0xa8   :  { %v280_v45 = vpop.eup %279 }
  0xa9   :  { %v282_v48 = vpop.eup %281  ;;  %v75_v49 = vmul.f32 %v280_v45, %v63_v44 }
  0xaa   :  { %v74_v50 = vmul.f32 %v282_v48, %v62_v46 }
  0xab   :  { %v86_v53 = vmul.f32 %v230_v47, %v75_v49 }
  0xac   :  { %v284_v54 = vpop.eup %283  ;;  %v85_v56 = vmul.f32 %v230_v47, %v74_v50 }
  0xad   :  { %v286_v57 = vpop.eup %285  ;;  %v97_v58 = vadd.f32 %v231_v51, %v86_v53  ;;  %v77_v59 = vmul.f32 %v284_v54, %v65_v52 }
  0xae   :  { %v96_v60 = vadd.f32 %v231_v51, %v85_v56  ;;  %v76_v61 = vmul.f32 %v286_v57, %v64_v55 }
  0xaf   :  { %v88_v62 = vmul.f32 %v230_v47, %v77_v59 }
  0xb0   :  { %v100_v63 = vpack.c.bf16 %v97_v58, %v96_v60  ;;  %v87_v1 = vmul.f32 %v230_v47, %v76_v61 }
  0xb1   :  { %v99_v3 = vadd.f32 %v231_v51, %v88_v62 }
  0xb2   :  { %267 = vmatprep.mubr.bf16.mxu0 %v100_v63  ;;  %v98_v4 = vadd.f32 %v231_v51, %v87_v1 }
  0xb4   :  { %v101_v5 = vpack.c.bf16 %v99_v3, %v98_v4 }
  0xb6   :  { %268 = vmatmul.mubr.bf16.vlgmr.msra.gmra.mrb[0].mxu0 %v101_v5 }
 0x189   :  { %v269_v6 = vpop.f32.mrb[0].mxu0 }
 0x18a   :  { %v216_v0 = vadd.f32 %v269_v6, %v232_v2  ;;  %v207_v7 = vpop.f32.mrb[1].mxu0 }
 0x18b   :  { %v208_v8 = vadd.f32 %v232_v2, %v207_v7  ;;  %v270_v9 = vpop.f32.mrb[2].mxu0 }
 0x18c   :  { %224 = vst [vmem:[%s403_s5 + $0x10] sm:$0xff] %v216_v0  ;;  %v219_v10 = vadd.f32 %v270_v9, %v232_v2  ;;  %v210_v11 = vpop.f32.mrb[3].mxu0 }
 0x18d   :  { %222 = vst [vmem:[%s403_s5] sm:$0xff] %v208_v8  ;;  %v211_v12 = vadd.f32 %v232_v2, %v210_v11 }
 0x18e   :  { %225 = vst [vmem:[%s403_s5 + $0x18] sm:$0xff] %v219_v10 }
 0x18f   :  { %223 = vst [vmem:[%s403_s5 + $0x8] sm:$0xff] %v211_v12 }

// kernel: volo_forward.76
= control target key start
LH: loop header
LB: loop body
LE: loop exit
PB: predicated region body
PF: predicated region fallthrough
CT: control target
= control target key end

     0   :  { %v252_v0 = vmov 0.0   ;;  %vm253_vm0 = vmmov 0   ;;  %s328_s1 = inlined_call_operand.vmem [shape: bf16[128,128], index: 1, kind: input, shape index: {}]   ;;  %s329_s0 = inlined_call_operand.vmem [shape: bf16[40,128], index: 0, kind: input, shape index: {}]   ;;  %s330_s2 = inlined_call_operand.vmem [shape: f32[1,128], index: 2, kind: input, shape index: {}]   ;;  %s331_s3 = inlined_call_operand.vmem [shape: f32[40,128], index: 3, kind: output, shape index: {}]  }
   0x1   :  { %223 = vmatprep.subr.bf16.mxu1 %v252_v0  ;;  %v241_v1 = vld [vmem:[%s328_s1] sm:$0xff]   ;;  %195 = vmatprep.subr.bf16.mxu0 %v252_v0  ;;  %v242_v2 = vld [vmem:[%s328_s1 + $0x8] sm:$0xff]   ;;  %v243_v3 = vld [vmem:[%s328_s1 + $0x10] sm:$0xff]  }
   0x2   :  { %215 = vmatprep.mubr.msk.bf16.mxu1 %vm253_vm0, %v252_v0  ;;  %211 = vmatprep.mubr.msk.bf16.mxu0 %vm253_vm0, %v252_v0  ;;  %v244_v4 = vld [vmem:[%s328_s1 + $0x18] sm:$0xff]   ;;  %v245_v5 = vld [vmem:[%s328_s1 + $0x20] sm:$0xff]   ;;  %v246_v6 = vld [vmem:[%s328_s1 + $0x28] sm:$0xff]  }
   0x3   :  { %231 = vmatpush3.bf16.msra.mxu1 %v241_v1  ;;  %196 = vmatpush3.bf16.msra.mxu0 %v241_v1  ;;  %v247_v7 = vld [vmem:[%s328_s1 + $0x30] sm:$0xff]   ;;  %v248_v8 = vld [vmem:[%s328_s1 + $0x38] sm:$0xff]   ;;  %v249_v9 = vld [vmem:[%s329_s0 + $0x8] sm:$0xff]  }
   0x4   :  { %224 = vmatprep.subr.bf16.mxu1 %v252_v0  ;;  %197 = vmatprep.subr.bf16.mxu0 %v252_v0  ;;  %v250_v10 = vld [vmem:[%s329_s0] sm:$0xff]   ;;  %v251_v11 = vld [vmem:[%s329_s0 + $0x10] ss:$0 sps:$4 sm:$0xff]  }
   0x5   :  { %v172_v12 = vld [vmem:[%s330_s2] ss:$0 sm:$0xff] }
   0x7   :  { %232 = vmatpush3.bf16.msra.mxu1 %v242_v2  ;;  %198 = vmatpush3.bf16.msra.mxu0 %v242_v2 }
   0x8   :  { %225 = vmatprep.subr.bf16.mxu1 %v252_v0  ;;  %199 = vmatprep.subr.bf16.mxu0 %v252_v0 }
   0xb   :  { %233 = vmatpush3.bf16.msra.mxu1 %v243_v3  ;;  %200 = vmatpush3.bf16.msra.mxu0 %v243_v3 }
   0xc   :  { %226 = vmatprep.subr.bf16.mxu1 %v252_v0  ;;  %201 = vmatprep.subr.bf16.mxu0 %v252_v0 }
   0xf   :  { %234 = vmatpush3.bf16.msra.mxu1 %v244_v4  ;;  %202 = vmatpush3.bf16.msra.mxu0 %v244_v4 }
  0x10   :  { %227 = vmatprep.subr.bf16.mxu1 %v252_v0  ;;  %203 = vmatprep.subr.bf16.mxu0 %v252_v0 }
  0x13   :  { %235 = vmatpush3.bf16.msra.mxu1 %v245_v5  ;;  %204 = vmatpush3.bf16.msra.mxu0 %v245_v5 }
  0x14   :  { %228 = vmatprep.subr.bf16.mxu1 %v252_v0  ;;  %205 = vmatprep.subr.bf16.mxu0 %v252_v0 }
  0x17   :  { %236 = vmatpush3.bf16.msra.mxu1 %v246_v6  ;;  %206 = vmatpush3.bf16.msra.mxu0 %v246_v6 }
  0x18   :  { %229 = vmatprep.subr.bf16.mxu1 %v252_v0  ;;  %207 = vmatprep.subr.bf16.mxu0 %v252_v0 }
  0x1b   :  { %237 = vmatpush3.bf16.msra.mxu1 %v247_v7  ;;  %208 = vmatpush3.bf16.msra.mxu0 %v247_v7 }
  0x1c   :  { %230 = vmatprep.subr.bf16.mxu1 %v252_v0  ;;  %209 = vmatprep.subr.bf16.mxu0 %v252_v0 }
  0x1f   :  { %238 = vmatpush3.bf16.msra.mxu1 %v248_v8  ;;  %210 = vmatpush3.bf16.msra.mxu0 %v248_v8 }
  0x22   :  { %216 = vmatmul.mubr.bf16.vlgmr.msra.gmra.mrb[0].mxu1 %v249_v9  ;;  %212 = vmatmul.mubr.bf16.vlgmr.msra.gmra.mrb[0].mxu0 %v250_v10 }
  0x23   :  { %219 = vmatprep.mubr.msk.bf16.mxu1 %vm253_vm0, %v252_v0 }
  0x2a   :  { %220 = vmatmul.mubr.bf16.gmra.mrb[4].mxu1 %v251_v11 }
  0xf5   :  { %v149_v13 = vpop.f32.mrb[0].mxu1  ;;  %v141_v14 = vpop.f32.mrb[0].mxu0 }
  0xf6   :  { %v150_v15 = vadd.f32 %v172_v12, %v149_v13  ;;  %v217_v16 = vpop.f32.mrb[1].mxu1  ;;  %v142_v17 = vadd.f32 %v172_v12, %v141_v14  ;;  %v213_v18 = vpop.f32.mrb[1].mxu0 }
  0xf7   :  { %v152_v19 = vpop.f32.mrb[2].mxu1  ;;  %v144_v20 = vpop.f32.mrb[2].mxu0 }
  0xf8   :  { %165 = vst [vmem:[%s331_s3 + $0x10] sm:$0xff] %v150_v15  ;;  %v153_v21 = vadd.f32 %v172_v12, %v152_v19  ;;  %163 = vst [vmem:[%s331_s3] sm:$0xff] %v142_v17  ;;  %v218_v22 = vpop.f32.mrb[3].mxu1  ;;  %v145_v23 = vadd.f32 %v172_v12, %v144_v20  ;;  %v214_v24 = vpop.f32.mrb[3].mxu0 }
  0xfa   :  { %166 = vst [vmem:[%s331_s3 + $0x18] sm:$0xff] %v153_v21  ;;  %164 = vst [vmem:[%s331_s3 + $0x8] sm:$0xff] %v145_v23 }
  0xfd   :  { %v157_v25 = vpop.f32.mrb[4].mxu1 }
  0xfe   :  { %v158_v26 = vadd.f32 %v172_v12, %v157_v25  ;;  %v221_v27 = vpop.f32.mrb[5].mxu1 }
  0xff   :  { %v160_v28 = vpop.f32.mrb[6].mxu1 }
 0x100   :  { %167 = vst [vmem:[%s331_s3 + $0x20] sm:$0xff] %v158_v26  ;;  %v222_v29 = vpop.f32.mrb[7].mxu1 }

// kernel: volo_forward.75
= control target key start
LH: loop header
LB: loop body
LE: loop exit
PB: predicated region body
PF: predicated region fallthrough
CT: control target
= control target key end

     0   :  { %s216_s0 = inlined_call_operand.vmem [shape: f32[40,128], index: 0, kind: input, shape index: {}]   ;;  %s217_s1 = inlined_call_operand.vmem [shape: f32[1,128], index: 1, kind: input, shape index: {}]   ;;  %s218_s2 = inlined_call_operand.vmem [shape: f32[1,128], index: 2, kind: input, shape index: {}]   ;;  %s219_s3 = inlined_call_operand.vmem [shape: f32[40,128], index: 3, kind: output, shape index: {}]  }
   0x1   :  { %v153_v0 = vld [vmem:[%s216_s0 + $0x10] sm:$0xff]  ;;  %v158_v1 = vld [vmem:[%s216_s0] sm:$0xff]  ;;  %v165_v2 = vld [vmem:[%s216_s0 + $0x18] sm:$0xff] }
   0x2   :  { %23 = vadd.xlane.f32.xlu1 %v153_v0  ;;  %19 = vadd.xlane.f32.xlu0 %v158_v1  ;;  %v170_v3 = vld [vmem:[%s216_s0 + $0x8] sm:$0xff]  ;;  %v35_v4 = vmul.f32 %v158_v1, %v158_v1  ;;  %v179_v5 = vld [vmem:[%s216_s0 + $0x20] sm:$0xff]  ;;  %v37_v7 = vmul.f32 %v153_v0, %v153_v0  ;;  %v38_v8 = vmul.f32 %v165_v2, %v165_v2 }
   0x3   :  { %v36_v6 = vmul.f32 %v170_v3, %v170_v3  ;;  %v39_v9 = vmul.f32 %v179_v5, %v179_v5  ;;  %v118_v47 = vld [vmem:[%s217_s1] ss:$0 sm:$0xff] }
   0x4   :  { %v119_v49 = vld [vmem:[%s218_s2] ss:$0 sm:$0xff] }
   0x6   :  { %25 = vadd.xlane.f32.xlu1 %v165_v2  ;;  %21 = vadd.xlane.f32.xlu0 %v170_v3 }
   0xa   :  { %27 = vadd.xlane.f32.xlu0 %v179_v5  ;;  %40 = vadd.xlane.f32.xlu1 %v35_v4 }
   0xe   :  { %42 = vadd.xlane.f32.xlu0 %v36_v6  ;;  %44 = vadd.xlane.f32.xlu1 %v37_v7 }
  0x12   :  { %46 = vadd.xlane.f32.xlu0 %v38_v8  ;;  %48 = vadd.xlane.f32.xlu1 %v39_v9 }
  0x8f   :  { %v24_v10 = vpop.xlane.xlu1 %23  ;;  %v20_v11 = vpop.xlane.xlu0 %19 }
  0x90   :  { %v30_v14 = vmul.f32 0.015625, %v20_v11  ;;  %v32_v15 = vmul.f32 0.015625, %v24_v10 }
  0x92   :  { %v55_v18 = vmul.f32 %v30_v14, %v30_v14  ;;  %v57_v22 = vmul.f32 %v32_v15, %v32_v15  ;;  %v65_v45 = vsub.f32 %v158_v1, %v30_v14  ;;  %v67_v53 = vsub.f32 %v153_v0, %v32_v15 }
  0x93   :  { %v26_v12 = vpop.xlane.xlu1 %25  ;;  %v22_v13 = vpop.xlane.xlu0 %21 }
  0x94   :  { %v31_v19 = vmul.f32 0.015625, %v22_v13  ;;  %v33_v23 = vmul.f32 0.015625, %v26_v12 }
  0x96   :  { %v56_v27 = vmul.f32 %v31_v19, %v31_v19  ;;  %v58_v33 = vmul.f32 %v33_v23, %v33_v23  ;;  %v66_v50 = vsub.f32 %v170_v3, %v31_v19  ;;  %v68_v58 = vsub.f32 %v165_v2, %v33_v23 }
  0x97   :  { %v28_v16 = vpop.xlane.xlu0 %27  ;;  %v41_v17 = vpop.xlane.xlu1 %40 }
  0x98   :  { %v50_v20 = vmul.f32 0.015625, %v41_v17  ;;  %v34_v24 = vmul.f32 0.015625, %v28_v16 }
  0x9a   :  { %v60_v21 = vsub.f32 %v50_v20, %v55_v18  ;;  %v59_v34 = vmul.f32 %v34_v24, %v34_v24  ;;  %v69_v61 = vsub.f32 %v179_v5, %v34_v24 }
  0x9b   :  { %v43_v25 = vpop.xlane.xlu0 %42  ;;  %v45_v26 = vpop.xlane.xlu1 %44 }
  0x9c   :  { %v70_v28 = vadd.f32 1e-05, %v60_v21  ;;  %v51_v29 = vmul.f32 0.015625, %v43_v25  ;;  %v52_v30 = vmul.f32 0.015625, %v45_v26 }
  0x9e   :  { %120 = vrsqrt.f32 %v70_v28  ;;  %v61_v31 = vsub.f32 %v51_v29, %v56_v27  ;;  %v62_v32 = vsub.f32 %v52_v30, %v57_v22 }
  0x9f   :  { %v47_v35 = vpop.xlane.xlu0 %46  ;;  %v49_v36 = vpop.xlane.xlu1 %48 }
  0xa0   :  { %v71_v37 = vadd.f32 1e-05, %v61_v31  ;;  %v72_v38 = vadd.f32 1e-05, %v62_v32  ;;  %v53_v39 = vmul.f32 0.015625, %v47_v35  ;;  %v54_v40 = vmul.f32 0.015625, %v49_v36 }
  0xa2   :  { %122 = vrsqrt.f32 %v71_v37  ;;  %v63_v41 = vsub.f32 %v53_v39, %v58_v33  ;;  %v64_v42 = vsub.f32 %v54_v40, %v59_v34 }
  0xa3   :  { %124 = vrsqrt.f32 %v72_v38 }
  0xa4   :  { %v73_v43 = vadd.f32 1e-05, %v63_v41  ;;  %v74_v44 = vadd.f32 1e-05, %v64_v42 }
  0xa6   :  { %126 = vrsqrt.f32 %v73_v43 }
  0xa7   :  { %128 = vrsqrt.f32 %v74_v44 }
  0xa8   :  { %v121_v46 = vpop.eup %120 }
  0xa9   :  { %v80_v48 = vmul.f32 %v121_v46, %v65_v45 }
  0xab   :  { %v92_v51 = vmul.f32 %v118_v47, %v80_v48 }
  0xac   :  { %v123_v52 = vpop.eup %122 }
  0xad   :  { %v125_v54 = vpop.eup %124  ;;  %v104_v55 = vadd.f32 %v119_v49, %v92_v51  ;;  %v81_v56 = vmul.f32 %v123_v52, %v66_v50 }
  0xae   :  { %v82_v57 = vmul.f32 %v125_v54, %v67_v53 }
  0xaf   :  { %109 = vst [vmem:[%s219_s3] sm:$0xff] %v104_v55  ;;  %v93_v59 = vmul.f32 %v118_v47, %v81_v56 }
  0xb0   :  { %v127_v60 = vpop.eup %126  ;;  %v94_v62 = vmul.f32 %v118_v47, %v82_v57 }
  0xb1   :  { %v129_v63 = vpop.eup %128  ;;  %v105_v1 = vadd.f32 %v119_v49, %v93_v59  ;;  %v83_v3 = vmul.f32 %v127_v60, %v68_v58 }
  0xb2   :  { %v106_v4 = vadd.f32 %v119_v49, %v94_v62  ;;  %v84_v0 = vmul.f32 %v129_v63, %v69_v61 }
  0xb3   :  { %110 = vst [vmem:[%s219_s3 + $0x8] sm:$0xff] %v105_v1  ;;  %v95_v6 = vmul.f32 %v118_v47, %v83_v3 }
  0xb4   :  { %111 = vst [vmem:[%s219_s3 + $0x10] sm:$0xff] %v106_v4  ;;  %v96_v2 = vmul.f32 %v118_v47, %v84_v0 }
  0xb5   :  { %v107_v7 = vadd.f32 %v119_v49, %v95_v6 }
  0xb6   :  { %v108_v8 = vadd.f32 %v119_v49, %v96_v2 }
  0xb7   :  { %112 = vst [vmem:[%s219_s3 + $0x18] sm:$0xff] %v107_v7 }
  0xb8   :  { %113 = vst [vmem:[%s219_s3 + $0x20] sm:$0xff] %v108_v8 }

// kernel: volo_forward.77
= control target key start
LH: loop header
LB: loop body
LE: loop exit
PB: predicated region body
PF: predicated region fallthrough
CT: control target
= control target key end

     0   :  { %v180_v0 = vmov 0.0   ;;  %vm181_vm0 = vmmov 0   ;;  %s235_s1 = inlined_call_operand.vmem [shape: bf16[128,128], index: 1, kind: input, shape index: {}]   ;;  %s236_s0 = inlined_call_operand.vmem [shape: bf16[8,128], index: 0, kind: input, shape index: {}]   ;;  %s237_s2 = inlined_call_operand.vmem [shape: f32[1,128], index: 2, kind: input, shape index: {}]   ;;  %s238_s3 = inlined_call_operand.vmem [shape: f32[8,128], index: 3, kind: output, shape index: {}]  }
   0x1   :  { %150 = vmatprep.subr.bf16.mxu0 %v180_v0  ;;  %v172_v1 = vld [vmem:[%s235_s1] sm:$0xff]   ;;  %166 = vmatprep.mubr.msk.bf16.mxu0 %vm181_vm0, %v180_v0  ;;  %v173_v2 = vld [vmem:[%s235_s1 + $0x8] sm:$0xff]   ;;  %v174_v3 = vld [vmem:[%s235_s1 + $0x10] sm:$0xff]  }
   0x2   :  { %151 = vmatpush3.bf16.msra.mxu0 %v172_v1  ;;  %v175_v4 = vld [vmem:[%s235_s1 + $0x18] sm:$0xff]   ;;  %v176_v5 = vld [vmem:[%s235_s1 + $0x20] sm:$0xff]   ;;  %v177_v6 = vld [vmem:[%s235_s1 + $0x28] sm:$0xff]  }
   0x3   :  { %152 = vmatprep.subr.bf16.mxu0 %v180_v0  ;;  %v178_v7 = vld [vmem:[%s235_s1 + $0x30] sm:$0xff]   ;;  %v179_v8 = vld [vmem:[%s235_s1 + $0x38] sm:$0xff]   ;;  %v15_v9 = vld [vmem:[%s236_s0] sm:$0xf] }
   0x4   :  { %v132_v10 = vld [vmem:[%s237_s2] ss:$0 sm:$0xff] }
   0x6   :  { %153 = vmatpush3.bf16.msra.mxu0 %v173_v2 }
   0x7   :  { %154 = vmatprep.subr.bf16.mxu0 %v180_v0 }
   0xa   :  { %155 = vmatpush3.bf16.msra.mxu0 %v174_v3 }
   0xb   :  { %156 = vmatprep.subr.bf16.mxu0 %v180_v0 }
   0xe   :  { %157 = vmatpush3.bf16.msra.mxu0 %v175_v4 }
   0xf   :  { %158 = vmatprep.subr.bf16.mxu0 %v180_v0 }
  0x12   :  { %159 = vmatpush3.bf16.msra.mxu0 %v176_v5 }
  0x13   :  { %160 = vmatprep.subr.bf16.mxu0 %v180_v0 }
  0x16   :  { %161 = vmatpush3.bf16.msra.mxu0 %v177_v6 }
  0x17   :  { %162 = vmatprep.subr.bf16.mxu0 %v180_v0 }
  0x1a   :  { %163 = vmatpush3.bf16.msra.mxu0 %v178_v7 }
  0x1b   :  { %164 = vmatprep.subr.bf16.mxu0 %v180_v0 }
  0x1e   :  { %165 = vmatpush3.bf16.msra.mxu0 %v179_v8 }
  0x21   :  { %167 = vmatmul.mubr.bf16.vlgmr.msra.gmra.mrb[0].mxu0 %v15_v9 }
  0xf4   :  { %v121_v11 = vpop.f32.mrb[0].mxu0 }
  0xf5   :  { %v122_v12 = vadd.f32 %v132_v10, %v121_v11  ;;  %v168_v13 = vpop.f32.mrb[1].mxu0 }
  0xf6   :  { %v124_v14 = vpop.f32.mrb[2].mxu0 }
  0xf7   :  { %127 = vst [vmem:[%s238_s3] sm:$0xff] %v122_v12  ;;  %v169_v15 = vpop.f32.mrb[3].mxu0 }

// kernel: volo_forward.80
= control target key start
LH: loop header
LB: loop body
LE: loop exit
PB: predicated region body
PF: predicated region fallthrough
CT: control target
= control target key end

     0   :  { %v221_v1 = vmov 0.0   ;;  %vm222_vm0 = vmmov 0   ;;  %s292_s0 = inlined_call_operand.vmem [shape: f32[8,128], index: 0, kind: input, shape index: {}]   ;;  %s293_s3 = inlined_call_operand.vmem [shape: bf16[128,128], index: 3, kind: input, shape index: {}]   ;;  %s294_s1 = inlined_call_operand.vmem [shape: f32[1,128], index: 1, kind: input, shape index: {}]   ;;  %s295_s2 = inlined_call_operand.vmem [shape: f32[1,128], index: 2, kind: input, shape index: {}]   ;;  %s296_s4 = inlined_call_operand.vmem [shape: f32[1,128], index: 4, kind: input, shape index: {}]   ;;  %s297_s5 = inlined_call_operand.vmem [shape: f32[8,128], index: 5, kind: output, shape index: {}]  }
   0x1   :  { %v21_v0 = vld [vmem:[%s292_s0] sm:$0xff]  ;;  %189 = vmatprep.subr.bf16.mxu0 %v221_v1  ;;  %v212_v4 = vld [vmem:[%s293_s3 + $0x8] sm:$0xff]   ;;  %v213_v5 = vld [vmem:[%s293_s3 + $0x10] sm:$0xff]   ;;  %205 = vmatprep.mubr.msk.bf16.mxu0 %vm222_vm0, %v221_v1 }
   0x2   :  { %22 = vadd.xlane.f32.xlu0 %v21_v0  ;;  %v26_v2 = vmul.f32 %v21_v0, %v21_v0  ;;  %v211_v3 = vld [vmem:[%s293_s3] sm:$0xff]   ;;  %v214_v6 = vld [vmem:[%s293_s3 + $0x18] sm:$0xff]   ;;  %v216_v8 = vld [vmem:[%s293_s3 + $0x28] sm:$0xff]  }
   0x3   :  { %190 = vmatpush3.bf16.msra.mxu0 %v211_v3  ;;  %v215_v7 = vld [vmem:[%s293_s3 + $0x20] sm:$0xff]   ;;  %v217_v9 = vld [vmem:[%s293_s3 + $0x30] sm:$0xff]   ;;  %v218_v10 = vld [vmem:[%s293_s3 + $0x38] sm:$0xff]  }
   0x4   :  { %191 = vmatprep.subr.bf16.mxu0 %v221_v1  ;;  %v169_v20 = vld [vmem:[%s294_s1] ss:$0 sm:$0xff] }
   0x5   :  { %v170_v22 = vld [vmem:[%s295_s2] ss:$0 sm:$0xff] }
   0x6   :  { %27 = vadd.xlane.f32.xlu0 %v26_v2  ;;  %v171_v26 = vld [vmem:[%s296_s4] ss:$0 sm:$0xff] }
   0x7   :  { %192 = vmatpush3.bf16.msra.mxu0 %v212_v4 }
   0x8   :  { %193 = vmatprep.subr.bf16.mxu0 %v221_v1 }
   0xb   :  { %194 = vmatpush3.bf16.msra.mxu0 %v213_v5 }
   0xc   :  { %195 = vmatprep.subr.bf16.mxu0 %v221_v1 }
   0xf   :  { %196 = vmatpush3.bf16.msra.mxu0 %v214_v6 }
  0x10   :  { %197 = vmatprep.subr.bf16.mxu0 %v221_v1 }
  0x13   :  { %198 = vmatpush3.bf16.msra.mxu0 %v215_v7 }
  0x14   :  { %199 = vmatprep.subr.bf16.mxu0 %v221_v1 }
  0x17   :  { %200 = vmatpush3.bf16.msra.mxu0 %v216_v8 }
  0x18   :  { %201 = vmatprep.subr.bf16.mxu0 %v221_v1 }
  0x1b   :  { %202 = vmatpush3.bf16.msra.mxu0 %v217_v9 }
  0x1c   :  { %203 = vmatprep.subr.bf16.mxu0 %v221_v1 }
  0x1f   :  { %204 = vmatpush3.bf16.msra.mxu0 %v218_v10 }
  0x8f   :  { %v23_v11 = vpop.xlane.xlu0 %22 }
  0x90   :  { %v25_v12 = vmul.f32 0.015625, %v23_v11 }
  0x92   :  { %v30_v14 = vmul.f32 %v25_v12, %v25_v12  ;;  %v32_v18 = vsub.f32 %v21_v0, %v25_v12 }
  0x93   :  { %v28_v13 = vpop.xlane.xlu0 %27 }
  0x94   :  { %v29_v15 = vmul.f32 0.015625, %v28_v13 }
  0x96   :  { %v31_v16 = vsub.f32 %v29_v15, %v30_v14 }
  0x98   :  { %v33_v17 = vadd.f32 1e-05, %v31_v16 }
  0x9a   :  { %219 = vrsqrt.f32 %v33_v17 }
  0xa4   :  { %v220_v19 = vpop.eup %219 }
  0xa5   :  { %v35_v21 = vmul.f32 %v220_v19, %v32_v18 }
  0xa7   :  { %v43_v23 = vmul.f32 %v169_v20, %v35_v21 }
  0xa9   :  { %v51_v24 = vadd.f32 %v170_v22, %v43_v23 }
  0xab   :  { %v52_v25 = vpack.c.bf16 %v51_v24, %v51_v24 }
  0xad   :  { %206 = vmatmul.mubr.bf16.vlgmr.msra.gmra.mrb[0].mxu0 %v52_v25 }
 0x180   :  { %v158_v27 = vpop.f32.mrb[0].mxu0 }
 0x181   :  { %v159_v28 = vadd.f32 %v171_v26, %v158_v27  ;;  %v207_v29 = vpop.f32.mrb[1].mxu0 }
 0x182   :  { %v161_v30 = vpop.f32.mrb[2].mxu0 }
 0x183   :  { %164 = vst [vmem:[%s297_s5] sm:$0xff] %v159_v28  ;;  %v208_v31 = vpop.f32.mrb[3].mxu0 }

// kernel: volo_forward.79
= control target key start
LH: loop header
LB: loop body
LE: loop exit
PB: predicated region body
PF: predicated region fallthrough
CT: control target
= control target key end

     0   :  { %v185_v0 = vmov 0.0   ;;  %vm186_vm0 = vmmov 0   ;;  %s248_s1 = inlined_call_operand.vmem [shape: bf16[128,128], index: 1, kind: input, shape index: {}]   ;;  %s249_s0 = inlined_call_operand.vmem [shape: bf16[8,128], index: 0, kind: input, shape index: {}]   ;;  %s250_s2 = inlined_call_operand.vmem [shape: f32[1,128], index: 2, kind: input, shape index: {}]   ;;  %s251_s3 = inlined_call_operand.vmem [shape: f32[8,128], index: 3, kind: input, shape index: {}]   ;;  %s252_s4 = inlined_call_operand.vmem [shape: f32[8,128], index: 4, kind: output, shape index: {}]  }
   0x1   :  { %155 = vmatprep.subr.bf16.mxu0 %v185_v0  ;;  %v177_v1 = vld [vmem:[%s248_s1] sm:$0xff]   ;;  %171 = vmatprep.mubr.msk.bf16.mxu0 %vm186_vm0, %v185_v0  ;;  %v178_v2 = vld [vmem:[%s248_s1 + $0x8] sm:$0xff]   ;;  %v179_v3 = vld [vmem:[%s248_s1 + $0x10] sm:$0xff]  }
   0x2   :  { %156 = vmatpush3.bf16.msra.mxu0 %v177_v1  ;;  %v180_v4 = vld [vmem:[%s248_s1 + $0x18] sm:$0xff]   ;;  %v181_v5 = vld [vmem:[%s248_s1 + $0x20] sm:$0xff]   ;;  %v182_v6 = vld [vmem:[%s248_s1 + $0x28] sm:$0xff]  }
   0x3   :  { %157 = vmatprep.subr.bf16.mxu0 %v185_v0  ;;  %v183_v7 = vld [vmem:[%s248_s1 + $0x30] sm:$0xff]   ;;  %v184_v8 = vld [vmem:[%s248_s1 + $0x38] sm:$0xff]   ;;  %v18_v9 = vld [vmem:[%s249_s0] sm:$0xf] }
   0x4   :  { %v137_v10 = vld [vmem:[%s250_s2] ss:$0 sm:$0xff] }
   0x5   :  { %v130_v12 = vld [vmem:[%s251_s3] sm:$0xff] }
   0x6   :  { %158 = vmatpush3.bf16.msra.mxu0 %v178_v2 }
   0x7   :  { %159 = vmatprep.subr.bf16.mxu0 %v185_v0 }
   0xa   :  { %160 = vmatpush3.bf16.msra.mxu0 %v179_v3 }
   0xb   :  { %161 = vmatprep.subr.bf16.mxu0 %v185_v0 }
   0xe   :  { %162 = vmatpush3.bf16.msra.mxu0 %v180_v4 }
   0xf   :  { %163 = vmatprep.subr.bf16.mxu0 %v185_v0 }
  0x12   :  { %164 = vmatpush3.bf16.msra.mxu0 %v181_v5 }
  0x13   :  { %165 = vmatprep.subr.bf16.mxu0 %v185_v0 }
  0x16   :  { %166 = vmatpush3.bf16.msra.mxu0 %v182_v6 }
  0x17   :  { %167 = vmatprep.subr.bf16.mxu0 %v185_v0 }
  0x1a   :  { %168 = vmatpush3.bf16.msra.mxu0 %v183_v7 }
  0x1b   :  { %169 = vmatprep.subr.bf16.mxu0 %v185_v0 }
  0x1e   :  { %170 = vmatpush3.bf16.msra.mxu0 %v184_v8 }
  0x21   :  { %172 = vmatmul.mubr.bf16.vlgmr.msra.gmra.mrb[0].mxu0 %v18_v9 }
  0xf4   :  { %v124_v11 = vpop.f32.mrb[0].mxu0 }
  0xf5   :  { %v125_v13 = vadd.f32 %v137_v10, %v124_v11  ;;  %v173_v14 = vpop.f32.mrb[1].mxu0 }
  0xf6   :  { %v127_v15 = vpop.f32.mrb[2].mxu0 }
  0xf7   :  { %v131_v16 = vadd.f32 %v130_v12, %v125_v13  ;;  %v174_v17 = vpop.f32.mrb[3].mxu0 }
  0xf9   :  { %132 = vst [vmem:[%s252_s4] sm:$0xff] %v131_v16 }

// kernel: volo_forward.78
= control target key start
LH: loop header
LB: loop body
LE: loop exit
PB: predicated region body
PF: predicated region fallthrough
CT: control target
= control target key end

     0   :  { %vm55_vm0 = vcmask 130048   ;;  %v1381_v0 = vmov 0.0   ;;  %vm1382_vm1 = vmmov 0   ;;  %vm512_vm2 = vcmask 131072   ;;  %s1730_s1 = inlined_call_operand.vmem [shape: bf16[8,17,16], index: 1, kind: input, shape index: {}]   ;;  %s1731_s0 = inlined_call_operand.vmem [shape: bf16[8,1,16], index: 0, kind: input, shape index: {}]   ;;  %s1732_s2 = inlined_call_operand.vmem [shape: bf16[8,17,16], index: 2, kind: input, shape index: {}]   ;;  %s1733_s3 = inlined_call_operand.vmem [shape: f32[8,1,16], index: 3, kind: output, shape index: {}]  }
   0x1   :  { %1186 = vmatprep.subr.bf16.mxu0 %v1381_v0  ;;  %1194 = vmatprep.subr.bf16.mxu1 %v1381_v0  ;;  %v1317_v1 = vld [vmem:[%s1730_s1] sm:$0xff]   ;;  %v1318_v2 = vld [vmem:[%s1730_s1 + $0xc] sm:$0xff]   ;;  %v1319_v5 = vld [vmem:[%s1730_s1 + $0x8] ss:$0 sps:$4 sm:$0x11]   ;;  %vm646_vm3 = vcmask 1040384  }
   0x2   :  { %1190 = vmatprep.mubr.msk.bf16.mxu0 %vm1382_vm1, %v1381_v0  ;;  %1198 = vmatprep.mubr.msk.bf16.mxu1 %vm1382_vm1, %v1381_v0  ;;  %v60_v3 = vsel %vm55_vm0, %v1317_v1, 0  ;;  %v117_v4 = vsel %vm55_vm0, %v1318_v2, 0  ;;  %v1320_v6 = vld [vmem:[%s1730_s1 + $0x14] ss:$0 sps:$4 sm:$0x11]   ;;  %v63_v7 = vsel %vm55_vm0, %v1319_v5, 0 }
   0x3   :  { %1187 = vmatpush3.bf16.xpose.msra.mxu0 %v60_v3  ;;  %1195 = vmatpush3.bf16.xpose.msra.mxu1 %v117_v4  ;;  %v120_v8 = vsel %vm55_vm0, %v1320_v6, 0  ;;  %v1321_v9 = vld [vmem:[%s1730_s1 + $0x18] sm:$0xff]   ;;  %v1322_v10 = vld [vmem:[%s1730_s1 + $0x24] sm:$0xff]   ;;  %v15_v11 = vld [vmem:[%s1731_s0] sm:$0x1]  ;;  %vm642_vm4 = vcmask 138240  }
   0x4   :  { %1188 = vmatprep.subr.bf16.mxu0 %v1381_v0  ;;  %1196 = vmatprep.subr.bf16.mxu1 %v1381_v0  ;;  %v16_v12 = vld [vmem:[%s1731_s0 + $0x1] sm:$0x1]  ;;  %v174_v13 = vsel %vm55_vm0, %v1321_v9, 0  ;;  %v231_v14 = vsel %vm55_vm0, %v1322_v10, 0  ;;  %v1325_v19 = vld [vmem:[%s1730_s1 + $0x30] sm:$0xff]   ;;  %v1329_v29 = vld [vmem:[%s1730_s1 + $0x48] sm:$0xff]  }
   0x5   :  { %v1323_v15 = vld [vmem:[%s1730_s1 + $0x20] ss:$0 sps:$4 sm:$0x11]   ;;  %v1324_v16 = vld [vmem:[%s1730_s1 + $0x2c] ss:$0 sps:$4 sm:$0x11]  }
   0x6   :  { %v177_v17 = vsel %vm55_vm0, %v1323_v15, 0  ;;  %v234_v18 = vsel %vm55_vm0, %v1324_v16, 0  ;;  %v1326_v20 = vld [vmem:[%s1730_s1 + $0x3c] sm:$0xff]   ;;  %v288_v23 = vsel %vm55_vm0, %v1325_v19, 0  ;;  %v1330_v30 = vld [vmem:[%s1730_s1 + $0x54] sm:$0xff]   ;;  %v402_v33 = vsel %vm55_vm0, %v1329_v29, 0 }
   0x7   :  { %v17_v21 = vld [vmem:[%s1731_s0 + $0x2] sm:$0x1]  ;;  %v18_v22 = vld [vmem:[%s1731_s0 + $0x3] sm:$0x1]  ;;  %v345_v24 = vsel %vm55_vm0, %v1326_v20, 0  ;;  %v459_v34 = vsel %vm55_vm0, %v1330_v30, 0 }
   0x8   :  { %v1327_v25 = vld [vmem:[%s1730_s1 + $0x38] ss:$0 sps:$4 sm:$0x11]   ;;  %v1328_v26 = vld [vmem:[%s1730_s1 + $0x44] ss:$0 sps:$4 sm:$0x11]  }
   0x9   :  { %v291_v27 = vsel %vm55_vm0, %v1327_v25, 0  ;;  %v348_v28 = vsel %vm55_vm0, %v1328_v26, 0  ;;  %v19_v31 = vld [vmem:[%s1731_s0 + $0x4] sm:$0x1]  ;;  %v20_v32 = vld [vmem:[%s1731_s0 + $0x5] sm:$0x1] }
   0xa   :  { %v1331_v35 = vld [vmem:[%s1730_s1 + $0x50] ss:$0 sps:$4 sm:$0x11]   ;;  %v1332_v36 = vld [vmem:[%s1730_s1 + $0x5c] ss:$0 sps:$4 sm:$0x11]  }
   0xb   :  { %1189 = vmatpush3.bf16.xpose.msra.mxu0 %v63_v7  ;;  %1197 = vmatpush3.bf16.xpose.msra.mxu1 %v120_v8  ;;  %v405_v37 = vsel %vm55_vm0, %v1331_v35, 0  ;;  %v462_v38 = vsel %vm55_vm0, %v1332_v36, 0  ;;  %v21_v39 = vld [vmem:[%s1731_s0 + $0x6] sm:$0x1]  ;;  %v22_v40 = vld [vmem:[%s1731_s0 + $0x7] sm:$0x1] }
   0xc   :  { %1202 = vmatprep.subr.bf16.mxu0 %v1381_v0  ;;  %1210 = vmatprep.subr.bf16.mxu1 %v1381_v0  ;;  %vm1077_vm5 = vcmask 122880  }
  0x12   :  { %1191 = vmatmul.mubr.msk.bf16.vlgmr.msra.gmra.mrb[0].mxu0 %vm55_vm0, %v15_v11  ;;  %1199 = vmatmul.mubr.msk.bf16.vlgmr.msra.gmra.mrb[0].mxu1 %vm55_vm0, %v16_v12 }
  0x13   :  { %1203 = vmatpush3.bf16.xpose.msra.mxu0 %v174_v13  ;;  %1211 = vmatpush3.bf16.xpose.msra.mxu1 %v231_v14 }
  0x14   :  { %1204 = vmatprep.subr.bf16.mxu0 %v1381_v0  ;;  %1212 = vmatprep.subr.bf16.mxu1 %v1381_v0 }
  0x15   :  { %1206 = vmatprep.mubr.msk.bf16.mxu0 %vm1382_vm1, %v1381_v0  ;;  %1214 = vmatprep.mubr.msk.bf16.mxu1 %vm1382_vm1, %v1381_v0 }
  0x1b   :  { %1205 = vmatpush3.bf16.xpose.msra.mxu0 %v177_v17  ;;  %1213 = vmatpush3.bf16.xpose.msra.mxu1 %v234_v18 }
  0x1c   :  { %1218 = vmatprep.subr.bf16.mxu0 %v1381_v0  ;;  %1226 = vmatprep.subr.bf16.mxu1 %v1381_v0 }
  0x22   :  { %1207 = vmatmul.mubr.msk.bf16.vlgmr.msra.gmra.mrb[4].mxu0 %vm55_vm0, %v17_v21  ;;  %1215 = vmatmul.mubr.msk.bf16.vlgmr.msra.gmra.mrb[4].mxu1 %vm55_vm0, %v18_v22 }
  0x23   :  { %1219 = vmatpush3.bf16.xpose.msra.mxu0 %v288_v23  ;;  %1227 = vmatpush3.bf16.xpose.msra.mxu1 %v345_v24 }
  0x24   :  { %1220 = vmatprep.subr.bf16.mxu0 %v1381_v0  ;;  %1228 = vmatprep.subr.bf16.mxu1 %v1381_v0 }
  0x25   :  { %1222 = vmatprep.mubr.msk.bf16.mxu0 %vm1382_vm1, %v1381_v0  ;;  %1230 = vmatprep.mubr.msk.bf16.mxu1 %vm1382_vm1, %v1381_v0 }
  0x2b   :  { %1221 = vmatpush3.bf16.xpose.msra.mxu0 %v291_v27  ;;  %1229 = vmatpush3.bf16.xpose.msra.mxu1 %v348_v28 }
  0x2c   :  { %1234 = vmatprep.subr.bf16.mxu0 %v1381_v0  ;;  %1242 = vmatprep.subr.bf16.mxu1 %v1381_v0 }
  0x32   :  { %1223 = vmatmul.mubr.msk.bf16.vlgmr.msra.gmra.mrb[8].mxu0 %vm55_vm0, %v19_v31  ;;  %1231 = vmatmul.mubr.msk.bf16.vlgmr.msra.gmra.mrb[8].mxu1 %vm55_vm0, %v20_v32 }
  0x33   :  { %1235 = vmatpush3.bf16.xpose.msra.mxu0 %v402_v33  ;;  %1243 = vmatpush3.bf16.xpose.msra.mxu1 %v459_v34 }
  0x34   :  { %1236 = vmatprep.subr.bf16.mxu0 %v1381_v0  ;;  %1244 = vmatprep.subr.bf16.mxu1 %v1381_v0 }
  0x35   :  { %1238 = vmatprep.mubr.msk.bf16.mxu0 %vm1382_vm1, %v1381_v0  ;;  %1246 = vmatprep.mubr.msk.bf16.mxu1 %vm1382_vm1, %v1381_v0 }
  0x3b   :  { %1237 = vmatpush3.bf16.xpose.msra.mxu0 %v405_v37  ;;  %1245 = vmatpush3.bf16.xpose.msra.mxu1 %v462_v38 }
  0x3c   :  { %1250 = vmatprep.subr.bf16.mxu0 %v1381_v0  ;;  %1258 = vmatprep.subr.bf16.mxu1 %v1381_v0 }
  0x42   :  { %1239 = vmatmul.mubr.msk.bf16.vlgmr.msra.gmra.mrb[12].mxu0 %vm55_vm0, %v21_v39  ;;  %1247 = vmatmul.mubr.msk.bf16.vlgmr.msra.gmra.mrb[12].mxu1 %vm55_vm0, %v22_v40 }
  0x43   :  { %1254 = vmatprep.mubr.msk.bf16.mxu0 %vm1382_vm1, %v1381_v0  ;;  %1262 = vmatprep.mubr.msk.bf16.mxu1 %vm1382_vm1, %v1381_v0 }
  0xe5   :  { %v99_v41 = vpop.f32.mrb[0].mxu0  ;;  %v156_v43 = vpop.f32.mrb[0].mxu1 }
  0xe6   :  { %v504_v42 = vmul.f32 0.25, %v99_v41  ;;  %v1192_v44 = vpop.f32.mrb[1].mxu0  ;;  %v1200_v45 = vpop.f32.mrb[1].mxu1  ;;  %v505_v47 = vmul.f32 0.25, %v156_v43 }
  0xe7   :  { %v102_v46 = vpop.f32.mrb[2].mxu0  ;;  %v159_v48 = vpop.f32.mrb[2].mxu1 }
  0xe8   :  { %v1193_v49 = vpop.f32.mrb[3].mxu0  ;;  %v513_v50 = vsel %vm512_vm2, %v504_v42, -inf  ;;  %v1201_v51 = vpop.f32.mrb[3].mxu1  ;;  %v516_v52 = vsel %vm512_vm2, %v505_v47, -inf }
  0xe9   :  { %514 = vmax.xlane.f32.xlu0 %v513_v50 }
  0xed   :  { %517 = vmax.xlane.f32.xlu0 %v516_v52  ;;  %v1333_v52 = vld [vmem:[%s1732_s2] sm:$0xff]  }
  0xee   :  { %1251 = vmatpush3.bf16.msra.mxu0 %v1333_v52 }
  0xef   :  { %1252 = vmatprep.subr.bf16.mxu0 %v1381_v0 }
  0xf5   :  { %v213_v53 = vpop.f32.mrb[4].mxu0  ;;  %v270_v55 = vpop.f32.mrb[4].mxu1 }
  0xf6   :  { %v506_v54 = vmul.f32 0.25, %v213_v53  ;;  %v1208_v56 = vpop.f32.mrb[5].mxu0  ;;  %v1216_v57 = vpop.f32.mrb[5].mxu1  ;;  %v507_v59 = vmul.f32 0.25, %v270_v55 }
  0xf7   :  { %v216_v58 = vpop.f32.mrb[6].mxu0  ;;  %v273_v60 = vpop.f32.mrb[6].mxu1  ;;  %v1334_v53 = vld [vmem:[%s1732_s2 + $0x8] ss:$0 sps:$4 sm:$0x11]   ;;  %v1335_v57 = vld [vmem:[%s1732_s2 + $0xc] sm:$0xff]  }
  0xf8   :  { %v1209_v61 = vpop.f32.mrb[7].mxu0  ;;  %v519_v62 = vsel %vm512_vm2, %v506_v54, -inf  ;;  %v1217_v63 = vpop.f32.mrb[7].mxu1  ;;  %v522_v1 = vsel %vm512_vm2, %v507_v59, -inf  ;;  %1259 = vmatpush3.bf16.msra.mxu1 %v1335_v57 }
  0xf9   :  { %520 = vmax.xlane.f32.xlu1 %v519_v62  ;;  %v1336_v58 = vld [vmem:[%s1732_s2 + $0x14] ss:$0 sps:$4 sm:$0x11]   ;;  %1260 = vmatprep.subr.bf16.mxu1 %v1381_v0 }
  0xfd   :  { %523 = vmax.xlane.f32.xlu1 %v522_v1 }
 0x105   :  { %v327_v2 = vpop.f32.mrb[8].mxu0  ;;  %v384_v4 = vpop.f32.mrb[8].mxu1 }
 0x106   :  { %v508_v3 = vmul.f32 0.25, %v327_v2  ;;  %v1224_v5 = vpop.f32.mrb[9].mxu0  ;;  %v509_v6 = vmul.f32 0.25, %v384_v4  ;;  %v1232_v7 = vpop.f32.mrb[9].mxu1 }
 0x107   :  { %v330_v8 = vpop.f32.mrb[10].mxu0  ;;  %v387_v9 = vpop.f32.mrb[10].mxu1  ;;  %v1338_v7 = vld [vmem:[%s1732_s2 + $0x20] ss:$0 sps:$4 sm:$0x11]  }
 0x108   :  { %v1225_v10 = vpop.f32.mrb[11].mxu0  ;;  %v525_v11 = vsel %vm512_vm2, %v508_v3, -inf  ;;  %v1233_v12 = vpop.f32.mrb[11].mxu1  ;;  %v528_v13 = vsel %vm512_vm2, %v509_v6, -inf }
 0x109   :  { %526 = vmax.xlane.f32.xlu0 %v525_v11  ;;  %529 = vmax.xlane.f32.xlu1 %v528_v13  ;;  %v1340_v9 = vld [vmem:[%s1732_s2 + $0x2c] ss:$0 sps:$4 sm:$0x11]  }
 0x115   :  { %v441_v14 = vpop.f32.mrb[12].mxu0  ;;  %v498_v16 = vpop.f32.mrb[12].mxu1 }
 0x116   :  { %v1544_v15 = vmul.f32 0.25, %v441_v14  ;;  %v1240_v17 = vpop.f32.mrb[13].mxu0  ;;  %v1546_v18 = vmul.f32 0.25, %v498_v16  ;;  %v1248_v19 = vpop.f32.mrb[13].mxu1 }
 0x117   :  { %v444_v20 = vpop.f32.mrb[14].mxu0  ;;  %v501_v21 = vpop.f32.mrb[14].mxu1  ;;  %v1344_v16 = vld [vmem:[%s1732_s2 + $0x44] ss:$0 sps:$4 sm:$0x11]  }
 0x118   :  { %v1241_v22 = vpop.f32.mrb[15].mxu0  ;;  %v531_v23 = vsel %vm512_vm2, %v1544_v15, -inf  ;;  %v1249_v24 = vpop.f32.mrb[15].mxu1  ;;  %v534_v25 = vsel %vm512_vm2, %v1546_v18, -inf }
 0x119   :  { %532 = vmax.xlane.f32.xlu0 %v531_v23  ;;  %535 = vmax.xlane.f32.xlu1 %v534_v25  ;;  %v1625_v19 = vld [vmem:[%s1732_s2 + $0x50] ss:$0 sps:$4 sm:$0x11]   ;;  %v1630_v20 = vld [vmem:[%s1732_s2 + $0x5c] ss:$0 sps:$4 sm:$0x11]  }
 0x176   :  { %v515_v26 = vpop.xlane.xlu0 %514 }
 0x177   :  { %v537_v27 = vsub.f32 %v504_v42, %v515_v26 }
 0x179   :  { %v545_v28 = vmul.f32 1.442695, %v537_v27  ;;  %v1337_v27 = vld [vmem:[%s1732_s2 + $0x18] sm:$0xff]  }
 0x17a   :  { %v518_v29 = vpop.xlane.xlu0 %517 }
 0x17b   :  { %1349 = vpow2.f32 %v545_v28  ;;  %v538_v30 = vsub.f32 %v505_v47, %v518_v29 }
 0x17d   :  { %v547_v31 = vmul.f32 1.442695, %v538_v30 }
 0x17f   :  { %1351 = vpow2.f32 %v547_v31 }
 0x185   :  { %v1552_v32 = vpop.eup %1349 }
 0x186   :  { %v521_v33 = vpop.xlane.xlu1 %520  ;;  %v561_v34 = vsel %vm512_vm2, %v1552_v32, 0.0 }
 0x187   :  { %v539_v35 = vsub.f32 %v506_v54, %v521_v33  ;;  %562 = vadd.xlane.f32.xlu0 %v561_v34  ;;  %v1383_v54 = vmov 0   ;;  %v1339_v33 = vld [vmem:[%s1732_s2 + $0x24] sm:$0xff]  }
 0x188   :  { %v1575_v55 = vsel %vm646_vm3, 65535, %v1383_v54 }
 0x189   :  { %v1556_v36 = vpop.eup %1351  ;;  %v549_v37 = vmul.f32 1.442695, %v539_v35  ;;  %v650_v56 = vand.u32 %v1334_v53, %v1575_v55  ;;  %v760_v8 = vand.u32 %v1338_v7, %v1575_v55  ;;  %v815_v10 = vand.u32 %v1340_v9, %v1575_v55 }
 0x18a   :  { %v524_v38 = vpop.xlane.xlu1 %523  ;;  %v564_v39 = vsel %vm512_vm2, %v1556_v36, 0.0  ;;  %v980_v21 = vand.u32 %v1625_v19, %v1575_v55  ;;  %v1035_v22 = vand.u32 %v1630_v20, %v1575_v55 }
 0x18b   :  { %1353 = vpow2.f32 %v549_v37  ;;  %v540_v40 = vsub.f32 %v507_v59, %v524_v38  ;;  %565 = vadd.xlane.f32.xlu1 %v564_v39  ;;  %1253 = vmatpush3.bf16.msra.mxu0 %v650_v56  ;;  %v705_v59 = vand.u32 %v1336_v58, %v1575_v55  ;;  %v1341_v37 = vld [vmem:[%s1732_s2 + $0x30] sm:$0xff]  }
 0x18c   :  { %1266 = vmatprep.subr.bf16.mxu0 %v1381_v0 }
 0x18d   :  { %v551_v41 = vmul.f32 1.442695, %v540_v40  ;;  %1261 = vmatpush3.bf16.msra.mxu1 %v705_v59 }
 0x18e   :  { %1274 = vmatprep.subr.bf16.mxu1 %v1381_v0 }
 0x18f   :  { %1355 = vpow2.f32 %v551_v41 }
 0x195   :  { %v1560_v42 = vpop.eup %1353 }
 0x196   :  { %v527_v43 = vpop.xlane.xlu0 %526  ;;  %v567_v44 = vsel %vm512_vm2, %v1560_v42, 0.0  ;;  %v530_v45 = vpop.xlane.xlu1 %529 }
 0x197   :  { %v541_v46 = vsub.f32 %v508_v3, %v527_v43  ;;  %568 = vadd.xlane.f32.xlu0 %v567_v44  ;;  %v542_v47 = vsub.f32 %v509_v6, %v530_v45  ;;  %v1342_v44 = vld [vmem:[%s1732_s2 + $0x3c] sm:$0xff]  }
 0x199   :  { %v1564_v48 = vpop.eup %1355  ;;  %v553_v49 = vmul.f32 1.442695, %v541_v46  ;;  %v555_v50 = vmul.f32 1.442695, %v542_v47 }
 0x19a   :  { %v570_v51 = vsel %vm512_vm2, %v1564_v48, 0.0 }
 0x19b   :  { %1357 = vpow2.f32 %v553_v49  ;;  %571 = vadd.xlane.f32.xlu1 %v570_v51  ;;  %v1345_v49 = vld [vmem:[%s1732_s2 + $0x48] sm:$0xff]   ;;  %v1346_v51 = vld [vmem:[%s1732_s2 + $0x54] sm:$0xff]  }
 0x19c   :  { %1359 = vpow2.f32 %v555_v50 }
 0x1a5   :  { %v1587_v60 = vpop.eup %1357 }
 0x1a6   :  { %v1589_v61 = vpop.eup %1359  ;;  %v533_v62 = vpop.xlane.xlu0 %532  ;;  %v573_v63 = vsel %vm512_vm2, %v1587_v60, 0.0 }
 0x1a7   :  { %v536_v1 = vpop.xlane.xlu1 %535  ;;  %v543_v2 = vsub.f32 %v1544_v15, %v533_v62  ;;  %v576_v3 = vsel %vm512_vm2, %v1589_v61, 0.0  ;;  %574 = vadd.xlane.f32.xlu0 %v573_v63  ;;  %v1343_v15 = vld [vmem:[%s1732_s2 + $0x38] ss:$0 sps:$4 sm:$0x11]  }
 0x1a8   :  { %v544_v4 = vsub.f32 %v1546_v18, %v536_v1  ;;  %577 = vadd.xlane.f32.xlu1 %v576_v3  ;;  %v870_v17 = vand.u32 %v1343_v15, %v1575_v55  ;;  %v925_v18 = vand.u32 %v1344_v16, %v1575_v55 }
 0x1a9   :  { %v557_v5 = vmul.f32 1.442695, %v543_v2 }
 0x1aa   :  { %v559_v6 = vmul.f32 1.442695, %v544_v4 }
 0x1ab   :  { %1361 = vpow2.f32 %v557_v5 }
 0x1ac   :  { %1363 = vpow2.f32 %v559_v6 }
 0x1b5   :  { %v1606_v11 = vpop.eup %1361 }
 0x1b6   :  { %v1608_v12 = vpop.eup %1363  ;;  %v579_v13 = vsel %vm512_vm2, %v1606_v11, 0.0 }
 0x1b7   :  { %v582_v14 = vsel %vm512_vm2, %v1608_v12, 0.0  ;;  %580 = vadd.xlane.f32.xlu0 %v579_v13 }
 0x1b8   :  { %583 = vadd.xlane.f32.xlu1 %v582_v14 }
 0x214   :  { %v563_v23 = vpop.xlane.xlu0 %562 }
 0x215   :  { %1365 = vrcp.f32 %v563_v23 }
 0x218   :  { %v566_v24 = vpop.xlane.xlu1 %565 }
 0x219   :  { %1367 = vrcp.f32 %v566_v24 }
 0x21f   :  { %v1366_v25 = vpop.eup %1365 }
 0x220   :  { %v593_v26 = vmul.f32 %v1366_v25, %v1552_v32 }
 0x222   :  { %v601_v28 = vpack.c.bf16 %v593_v26, %v593_v26 }
 0x223   :  { %v1368_v29 = vpop.eup %1367 }
 0x224   :  { %v594_v30 = vmul.f32 %v1368_v29, %v1556_v36  ;;  %1255 = vmatmul.mubr.msk.bf16.vlgmr.msra.gmra.mrb[16].mxu0 %vm642_vm4, %v601_v28  ;;  %v569_v31 = vpop.xlane.xlu0 %568 }
 0x225   :  { %1369 = vrcp.f32 %v569_v31  ;;  %1267 = vmatpush3.bf16.msra.mxu0 %v1337_v27  ;;  %1270 = vmatprep.mubr.msk.bf16.mxu0 %vm1382_vm1, %v1381_v0 }
 0x226   :  { %v602_v32 = vpack.c.bf16 %v594_v30, %v594_v30  ;;  %1268 = vmatprep.subr.bf16.mxu0 %v1381_v0 }
 0x228   :  { %1263 = vmatmul.mubr.msk.bf16.vlgmr.msra.gmra.mrb[16].mxu1 %vm642_vm4, %v602_v32  ;;  %v572_v34 = vpop.xlane.xlu1 %571 }
 0x229   :  { %1371 = vrcp.f32 %v572_v34  ;;  %1269 = vmatpush3.bf16.msra.mxu0 %v760_v8  ;;  %1275 = vmatpush3.bf16.msra.mxu1 %v1339_v33 }
 0x22a   :  { %1276 = vmatprep.subr.bf16.mxu1 %v1381_v0  ;;  %1278 = vmatprep.mubr.msk.bf16.mxu1 %vm1382_vm1, %v1381_v0 }
 0x22b   :  { %1282 = vmatprep.subr.bf16.mxu0 %v1381_v0 }
 0x22d   :  { %1277 = vmatpush3.bf16.msra.mxu1 %v815_v10 }
 0x22e   :  { %1290 = vmatprep.subr.bf16.mxu1 %v1381_v0 }
 0x22f   :  { %v1370_v35 = vpop.eup %1369 }
 0x230   :  { %v595_v36 = vmul.f32 %v1370_v35, %v1560_v42 }
 0x232   :  { %v603_v38 = vpack.c.bf16 %v595_v36, %v595_v36 }
 0x233   :  { %v1372_v39 = vpop.eup %1371 }
 0x234   :  { %v596_v40 = vmul.f32 %v1372_v39, %v1564_v48  ;;  %1271 = vmatmul.mubr.msk.bf16.vlgmr.msra.gmra.mrb[20].mxu0 %vm642_vm4, %v603_v38  ;;  %v575_v41 = vpop.xlane.xlu0 %574 }
 0x235   :  { %v578_v43 = vpop.xlane.xlu1 %577  ;;  %1373 = vrcp.f32 %v575_v41  ;;  %1283 = vmatpush3.bf16.msra.mxu0 %v1341_v37  ;;  %1286 = vmatprep.mubr.msk.bf16.mxu0 %vm1382_vm1, %v1381_v0 }
 0x236   :  { %1375 = vrcp.f32 %v578_v43  ;;  %v604_v42 = vpack.c.bf16 %v596_v40, %v596_v40  ;;  %1284 = vmatprep.subr.bf16.mxu0 %v1381_v0 }
 0x238   :  { %1279 = vmatmul.mubr.msk.bf16.vlgmr.msra.gmra.mrb[20].mxu1 %vm642_vm4, %v604_v42 }
 0x239   :  { %1291 = vmatpush3.bf16.msra.mxu1 %v1342_v44  ;;  %1285 = vmatpush3.bf16.msra.mxu0 %v870_v17 }
 0x23a   :  { %1292 = vmatprep.subr.bf16.mxu1 %v1381_v0  ;;  %1294 = vmatprep.mubr.msk.bf16.mxu1 %vm1382_vm1, %v1381_v0 }
 0x23b   :  { %1298 = vmatprep.subr.bf16.mxu0 %v1381_v0 }
 0x23d   :  { %1293 = vmatpush3.bf16.msra.mxu1 %v925_v18 }
 0x23e   :  { %1306 = vmatprep.subr.bf16.mxu1 %v1381_v0 }
 0x23f   :  { %v1374_v45 = vpop.eup %1373 }
 0x240   :  { %v1376_v46 = vpop.eup %1375  ;;  %v597_v47 = vmul.f32 %v1374_v45, %v1587_v60 }
 0x241   :  { %v598_v48 = vmul.f32 %v1376_v46, %v1589_v61 }
 0x242   :  { %v605_v50 = vpack.c.bf16 %v597_v47, %v597_v47 }
 0x243   :  { %v606_v52 = vpack.c.bf16 %v598_v48, %v598_v48 }
 0x244   :  { %1287 = vmatmul.mubr.msk.bf16.vlgmr.msra.gmra.mrb[24].mxu0 %vm642_vm4, %v605_v50  ;;  %v581_v53 = vpop.xlane.xlu0 %580 }
 0x245   :  { %1295 = vmatmul.mubr.msk.bf16.vlgmr.msra.gmra.mrb[24].mxu1 %vm642_vm4, %v606_v52  ;;  %v584_v54 = vpop.xlane.xlu1 %583  ;;  %1377 = vrcp.f32 %v581_v53  ;;  %1299 = vmatpush3.bf16.msra.mxu0 %v1345_v49 }
 0x246   :  { %1379 = vrcp.f32 %v584_v54  ;;  %1307 = vmatpush3.bf16.msra.mxu1 %v1346_v51  ;;  %1300 = vmatprep.subr.bf16.mxu0 %v1381_v0 }
 0x247   :  { %1308 = vmatprep.subr.bf16.mxu1 %v1381_v0  ;;  %1302 = vmatprep.mubr.msk.bf16.mxu0 %vm1382_vm1, %v1381_v0 }
 0x248   :  { %1310 = vmatprep.mubr.msk.bf16.mxu1 %vm1382_vm1, %v1381_v0 }
 0x249   :  { %1301 = vmatpush3.bf16.msra.mxu0 %v980_v21 }
 0x24a   :  { %1309 = vmatpush3.bf16.msra.mxu1 %v1035_v22 }
 0x24f   :  { %v1378_v56 = vpop.eup %1377 }
 0x250   :  { %v1380_v57 = vpop.eup %1379  ;;  %v599_v58 = vmul.f32 %v1378_v56, %v1606_v11 }
 0x251   :  { %v600_v59 = vmul.f32 %v1380_v57, %v1608_v12 }
 0x252   :  { %v607_v60 = vpack.c.bf16 %v599_v58, %v599_v58 }
 0x253   :  { %v608_v61 = vpack.c.bf16 %v600_v59, %v600_v59 }
 0x254   :  { %1303 = vmatmul.mubr.msk.bf16.vlgmr.msra.gmra.mrb[28].mxu0 %vm642_vm4, %v607_v60 }
 0x255   :  { %1311 = vmatmul.mubr.msk.bf16.vlgmr.msra.gmra.mrb[28].mxu1 %vm642_vm4, %v608_v61 }
 0x2f7   :  { %v686_v0 = vpop.f32.mrb[16].mxu0 }
 0x2f8   :  { %1078 = vst.msk [vmem:[%s1733_s3] sm:$0x1] %vm1077_vm5, %v686_v0  ;;  %v1256_v55 = vpop.f32.mrb[17].mxu0 }
 0x2f9   :  { %v689_v62 = vpop.f32.mrb[18].mxu0 }
 0x2fa   :  { %v1257_v63 = vpop.f32.mrb[19].mxu0 }
 0x2fb   :  { %v741_v1 = vpop.f32.mrb[16].mxu1 }
 0x2fc   :  { %1079 = vst.msk [vmem:[%s1733_s3 + $0x1] sm:$0x1] %vm1077_vm5, %v741_v1  ;;  %v1264_v2 = vpop.f32.mrb[17].mxu1 }
 0x2fd   :  { %v744_v3 = vpop.f32.mrb[18].mxu1 }
 0x2fe   :  { %v1265_v4 = vpop.f32.mrb[19].mxu1 }
 0x307   :  { %v796_v5 = vpop.f32.mrb[20].mxu0 }
 0x308   :  { %1080 = vst.msk [vmem:[%s1733_s3 + $0x2] sm:$0x1] %vm1077_vm5, %v796_v5  ;;  %v1272_v6 = vpop.f32.mrb[21].mxu0 }
 0x309   :  { %v799_v7 = vpop.f32.mrb[22].mxu0 }
 0x30a   :  { %v1273_v8 = vpop.f32.mrb[23].mxu0 }
 0x30b   :  { %v851_v9 = vpop.f32.mrb[20].mxu1 }
 0x30c   :  { %1081 = vst.msk [vmem:[%s1733_s3 + $0x3] sm:$0x1] %vm1077_vm5, %v851_v9  ;;  %v1280_v10 = vpop.f32.mrb[21].mxu1 }
 0x30d   :  { %v854_v11 = vpop.f32.mrb[22].mxu1 }
 0x30e   :  { %v1281_v12 = vpop.f32.mrb[23].mxu1 }
 0x317   :  { %v906_v13 = vpop.f32.mrb[24].mxu0 }
 0x318   :  { %1082 = vst.msk [vmem:[%s1733_s3 + $0x4] sm:$0x1] %vm1077_vm5, %v906_v13  ;;  %v961_v14 = vpop.f32.mrb[24].mxu1  ;;  %v1288_v15 = vpop.f32.mrb[25].mxu0 }
 0x319   :  { %1083 = vst.msk [vmem:[%s1733_s3 + $0x5] sm:$0x1] %vm1077_vm5, %v961_v14  ;;  %v1296_v16 = vpop.f32.mrb[25].mxu1  ;;  %v909_v17 = vpop.f32.mrb[26].mxu0 }
 0x31a   :  { %v964_v18 = vpop.f32.mrb[26].mxu1  ;;  %v1289_v19 = vpop.f32.mrb[27].mxu0 }
 0x31b   :  { %v1297_v20 = vpop.f32.mrb[27].mxu1 }
 0x327   :  { %v1016_v21 = vpop.f32.mrb[28].mxu0 }
 0x328   :  { %1084 = vst.msk [vmem:[%s1733_s3 + $0x6] sm:$0x1] %vm1077_vm5, %v1016_v21  ;;  %v1071_v22 = vpop.f32.mrb[28].mxu1  ;;  %v1304_v23 = vpop.f32.mrb[29].mxu0 }
 0x329   :  { %1085 = vst.msk [vmem:[%s1733_s3 + $0x7] sm:$0x1] %vm1077_vm5, %v1071_v22  ;;  %v1312_v24 = vpop.f32.mrb[29].mxu1  ;;  %v1019_v25 = vpop.f32.mrb[30].mxu0 }
 0x32a   :  { %v1074_v26 = vpop.f32.mrb[30].mxu1  ;;  %v1305_v27 = vpop.f32.mrb[31].mxu0 }
 0x32b   :  { %v1313_v28 = vpop.f32.mrb[31].mxu1 }

</bundles_post_ra>
